<compile_context>
chip_gen: v5e
topology: v5e:2x2
jax: 0.10.0
libtpu: 0.0.40
codegen_flags: <defaults>
</compile_context>

<pallas_src>
import functools

import numpy as np

import jax
import jax.numpy as jnp
from jax.experimental import pallas as pl
from jax.experimental.pallas import tpu as pltpu

nc = 3
ndf = 1
nz = 512

_VMEM_LIMIT = 32 * 1024 * 1024  # conservative scoped-VMEM cap; safe on v5e/v6e/v7x


# ----------------------------------------------------------------------------
# Kernel A: first conv (nc -> ndf, k=4, s=2, p=1) + LeakyReLU(0.2).
# Fused im2col: the 16 taps are accumulated in-kernel from a parity-split padded
# input.  Grid over blocks of images ("parallel"), taps read as SMEM scalars.
# ----------------------------------------------------------------------------
def _conv1_kernel(w_ref, x_ref, o_ref, *, cin, cout, nb, ho, wo, slope):
    # w_ref: SMEM (cout*16*cin,), w_ref[(co*16 + ki*4 + kj)*cin + ci] = w[co,ci,ki,kj]
    # x_ref: (2, 2, cin, nb, ho+1, wo+1); x_ref[p,q,ci,b,i,j] = xpad[b,ci,2i+p,2j+q]
    # o_ref: (nb, cout, ho, wo)
    for co in range(cout):
        # 4 independent accumulator chains (one per ki) -> no single serial FMA chain.
        accs = [jnp.zeros((nb, ho, wo), jnp.float32) for _ in range(4)]
        for ki in range(4):
            p, a = ki % 2, ki // 2
            for kj in range(4):
                q, c = kj % 2, kj // 2
                for ci in range(cin):
                    wv = w_ref[(co * 16 + ki * 4 + kj) * cin + ci]       # SMEM scalar
                    win = x_ref[p, q, ci, :, a:a + ho, c:c + wo]         # (nb, ho, wo)
                    accs[ki] = accs[ki] + wv * win                       # scalar-bcast FMA (VPU)
        # TODO(synk): the a/c=1 window slices are (8,128)-unaligned; they could be
        # generated with pltpu.roll of a once-loaded plane to move the copies onto
        # the otherwise idle XLU.
        acc = (accs[0] + accs[1]) + (accs[2] + accs[3])
        acc = jnp.where(acc >= 0.0, acc, slope * acc)                    # LeakyReLU(0.2)
        o_ref[:, co, :, :] = acc


def conv1_leaky(x_nchw, w1_flat, *, cout, slope=0.2):
    B, cin, H, W = x_nchw.shape
    ho, wo = H // 2, W // 2
    hp2, wp2 = ho + 1, wo + 1

    # Pad + parity split straight from NCHW (pure layout glue, no 4x duplication).
    xp = jnp.pad(x_nchw, ((0, 0), (0, 0), (1, 1), (1, 1)))               # (B,cin,H+2,W+2)
    xpar = xp.reshape(B, cin, hp2, 2, wp2, 2).transpose(3, 5, 1, 0, 2, 4)
    # xpar: (2, 2, cin, B, hp2, wp2), xpar[p,q,ci,b,i,j] = xpad[b,ci,2i+p,2j+q]

    nb = 8 if (B % 8 == 0) else B                                        # images per grid step
    kern = functools.partial(_conv1_kernel, cin=cin, cout=cout, nb=nb,
                             ho=ho, wo=wo, slope=slope)
    y = pl.pallas_call(
        kern,
        out_shape=jax.ShapeDtypeStruct((B, cout, ho, wo), jnp.float32),
        grid=(B // nb,),
        in_specs=[
            pl.BlockSpec(memory_space=pltpu.MemorySpace.SMEM),           # flat taps in SMEM
            pl.BlockSpec((2, 2, cin, nb, hp2, wp2), lambda b: (0, 0, 0, b, 0, 0)),
        ],
        out_specs=pl.BlockSpec((nb, cout, ho, wo), lambda b: (b, 0, 0, 0)),
        compiler_params=pltpu.CompilerParams(
            dimension_semantics=("parallel",),
            vmem_limit_bytes=_VMEM_LIMIT,
        ),
    )(w1_flat, xpar)
    # Free row-major reshape -> lane-dense (B, Cout*Ho*Wo), exactly what the tail wants.
    return y.reshape(B, cout * ho * wo)


# ----------------------------------------------------------------------------
# Kernel B: layers 2-5 fused in a single pallas_call (whole batch in one block so
# the BatchNorm batch statistics are exact).  Every conv is an exact dense matmul
# against its unrolled weight matrix; BN stats/broadcast use per-channel selector
# matrices S / S^T so everything stays lane-dense (B, C*H*W).
# ----------------------------------------------------------------------------
def _tail_kernel(x_ref,
                 w2_ref, w3_ref, w4_ref, w5_ref,
                 s2_ref, st2_ref, s3_ref, st3_ref, s4_ref, st4_ref,
                 g2_ref, b2_ref, g3_ref, b3_ref, g4_ref, b4_ref,
                 o_ref, *, eps, slope):
    def dot(a, b):
        return jnp.dot(a, b, preferred_element_type=jnp.float32)

    def bn_leaky(y, s_ref, st_ref, g_ref, b_ref):
        Bn, CM = y.shape
        C = s_ref.shape[1]
        inv = 1.0 / float(Bn * (CM // C))
        S = s_ref[...]                                   # (C*M, C) channel selector
        St = st_ref[...]                                 # (C, C*M)
        mean_c = dot(jnp.sum(y, axis=0, keepdims=True), S) * inv           # (1, C)
        d = y - dot(mean_c, St)                                            # per-channel bcast
        var_c = dot(jnp.sum(d * d, axis=0, keepdims=True), S) * inv        # biased variance
        scale_c = g_ref[...] * jax.lax.rsqrt(var_c + eps)                  # (1, C)
        shift_c = b_ref[...] - mean_c * scale_c
        yn = y * dot(scale_c, St) + dot(shift_c, St)
        return jnp.where(yn >= 0.0, yn, slope * yn)                        # LeakyReLU(0.2)

    y = dot(x_ref[...], w2_ref[...])                     # conv2 (unrolled): (B, 2*16*16)
    y = bn_leaky(y, s2_ref, st2_ref, g2_ref, b2_ref)
    y = dot(y, w3_ref[...])                              # conv3: (B, 4*8*8)
    y = bn_leaky(y, s3_ref, st3_ref, g3_ref, b3_ref)
    y = dot(y, w4_ref[...])                              # conv4: (B, 8*4*4)
    y = bn_leaky(y, s4_ref, st4_ref, g4_ref, b4_ref)
    o_ref[...] = dot(y, w5_ref[...])                     # conv5 (4x4, s1, p0): (B, nz)
    # TODO(synk): w5 (and the other unrolled weights) could be stored bf16 to halve
    # the weight DMA; kept f32 to preserve exact conv numerics.


def tail_fused(x1, tail_params, *, eps=1e-5, slope=0.2):
    B = x1.shape[0]
    w5 = tail_params[3]
    kern = functools.partial(_tail_kernel, eps=eps, slope=slope)
    return pl.pallas_call(
        kern,
        out_shape=jax.ShapeDtypeStruct((B, w5.shape[1]), jnp.float32),
        compiler_params=pltpu.CompilerParams(vmem_limit_bytes=_VMEM_LIMIT),
    )(x1, *tail_params)


# ----------------------------------------------------------------------------
# Encoder forward: input glue (pad + parity split) -> 2 pallas_calls -> reshape.
# ----------------------------------------------------------------------------
def encoder_forward(x_nchw, params):
    B = x_nchw.shape[0]
    x1 = conv1_leaky(x_nchw, params["w1"], cout=ndf)     # (B, ndf*32*32), lane-dense
    y = tail_fused(x1, params["tail"])                   # (B, nz)
    return y.reshape(B, nz, 1, 1)


# ----------------------------------------------------------------------------
# Init-time weight re-layout (done once, exact).
# ----------------------------------------------------------------------------
def _unroll_conv_weight(w_np, H, W, stride, pad):
    """Exact dense matrix of the conv: out_flat = x_flat @ M, NCHW flatten order.

    w_np: (Co, Ci, kh, kw) -> M: (Ci*H*W, Co*Ho*Wo)."""
    Co, Ci, kh, kw = w_np.shape
    Ho = (H + 2 * pad - kh) // stride + 1
    Wo = (W + 2 * pad - kw) // stride + 1
    M = np.zeros((Ci * H * W, Co * Ho * Wo), np.float32)
    oi = np.arange(Ho)[:, None]
    oj = np.arange(Wo)[None, :]
    ci_idx = np.arange(Ci)
    co_idx = np.arange(Co)
    for ki in range(kh):
        ii = stride * oi + ki - pad                                  # (Ho, 1)
        for kj in range(kw):
            ij = stride * oj + kj - pad                              # (1, Wo)
            valid = (ii >= 0) & (ii < H) & (ij >= 0) & (ij < W)      # (Ho, Wo)
            in_sp = (ii * W + ij)[valid]                             # (Nv,)
            out_sp = (oi * Wo + oj)[valid]                           # (Nv,)
            rows = ci_idx[:, None] * (H * W) + in_sp[None, :]        # (Ci, Nv)
            cols = co_idx[:, None] * (Ho * Wo) + out_sp[None, :]     # (Co, Nv)
            vals = np.asarray(w_np[:, :, ki, kj]).T                  # (Ci, Co)
            M[rows[:, None, :], cols[None, :, :]] = vals[:, :, None]
    return M


def _bn_selector(C, M):
    S = np.kron(np.eye(C, dtype=np.float32), np.ones((M, 1), np.float32))  # (C*M, C)
    return S, np.ascontiguousarray(S.T)


def init_params(key):
    channel_pairs = [
        (nc, ndf),
        (ndf, ndf * 2),
        (ndf * 2, ndf * 4),
        (ndf * 4, ndf * 8),
        (ndf * 8, nz),
    ]
    raw = []
    for (cin, cout) in channel_pairs:
        key, wk = jax.random.split(key)
        raw.append(jax.random.normal(wk, (cout, cin, 4, 4), jnp.float32) * 0.02)  # DCGAN init

    params = {}
    # Layer 1 taps, flat SMEM layout: index ((co*4 + ki)*4 + kj)*cin + ci.
    params["w1"] = raw[0].transpose(0, 2, 3, 1).reshape(-1)

    # Layers 2-5: exact unrolled dense weights (weight re-layout only; 64x64 input).
    spatial = [(32, 32, 2, 1), (16, 16, 2, 1), (8, 8, 2, 1), (4, 4, 1, 0)]
    unrolled = []
    for w, (H, W, s, p) in zip(raw[1:], spatial):
        unrolled.append(jnp.asarray(_unroll_conv_weight(np.asarray(w), H, W, s, p)))
    w2, w3, w4, w5 = unrolled

    # BatchNorm channel selectors and gamma/beta at their PyTorch init values.
    s2, st2 = map(jnp.asarray, _bn_selector(ndf * 2, 16 * 16))
    s3, st3 = map(jnp.asarray, _bn_selector(ndf * 4, 8 * 8))
    s4, st4 = map(jnp.asarray, _bn_selector(ndf * 8, 4 * 4))
    g2, b2 = jnp.ones((1, ndf * 2), jnp.float32), jnp.zeros((1, ndf * 2), jnp.float32)
    g3, b3 = jnp.ones((1, ndf * 4), jnp.float32), jnp.zeros((1, ndf * 4), jnp.float32)
    g4, b4 = jnp.ones((1, ndf * 8), jnp.float32), jnp.zeros((1, ndf * 8), jnp.float32)

    params["tail"] = (w2, w3, w4, w5, s2, st2, s3, st3, s4, st4,
                      g2, b2, g3, b3, g4, b4)
    return params, raw, key


# ----------------------------------------------------------------------------
# Pure-JAX reference (for the in-script correctness check only).
# ----------------------------------------------------------------------------
def encoder_reference(x, raw_weights, *, eps=1e-5, slope=0.2):
    w1, w2, w3, w4, w5 = raw_weights

    def conv(x, w, stride, pad):
        return jax.lax.conv_general_dilated(
            x, w, window_strides=(stride, stride), padding=((pad, pad), (pad, pad)),
            dimension_numbers=("NCHW", "OIHW", "NCHW"),
            precision=jax.lax.Precision.HIGHEST)

    def bn(x):
        mean = jnp.mean(x, axis=(0, 2, 3), keepdims=True)
        var = jnp.mean(jnp.square(x - mean), axis=(0, 2, 3), keepdims=True)
        return (x - mean) * jax.lax.rsqrt(var + eps)

    def lrelu(x):
        return jnp.where(x >= 0.0, x, slope * x)

    y = lrelu(conv(x, w1, 2, 1))
    y = lrelu(bn(conv(y, w2, 2, 1)))
    y = lrelu(bn(conv(y, w3, 2, 1)))
    y = lrelu(bn(conv(y, w4, 2, 1)))
    return conv(y, w5, 1, 0)


if __name__ == "__main__":
    key = jax.random.PRNGKey(0)
    params, raw, key = init_params(key)

    # 64x64 input so the final 4x4/stride-1/pad-0 conv yields a 1x1 map, i.e.
    # output (B, nz, 1, 1), exactly like the PyTorch Encoder.
    key, xk = jax.random.split(key)
    x = jax.random.normal(xk, (2, nc, 64, 64), jnp.float32)

    fwd = jax.jit(encoder_forward)
    out = jax.block_until_ready(fwd(x, params))

    assert out.shape == (2, nz, 1, 1), out.shape
    assert out.dtype == jnp.float32

    ref = encoder_reference(x, raw)
    max_err = float(jnp.max(jnp.abs(out - ref)))
    assert max_err < 1e-2, f"mismatch vs pure-JAX reference: {max_err}"

    print("KERNEL_OK")
</pallas_src>

<mosaic_0001>
module attributes {stable_mosaic.version = 11 : i64} {
  func.func @_conv1_kernel(%arg0: i32, %arg1: memref<48xf32, #tpu.memory_space<smem>>, %arg2: memref<2x2x3x2x33x33xf32, #tpu.memory_space<vmem>>, %arg3: memref<2x1x32x32xf32, #tpu.memory_space<vmem>>) attributes {dimension_semantics = [#tpu.dimension_semantics<parallel>], iteration_bounds = array<i64: 1>, scalar_prefetch = 0 : i64, scratch_operands = 0 : i64, tpu.core_type = #tpu.core_type<tc>, window_params = [{transform_indices = @transform_0, window_bounds = array<i64: 48>}, {transform_indices = @transform_1, window_bounds = array<i64: 2, 2, 3, 2, 33, 33>}, {transform_indices = @transform_2, window_bounds = array<i64: 2, 1, 32, 32>}]} {
    %cst = arith.constant 0.000000e+00 : f32
    %0 = vector.broadcast %cst : f32 to vector<2x32x32xf32>
    %cst_0 = arith.constant 0.000000e+00 : f32
    %1 = vector.broadcast %cst_0 : f32 to vector<2x32x32xf32>
    %cst_1 = arith.constant 0.000000e+00 : f32
    %2 = vector.broadcast %cst_1 : f32 to vector<2x32x32xf32>
    %cst_2 = arith.constant 0.000000e+00 : f32
    %3 = vector.broadcast %cst_2 : f32 to vector<2x32x32xf32>
    %c0 = arith.constant 0 : index
    %4 = memref.load %arg1[%c0] : memref<48xf32, #tpu.memory_space<smem>>
    %c0_3 = arith.constant 0 : index
    %c0_4 = arith.constant 0 : index
    %c0_5 = arith.constant 0 : index
    %c0_6 = arith.constant 0 : index
    %c0_7 = arith.constant 0 : index
    %c0_8 = arith.constant 0 : index
    %5 = vector.load %arg2[%c0_3, %c0_4, %c0_5, %c0_6, %c0_7, %c0_8] : memref<2x2x3x2x33x33xf32, #tpu.memory_space<vmem>>, vector<1x1x1x2x32x32xf32>
    %6 = vector.shape_cast %5 : vector<1x1x1x2x32x32xf32> to vector<2x32x32xf32>
    %7 = vector.broadcast %4 : f32 to vector<2x32x32xf32>
    %8 = arith.mulf %7, %6 : vector<2x32x32xf32>
    %9 = arith.addf %0, %8 : vector<2x32x32xf32>
    %c1 = arith.constant 1 : index
    %10 = memref.load %arg1[%c1] : memref<48xf32, #tpu.memory_space<smem>>
    %c0_9 = arith.constant 0 : index
    %c0_10 = arith.constant 0 : index
    %c1_11 = arith.constant 1 : index
    %c0_12 = arith.constant 0 : index
    %c0_13 = arith.constant 0 : index
    %c0_14 = arith.constant 0 : index
    %11 = vector.load %arg2[%c0_9, %c0_10, %c1_11, %c0_12, %c0_13, %c0_14] : memref<2x2x3x2x33x33xf32, #tpu.memory_space<vmem>>, vector<1x1x1x2x32x32xf32>
    %12 = vector.shape_cast %11 : vector<1x1x1x2x32x32xf32> to vector<2x32x32xf32>
    %13 = vector.broadcast %10 : f32 to vector<2x32x32xf32>
    %14 = arith.mulf %13, %12 : vector<2x32x32xf32>
    %15 = arith.addf %9, %14 : vector<2x32x32xf32>
    %c2 = arith.constant 2 : index
    %16 = memref.load %arg1[%c2] : memref<48xf32, #tpu.memory_space<smem>>
    %c0_15 = arith.constant 0 : index
    %c0_16 = arith.constant 0 : index
    %c2_17 = arith.constant 2 : index
    %c0_18 = arith.constant 0 : index
    %c0_19 = arith.constant 0 : index
    %c0_20 = arith.constant 0 : index
    %17 = vector.load %arg2[%c0_15, %c0_16, %c2_17, %c0_18, %c0_19, %c0_20] : memref<2x2x3x2x33x33xf32, #tpu.memory_space<vmem>>, vector<1x1x1x2x32x32xf32>
    %18 = vector.shape_cast %17 : vector<1x1x1x2x32x32xf32> to vector<2x32x32xf32>
    %19 = vector.broadcast %16 : f32 to vector<2x32x32xf32>
    %20 = arith.mulf %19, %18 : vector<2x32x32xf32>
    %21 = arith.addf %15, %20 : vector<2x32x32xf32>
    %c3 = arith.constant 3 : index
    %22 = memref.load %arg1[%c3] : memref<48xf32, #tpu.memory_space<smem>>
    %c0_21 = arith.constant 0 : index
    %c1_22 = arith.constant 1 : index
    %c0_23 = arith.constant 0 : index
    %c0_24 = arith.constant 0 : index
    %c0_25 = arith.constant 0 : index
    %c0_26 = arith.constant 0 : index
    %23 = vector.load %arg2[%c0_21, %c1_22, %c0_23, %c0_24, %c0_25, %c0_26] : memref<2x2x3x2x33x33xf32, #tpu.memory_space<vmem>>, vector<1x1x1x2x32x32xf32>
    %24 = vector.shape_cast %23 : vector<1x1x1x2x32x32xf32> to vector<2x32x32xf32>
    %25 = vector.broadcast %22 : f32 to vector<2x32x32xf32>
    %26 = arith.mulf %25, %24 : vector<2x32x32xf32>
    %27 = arith.addf %21, %26 : vector<2x32x32xf32>
    %c4 = arith.constant 4 : index
    %28 = memref.load %arg1[%c4] : memref<48xf32, #tpu.memory_space<smem>>
    %c0_27 = arith.constant 0 : index
    %c1_28 = arith.constant 1 : index
    %c1_29 = arith.constant 1 : index
    %c0_30 = arith.constant 0 : index
    %c0_31 = arith.constant 0 : index
    %c0_32 = arith.constant 0 : index
    %29 = vector.load %arg2[%c0_27, %c1_28, %c1_29, %c0_30, %c0_31, %c0_32] : memref<2x2x3x2x33x33xf32, #tpu.memory_space<vmem>>, vector<1x1x1x2x32x32xf32>
    %30 = vector.shape_cast %29 : vector<1x1x1x2x32x32xf32> to vector<2x32x32xf32>
    %31 = vector.broadcast %28 : f32 to vector<2x32x32xf32>
    %32 = arith.mulf %31, %30 : vector<2x32x32xf32>
    %33 = arith.addf %27, %32 : vector<2x32x32xf32>
    %c5 = arith.constant 5 : index
    %34 = memref.load %arg1[%c5] : memref<48xf32, #tpu.memory_space<smem>>
    %c0_33 = arith.constant 0 : index
    %c1_34 = arith.constant 1 : index
    %c2_35 = arith.constant 2 : index
    %c0_36 = arith.constant 0 : index
    %c0_37 = arith.constant 0 : index
    %c0_38 = arith.constant 0 : index
    %35 = vector.load %arg2[%c0_33, %c1_34, %c2_35, %c0_36, %c0_37, %c0_38] : memref<2x2x3x2x33x33xf32, #tpu.memory_space<vmem>>, vector<1x1x1x2x32x32xf32>
    %36 = vector.shape_cast %35 : vector<1x1x1x2x32x32xf32> to vector<2x32x32xf32>
    %37 = vector.broadcast %34 : f32 to vector<2x32x32xf32>
    %38 = arith.mulf %37, %36 : vector<2x32x32xf32>
    %39 = arith.addf %33, %38 : vector<2x32x32xf32>
    %c6 = arith.constant 6 : index
    %40 = memref.load %arg1[%c6] : memref<48xf32, #tpu.memory_space<smem>>
    %c0_39 = arith.constant 0 : index
    %c0_40 = arith.constant 0 : index
    %c0_41 = arith.constant 0 : index
    %c0_42 = arith.constant 0 : index
    %c0_43 = arith.constant 0 : index
    %c1_44 = arith.constant 1 : index
    %41 = vector.load %arg2[%c0_39, %c0_40, %c0_41, %c0_42, %c0_43, %c1_44] : memref<2x2x3x2x33x33xf32, #tpu.memory_space<vmem>>, vector<1x1x1x2x32x32xf32>
    %42 = vector.shape_cast %41 : vector<1x1x1x2x32x32xf32> to vector<2x32x32xf32>
    %43 = vector.broadcast %40 : f32 to vector<2x32x32xf32>
    %44 = arith.mulf %43, %42 : vector<2x32x32xf32>
    %45 = arith.addf %39, %44 : vector<2x32x32xf32>
    %c7 = arith.constant 7 : index
    %46 = memref.load %arg1[%c7] : memref<48xf32, #tpu.memory_space<smem>>
    %c0_45 = arith.constant 0 : index
    %c0_46 = arith.constant 0 : index
    %c1_47 = arith.constant 1 : index
    %c0_48 = arith.constant 0 : index
    %c0_49 = arith.constant 0 : index
    %c1_50 = arith.constant 1 : index
    %47 = vector.load %arg2[%c0_45, %c0_46, %c1_47, %c0_48, %c0_49, %c1_50] : memref<2x2x3x2x33x33xf32, #tpu.memory_space<vmem>>, vector<1x1x1x2x32x32xf32>
    %48 = vector.shape_cast %47 : vector<1x1x1x2x32x32xf32> to vector<2x32x32xf32>
    %49 = vector.broadcast %46 : f32 to vector<2x32x32xf32>
    %50 = arith.mulf %49, %48 : vector<2x32x32xf32>
    %51 = arith.addf %45, %50 : vector<2x32x32xf32>
    %c8 = arith.constant 8 : index
    %52 = memref.load %arg1[%c8] : memref<48xf32, #tpu.memory_space<smem>>
    %c0_51 = arith.constant 0 : index
    %c0_52 = arith.constant 0 : index
    %c2_53 = arith.constant 2 : index
    %c0_54 = arith.constant 0 : index
    %c0_55 = arith.constant 0 : index
    %c1_56 = arith.constant 1 : index
    %53 = vector.load %arg2[%c0_51, %c0_52, %c2_53, %c0_54, %c0_55, %c1_56] : memref<2x2x3x2x33x33xf32, #tpu.memory_space<vmem>>, vector<1x1x1x2x32x32xf32>
    %54 = vector.shape_cast %53 : vector<1x1x1x2x32x32xf32> to vector<2x32x32xf32>
    %55 = vector.broadcast %52 : f32 to vector<2x32x32xf32>
    %56 = arith.mulf %55, %54 : vector<2x32x32xf32>
    %57 = arith.addf %51, %56 : vector<2x32x32xf32>
    %c9 = arith.constant 9 : index
    %58 = memref.load %arg1[%c9] : memref<48xf32, #tpu.memory_space<smem>>
    %c0_57 = arith.constant 0 : index
    %c1_58 = arith.constant 1 : index
    %c0_59 = arith.constant 0 : index
    %c0_60 = arith.constant 0 : index
    %c0_61 = arith.constant 0 : index
    %c1_62 = arith.constant 1 : index
    %59 = vector.load %arg2[%c0_57, %c1_58, %c0_59, %c0_60, %c0_61, %c1_62] : memref<2x2x3x2x33x33xf32, #tpu.memory_space<vmem>>, vector<1x1x1x2x32x32xf32>
    %60 = vector.shape_cast %59 : vector<1x1x1x2x32x32xf32> to vector<2x32x32xf32>
    %61 = vector.broadcast %58 : f32 to vector<2x32x32xf32>
    %62 = arith.mulf %61, %60 : vector<2x32x32xf32>
    %63 = arith.addf %57, %62 : vector<2x32x32xf32>
    %c10 = arith.constant 10 : index
    %64 = memref.load %arg1[%c10] : memref<48xf32, #tpu.memory_space<smem>>
    %c0_63 = arith.constant 0 : index
    %c1_64 = arith.constant 1 : index
    %c1_65 = arith.constant 1 : index
    %c0_66 = arith.constant 0 : index
    %c0_67 = arith.constant 0 : index
    %c1_68 = arith.constant 1 : index
    %65 = vector.load %arg2[%c0_63, %c1_64, %c1_65, %c0_66, %c0_67, %c1_68] : memref<2x2x3x2x33x33xf32, #tpu.memory_space<vmem>>, vector<1x1x1x2x32x32xf32>
    %66 = vector.shape_cast %65 : vector<1x1x1x2x32x32xf32> to vector<2x32x32xf32>
    %67 = vector.broadcast %64 : f32 to vector<2x32x32xf32>
    %68 = arith.mulf %67, %66 : vector<2x32x32xf32>
    %69 = arith.addf %63, %68 : vector<2x32x32xf32>
    %c11 = arith.constant 11 : index
    %70 = memref.load %arg1[%c11] : memref<48xf32, #tpu.memory_space<smem>>
    %c0_69 = arith.constant 0 : index
    %c1_70 = arith.constant 1 : index
    %c2_71 = arith.constant 2 : index
    %c0_72 = arith.constant 0 : index
    %c0_73 = arith.constant 0 : index
    %c1_74 = arith.constant 1 : index
    %71 = vector.load %arg2[%c0_69, %c1_70, %c2_71, %c0_72, %c0_73, %c1_74] : memref<2x2x3x2x33x33xf32, #tpu.memory_space<vmem>>, vector<1x1x1x2x32x32xf32>
    %72 = vector.shape_cast %71 : vector<1x1x1x2x32x32xf32> to vector<2x32x32xf32>
    %73 = vector.broadcast %70 : f32 to vector<2x32x32xf32>
    %74 = arith.mulf %73, %72 : vector<2x32x32xf32>
    %75 = arith.addf %69, %74 : vector<2x32x32xf32>
    %c12 = arith.constant 12 : index
    %76 = memref.load %arg1[%c12] : memref<48xf32, #tpu.memory_space<smem>>
    %c1_75 = arith.constant 1 : index
    %c0_76 = arith.constant 0 : index
    %c0_77 = arith.constant 0 : index
    %c0_78 = arith.constant 0 : index
    %c0_79 = arith.constant 0 : index
    %c0_80 = arith.constant 0 : index
    %77 = vector.load %arg2[%c1_75, %c0_76, %c0_77, %c0_78, %c0_79, %c0_80] : memref<2x2x3x2x33x33xf32, #tpu.memory_space<vmem>>, vector<1x1x1x2x32x32xf32>
    %78 = vector.shape_cast %77 : vector<1x1x1x2x32x32xf32> to vector<2x32x32xf32>
    %79 = vector.broadcast %76 : f32 to vector<2x32x32xf32>
    %80 = arith.mulf %79, %78 : vector<2x32x32xf32>
    %81 = arith.addf %1, %80 : vector<2x32x32xf32>
    %c13 = arith.constant 13 : index
    %82 = memref.load %arg1[%c13] : memref<48xf32, #tpu.memory_space<smem>>
    %c1_81 = arith.constant 1 : index
    %c0_82 = arith.constant 0 : index
    %c1_83 = arith.constant 1 : index
    %c0_84 = arith.constant 0 : index
    %c0_85 = arith.constant 0 : index
    %c0_86 = arith.constant 0 : index
    %83 = vector.load %arg2[%c1_81, %c0_82, %c1_83, %c0_84, %c0_85, %c0_86] : memref<2x2x3x2x33x33xf32, #tpu.memory_space<vmem>>, vector<1x1x1x2x32x32xf32>
    %84 = vector.shape_cast %83 : vector<1x1x1x2x32x32xf32> to vector<2x32x32xf32>
    %85 = vector.broadcast %82 : f32 to vector<2x32x32xf32>
    %86 = arith.mulf %85, %84 : vector<2x32x32xf32>
    %87 = arith.addf %81, %86 : vector<2x32x32xf32>
    %c14 = arith.constant 14 : index
    %88 = memref.load %arg1[%c14] : memref<48xf32, #tpu.memory_space<smem>>
    %c1_87 = arith.constant 1 : index
    %c0_88 = arith.constant 0 : index
    %c2_89 = arith.constant 2 : index
    %c0_90 = arith.constant 0 : index
    %c0_91 = arith.constant 0 : index
    %c0_92 = arith.constant 0 : index
    %89 = vector.load %arg2[%c1_87, %c0_88, %c2_89, %c0_90, %c0_91, %c0_92] : memref<2x2x3x2x33x33xf32, #tpu.memory_space<vmem>>, vector<1x1x1x2x32x32xf32>
    %90 = vector.shape_cast %89 : vector<1x1x1x2x32x32xf32> to vector<2x32x32xf32>
    %91 = vector.broadcast %88 : f32 to vector<2x32x32xf32>
    %92 = arith.mulf %91, %90 : vector<2x32x32xf32>
    %93 = arith.addf %87, %92 : vector<2x32x32xf32>
    %c15 = arith.constant 15 : index
    %94 = memref.load %arg1[%c15] : memref<48xf32, #tpu.memory_space<smem>>
    %c1_93 = arith.constant 1 : index
    %c1_94 = arith.constant 1 : index
    %c0_95 = arith.constant 0 : index
    %c0_96 = arith.constant 0 : index
    %c0_97 = arith.constant 0 : index
    %c0_98 = arith.constant 0 : index
    %95 = vector.load %arg2[%c1_93, %c1_94, %c0_95, %c0_96, %c0_97, %c0_98] : memref<2x2x3x2x33x33xf32, #tpu.memory_space<vmem>>, vector<1x1x1x2x32x32xf32>
    %96 = vector.shape_cast %95 : vector<1x1x1x2x32x32xf32> to vector<2x32x32xf32>
    %97 = vector.broadcast %94 : f32 to vector<2x32x32xf32>
    %98 = arith.mulf %97, %96 : vector<2x32x32xf32>
    %99 = arith.addf %93, %98 : vector<2x32x32xf32>
    %c16 = arith.constant 16 : index
    %100 = memref.load %arg1[%c16] : memref<48xf32, #tpu.memory_space<smem>>
    %c1_99 = arith.constant 1 : index
    %c1_100 = arith.constant 1 : index
    %c1_101 = arith.constant 1 : index
    %c0_102 = arith.constant 0 : index
    %c0_103 = arith.constant 0 : index
    %c0_104 = arith.constant 0 : index
    %101 = vector.load %arg2[%c1_99, %c1_100, %c1_101, %c0_102, %c0_103, %c0_104] : memref<2x2x3x2x33x33xf32, #tpu.memory_space<vmem>>, vector<1x1x1x2x32x32xf32>
    %102 = vector.shape_cast %101 : vector<1x1x1x2x32x32xf32> to vector<2x32x32xf32>
    %103 = vector.broadcast %100 : f32 to vector<2x32x32xf32>
    %104 = arith.mulf %103, %102 : vector<2x32x32xf32>
    %105 = arith.addf %99, %104 : vector<2x32x32xf32>
    %c17 = arith.constant 17 : index
    %106 = memref.load %arg1[%c17] : memref<48xf32, #tpu.memory_space<smem>>
    %c1_105 = arith.constant 1 : index
    %c1_106 = arith.constant 1 : index
    %c2_107 = arith.constant 2 : index
    %c0_108 = arith.constant 0 : index
    %c0_109 = arith.constant 0 : index
    %c0_110 = arith.constant 0 : index
    %107 = vector.load %arg2[%c1_105, %c1_106, %c2_107, %c0_108, %c0_109, %c0_110] : memref<2x2x3x2x33x33xf32, #tpu.memory_space<vmem>>, vector<1x1x1x2x32x32xf32>
    %108 = vector.shape_cast %107 : vector<1x1x1x2x32x32xf32> to vector<2x32x32xf32>
    %109 = vector.broadcast %106 : f32 to vector<2x32x32xf32>
    %110 = arith.mulf %109, %108 : vector<2x32x32xf32>
    %111 = arith.addf %105, %110 : vector<2x32x32xf32>
    %c18 = arith.constant 18 : index
    %112 = memref.load %arg1[%c18] : memref<48xf32, #tpu.memory_space<smem>>
    %c1_111 = arith.constant 1 : index
    %c0_112 = arith.constant 0 : index
    %c0_113 = arith.constant 0 : index
    %c0_114 = arith.constant 0 : index
    %c0_115 = arith.constant 0 : index
    %c1_116 = arith.constant 1 : index
    %113 = vector.load %arg2[%c1_111, %c0_112, %c0_113, %c0_114, %c0_115, %c1_116] : memref<2x2x3x2x33x33xf32, #tpu.memory_space<vmem>>, vector<1x1x1x2x32x32xf32>
    %114 = vector.shape_cast %113 : vector<1x1x1x2x32x32xf32> to vector<2x32x32xf32>
    %115 = vector.broadcast %112 : f32 to vector<2x32x32xf32>
    %116 = arith.mulf %115, %114 : vector<2x32x32xf32>
    %117 = arith.addf %111, %116 : vector<2x32x32xf32>
    %c19 = arith.constant 19 : index
    %118 = memref.load %arg1[%c19] : memref<48xf32, #tpu.memory_space<smem>>
    %c1_117 = arith.constant 1 : index
    %c0_118 = arith.constant 0 : index
    %c1_119 = arith.constant 1 : index
    %c0_120 = arith.constant 0 : index
    %c0_121 = arith.constant 0 : index
    %c1_122 = arith.constant 1 : index
    %119 = vector.load %arg2[%c1_117, %c0_118, %c1_119, %c0_120, %c0_121, %c1_122] : memref<2x2x3x2x33x33xf32, #tpu.memory_space<vmem>>, vector<1x1x1x2x32x32xf32>
    %120 = vector.shape_cast %119 : vector<1x1x1x2x32x32xf32> to vector<2x32x32xf32>
    %121 = vector.broadcast %118 : f32 to vector<2x32x32xf32>
    %122 = arith.mulf %121, %120 : vector<2x32x32xf32>
    %123 = arith.addf %117, %122 : vector<2x32x32xf32>
    %c20 = arith.constant 20 : index
    %124 = memref.load %arg1[%c20] : memref<48xf32, #tpu.memory_space<smem>>
    %c1_123 = arith.constant 1 : index
    %c0_124 = arith.constant 0 : index
    %c2_125 = arith.constant 2 : index
    %c0_126 = arith.constant 0 : index
    %c0_127 = arith.constant 0 : index
    %c1_128 = arith.constant 1 : index
    %125 = vector.load %arg2[%c1_123, %c0_124, %c2_125, %c0_126, %c0_127, %c1_128] : memref<2x2x3x2x33x33xf32, #tpu.memory_space<vmem>>, vector<1x1x1x2x32x32xf32>
    %126 = vector.shape_cast %125 : vector<1x1x1x2x32x32xf32> to vector<2x32x32xf32>
    %127 = vector.broadcast %124 : f32 to vector<2x32x32xf32>
    %128 = arith.mulf %127, %126 : vector<2x32x32xf32>
    %129 = arith.addf %123, %128 : vector<2x32x32xf32>
    %c21 = arith.constant 21 : index
    %130 = memref.load %arg1[%c21] : memref<48xf32, #tpu.memory_space<smem>>
    %c1_129 = arith.constant 1 : index
    %c1_130 = arith.constant 1 : index
    %c0_131 = arith.constant 0 : index
    %c0_132 = arith.constant 0 : index
    %c0_133 = arith.constant 0 : index
    %c1_134 = arith.constant 1 : index
    %131 = vector.load %arg2[%c1_129, %c1_130, %c0_131, %c0_132, %c0_133, %c1_134] : memref<2x2x3x2x33x33xf32, #tpu.memory_space<vmem>>, vector<1x1x1x2x32x32xf32>
    %132 = vector.shape_cast %131 : vector<1x1x1x2x32x32xf32> to vector<2x32x32xf32>
    %133 = vector.broadcast %130 : f32 to vector<2x32x32xf32>
    %134 = arith.mulf %133, %132 : vector<2x32x32xf32>
    %135 = arith.addf %129, %134 : vector<2x32x32xf32>
    %c22 = arith.constant 22 : index
    %136 = memref.load %arg1[%c22] : memref<48xf32, #tpu.memory_space<smem>>
    %c1_135 = arith.constant 1 : index
    %c1_136 = arith.constant 1 : index
    %c1_137 = arith.constant 1 : index
    %c0_138 = arith.constant 0 : index
    %c0_139 = arith.constant 0 : index
    %c1_140 = arith.constant 1 : index
    %137 = vector.load %arg2[%c1_135, %c1_136, %c1_137, %c0_138, %c0_139, %c1_140] : memref<2x2x3x2x33x33xf32, #tpu.memory_space<vmem>>, vector<1x1x1x2x32x32xf32>
    %138 = vector.shape_cast %137 : vector<1x1x1x2x32x32xf32> to vector<2x32x32xf32>
    %139 = vector.broadcast %136 : f32 to vector<2x32x32xf32>
    %140 = arith.mulf %139, %138 : vector<2x32x32xf32>
    %141 = arith.addf %135, %140 : vector<2x32x32xf32>
    %c23 = arith.constant 23 : index
    %142 = memref.load %arg1[%c23] : memref<48xf32, #tpu.memory_space<smem>>
    %c1_141 = arith.constant 1 : index
    %c1_142 = arith.constant 1 : index
    %c2_143 = arith.constant 2 : index
    %c0_144 = arith.constant 0 : index
    %c0_145 = arith.constant 0 : index
    %c1_146 = arith.constant 1 : index
    %143 = vector.load %arg2[%c1_141, %c1_142, %c2_143, %c0_144, %c0_145, %c1_146] : memref<2x2x3x2x33x33xf32, #tpu.memory_space<vmem>>, vector<1x1x1x2x32x32xf32>
    %144 = vector.shape_cast %143 : vector<1x1x1x2x32x32xf32> to vector<2x32x32xf32>
    %145 = vector.broadcast %142 : f32 to vector<2x32x32xf32>
    %146 = arith.mulf %145, %144 : vector<2x32x32xf32>
    %147 = arith.addf %141, %146 : vector<2x32x32xf32>
    %c24 = arith.constant 24 : index
    %148 = memref.load %arg1[%c24] : memref<48xf32, #tpu.memory_space<smem>>
    %c0_147 = arith.constant 0 : index
    %c0_148 = arith.constant 0 : index
    %c0_149 = arith.constant 0 : index
    %c0_150 = arith.constant 0 : index
    %c1_151 = arith.constant 1 : index
    %c0_152 = arith.constant 0 : index
    %149 = vector.load %arg2[%c0_147, %c0_148, %c0_149, %c0_150, %c1_151, %c0_152] : memref<2x2x3x2x33x33xf32, #tpu.memory_space<vmem>>, vector<1x1x1x2x32x32xf32>
    %150 = vector.shape_cast %149 : vector<1x1x1x2x32x32xf32> to vector<2x32x32xf32>
    %151 = vector.broadcast %148 : f32 to vector<2x32x32xf32>
    %152 = arith.mulf %151, %150 : vector<2x32x32xf32>
    %153 = arith.addf %2, %152 : vector<2x32x32xf32>
    %c25 = arith.constant 25 : index
    %154 = memref.load %arg1[%c25] : memref<48xf32, #tpu.memory_space<smem>>
    %c0_153 = arith.constant 0 : index
    %c0_154 = arith.constant 0 : index
    %c1_155 = arith.constant 1 : index
    %c0_156 = arith.constant 0 : index
    %c1_157 = arith.constant 1 : index
    %c0_158 = arith.constant 0 : index
    %155 = vector.load %arg2[%c0_153, %c0_154, %c1_155, %c0_156, %c1_157, %c0_158] : memref<2x2x3x2x33x33xf32, #tpu.memory_space<vmem>>, vector<1x1x1x2x32x32xf32>
    %156 = vector.shape_cast %155 : vector<1x1x1x2x32x32xf32> to vector<2x32x32xf32>
    %157 = vector.broadcast %154 : f32 to vector<2x32x32xf32>
    %158 = arith.mulf %157, %156 : vector<2x32x32xf32>
    %159 = arith.addf %153, %158 : vector<2x32x32xf32>
    %c26 = arith.constant 26 : index
    %160 = memref.load %arg1[%c26] : memref<48xf32, #tpu.memory_space<smem>>
    %c0_159 = arith.constant 0 : index
    %c0_160 = arith.constant 0 : index
    %c2_161 = arith.constant 2 : index
    %c0_162 = arith.constant 0 : index
    %c1_163 = arith.constant 1 : index
    %c0_164 = arith.constant 0 : index
    %161 = vector.load %arg2[%c0_159, %c0_160, %c2_161, %c0_162, %c1_163, %c0_164] : memref<2x2x3x2x33x33xf32, #tpu.memory_space<vmem>>, vector<1x1x1x2x32x32xf32>
    %162 = vector.shape_cast %161 : vector<1x1x1x2x32x32xf32> to vector<2x32x32xf32>
    %163 = vector.broadcast %160 : f32 to vector<2x32x32xf32>
    %164 = arith.mulf %163, %162 : vector<2x32x32xf32>
    %165 = arith.addf %159, %164 : vector<2x32x32xf32>
    %c27 = arith.constant 27 : index
    %166 = memref.load %arg1[%c27] : memref<48xf32, #tpu.memory_space<smem>>
    %c0_165 = arith.constant 0 : index
    %c1_166 = arith.constant 1 : index
    %c0_167 = arith.constant 0 : index
    %c0_168 = arith.constant 0 : index
    %c1_169 = arith.constant 1 : index
    %c0_170 = arith.constant 0 : index
    %167 = vector.load %arg2[%c0_165, %c1_166, %c0_167, %c0_168, %c1_169, %c0_170] : memref<2x2x3x2x33x33xf32, #tpu.memory_space<vmem>>, vector<1x1x1x2x32x32xf32>
    %168 = vector.shape_cast %167 : vector<1x1x1x2x32x32xf32> to vector<2x32x32xf32>
    %169 = vector.broadcast %166 : f32 to vector<2x32x32xf32>
    %170 = arith.mulf %169, %168 : vector<2x32x32xf32>
    %171 = arith.addf %165, %170 : vector<2x32x32xf32>
    %c28 = arith.constant 28 : index
    %172 = memref.load %arg1[%c28] : memref<48xf32, #tpu.memory_space<smem>>
    %c0_171 = arith.constant 0 : index
    %c1_172 = arith.constant 1 : index
    %c1_173 = arith.constant 1 : index
    %c0_174 = arith.constant 0 : index
    %c1_175 = arith.constant 1 : index
    %c0_176 = arith.constant 0 : index
    %173 = vector.load %arg2[%c0_171, %c1_172, %c1_173, %c0_174, %c1_175, %c0_176] : memref<2x2x3x2x33x33xf32, #tpu.memory_space<vmem>>, vector<1x1x1x2x32x32xf32>
    %174 = vector.shape_cast %173 : vector<1x1x1x2x32x32xf32> to vector<2x32x32xf32>
    %175 = vector.broadcast %172 : f32 to vector<2x32x32xf32>
    %176 = arith.mulf %175, %174 : vector<2x32x32xf32>
    %177 = arith.addf %171, %176 : vector<2x32x32xf32>
    %c29 = arith.constant 29 : index
    %178 = memref.load %arg1[%c29] : memref<48xf32, #tpu.memory_space<smem>>
    %c0_177 = arith.constant 0 : index
    %c1_178 = arith.constant 1 : index
    %c2_179 = arith.constant 2 : index
    %c0_180 = arith.constant 0 : index
    %c1_181 = arith.constant 1 : index
    %c0_182 = arith.constant 0 : index
    %179 = vector.load %arg2[%c0_177, %c1_178, %c2_179, %c0_180, %c1_181, %c0_182] : memref<2x2x3x2x33x33xf32, #tpu.memory_space<vmem>>, vector<1x1x1x2x32x32xf32>
    %180 = vector.shape_cast %179 : vector<1x1x1x2x32x32xf32> to vector<2x32x32xf32>
    %181 = vector.broadcast %178 : f32 to vector<2x32x32xf32>
    %182 = arith.mulf %181, %180 : vector<2x32x32xf32>
    %183 = arith.addf %177, %182 : vector<2x32x32xf32>
    %c30 = arith.constant 30 : index
    %184 = memref.load %arg1[%c30] : memref<48xf32, #tpu.memory_space<smem>>
    %c0_183 = arith.constant 0 : index
    %c0_184 = arith.constant 0 : index
    %c0_185 = arith.constant 0 : index
    %c0_186 = arith.constant 0 : index
    %c1_187 = arith.constant 1 : index
    %c1_188 = arith.constant 1 : index
    %185 = vector.load %arg2[%c0_183, %c0_184, %c0_185, %c0_186, %c1_187, %c1_188] : memref<2x2x3x2x33x33xf32, #tpu.memory_space<vmem>>, vector<1x1x1x2x32x32xf32>
    %186 = vector.shape_cast %185 : vector<1x1x1x2x32x32xf32> to vector<2x32x32xf32>
    %187 = vector.broadcast %184 : f32 to vector<2x32x32xf32>
    %188 = arith.mulf %187, %186 : vector<2x32x32xf32>
    %189 = arith.addf %183, %188 : vector<2x32x32xf32>
    %c31 = arith.constant 31 : index
    %190 = memref.load %arg1[%c31] : memref<48xf32, #tpu.memory_space<smem>>
    %c0_189 = arith.constant 0 : index
    %c0_190 = arith.constant 0 : index
    %c1_191 = arith.constant 1 : index
    %c0_192 = arith.constant 0 : index
    %c1_193 = arith.constant 1 : index
    %c1_194 = arith.constant 1 : index
    %191 = vector.load %arg2[%c0_189, %c0_190, %c1_191, %c0_192, %c1_193, %c1_194] : memref<2x2x3x2x33x33xf32, #tpu.memory_space<vmem>>, vector<1x1x1x2x32x32xf32>
    %192 = vector.shape_cast %191 : vector<1x1x1x2x32x32xf32> to vector<2x32x32xf32>
    %193 = vector.broadcast %190 : f32 to vector<2x32x32xf32>
    %194 = arith.mulf %193, %192 : vector<2x32x32xf32>
    %195 = arith.addf %189, %194 : vector<2x32x32xf32>
    %c32 = arith.constant 32 : index
    %196 = memref.load %arg1[%c32] : memref<48xf32, #tpu.memory_space<smem>>
    %c0_195 = arith.constant 0 : index
    %c0_196 = arith.constant 0 : index
    %c2_197 = arith.constant 2 : index
    %c0_198 = arith.constant 0 : index
    %c1_199 = arith.constant 1 : index
    %c1_200 = arith.constant 1 : index
    %197 = vector.load %arg2[%c0_195, %c0_196, %c2_197, %c0_198, %c1_199, %c1_200] : memref<2x2x3x2x33x33xf32, #tpu.memory_space<vmem>>, vector<1x1x1x2x32x32xf32>
    %198 = vector.shape_cast %197 : vector<1x1x1x2x32x32xf32> to vector<2x32x32xf32>
    %199 = vector.broadcast %196 : f32 to vector<2x32x32xf32>
    %200 = arith.mulf %199, %198 : vector<2x32x32xf32>
    %201 = arith.addf %195, %200 : vector<2x32x32xf32>
    %c33 = arith.constant 33 : index
    %202 = memref.load %arg1[%c33] : memref<48xf32, #tpu.memory_space<smem>>
    %c0_201 = arith.constant 0 : index
    %c1_202 = arith.constant 1 : index
    %c0_203 = arith.constant 0 : index
    %c0_204 = arith.constant 0 : index
    %c1_205 = arith.constant 1 : index
    %c1_206 = arith.constant 1 : index
    %203 = vector.load %arg2[%c0_201, %c1_202, %c0_203, %c0_204, %c1_205, %c1_206] : memref<2x2x3x2x33x33xf32, #tpu.memory_space<vmem>>, vector<1x1x1x2x32x32xf32>
    %204 = vector.shape_cast %203 : vector<1x1x1x2x32x32xf32> to vector<2x32x32xf32>
    %205 = vector.broadcast %202 : f32 to vector<2x32x32xf32>
    %206 = arith.mulf %205, %204 : vector<2x32x32xf32>
    %207 = arith.addf %201, %206 : vector<2x32x32xf32>
    %c34 = arith.constant 34 : index
    %208 = memref.load %arg1[%c34] : memref<48xf32, #tpu.memory_space<smem>>
    %c0_207 = arith.constant 0 : index
    %c1_208 = arith.constant 1 : index
    %c1_209 = arith.constant 1 : index
    %c0_210 = arith.constant 0 : index
    %c1_211 = arith.constant 1 : index
    %c1_212 = arith.constant 1 : index
    %209 = vector.load %arg2[%c0_207, %c1_208, %c1_209, %c0_210, %c1_211, %c1_212] : memref<2x2x3x2x33x33xf32, #tpu.memory_space<vmem>>, vector<1x1x1x2x32x32xf32>
    %210 = vector.shape_cast %209 : vector<1x1x1x2x32x32xf32> to vector<2x32x32xf32>
    %211 = vector.broadcast %208 : f32 to vector<2x32x32xf32>
    %212 = arith.mulf %211, %210 : vector<2x32x32xf32>
    %213 = arith.addf %207, %212 : vector<2x32x32xf32>
    %c35 = arith.constant 35 : index
    %214 = memref.load %arg1[%c35] : memref<48xf32, #tpu.memory_space<smem>>
    %c0_213 = arith.constant 0 : index
    %c1_214 = arith.constant 1 : index
    %c2_215 = arith.constant 2 : index
    %c0_216 = arith.constant 0 : index
    %c1_217 = arith.constant 1 : index
    %c1_218 = arith.constant 1 : index
    %215 = vector.load %arg2[%c0_213, %c1_214, %c2_215, %c0_216, %c1_217, %c1_218] : memref<2x2x3x2x33x33xf32, #tpu.memory_space<vmem>>, vector<1x1x1x2x32x32xf32>
    %216 = vector.shape_cast %215 : vector<1x1x1x2x32x32xf32> to vector<2x32x32xf32>
    %217 = vector.broadcast %214 : f32 to vector<2x32x32xf32>
    %218 = arith.mulf %217, %216 : vector<2x32x32xf32>
    %219 = arith.addf %213, %218 : vector<2x32x32xf32>
    %c36 = arith.constant 36 : index
    %220 = memref.load %arg1[%c36] : memref<48xf32, #tpu.memory_space<smem>>
    %c1_219 = arith.constant 1 : index
    %c0_220 = arith.constant 0 : index
    %c0_221 = arith.constant 0 : index
    %c0_222 = arith.constant 0 : index
    %c1_223 = arith.constant 1 : index
    %c0_224 = arith.constant 0 : index
    %221 = vector.load %arg2[%c1_219, %c0_220, %c0_221, %c0_222, %c1_223, %c0_224] : memref<2x2x3x2x33x33xf32, #tpu.memory_space<vmem>>, vector<1x1x1x2x32x32xf32>
    %222 = vector.shape_cast %221 : vector<1x1x1x2x32x32xf32> to vector<2x32x32xf32>
    %223 = vector.broadcast %220 : f32 to vector<2x32x32xf32>
    %224 = arith.mulf %223, %222 : vector<2x32x32xf32>
    %225 = arith.addf %3, %224 : vector<2x32x32xf32>
    %c37 = arith.constant 37 : index
    %226 = memref.load %arg1[%c37] : memref<48xf32, #tpu.memory_space<smem>>
    %c1_225 = arith.constant 1 : index
    %c0_226 = arith.constant 0 : index
    %c1_227 = arith.constant 1 : index
    %c0_228 = arith.constant 0 : index
    %c1_229 = arith.constant 1 : index
    %c0_230 = arith.constant 0 : index
    %227 = vector.load %arg2[%c1_225, %c0_226, %c1_227, %c0_228, %c1_229, %c0_230] : memref<2x2x3x2x33x33xf32, #tpu.memory_space<vmem>>, vector<1x1x1x2x32x32xf32>
    %228 = vector.shape_cast %227 : vector<1x1x1x2x32x32xf32> to vector<2x32x32xf32>
    %229 = vector.broadcast %226 : f32 to vector<2x32x32xf32>
    %230 = arith.mulf %229, %228 : vector<2x32x32xf32>
    %231 = arith.addf %225, %230 : vector<2x32x32xf32>
    %c38 = arith.constant 38 : index
    %232 = memref.load %arg1[%c38] : memref<48xf32, #tpu.memory_space<smem>>
    %c1_231 = arith.constant 1 : index
    %c0_232 = arith.constant 0 : index
    %c2_233 = arith.constant 2 : index
    %c0_234 = arith.constant 0 : index
    %c1_235 = arith.constant 1 : index
    %c0_236 = arith.constant 0 : index
    %233 = vector.load %arg2[%c1_231, %c0_232, %c2_233, %c0_234, %c1_235, %c0_236] : memref<2x2x3x2x33x33xf32, #tpu.memory_space<vmem>>, vector<1x1x1x2x32x32xf32>
    %234 = vector.shape_cast %233 : vector<1x1x1x2x32x32xf32> to vector<2x32x32xf32>
    %235 = vector.broadcast %232 : f32 to vector<2x32x32xf32>
    %236 = arith.mulf %235, %234 : vector<2x32x32xf32>
    %237 = arith.addf %231, %236 : vector<2x32x32xf32>
    %c39 = arith.constant 39 : index
    %238 = memref.load %arg1[%c39] : memref<48xf32, #tpu.memory_space<smem>>
    %c1_237 = arith.constant 1 : index
    %c1_238 = arith.constant 1 : index
    %c0_239 = arith.constant 0 : index
    %c0_240 = arith.constant 0 : index
    %c1_241 = arith.constant 1 : index
    %c0_242 = arith.constant 0 : index
    %239 = vector.load %arg2[%c1_237, %c1_238, %c0_239, %c0_240, %c1_241, %c0_242] : memref<2x2x3x2x33x33xf32, #tpu.memory_space<vmem>>, vector<1x1x1x2x32x32xf32>
    %240 = vector.shape_cast %239 : vector<1x1x1x2x32x32xf32> to vector<2x32x32xf32>
    %241 = vector.broadcast %238 : f32 to vector<2x32x32xf32>
    %242 = arith.mulf %241, %240 : vector<2x32x32xf32>
    %243 = arith.addf %237, %242 : vector<2x32x32xf32>
    %c40 = arith.constant 40 : index
    %244 = memref.load %arg1[%c40] : memref<48xf32, #tpu.memory_space<smem>>
    %c1_243 = arith.constant 1 : index
    %c1_244 = arith.constant 1 : index
    %c1_245 = arith.constant 1 : index
    %c0_246 = arith.constant 0 : index
    %c1_247 = arith.constant 1 : index
    %c0_248 = arith.constant 0 : index
    %245 = vector.load %arg2[%c1_243, %c1_244, %c1_245, %c0_246, %c1_247, %c0_248] : memref<2x2x3x2x33x33xf32, #tpu.memory_space<vmem>>, vector<1x1x1x2x32x32xf32>
    %246 = vector.shape_cast %245 : vector<1x1x1x2x32x32xf32> to vector<2x32x32xf32>
    %247 = vector.broadcast %244 : f32 to vector<2x32x32xf32>
    %248 = arith.mulf %247, %246 : vector<2x32x32xf32>
    %249 = arith.addf %243, %248 : vector<2x32x32xf32>
    %c41 = arith.constant 41 : index
    %250 = memref.load %arg1[%c41] : memref<48xf32, #tpu.memory_space<smem>>
    %c1_249 = arith.constant 1 : index
    %c1_250 = arith.constant 1 : index
    %c2_251 = arith.constant 2 : index
    %c0_252 = arith.constant 0 : index
    %c1_253 = arith.constant 1 : index
    %c0_254 = arith.constant 0 : index
    %251 = vector.load %arg2[%c1_249, %c1_250, %c2_251, %c0_252, %c1_253, %c0_254] : memref<2x2x3x2x33x33xf32, #tpu.memory_space<vmem>>, vector<1x1x1x2x32x32xf32>
    %252 = vector.shape_cast %251 : vector<1x1x1x2x32x32xf32> to vector<2x32x32xf32>
    %253 = vector.broadcast %250 : f32 to vector<2x32x32xf32>
    %254 = arith.mulf %253, %252 : vector<2x32x32xf32>
    %255 = arith.addf %249, %254 : vector<2x32x32xf32>
    %c42 = arith.constant 42 : index
    %256 = memref.load %arg1[%c42] : memref<48xf32, #tpu.memory_space<smem>>
    %c1_255 = arith.constant 1 : index
    %c0_256 = arith.constant 0 : index
    %c0_257 = arith.constant 0 : index
    %c0_258 = arith.constant 0 : index
    %c1_259 = arith.constant 1 : index
    %c1_260 = arith.constant 1 : index
    %257 = vector.load %arg2[%c1_255, %c0_256, %c0_257, %c0_258, %c1_259, %c1_260] : memref<2x2x3x2x33x33xf32, #tpu.memory_space<vmem>>, vector<1x1x1x2x32x32xf32>
    %258 = vector.shape_cast %257 : vector<1x1x1x2x32x32xf32> to vector<2x32x32xf32>
    %259 = vector.broadcast %256 : f32 to vector<2x32x32xf32>
    %260 = arith.mulf %259, %258 : vector<2x32x32xf32>
    %261 = arith.addf %255, %260 : vector<2x32x32xf32>
    %c43 = arith.constant 43 : index
    %262 = memref.load %arg1[%c43] : memref<48xf32, #tpu.memory_space<smem>>
    %c1_261 = arith.constant 1 : index
    %c0_262 = arith.constant 0 : index
    %c1_263 = arith.constant 1 : index
    %c0_264 = arith.constant 0 : index
    %c1_265 = arith.constant 1 : index
    %c1_266 = arith.constant 1 : index
    %263 = vector.load %arg2[%c1_261, %c0_262, %c1_263, %c0_264, %c1_265, %c1_266] : memref<2x2x3x2x33x33xf32, #tpu.memory_space<vmem>>, vector<1x1x1x2x32x32xf32>
    %264 = vector.shape_cast %263 : vector<1x1x1x2x32x32xf32> to vector<2x32x32xf32>
    %265 = vector.broadcast %262 : f32 to vector<2x32x32xf32>
    %266 = arith.mulf %265, %264 : vector<2x32x32xf32>
    %267 = arith.addf %261, %266 : vector<2x32x32xf32>
    %c44 = arith.constant 44 : index
    %268 = memref.load %arg1[%c44] : memref<48xf32, #tpu.memory_space<smem>>
    %c1_267 = arith.constant 1 : index
    %c0_268 = arith.constant 0 : index
    %c2_269 = arith.constant 2 : index
    %c0_270 = arith.constant 0 : index
    %c1_271 = arith.constant 1 : index
    %c1_272 = arith.constant 1 : index
    %269 = vector.load %arg2[%c1_267, %c0_268, %c2_269, %c0_270, %c1_271, %c1_272] : memref<2x2x3x2x33x33xf32, #tpu.memory_space<vmem>>, vector<1x1x1x2x32x32xf32>
    %270 = vector.shape_cast %269 : vector<1x1x1x2x32x32xf32> to vector<2x32x32xf32>
    %271 = vector.broadcast %268 : f32 to vector<2x32x32xf32>
    %272 = arith.mulf %271, %270 : vector<2x32x32xf32>
    %273 = arith.addf %267, %272 : vector<2x32x32xf32>
    %c45 = arith.constant 45 : index
    %274 = memref.load %arg1[%c45] : memref<48xf32, #tpu.memory_space<smem>>
    %c1_273 = arith.constant 1 : index
    %c1_274 = arith.constant 1 : index
    %c0_275 = arith.constant 0 : index
    %c0_276 = arith.constant 0 : index
    %c1_277 = arith.constant 1 : index
    %c1_278 = arith.constant 1 : index
    %275 = vector.load %arg2[%c1_273, %c1_274, %c0_275, %c0_276, %c1_277, %c1_278] : memref<2x2x3x2x33x33xf32, #tpu.memory_space<vmem>>, vector<1x1x1x2x32x32xf32>
    %276 = vector.shape_cast %275 : vector<1x1x1x2x32x32xf32> to vector<2x32x32xf32>
    %277 = vector.broadcast %274 : f32 to vector<2x32x32xf32>
    %278 = arith.mulf %277, %276 : vector<2x32x32xf32>
    %279 = arith.addf %273, %278 : vector<2x32x32xf32>
    %c46 = arith.constant 46 : index
    %280 = memref.load %arg1[%c46] : memref<48xf32, #tpu.memory_space<smem>>
    %c1_279 = arith.constant 1 : index
    %c1_280 = arith.constant 1 : index
    %c1_281 = arith.constant 1 : index
    %c0_282 = arith.constant 0 : index
    %c1_283 = arith.constant 1 : index
    %c1_284 = arith.constant 1 : index
    %281 = vector.load %arg2[%c1_279, %c1_280, %c1_281, %c0_282, %c1_283, %c1_284] : memref<2x2x3x2x33x33xf32, #tpu.memory_space<vmem>>, vector<1x1x1x2x32x32xf32>
    %282 = vector.shape_cast %281 : vector<1x1x1x2x32x32xf32> to vector<2x32x32xf32>
    %283 = vector.broadcast %280 : f32 to vector<2x32x32xf32>
    %284 = arith.mulf %283, %282 : vector<2x32x32xf32>
    %285 = arith.addf %279, %284 : vector<2x32x32xf32>
    %c47 = arith.constant 47 : index
    %286 = memref.load %arg1[%c47] : memref<48xf32, #tpu.memory_space<smem>>
    %c1_285 = arith.constant 1 : index
    %c1_286 = arith.constant 1 : index
    %c2_287 = arith.constant 2 : index
    %c0_288 = arith.constant 0 : index
    %c1_289 = arith.constant 1 : index
    %c1_290 = arith.constant 1 : index
    %287 = vector.load %arg2[%c1_285, %c1_286, %c2_287, %c0_288, %c1_289, %c1_290] : memref<2x2x3x2x33x33xf32, #tpu.memory_space<vmem>>, vector<1x1x1x2x32x32xf32>
    %288 = vector.shape_cast %287 : vector<1x1x1x2x32x32xf32> to vector<2x32x32xf32>
    %289 = vector.broadcast %286 : f32 to vector<2x32x32xf32>
    %290 = arith.mulf %289, %288 : vector<2x32x32xf32>
    %291 = arith.addf %285, %290 : vector<2x32x32xf32>
    %292 = arith.addf %75, %147 : vector<2x32x32xf32>
    %293 = arith.addf %219, %291 : vector<2x32x32xf32>
    %294 = arith.addf %292, %293 : vector<2x32x32xf32>
    %cst_291 = arith.constant 0.000000e+00 : f32
    %295 = vector.broadcast %cst_291 : f32 to vector<2x32x32xf32>
    %296 = arith.cmpf oge, %294, %295 : vector<2x32x32xf32>
    %cst_292 = arith.constant 2.000000e-01 : f32
    %297 = vector.broadcast %cst_292 : f32 to vector<2x32x32xf32>
    %298 = arith.mulf %297, %294 : vector<2x32x32xf32>
    %299 = arith.select %296, %294, %298 : vector<2x32x32xi1>, vector<2x32x32xf32>
    %c0_293 = arith.constant 0 : index
    %c0_294 = arith.constant 0 : index
    %c0_295 = arith.constant 0 : index
    %c0_296 = arith.constant 0 : index
    %300 = vector.load %arg3[%c0_293, %c0_294, %c0_295, %c0_296] : memref<2x1x32x32xf32, #tpu.memory_space<vmem>>, vector<2x1x32x32xf32>
    %301 = vector.shape_cast %300 : vector<2x1x32x32xf32> to vector<2x32x32xf32>
    %302 = vector.shape_cast %299 : vector<2x32x32xf32> to vector<2x1x32x32xf32>
    tpu.vector_store %arg3[%c0_293, %c0_294, %c0_295, %c0_296], %302 {strides = array<i32>} : memref<2x1x32x32xf32, #tpu.memory_space<vmem>>, vector<2x1x32x32xf32>,
    return
  }
  func.func @transform_0(%arg0: i32) -> i32 {
    %c0_i32 = arith.constant 0 : i32
    %c0_i32_0 = arith.constant 0 : i32
    return %c0_i32 : i32
  }
  func.func @transform_1(%arg0: i32) -> (i32, i32, i32, i32, i32, i32) {
    %c0_i32 = arith.constant 0 : i32
    %c0_i32_0 = arith.constant 0 : i32
    %c0_i32_1 = arith.constant 0 : i32
    %c0_i32_2 = arith.constant 0 : i32
    %c0_i32_3 = arith.constant 0 : i32
    %c0_i32_4 = arith.constant 0 : i32
    return %c0_i32, %c0_i32_0, %c0_i32_1, %arg0, %c0_i32_2, %c0_i32_3 : i32, i32, i32, i32, i32, i32
  }
  func.func @transform_2(%arg0: i32) -> (i32, i32, i32, i32) {
    %c0_i32 = arith.constant 0 : i32
    %c0_i32_0 = arith.constant 0 : i32
    %c0_i32_1 = arith.constant 0 : i32
    %c0_i32_2 = arith.constant 0 : i32
    return %arg0, %c0_i32, %c0_i32_0, %c0_i32_1 : i32, i32, i32, i32
  }
}

module attributes {stable_mosaic.version = 11 : i64} {
  func.func @_tail_kernel(%arg0: memref<2x1024xf32, #tpu.memory_space<vmem>>, %arg1: memref<1024x512xf32, #tpu.memory_space<vmem>>, %arg2: memref<512x256xf32, #tpu.memory_space<vmem>>, %arg3: memref<256x128xf32, #tpu.memory_space<vmem>>, %arg4: memref<128x512xf32, #tpu.memory_space<vmem>>, %arg5: memref<512x2xf32, #tpu.memory_space<vmem>>, %arg6: memref<2x512xf32, #tpu.memory_space<vmem>>, %arg7: memref<256x4xf32, #tpu.memory_space<vmem>>, %arg8: memref<4x256xf32, #tpu.memory_space<vmem>>, %arg9: memref<128x8xf32, #tpu.memory_space<vmem>>, %arg10: memref<8x128xf32, #tpu.memory_space<vmem>>, %arg11: memref<1x2xf32, #tpu.memory_space<vmem>>, %arg12: memref<1x2xf32, #tpu.memory_space<vmem>>, %arg13: memref<1x4xf32, #tpu.memory_space<vmem>>, %arg14: memref<1x4xf32, #tpu.memory_space<vmem>>, %arg15: memref<1x8xf32, #tpu.memory_space<vmem>>, %arg16: memref<1x8xf32, #tpu.memory_space<vmem>>, %arg17: memref<2x512xf32, #tpu.memory_space<vmem>>) attributes {dimension_semantics = [], scalar_prefetch = 0 : i64, scratch_operands = 0 : i64, tpu.core_type = #tpu.core_type<tc>} {
    %c0 = arith.constant 0 : index
    %c0_0 = arith.constant 0 : index
    %0 = vector.load %arg0[%c0, %c0_0] : memref<2x1024xf32, #tpu.memory_space<vmem>>, vector<2x1024xf32>
    %c0_1 = arith.constant 0 : index
    %c0_2 = arith.constant 0 : index
    %1 = vector.load %arg1[%c0_1, %c0_2] : memref<1024x512xf32, #tpu.memory_space<vmem>>, vector<1024x512xf32>
    %cst = arith.constant dense<0.000000e+00> : vector<2x512xf32>
    %2 = tpu.matmul %0, %1, %cst {dimension_numbers = #tpu.dot_dimension_numbers<[1], [0], [0], [1], [0, 0, 1, 1], [], []>} : vector<2x1024xf32>, vector<1024x512xf32>, vector<2x512xf32> -> vector<2x512xf32>
    %c0_3 = arith.constant 0 : index
    %c0_4 = arith.constant 0 : index
    %3 = vector.load %arg5[%c0_3, %c0_4] : memref<512x2xf32, #tpu.memory_space<vmem>>, vector<512x2xf32>
    %c0_5 = arith.constant 0 : index
    %c0_6 = arith.constant 0 : index
    %4 = vector.load %arg6[%c0_5, %c0_6] : memref<2x512xf32, #tpu.memory_space<vmem>>, vector<2x512xf32>
    %cst_7 = arith.constant dense<0.000000e+00> : vector<512xf32>
    %5 = vector.multi_reduction <add>, %2, %cst_7 [0] : vector<2x512xf32> to vector<512xf32>
    %6 = vector.shape_cast %5 : vector<512xf32> to vector<1x512xf32>
    %cst_8 = arith.constant dense<0.000000e+00> : vector<1x2xf32>
    %7 = tpu.matmul %6, %3, %cst_8 {dimension_numbers = #tpu.dot_dimension_numbers<[1], [0], [0], [1], [0, 0, 1, 1], [], []>} : vector<1x512xf32>, vector<512x2xf32>, vector<1x2xf32> -> vector<1x2xf32>
    %cst_9 = arith.constant 0.001953125 : f32
    %8 = vector.broadcast %cst_9 : f32 to vector<1x2xf32>
    %9 = arith.mulf %7, %8 : vector<1x2xf32>
    %cst_10 = arith.constant dense<0.000000e+00> : vector<1x512xf32>
    %10 = tpu.matmul %9, %4, %cst_10 {dimension_numbers = #tpu.dot_dimension_numbers<[1], [0], [0], [1], [0, 0, 1, 1], [], []>} : vector<1x2xf32>, vector<2x512xf32>, vector<1x512xf32> -> vector<1x512xf32>
    %11 = vector.broadcast %10 : vector<1x512xf32> to vector<2x512xf32>
    %12 = arith.subf %2, %11 : vector<2x512xf32>
    %13 = arith.mulf %12, %12 : vector<2x512xf32>
    %cst_11 = arith.constant dense<0.000000e+00> : vector<512xf32>
    %14 = vector.multi_reduction <add>, %13, %cst_11 [0] : vector<2x512xf32> to vector<512xf32>
    %15 = vector.shape_cast %14 : vector<512xf32> to vector<1x512xf32>
    %cst_12 = arith.constant dense<0.000000e+00> : vector<1x2xf32>
    %16 = tpu.matmul %15, %3, %cst_12 {dimension_numbers = #tpu.dot_dimension_numbers<[1], [0], [0], [1], [0, 0, 1, 1], [], []>} : vector<1x512xf32>, vector<512x2xf32>, vector<1x2xf32> -> vector<1x2xf32>
    %cst_13 = arith.constant 0.001953125 : f32
    %17 = vector.broadcast %cst_13 : f32 to vector<1x2xf32>
    %18 = arith.mulf %16, %17 : vector<1x2xf32>
    %c0_14 = arith.constant 0 : index
    %c0_15 = arith.constant 0 : index
    %19 = vector.load %arg11[%c0_14, %c0_15] : memref<1x2xf32, #tpu.memory_space<vmem>>, vector<1x2xf32>
    %cst_16 = arith.constant 9.99999974E-6 : f32
    %20 = vector.broadcast %cst_16 : f32 to vector<1x2xf32>
    %21 = arith.addf %18, %20 : vector<1x2xf32>
    %22 = math.rsqrt %21 : vector<1x2xf32>
    %23 = arith.mulf %19, %22 : vector<1x2xf32>
    %c0_17 = arith.constant 0 : index
    %c0_18 = arith.constant 0 : index
    %24 = vector.load %arg12[%c0_17, %c0_18] : memref<1x2xf32, #tpu.memory_space<vmem>>, vector<1x2xf32>
    %25 = arith.mulf %9, %23 : vector<1x2xf32>
    %26 = arith.subf %24, %25 : vector<1x2xf32>
    %cst_19 = arith.constant dense<0.000000e+00> : vector<1x512xf32>
    %27 = tpu.matmul %23, %4, %cst_19 {dimension_numbers = #tpu.dot_dimension_numbers<[1], [0], [0], [1], [0, 0, 1, 1], [], []>} : vector<1x2xf32>, vector<2x512xf32>, vector<1x512xf32> -> vector<1x512xf32>
    %28 = vector.broadcast %27 : vector<1x512xf32> to vector<2x512xf32>
    %29 = arith.mulf %2, %28 : vector<2x512xf32>
    %cst_20 = arith.constant dense<0.000000e+00> : vector<1x512xf32>
    %30 = tpu.matmul %26, %4, %cst_20 {dimension_numbers = #tpu.dot_dimension_numbers<[1], [0], [0], [1], [0, 0, 1, 1], [], []>} : vector<1x2xf32>, vector<2x512xf32>, vector<1x512xf32> -> vector<1x512xf32>
    %31 = vector.broadcast %30 : vector<1x512xf32> to vector<2x512xf32>
    %32 = arith.addf %29, %31 : vector<2x512xf32>
    %cst_21 = arith.constant 0.000000e+00 : f32
    %33 = vector.broadcast %cst_21 : f32 to vector<2x512xf32>
    %34 = arith.cmpf oge, %32, %33 : vector<2x512xf32>
    %cst_22 = arith.constant 2.000000e-01 : f32
    %35 = vector.broadcast %cst_22 : f32 to vector<2x512xf32>
    %36 = arith.mulf %35, %32 : vector<2x512xf32>
    %37 = arith.select %34, %32, %36 : vector<2x512xi1>, vector<2x512xf32>
    %c0_23 = arith.constant 0 : index
    %c0_24 = arith.constant 0 : index
    %38 = vector.load %arg2[%c0_23, %c0_24] : memref<512x256xf32, #tpu.memory_space<vmem>>, vector<512x256xf32>
    %cst_25 = arith.constant dense<0.000000e+00> : vector<2x256xf32>
    %39 = tpu.matmul %37, %38, %cst_25 {dimension_numbers = #tpu.dot_dimension_numbers<[1], [0], [0], [1], [0, 0, 1, 1], [], []>} : vector<2x512xf32>, vector<512x256xf32>, vector<2x256xf32> -> vector<2x256xf32>
    %c0_26 = arith.constant 0 : index
    %c0_27 = arith.constant 0 : index
    %40 = vector.load %arg7[%c0_26, %c0_27] : memref<256x4xf32, #tpu.memory_space<vmem>>, vector<256x4xf32>
    %c0_28 = arith.constant 0 : index
    %c0_29 = arith.constant 0 : index
    %41 = vector.load %arg8[%c0_28, %c0_29] : memref<4x256xf32, #tpu.memory_space<vmem>>, vector<4x256xf32>
    %cst_30 = arith.constant dense<0.000000e+00> : vector<256xf32>
    %42 = vector.multi_reduction <add>, %39, %cst_30 [0] : vector<2x256xf32> to vector<256xf32>
    %43 = vector.shape_cast %42 : vector<256xf32> to vector<1x256xf32>
    %cst_31 = arith.constant dense<0.000000e+00> : vector<1x4xf32>
    %44 = tpu.matmul %43, %40, %cst_31 {dimension_numbers = #tpu.dot_dimension_numbers<[1], [0], [0], [1], [0, 0, 1, 1], [], []>} : vector<1x256xf32>, vector<256x4xf32>, vector<1x4xf32> -> vector<1x4xf32>
    %cst_32 = arith.constant 7.812500e-03 : f32
    %45 = vector.broadcast %cst_32 : f32 to vector<1x4xf32>
    %46 = arith.mulf %44, %45 : vector<1x4xf32>
    %cst_33 = arith.constant dense<0.000000e+00> : vector<1x256xf32>
    %47 = tpu.matmul %46, %41, %cst_33 {dimension_numbers = #tpu.dot_dimension_numbers<[1], [0], [0], [1], [0, 0, 1, 1], [], []>} : vector<1x4xf32>, vector<4x256xf32>, vector<1x256xf32> -> vector<1x256xf32>
    %48 = vector.broadcast %47 : vector<1x256xf32> to vector<2x256xf32>
    %49 = arith.subf %39, %48 : vector<2x256xf32>
    %50 = arith.mulf %49, %49 : vector<2x256xf32>
    %cst_34 = arith.constant dense<0.000000e+00> : vector<256xf32>
    %51 = vector.multi_reduction <add>, %50, %cst_34 [0] : vector<2x256xf32> to vector<256xf32>
    %52 = vector.shape_cast %51 : vector<256xf32> to vector<1x256xf32>
    %cst_35 = arith.constant dense<0.000000e+00> : vector<1x4xf32>
    %53 = tpu.matmul %52, %40, %cst_35 {dimension_numbers = #tpu.dot_dimension_numbers<[1], [0], [0], [1], [0, 0, 1, 1], [], []>} : vector<1x256xf32>, vector<256x4xf32>, vector<1x4xf32> -> vector<1x4xf32>
    %cst_36 = arith.constant 7.812500e-03 : f32
    %54 = vector.broadcast %cst_36 : f32 to vector<1x4xf32>
    %55 = arith.mulf %53, %54 : vector<1x4xf32>
    %c0_37 = arith.constant 0 : index
    %c0_38 = arith.constant 0 : index
    %56 = vector.load %arg13[%c0_37, %c0_38] : memref<1x4xf32, #tpu.memory_space<vmem>>, vector<1x4xf32>
    %cst_39 = arith.constant 9.99999974E-6 : f32
    %57 = vector.broadcast %cst_39 : f32 to vector<1x4xf32>
    %58 = arith.addf %55, %57 : vector<1x4xf32>
    %59 = math.rsqrt %58 : vector<1x4xf32>
    %60 = arith.mulf %56, %59 : vector<1x4xf32>
    %c0_40 = arith.constant 0 : index
    %c0_41 = arith.constant 0 : index
    %61 = vector.load %arg14[%c0_40, %c0_41] : memref<1x4xf32, #tpu.memory_space<vmem>>, vector<1x4xf32>
    %62 = arith.mulf %46, %60 : vector<1x4xf32>
    %63 = arith.subf %61, %62 : vector<1x4xf32>
    %cst_42 = arith.constant dense<0.000000e+00> : vector<1x256xf32>
    %64 = tpu.matmul %60, %41, %cst_42 {dimension_numbers = #tpu.dot_dimension_numbers<[1], [0], [0], [1], [0, 0, 1, 1], [], []>} : vector<1x4xf32>, vector<4x256xf32>, vector<1x256xf32> -> vector<1x256xf32>
    %65 = vector.broadcast %64 : vector<1x256xf32> to vector<2x256xf32>
    %66 = arith.mulf %39, %65 : vector<2x256xf32>
    %cst_43 = arith.constant dense<0.000000e+00> : vector<1x256xf32>
    %67 = tpu.matmul %63, %41, %cst_43 {dimension_numbers = #tpu.dot_dimension_numbers<[1], [0], [0], [1], [0, 0, 1, 1], [], []>} : vector<1x4xf32>, vector<4x256xf32>, vector<1x256xf32> -> vector<1x256xf32>
    %68 = vector.broadcast %67 : vector<1x256xf32> to vector<2x256xf32>
    %69 = arith.addf %66, %68 : vector<2x256xf32>
    %cst_44 = arith.constant 0.000000e+00 : f32
    %70 = vector.broadcast %cst_44 : f32 to vector<2x256xf32>
    %71 = arith.cmpf oge, %69, %70 : vector<2x256xf32>
    %cst_45 = arith.constant 2.000000e-01 : f32
    %72 = vector.broadcast %cst_45 : f32 to vector<2x256xf32>
    %73 = arith.mulf %72, %69 : vector<2x256xf32>
    %74 = arith.select %71, %69, %73 : vector<2x256xi1>, vector<2x256xf32>
    %c0_46 = arith.constant 0 : index
    %c0_47 = arith.constant 0 : index
    %75 = vector.load %arg3[%c0_46, %c0_47] : memref<256x128xf32, #tpu.memory_space<vmem>>, vector<256x128xf32>
    %cst_48 = arith.constant dense<0.000000e+00> : vector<2x128xf32>
    %76 = tpu.matmul %74, %75, %cst_48 {dimension_numbers = #tpu.dot_dimension_numbers<[1], [0], [0], [1], [0, 0, 1, 1], [], []>} : vector<2x256xf32>, vector<256x128xf32>, vector<2x128xf32> -> vector<2x128xf32>
    %c0_49 = arith.constant 0 : index
    %c0_50 = arith.constant 0 : index
    %77 = vector.load %arg9[%c0_49, %c0_50] : memref<128x8xf32, #tpu.memory_space<vmem>>, vector<128x8xf32>
    %c0_51 = arith.constant 0 : index
    %c0_52 = arith.constant 0 : index
    %78 = vector.load %arg10[%c0_51, %c0_52] : memref<8x128xf32, #tpu.memory_space<vmem>>, vector<8x128xf32>
    %cst_53 = arith.constant dense<0.000000e+00> : vector<128xf32>
    %79 = vector.multi_reduction <add>, %76, %cst_53 [0] : vector<2x128xf32> to vector<128xf32>
    %80 = vector.shape_cast %79 : vector<128xf32> to vector<1x128xf32>
    %cst_54 = arith.constant dense<0.000000e+00> : vector<1x8xf32>
    %81 = tpu.matmul %80, %77, %cst_54 {dimension_numbers = #tpu.dot_dimension_numbers<[1], [0], [0], [1], [0, 0, 1, 1], [], []>} : vector<1x128xf32>, vector<128x8xf32>, vector<1x8xf32> -> vector<1x8xf32>
    %cst_55 = arith.constant 3.125000e-02 : f32
    %82 = vector.broadcast %cst_55 : f32 to vector<1x8xf32>
    %83 = arith.mulf %81, %82 : vector<1x8xf32>
    %cst_56 = arith.constant dense<0.000000e+00> : vector<1x128xf32>
    %84 = tpu.matmul %83, %78, %cst_56 {dimension_numbers = #tpu.dot_dimension_numbers<[1], [0], [0], [1], [0, 0, 1, 1], [], []>} : vector<1x8xf32>, vector<8x128xf32>, vector<1x128xf32> -> vector<1x128xf32>
    %85 = vector.broadcast %84 : vector<1x128xf32> to vector<2x128xf32>
    %86 = arith.subf %76, %85 : vector<2x128xf32>
    %87 = arith.mulf %86, %86 : vector<2x128xf32>
    %cst_57 = arith.constant dense<0.000000e+00> : vector<128xf32>
    %88 = vector.multi_reduction <add>, %87, %cst_57 [0] : vector<2x128xf32> to vector<128xf32>
    %89 = vector.shape_cast %88 : vector<128xf32> to vector<1x128xf32>
    %cst_58 = arith.constant dense<0.000000e+00> : vector<1x8xf32>
    %90 = tpu.matmul %89, %77, %cst_58 {dimension_numbers = #tpu.dot_dimension_numbers<[1], [0], [0], [1], [0, 0, 1, 1], [], []>} : vector<1x128xf32>, vector<128x8xf32>, vector<1x8xf32> -> vector<1x8xf32>
    %cst_59 = arith.constant 3.125000e-02 : f32
    %91 = vector.broadcast %cst_59 : f32 to vector<1x8xf32>
    %92 = arith.mulf %90, %91 : vector<1x8xf32>
    %c0_60 = arith.constant 0 : index
    %c0_61 = arith.constant 0 : index
    %93 = vector.load %arg15[%c0_60, %c0_61] : memref<1x8xf32, #tpu.memory_space<vmem>>, vector<1x8xf32>
    %cst_62 = arith.constant 9.99999974E-6 : f32
    %94 = vector.broadcast %cst_62 : f32 to vector<1x8xf32>
    %95 = arith.addf %92, %94 : vector<1x8xf32>
    %96 = math.rsqrt %95 : vector<1x8xf32>
    %97 = arith.mulf %93, %96 : vector<1x8xf32>
    %c0_63 = arith.constant 0 : index
    %c0_64 = arith.constant 0 : index
    %98 = vector.load %arg16[%c0_63, %c0_64] : memref<1x8xf32, #tpu.memory_space<vmem>>, vector<1x8xf32>
    %99 = arith.mulf %83, %97 : vector<1x8xf32>
    %100 = arith.subf %98, %99 : vector<1x8xf32>
    %cst_65 = arith.constant dense<0.000000e+00> : vector<1x128xf32>
    %101 = tpu.matmul %97, %78, %cst_65 {dimension_numbers = #tpu.dot_dimension_numbers<[1], [0], [0], [1], [0, 0, 1, 1], [], []>} : vector<1x8xf32>, vector<8x128xf32>, vector<1x128xf32> -> vector<1x128xf32>
    %102 = vector.broadcast %101 : vector<1x128xf32> to vector<2x128xf32>
    %103 = arith.mulf %76, %102 : vector<2x128xf32>
    %cst_66 = arith.constant dense<0.000000e+00> : vector<1x128xf32>
    %104 = tpu.matmul %100, %78, %cst_66 {dimension_numbers = #tpu.dot_dimension_numbers<[1], [0], [0], [1], [0, 0, 1, 1], [], []>} : vector<1x8xf32>, vector<8x128xf32>, vector<1x128xf32> -> vector<1x128xf32>
    %105 = vector.broadcast %104 : vector<1x128xf32> to vector<2x128xf32>
    %106 = arith.addf %103, %105 : vector<2x128xf32>
    %cst_67 = arith.constant 0.000000e+00 : f32
    %107 = vector.broadcast %cst_67 : f32 to vector<2x128xf32>
    %108 = arith.cmpf oge, %106, %107 : vector<2x128xf32>
    %cst_68 = arith.constant 2.000000e-01 : f32
    %109 = vector.broadcast %cst_68 : f32 to vector<2x128xf32>
    %110 = arith.mulf %109, %106 : vector<2x128xf32>
    %111 = arith.select %108, %106, %110 : vector<2x128xi1>, vector<2x128xf32>
    %c0_69 = arith.constant 0 : index
    %c0_70 = arith.constant 0 : index
    %112 = vector.load %arg4[%c0_69, %c0_70] : memref<128x512xf32, #tpu.memory_space<vmem>>, vector<128x512xf32>
    %cst_71 = arith.constant dense<0.000000e+00> : vector<2x512xf32>
    %113 = tpu.matmul %111, %112, %cst_71 {dimension_numbers = #tpu.dot_dimension_numbers<[1], [0], [0], [1], [0, 0, 1, 1], [], []>} : vector<2x128xf32>, vector<128x512xf32>, vector<2x512xf32> -> vector<2x512xf32>
    %c0_72 = arith.constant 0 : index
    %c0_73 = arith.constant 0 : index
    %114 = vector.load %arg17[%c0_72, %c0_73] : memref<2x512xf32, #tpu.memory_space<vmem>>, vector<2x512xf32>
    tpu.vector_store %arg17[%c0_72, %c0_73], %113 {strides = array<i32>} : memref<2x512xf32, #tpu.memory_space<vmem>>, vector<2x512xf32>,
    return
  }
}

</mosaic_0001>

<bundles_post_ra>
// kernel: encoder_forward.2
= control target key start
LH: loop header
LB: loop body
LE: loop exit
PB: predicated region body
PF: predicated region fallthrough
CT: control target
= control target key end

     0   :  { %7 = vsyncpa [#allocation3], 0  ;;  %s2160_s12 = smov [#allocation2]   ;;  %s4120_s0 = inlined_call_operand.vmem [shape: f32[48], index: 0, kind: input, shape index: {}]   ;;  %s4121_s1 = inlined_call_operand.vmem [shape: f32[2,2,3,2,33,33], index: 1, kind: input, shape index: {}]   ;;  %s4122_s2 = inlined_call_operand.vmem [shape: f32[2,1,32,32], index: 2, kind: output, shape index: {}]  }
   0x1   :  { %s13_s11 = sshll.u32 %s4120_s0, 4  ;;  %s14_s11 = int_to_ptr.vmem [resolvable:$true] %s13_s11 }
   0x2   :  { %16 = dma.vmem_to_smem %s14_s11, 16, %s2160_s12, [#allocation3]  }
   0x3   :  { %2158 = dma.done.wait [#allocation3], 16  }
   0x4   :  { %2159 = vsyncadd [#allocation3], 4294967280 }
   0x5   :  { %23 = sfence }
   0x6   :  { %s1966_s13 = sld [smem:[#allocation2 + $0x6]]  ;;  %v27_v0 = vld [vmem:[%s4121_s1 + $0x10] sm:$0xff]  ;;  %v25_v1 = vld [vmem:[%s4121_s1] sm:$0xff]  ;;  %v29_v3 = vld [vmem:[%s4121_s1 + $0x28] sm:$0xff]  ;;  %s2161_s24 = smov 127   ;;  %vm1907_vm0 = vcmask 261120  }
   0x7   :  { %s24_s14 = sld [smem:[#allocation2]]  ;;  %v28_v7 = vld [vmem:[%s4121_s1 + $0x18] sm:$0xff]  ;;  %v26_v9 = vld [vmem:[%s4121_s1 + $0x8] sm:$0xff]  ;;  %v30_v14 = vld [vmem:[%s4121_s1 + $0x30] sm:$0xff] }
   0x8   :  { %s1921_s15 = sld [smem:[#allocation2 + $0x1]]  ;;  %v1924_v15 = vld [vmem:[%s4121_s1 + $0x60] sm:$0xff]  ;;  %v1923_v18 = vld [vmem:[%s4121_s1 + $0x58] sm:$0xff]  ;;  %v1922_v19 = vld [vmem:[%s4121_s1 + $0x50] sm:$0xff] }
   0x9   :  { %s2189_s21 = sld [smem:[#allocation2 + $0x2]]  ;;  %v2215_v24 = vld [vmem:[%s4121_s1 + $0x80] sm:$0xff]  ;;  %v1926_v30 = vld [vmem:[%s4121_s1 + $0x78] sm:$0xff]  ;;  %v1925_v35 = vld [vmem:[%s4121_s1 + $0x68] sm:$0xff] }
   0xa   :  { %v32_v27 = vld [vmem:[%s4121_s1 + $0x40] sm:$0xff]  ;;  %v31_v36 = vld [vmem:[%s4121_s1 + $0x38] sm:$0xff]  ;;  %v1929_v45 = vld [vmem:[%s4121_s1 + $0x90] sm:$0xff]  ;;  %s1968_s8 = sld [smem:[#allocation2 + $0x8]] }
   0xb   :  { %v1931_v40 = vld [vmem:[%s4121_s1 + $0xa0] sm:$0xff]  ;;  %v1928_v48 = vld [vmem:[%s4121_s1 + $0x88] sm:$0xff]  ;;  %v1934_v53 = vld [vmem:[%s4121_s1 + $0xb8] sm:$0xff]  ;;  %s1969_s11 = sld [smem:[#allocation2 + $0x9]] }
   0xc   :  { %v186_v2 = vstv %s1966_s13  ;;  %s1967_s13 = sld [smem:[#allocation2 + $0x7]]  ;;  %v1933_v59 = vld [vmem:[%s4121_s1 + $0xb0] sm:$0xff]  ;;  %v1932_v60 = vld [vmem:[%s4121_s1 + $0xa8] sm:$0xff] }
   0xd   :  { %v189_v4 = vmul.f32 %v186_v2, %v27_v0  ;;  %v33_v5 = vstv %s24_s14  ;;  %v187_v6 = vmul.f32 %v186_v2, %v25_v1  ;;  %v191_v10 = vmul.f32 %v186_v2, %v29_v3  ;;  %s1939_s12 = sld [smem:[#allocation2 + $0x3]] }
   0xe   :  { %v36_v8 = vmul.f32 %v33_v5, %v27_v0  ;;  %v60_v11 = vstv %s1921_s15  ;;  %v34_v12 = vmul.f32 %v33_v5, %v25_v1  ;;  %v35_v13 = vmul.f32 %v33_v5, %v26_v9  ;;  %s1957_s14 = sld [smem:[#allocation2 + $0x5]] }
   0xf   :  { %207 = vrot.lane.b32.xlu1 %v189_v4, %s2161_s24  ;;  %203 = vrot.lane.b32.xlu0 %v187_v6, %s2161_s24  ;;  %v39_v16 = vmul.f32 %v33_v5, %v30_v14  ;;  %v63_v17 = vmul.f32 %v1924_v15, %v60_v11  ;;  %v190_v20 = vmul.f32 %v186_v2, %v28_v7  ;;  %v87_v41 = vstv %s2189_s21  ;;  %s1970_s3 = sld [smem:[#allocation2 + $0xa]] }
  0x10   :  { %211 = vrot.lane.b32.xlu2 %v191_v10, %s2161_s24  ;;  %v38_v21 = vmul.f32 %v33_v5, %v29_v3  ;;  %v62_v22 = vmul.f32 %v1923_v18, %v60_v11  ;;  %v61_v23 = vmul.f32 %v1922_v19, %v60_v11  ;;  %v37_v25 = vmul.f32 %v33_v5, %v28_v7  ;;  %v1936_v7 = vld [vmem:[%s4121_s1 + $0xd0] sm:$0xff]  ;;  %s1971_s28 = sld [smem:[#allocation2 + $0xb]] }
  0x11   :  { %v188_v26 = vmul.f32 %v186_v2, %v26_v9  ;;  %v71_v28 = vadd.f32 %v63_v17, %v36_v8  ;;  %v66_v29 = vmul.f32 %v2215_v24, %v60_v11  ;;  %v41_v31 = vmul.f32 %v33_v5, %v32_v27  ;;  %v1935_v8 = vld [vmem:[%s4121_s1 + $0xc8] sm:$0xff]  ;;  %v1938_v17 = vld [vmem:[%s4121_s1 + $0xe0] sm:$0xff]  ;;  %s1972_s9 = sld [smem:[#allocation2 + $0xc]] }
  0x12   :  { %v70_v32 = vadd.f32 %v62_v22, %v35_v13  ;;  %v69_v33 = vadd.f32 %v61_v23, %v34_v12  ;;  %v65_v34 = vmul.f32 %v1926_v30, %v60_v11  ;;  %v192_v37 = vmul.f32 %v186_v2, %v30_v14  ;;  %s1981_s10 = sld [smem:[#allocation2 + $0xd]] }
  0x13   :  { %v74_v38 = vadd.f32 %v66_v29, %v39_v16  ;;  %v64_v39 = vmul.f32 %v1925_v35, %v60_v11  ;;  %v40_v42 = vmul.f32 %v33_v5, %v31_v36  ;;  %v88_v44 = vmul.f32 %v1931_v40, %v87_v41  ;;  %s1990_s4 = sld [smem:[#allocation2 + $0xe]] }
  0x14   :  { %v73_v43 = vadd.f32 %v65_v34, %v38_v21  ;;  %v68_v47 = vmul.f32 %v1929_v45, %v60_v11  ;;  %v67_v50 = vmul.f32 %v1928_v48, %v60_v11  ;;  %v194_v54 = vmul.f32 %v186_v2, %v32_v27  ;;  %v1942_v34 = vld [vmem:[%s4121_s1 + $0x100] sm:$0xff]  ;;  %s2029_s7 = sld [smem:[#allocation2 + $0x15]] }
  0x15   :  { %v72_v46 = vadd.f32 %v64_v39, %v37_v25  ;;  %v2242_v49 = vadd.f32 %v88_v44, %v69_v33  ;;  %v193_v55 = vmul.f32 %v186_v2, %v31_v36  ;;  %v91_v56 = vmul.f32 %v1934_v53, %v87_v41  ;;  %v1937_v2 = vld [vmem:[%s4121_s1 + $0xd8] sm:$0xff]  ;;  %s2017_s16 = sld [smem:[#allocation2 + $0x11]] }
  0x16   :  { %v76_v51 = vadd.f32 %v68_v47, %v41_v31  ;;  %v75_v52 = vadd.f32 %v67_v50, %v40_v42  ;;  %v236_v57 = vstv %s1967_s13  ;;  %v90_v62 = vmul.f32 %v1933_v59, %v87_v41  ;;  %s1948_s13 = sld [smem:[#allocation2 + $0x4]] }
  0x17   :  { %209 = vrot.lane.b32.xlu1 %v190_v20, %s2161_s24  ;;  %205 = vrot.lane.b32.xlu0 %v188_v26, %s2161_s24  ;;  %v237_v58 = vmul.f32 %v1922_v19, %v236_v57  ;;  %v2256_v61 = vadd.f32 %v91_v56, %v72_v46  ;;  %v89_v63 = vmul.f32 %v1932_v60, %v87_v41  ;;  %v286_v19 = vstv %s1968_s8  ;;  %v2345_v56 = vld [vmem:[%s4121_s1 + $0x170] sm:$0xff]  ;;  %s1999_s8 = sld [smem:[#allocation2 + $0xf]] }
  0x18   :  { %213 = vrot.lane.b32.xlu2 %v192_v37, %s2161_s24  ;;  %v2259_v0 = vadd.f32 %v90_v62, %v71_v28  ;;  %v239_v3 = vmul.f32 %v1924_v15, %v236_v57  ;;  %v238_v4 = vmul.f32 %v1923_v18, %v236_v57  ;;  %v94_v5 = vmul.f32 %v1937_v2, %v87_v41  ;;  %v1944_v37 = vld [vmem:[%s4121_s1 + $0x118] sm:$0xff]  ;;  %v1947_v62 = vld [vmem:[%s4121_s1 + $0x130] sm:$0xff]  ;;  %s2030_s27 = sld [smem:[#allocation2 + $0x16]] }
  0x19   :  { %v2261_v1 = vadd.f32 %v89_v63, %v70_v32  ;;  %v240_v6 = vmul.f32 %v1925_v35, %v236_v57  ;;  %v93_v10 = vmul.f32 %v1936_v7, %v87_v41  ;;  %v92_v11 = vmul.f32 %v1935_v8, %v87_v41  ;;  %v1940_v32 = vld [vmem:[%s4121_s1 + $0xf0] sm:$0xff]  ;;  %v1946_v63 = vld [vmem:[%s4121_s1 + $0x128] sm:$0xff]  ;;  %s2868_s21 = sld [smem:[#allocation2 + $0x17]] }
  0x1a   :  { %v2274_v9 = vadd.f32 %v94_v5, %v75_v52  ;;  %v242_v14 = vmul.f32 %v2215_v24, %v236_v57  ;;  %v241_v15 = vmul.f32 %v1926_v30, %v236_v57  ;;  %v243_v16 = vmul.f32 %v1928_v48, %v236_v57  ;;  %v1941_v30 = vld [vmem:[%s4121_s1 + $0xf8] sm:$0xff]  ;;  %v1945_v48 = vld [vmem:[%s4121_s1 + $0x120] sm:$0xff]  ;;  %s2032_s5 = sld [smem:[#allocation2 + $0x18]] }
  0x1b   :  { %v2277_v12 = vadd.f32 %v93_v10, %v74_v38  ;;  %v100_v13 = vadd.f32 %v92_v11, %v73_v43  ;;  %v95_v18 = vmul.f32 %v1938_v17, %v87_v41  ;;  %v287_v21 = vmul.f32 %v1931_v40, %v286_v19  ;;  %v2317_v41 = vld [vmem:[%s4121_s1 + $0x168] sm:$0xff]  ;;  %v2326_v43 = vld [vmem:[%s4121_s1 + $0x1b8] sm:$0xff]  ;;  %v1949_v5 = vld [vmem:[%s4121_s1 + $0x140] sm:$0xff]  ;;  %s2033_s6 = sld [smem:[#allocation2 + $0x19]] }
  0x1c   :  { %v244_v22 = vmul.f32 %v1929_v45, %v236_v57  ;;  %v288_v23 = vmul.f32 %v1932_v60, %v286_v19  ;;  %v290_v24 = vmul.f32 %v1934_v53, %v286_v19  ;;  %v289_v25 = vmul.f32 %v1933_v59, %v286_v19  ;;  %v1943_v45 = vld [vmem:[%s4121_s1 + $0x108] sm:$0xff]  ;;  %s3264_s0 = sld [smem:[#allocation2 + $0x22]] }
  0x1d   :  { %v2286_v20 = vadd.f32 %v95_v18, %v76_v51  ;;  %v291_v26 = vmul.f32 %v1935_v8, %v286_v19  ;;  %v293_v27 = vmul.f32 %v1937_v2, %v286_v19  ;;  %v292_v28 = vmul.f32 %v1936_v7, %v286_v19  ;;  %v1958_v18 = vld [vmem:[%s4121_s1 + $0x190] sm:$0xff]  ;;  %s3407_s19 = sld [smem:[#allocation2 + $0x25]] }
  0x1e   :  { %v294_v29 = vmul.f32 %v1938_v17, %v286_v19  ;;  %v336_v31 = vstv %s1969_s11  ;;  %v2302_v33 = vstv %s1939_s12  ;;  %v2312_v39 = vstv %s1948_s13  ;;  %s2026_s11 = sld [smem:[#allocation2 + $0x12]] }
  0x1f   :  { %217 = vrot.lane.b32.xlu1 %v194_v54, %s2161_s24  ;;  %215 = vrot.lane.b32.xlu0 %v193_v55, %s2161_s24  ;;  %v338_v35 = vmul.f32 %v1941_v30, %v336_v31  ;;  %v337_v36 = vmul.f32 %v1940_v32, %v336_v31  ;;  %v119_v38 = vmul.f32 %v1944_v37, %v2302_v33  ;;  %v2328_v44 = vstv %s1957_s14  ;;  %s2027_s13 = sld [smem:[#allocation2 + $0x13]] }
  0x20   :  { %253 = vrot.lane.b32.xlu2 %v237_v58, %s2161_s24  ;;  %v339_v40 = vmul.f32 %v1942_v34, %v336_v31  ;;  %v146_v42 = vmul.f32 %v2317_v41, %v2312_v39  ;;  %v173_v46 = vmul.f32 %v2326_v43, %v2328_v44  ;;  %v341_v51 = vmul.f32 %v1944_v37, %v336_v31  ;;  %v2354_v58 = vld [vmem:[%s4121_s1 + $0x1c0] sm:$0xff]  ;;  %v1959_v37 = vld [vmem:[%s4121_s1 + $0x198] sm:$0xff]  ;;  %s2069_s12 = sld [smem:[#allocation2 + $0x1d]] }
  0x21   :  { %v127_v47 = vadd.f32 %v119_v38, %v100_v13  ;;  %v340_v52 = vmul.f32 %v1943_v45, %v336_v31  ;;  %v120_v53 = vmul.f32 %v1945_v48, %v2302_v33  ;;  %v342_v55 = vmul.f32 %v1945_v48, %v336_v31  ;;  %v1956_v48 = vld [vmem:[%s4121_s1 + $0x180] sm:$0xff]  ;;  %s3420_s22 = sld [smem:[#allocation2 + $0x23]] }
  0x22   :  { %v147_v57 = vmul.f32 %v2345_v56, %v2312_v39  ;;  %v115_v59 = vmul.f32 %v1940_v32, %v2302_v33  ;;  %v117_v60 = vmul.f32 %v1942_v34, %v2302_v33  ;;  %v174_v2 = vmul.f32 %v2354_v58, %v2328_v44  ;;  %s2138_s15 = sld [smem:[#allocation2 + $0x2a]] }
  0x23   :  { %v154_v50 = vadd.f32 %v146_v42, %v127_v47  ;;  %v142_v7 = vmul.f32 %v1949_v5, %v2312_v39  ;;  %v344_v10 = vmul.f32 %v1947_v62, %v336_v31  ;;  %v343_v11 = vmul.f32 %v1946_v63, %v336_v31 }
  0x24   :  { %v2376_v13 = vstv %s1970_s3  ;;  %v170_v42 = vmul.f32 %v1959_v37, %v2328_v44  ;;  %v121_v47 = vmul.f32 %v1946_v63, %v2302_v33  ;;  %s2081_s3 = sld [smem:[#allocation2 + $0x21]] }
  0x25   :  { %v2340_v54 = vadd.f32 %v173_v46, %v154_v50  ;;  %v387_v17 = vmul.f32 %v1949_v5, %v2376_v13  ;;  %v149_v50 = vmul.f32 %v1956_v48, %v2312_v39 }
  0x27   :  { %257 = vrot.lane.b32.xlu1 %v239_v3, %s2161_s24  ;;  %255 = vrot.lane.b32.xlu0 %v238_v4, %s2161_s24  ;;  %v128_v3 = vadd.f32 %v120_v53, %v2277_v12  ;;  %v1951_v4 = vld [vmem:[%s4121_s1 + $0x150] sm:$0xff]  ;;  %v391_v53 = vmul.f32 %v2317_v41, %v2376_v13 }
  0x28   :  { %259 = vrot.lane.b32.xlu2 %v240_v6, %s2161_s24  ;;  %v144_v6 = vmul.f32 %v1951_v4, %v2312_v39 }
  0x29   :  { %v155_v8 = vadd.f32 %v147_v57, %v128_v3 }
  0x2b   :  { %v2378_v12 = vadd.f32 %v174_v2, %v155_v8 }
  0x2f   :  { %263 = vrot.lane.b32.xlu1 %v242_v14, %s2161_s24  ;;  %261 = vrot.lane.b32.xlu0 %v241_v15, %s2161_s24  ;;  %v2383_v14 = vld [vmem:[%s4121_s1 + $0x1a0] sm:$0xff]  ;;  %v125_v15 = vadd.f32 %v117_v60, %v2259_v0  ;;  %v116_v0 = vmul.f32 %v1941_v30, %v2302_v33  ;;  %v389_v30 = vmul.f32 %v1951_v4, %v2376_v13  ;;  %v1964_v60 = vld [vmem:[%s4121_s1 + $0x1c8] sm:$0xff] }
  0x30   :  { %265 = vrot.lane.b32.xlu2 %v243_v16, %s2161_s24  ;;  %v123_v16 = vadd.f32 %v115_v59, %v2242_v49  ;;  %v171_v19 = vmul.f32 %v2383_v14, %v2328_v44  ;;  %v118_v49 = vmul.f32 %v1943_v45, %v2302_v33  ;;  %v175_v2 = vmul.f32 %v1964_v60, %v2328_v44 }
  0x31   :  { %v124_v34 = vadd.f32 %v116_v0, %v2261_v1  ;;  %v522_v0 = vstv %s1981_s10 }
  0x32   :  { %v126_v32 = vadd.f32 %v118_v49, %v2256_v61  ;;  %v122_v61 = vmul.f32 %v1947_v62, %v2302_v33  ;;  %v1965_v62 = vld [vmem:[%s4121_s1 + $0x1d0] sm:$0xff] }
  0x33   :  { %v176_v41 = vmul.f32 %v1965_v62, %v2328_v44 }
  0x34   :  { %v130_v57 = vadd.f32 %v122_v61, %v2286_v20 }
  0x36   :  { %v157_v63 = vadd.f32 %v149_v50, %v130_v57  ;;  %v1976_v50 = vld [vmem:[%s4121_s1 + $0x1f8] sm:$0xff] }
  0x37   :  { %303 = vrot.lane.b32.xlu1 %v287_v21, %s2161_s24  ;;  %267 = vrot.lane.b32.xlu0 %v244_v22, %s2161_s24  ;;  %v152_v21 = vadd.f32 %v144_v6, %v125_v15  ;;  %v169_v22 = vmul.f32 %v1958_v18, %v2328_v44 }
  0x38   :  { %305 = vrot.lane.b32.xlu2 %v288_v23, %s2161_s24  ;;  %v150_v23 = vadd.f32 %v142_v7, %v123_v16  ;;  %v2460_v3 = vadd.f32 %v176_v41, %v157_v63 }
  0x3f   :  { %309 = vrot.lane.b32.xlu1 %v290_v24, %s2161_s24  ;;  %307 = vrot.lane.b32.xlu0 %v289_v25, %s2161_s24  ;;  %v1950_v24 = vld [vmem:[%s4121_s1 + $0x148] sm:$0xff]  ;;  %v2401_v25 = vadd.f32 %v171_v19, %v152_v21 }
  0x40   :  { %311 = vrot.lane.b32.xlu2 %v291_v26, %s2161_s24  ;;  %v2403_v26 = vadd.f32 %v169_v22, %v150_v23  ;;  %v388_v31 = vmul.f32 %v1950_v24, %v2376_v13  ;;  %v1974_v21 = vld [vmem:[%s4121_s1 + $0x1e8] sm:$0xff]  ;;  %v1973_v22 = vld [vmem:[%s4121_s1 + $0x1e0] sm:$0xff] }
  0x41   :  { %4123 = vst [vmem:[#allocation5_spill] sm:$0xff] %v2401_v25  ;;  %v2500_v23 = vld [vmem:[%s4121_s1 + $0x240] sm:$0xff] }
  0x47   :  { %315 = vrot.lane.b32.xlu1 %v293_v27, %s2161_s24  ;;  %313 = vrot.lane.b32.xlu0 %v292_v28, %s2161_s24  ;;  %v1952_v27 = vld [vmem:[%s4121_s1 + $0x158] sm:$0xff]  ;;  %v143_v28 = vmul.f32 %v1950_v24, %v2312_v39 }
  0x48   :  { %317 = vrot.lane.b32.xlu2 %v294_v29, %s2161_s24  ;;  %v145_v29 = vmul.f32 %v1952_v27, %v2312_v39 }
  0x49   :  { %v151_v45 = vadd.f32 %v143_v28, %v124_v34  ;;  %v2508_v28 = vld [vmem:[%s4121_s1 + $0x238] sm:$0xff]  ;;  %v648_v34 = vstv %s2026_s11 }
  0x4b   :  { %v2429_v46 = vadd.f32 %v170_v42, %v151_v45  ;;  %v650_v42 = vmul.f32 %v1974_v21, %v648_v34  ;;  %v649_v45 = vmul.f32 %v1973_v22, %v648_v34 }
  0x4f   :  { %355 = vrot.lane.b32.xlu1 %v338_v35, %s2161_s24  ;;  %353 = vrot.lane.b32.xlu0 %v337_v36, %s2161_s24  ;;  %v390_v35 = vmul.f32 %v1952_v27, %v2376_v13  ;;  %v1961_v36 = vld [vmem:[%s4121_s1 + $0x1a8] sm:$0xff]  ;;  %v525_v27 = vmul.f32 %v2500_v23, %v522_v0 }
  0x50   :  { %357 = vrot.lane.b32.xlu2 %v339_v40, %s2161_s24  ;;  %v172_v38 = vmul.f32 %v1961_v36, %v2328_v44  ;;  %v153_v40 = vadd.f32 %v145_v29, %v126_v32  ;;  %v2513_v29 = vld [vmem:[%s4121_s1 + $0x230] sm:$0xff] }
  0x51   :  { %v523_v32 = vmul.f32 %v2513_v29, %v522_v0 }
  0x52   :  { %v2427_v1 = vadd.f32 %v172_v38, %v153_v40  ;;  %v1978_v40 = vld [vmem:[%s4121_s1 + $0x210] sm:$0xff] }
  0x54   :  { %4124 = vst [vmem:[#allocation6_spill] sm:$0xff] %v2427_v1 }
  0x57   :  { %361 = vrot.lane.b32.xlu1 %v341_v51, %s2161_s24  ;;  %359 = vrot.lane.b32.xlu0 %v340_v52, %s2161_s24  ;;  %v1955_v51 = vld [vmem:[%s4121_s1 + $0x178] sm:$0xff]  ;;  %v392_v52 = vmul.f32 %v2345_v56, %v2376_v13  ;;  %v129_v56 = vadd.f32 %v121_v47, %v2274_v9  ;;  %v394_v9 = vmul.f32 %v1956_v48, %v2376_v13  ;;  %v1977_v48 = vld [vmem:[%s4121_s1 + $0x208] sm:$0xff] }
  0x58   :  { %363 = vrot.lane.b32.xlu2 %v342_v55, %s2161_s24  ;;  %v148_v33 = vmul.f32 %v1955_v51, %v2312_v39  ;;  %v393_v59 = vmul.f32 %v1955_v51, %v2376_v13  ;;  %v436_v39 = vstv %s1971_s28  ;;  %v2477_v13 = vstv %s1972_s9  ;;  %v2543_v51 = vld [vmem:[%s4121_s1 + $0x260] sm:$0xff]  ;;  %s2008_s9 = sld [smem:[#allocation2 + $0x10]] }
  0x59   :  { %v437_v5 = vmul.f32 %v1958_v18, %v436_v39  ;;  %v438_v7 = vmul.f32 %v1959_v37, %v436_v39  ;;  %v440_v44 = vmul.f32 %v1961_v36, %v436_v39  ;;  %v439_v8 = vmul.f32 %v2383_v14, %v436_v39  ;;  %v1975_v14 = vld [vmem:[%s4121_s1 + $0x1f0] sm:$0xff]  ;;  %s2042_s28 = sld [smem:[#allocation2 + $0x1a]] }
  0x5a   :  { %v156_v20 = vadd.f32 %v148_v33, %v129_v56  ;;  %v498_v19 = vmul.f32 %v1975_v14, %v2477_v13  ;;  %v496_v49 = vmul.f32 %v1973_v22, %v2477_v13  ;;  %v444_v24 = vmul.f32 %v1965_v62, %v436_v39  ;;  %v2587_v22 = vld [vmem:[%s4121_s1 + $0x270] sm:$0xff] }
  0x5b   :  { %v501_v47 = vmul.f32 %v1978_v40, %v2477_v13  ;;  %v651_v33 = vmul.f32 %v1975_v14, %v648_v34  ;;  %v528_v57 = vmul.f32 %v2543_v51, %v522_v0  ;;  %v549_v14 = vstv %s1990_s4  ;;  %s2028_s4 = sld [smem:[#allocation2 + $0x14]] }
  0x5c   :  { %v2463_v4 = vadd.f32 %v175_v2, %v156_v20  ;;  %v531_v38 = vadd.f32 %v523_v32, %v496_v49 }
  0x5d   :  { %v2558_v62 = vadd.f32 %v528_v57, %v501_v47 }
  0x5f   :  { %367 = vrot.lane.b32.xlu1 %v344_v10, %s2161_s24  ;;  %365 = vrot.lane.b32.xlu0 %v343_v11, %s2161_s24  ;;  %v441_v11 = vmul.f32 %v2326_v43, %v436_v39  ;;  %v442_v43 = vmul.f32 %v2354_v58, %v436_v39  ;;  %v497_v58 = vmul.f32 %v1974_v21, %v2477_v13 }
  0x60   :  { %403 = vrot.lane.b32.xlu2 %v387_v17, %s2161_s24  ;;  %v443_v17 = vmul.f32 %v1964_v60, %v436_v39  ;;  %v1985_v60 = vld [vmem:[%s4121_s1 + $0x248] sm:$0xff] }
  0x61   :  { %v526_v41 = vmul.f32 %v1985_v60, %v522_v0 }
  0x67   :  { %407 = vrot.lane.b32.xlu1 %v389_v30, %s2161_s24  ;;  %405 = vrot.lane.b32.xlu0 %v388_v31, %s2161_s24  ;;  %v2517_v30 = vadd.f32 %v525_v27, %v498_v19  ;;  %v524_v31 = vmul.f32 %v2508_v28, %v522_v0  ;;  %v654_v19 = vmul.f32 %v1978_v40, %v648_v34 }
  0x68   :  { %409 = vrot.lane.b32.xlu2 %v390_v35, %s2161_s24 }
  0x69   :  { %v2526_v37 = vadd.f32 %v524_v31, %v497_v58  ;;  %v1988_v58 = vld [vmem:[%s4121_s1 + $0x268] sm:$0xff] }
  0x6a   :  { %v2444_v55 = vpop.permute.xlu2 %211 }
  0x6f   :  { %413 = vrot.lane.b32.xlu1 %v392_v52, %s2161_s24  ;;  %411 = vrot.lane.b32.xlu0 %v391_v53, %s2161_s24  ;;  %v500_v52 = vmul.f32 %v1977_v48, %v2477_v13  ;;  %v499_v53 = vmul.f32 %v1976_v50, %v2477_v13 }
  0x70   :  { %415 = vrot.lane.b32.xlu2 %v393_v59, %s2161_s24  ;;  %v2551_v59 = vld [vmem:[%s4121_s1 + $0x258] sm:$0xff] }
  0x71   :  { %v527_v56 = vmul.f32 %v2551_v59, %v522_v0  ;;  %v534_v39 = vadd.f32 %v526_v41, %v499_v53  ;;  %v1992_v53 = vld [vmem:[%s4121_s1 + $0x288] sm:$0xff] }
  0x72   :  { %v2466_v6 = vpop.permute.xlu2 %213  ;;  %v551_v57 = vmul.f32 %v1992_v53, %v549_v14 }
  0x73   :  { %v2566_v20 = vadd.f32 %v527_v56, %v500_v52  ;;  %v1993_v52 = vld [vmem:[%s4121_s1 + $0x290] sm:$0xff] }
  0x77   :  { %453 = vrot.lane.b32.xlu1 %v437_v5, %s2161_s24  ;;  %417 = vrot.lane.b32.xlu0 %v394_v9, %s2161_s24  ;;  %v653_v5 = vmul.f32 %v1977_v48, %v648_v34  ;;  %v652_v9 = vmul.f32 %v1976_v50, %v648_v34  ;;  %v698_v48 = vstv %s2027_s13  ;;  %s3773_s13 = sld [smem:[#allocation2 + $0x2e]] }
  0x78   :  { %455 = vrot.lane.b32.xlu2 %v438_v7, %s2161_s24  ;;  %v699_v50 = vmul.f32 %v2513_v29, %v698_v48 }
  0x7a   :  { %v2472_v10 = vpop.permute.xlu2 %253 }
  0x7b   :  { %4125 = vst [vmem:[#allocation7_spill] sm:$0xff] %v2472_v10 }
  0x7f   :  { %459 = vrot.lane.b32.xlu1 %v440_v44, %s2161_s24  ;;  %457 = vrot.lane.b32.xlu0 %v439_v8, %s2161_s24  ;;  %v1980_v44 = vld [vmem:[%s4121_s1 + $0x220] sm:$0xff]  ;;  %v1979_v8 = vld [vmem:[%s4121_s1 + $0x218] sm:$0xff] }
  0x80   :  { %461 = vrot.lane.b32.xlu2 %v441_v11, %s2161_s24  ;;  %v2579_v11 = vld [vmem:[%s4121_s1 + $0x280] sm:$0xff] }
  0x81   :  { %v2479_v15 = vpop.permute.xlu1 %207  ;;  %v2481_v16 = vpop.permute.xlu0 %203  ;;  %v550_v21 = vmul.f32 %v2579_v11, %v549_v14 }
  0x82   :  { %4126 = vst [vmem:[#allocation8_spill] sm:$0xff] %v2479_v15  ;;  %v2488_v18 = vpop.permute.xlu2 %259 }
  0x83   :  { %4127 = vst [vmem:[#allocation9_spill] sm:$0xff] %v2481_v16  ;;  %v2594_v49 = vadd.f32 %v550_v21, %v531_v38  ;;  %v1994_v38 = vld [vmem:[%s4121_s1 + $0x298] sm:$0xff] }
  0x84   :  { %4128 = vst [vmem:[#allocation10_spill] sm:$0xff] %v2488_v18 }
  0x87   :  { %465 = vrot.lane.b32.xlu1 %v443_v17, %s2161_s24  ;;  %463 = vrot.lane.b32.xlu0 %v442_v43, %s2161_s24  ;;  %v503_v17 = vmul.f32 %v1980_v44, %v2477_v13  ;;  %v502_v43 = vmul.f32 %v1979_v8, %v2477_v13  ;;  %v530_v13 = vmul.f32 %v2587_v22, %v522_v0 }
  0x88   :  { %467 = vrot.lane.b32.xlu2 %v444_v24, %s2161_s24  ;;  %v529_v24 = vmul.f32 %v1988_v58, %v522_v0  ;;  %v553_v0 = vmul.f32 %v1994_v38, %v549_v14 }
  0x89   :  { %v2521_v35 = vpop.permute.xlu1 %209  ;;  %v2523_v36 = vpop.permute.xlu0 %205  ;;  %v538_v32 = vadd.f32 %v530_v13, %v503_v17  ;;  %v702_v17 = vmul.f32 %v1985_v60, %v698_v48 }
  0x8a   :  { %4129 = vst [vmem:[#allocation11_spill] sm:$0xff] %v2521_v35  ;;  %v2531_v61 = vpop.permute.xlu2 %265  ;;  %v537_v40 = vadd.f32 %v529_v24, %v502_v43 }
  0x8f   :  { %667 = vrot.lane.b32.xlu1 %v650_v42, %s2161_s24  ;;  %665 = vrot.lane.b32.xlu0 %v649_v45, %s2161_s24  ;;  %v656_v42 = vmul.f32 %v1980_v44, %v648_v34  ;;  %v655_v45 = vmul.f32 %v1979_v8, %v648_v34  ;;  %v2616_v34 = vadd.f32 %v553_v0, %v534_v39  ;;  %v1997_v8 = vld [vmem:[%s4121_s1 + $0x2b8] sm:$0xff]  ;;  %v1998_v0 = vld [vmem:[%s4121_s1 + $0x2c0] sm:$0xff] }
  0x90   :  { %669 = vrot.lane.b32.xlu2 %v651_v33, %s2161_s24  ;;  %v552_v33 = vmul.f32 %v1993_v52, %v549_v14  ;;  %v700_v44 = vmul.f32 %v2508_v28, %v698_v48  ;;  %v556_v43 = vmul.f32 %v1997_v8, %v549_v14 }
  0x91   :  { %v2561_v63 = vpop.permute.xlu1 %217  ;;  %v2563_v2 = vpop.permute.xlu0 %215 }
  0x92   :  { %v2568_v7 = vpop.permute.xlu2 %305  ;;  %v2624_v41 = vadd.f32 %v552_v33, %v2517_v30  ;;  %v1996_v30 = vld [vmem:[%s4121_s1 + $0x2b0] sm:$0xff]  ;;  %v748_v33 = vstv %s2028_s4  ;;  %s2051_s4 = sld [smem:[#allocation2 + $0x1b]] }
  0x93   :  { %v555_v28 = vmul.f32 %v1996_v30, %v549_v14 }
  0x95   :  { %v2652_v13 = vadd.f32 %v555_v28, %v2558_v62  ;;  %v557_v62 = vmul.f32 %v1998_v0, %v549_v14 }
  0x97   :  { %673 = vrot.lane.b32.xlu1 %v653_v5, %s2161_s24  ;;  %671 = vrot.lane.b32.xlu0 %v652_v9, %s2161_s24  ;;  %v2627_v5 = vadd.f32 %v551_v57, %v2526_v37  ;;  %v701_v9 = vmul.f32 %v2500_v23, %v698_v48  ;;  %v1995_v37 = vld [vmem:[%s4121_s1 + $0x2a8] sm:$0xff]  ;;  %v2644_v23 = vadd.f32 %v556_v43, %v537_v40 }
  0x98   :  { %675 = vrot.lane.b32.xlu2 %v654_v19, %s2161_s24  ;;  %v554_v19 = vmul.f32 %v1995_v37, %v549_v14  ;;  %v703_v40 = vmul.f32 %v2551_v59, %v698_v48  ;;  %v749_v59 = vmul.f32 %v2579_v11, %v748_v33  ;;  %v752_v43 = vmul.f32 %v1994_v38, %v748_v33 }
  0x99   :  { %v2597_v27 = vpop.permute.xlu1 %257  ;;  %v2599_v31 = vpop.permute.xlu0 %255  ;;  %v753_v11 = vmul.f32 %v1995_v37, %v748_v33  ;;  %v756_v38 = vmul.f32 %v1998_v0, %v748_v33  ;;  %v798_v37 = vstv %s2029_s7  ;;  %v2711_v0 = vstv %s1999_s8  ;;  %s2078_s7 = sld [smem:[#allocation2 + $0x1e]] }
  0x9a   :  { %4130 = vst [vmem:[#allocation12_spill] sm:$0xff] %v2597_v27  ;;  %v2602_v47 = vpop.permute.xlu2 %311  ;;  %v2655_v24 = vadd.f32 %v554_v19, %v2566_v20  ;;  %v754_v19 = vmul.f32 %v1996_v30, %v748_v33  ;;  %s2129_s8 = sld [smem:[#allocation2 + $0x29]] }
  0x9b   :  { %4131 = vst [vmem:[#allocation13_spill] sm:$0xff] %v2602_v47  ;;  %v2807_v47 = vld [vmem:[%s4121_s1 + $0x378] sm:$0xff] }
  0x9f   :  { %679 = vrot.lane.b32.xlu1 %v656_v42, %s2161_s24  ;;  %677 = vrot.lane.b32.xlu0 %v655_v45, %s2161_s24  ;;  %v704_v42 = vmul.f32 %v2543_v51, %v698_v48  ;;  %v2671_v51 = vadd.f32 %v557_v62, %v538_v32  ;;  %v751_v32 = vmul.f32 %v1993_v52, %v748_v33  ;;  %v2001_v52 = vld [vmem:[%s4121_s1 + $0x2d8] sm:$0xff] }
  0xa0   :  { %715 = vrot.lane.b32.xlu2 %v699_v50, %s2161_s24  ;;  %v705_v50 = vmul.f32 %v1988_v58, %v698_v48  ;;  %v706_v58 = vmul.f32 %v2587_v22, %v698_v48  ;;  %v800_v62 = vmul.f32 %v2001_v52, %v798_v37  ;;  %v578_v27 = vmul.f32 %v2001_v52, %v2711_v0  ;;  %v2010_v52 = vld [vmem:[%s4121_s1 + $0x328] sm:$0xff] }
  0xa1   :  { %v2618_v56 = vpop.permute.xlu1 %263  ;;  %v2620_v29 = vpop.permute.xlu0 %261 }
  0xa2   :  { %v2631_v39 = vpop.permute.xlu2 %317 }
  0xa7   :  { %719 = vrot.lane.b32.xlu1 %v701_v9, %s2161_s24  ;;  %717 = vrot.lane.b32.xlu0 %v700_v44, %s2161_s24  ;;  %v750_v44 = vmul.f32 %v1992_v53, %v748_v33  ;;  %v755_v53 = vmul.f32 %v1997_v8, %v748_v33 }
  0xa8   :  { %721 = vrot.lane.b32.xlu2 %v702_v17, %s2161_s24 }
  0xa9   :  { %v2646_v21 = vpop.permute.xlu1 %303  ;;  %v2648_v60 = vpop.permute.xlu0 %267 }
  0xaa   :  { %4132 = vst [vmem:[#allocation14_spill] sm:$0xff] %v2646_v21  ;;  %v2659_v45 = vpop.permute.xlu2 %357 }
  0xab   :  { %4133 = vst [vmem:[#allocation15_spill] sm:$0xff] %v2659_v45 }
  0xaf   :  { %725 = vrot.lane.b32.xlu1 %v704_v42, %s2161_s24  ;;  %723 = vrot.lane.b32.xlu0 %v703_v40, %s2161_s24  ;;  %v2000_v40 = vld [vmem:[%s4121_s1 + $0x2d0] sm:$0xff] }
  0xb0   :  { %727 = vrot.lane.b32.xlu2 %v705_v50, %s2161_s24  ;;  %v2002_v50 = vld [vmem:[%s4121_s1 + $0x2e0] sm:$0xff]  ;;  %v799_v33 = vmul.f32 %v2000_v40, %v798_v37  ;;  %v577_v21 = vmul.f32 %v2000_v40, %v2711_v0 }
  0xb1   :  { %v2666_v57 = vpop.permute.xlu1 %309  ;;  %v2668_v20 = vpop.permute.xlu0 %307  ;;  %v2009_v40 = vld [vmem:[%s4121_s1 + $0x320] sm:$0xff] }
  0xb2   :  { %4134 = vst [vmem:[#allocation16_spill] sm:$0xff] %v2666_v57  ;;  %v2675_v9 = vpop.permute.xlu2 %363 }
  0xb3   :  { %4135 = vst [vmem:[#allocation17_spill] sm:$0xff] %v2668_v20 }
  0xb7   :  { %765 = vrot.lane.b32.xlu1 %v749_v59, %s2161_s24  ;;  %729 = vrot.lane.b32.xlu0 %v706_v58, %s2161_s24  ;;  %v801_v58 = vmul.f32 %v2002_v50, %v798_v37 }
  0xb8   :  { %767 = vrot.lane.b32.xlu2 %v750_v44, %s2161_s24  ;;  %v2715_v44 = vstv %s2008_s9  ;;  %s2079_s9 = sld [smem:[#allocation2 + $0x1f]] }
  0xb9   :  { %v2679_v14 = vpop.permute.xlu1 %315  ;;  %v2681_v17 = vpop.permute.xlu0 %313 }
  0xba   :  { %v2684_v28 = vpop.permute.xlu2 %403 }
  0xbb   :  { %4136 = vst [vmem:[#allocation18_spill] sm:$0xff] %v2684_v28 }
  0xbf   :  { %771 = vrot.lane.b32.xlu1 %v752_v43, %s2161_s24  ;;  %769 = vrot.lane.b32.xlu0 %v751_v32, %s2161_s24  ;;  %v579_v43 = vmul.f32 %v2002_v50, %v2711_v0  ;;  %v2723_v32 = vld [vmem:[%s4121_s1 + $0x330] sm:$0xff] }
  0xc0   :  { %773 = vrot.lane.b32.xlu2 %v753_v11, %s2161_s24  ;;  %v2004_v11 = vld [vmem:[%s4121_s1 + $0x2f8] sm:$0xff] }
  0xc1   :  { %v2688_v22 = vpop.permute.xlu1 %355  ;;  %v2690_v48 = vpop.permute.xlu0 %353  ;;  %v803_v45 = vmul.f32 %v2004_v11, %v798_v37 }
  0xc2   :  { %4137 = vst [vmem:[#allocation19_spill] sm:$0xff] %v2690_v48  ;;  %v2693_v42 = vpop.permute.xlu2 %409 }
  0xc3   :  { %4138 = vst [vmem:[#allocation20_spill] sm:$0xff] %v2693_v42  ;;  %v2745_v42 = vld [vmem:[%s4121_s1 + $0x380] sm:$0xff] }
  0xc7   :  { %777 = vrot.lane.b32.xlu1 %v755_v53, %s2161_s24  ;;  %775 = vrot.lane.b32.xlu0 %v754_v19, %s2161_s24  ;;  %v2003_v53 = vld [vmem:[%s4121_s1 + $0x2e8] sm:$0xff]  ;;  %v606_v19 = vmul.f32 %v2723_v32, %v2715_v44 }
  0xc8   :  { %779 = vrot.lane.b32.xlu2 %v756_v38, %s2161_s24  ;;  %v802_v28 = vmul.f32 %v2003_v53, %v798_v37 }
  0xc9   :  { %v2703_v8 = vpop.permute.xlu1 %361  ;;  %v2705_v30 = vpop.permute.xlu0 %359 }
  0xca   :  { %4139 = vst [vmem:[#allocation21_spill] sm:$0xff] %v2703_v8  ;;  %v2713_v59 = vpop.permute.xlu2 %415  ;;  %v2799_v8 = vstv %s2030_s27  ;;  %s2102_s27 = sld [smem:[#allocation2 + $0x26]] }
  0xcb   :  { %4140 = vst [vmem:[#allocation22_spill] sm:$0xff] %v2705_v30  ;;  %v2747_v30 = vstv %s2017_s16  ;;  %s3397_s16 = sld [smem:[#allocation2 + $0x24]] }
  0xcf   :  { %817 = vrot.lane.b32.xlu1 %v800_v62, %s2161_s24  ;;  %815 = vrot.lane.b32.xlu0 %v799_v33, %s2161_s24  ;;  %v2005_v62 = vld [vmem:[%s4121_s1 + $0x300] sm:$0xff]  ;;  %v587_v33 = vadd.f32 %v579_v43, %v2624_v41  ;;  %v2761_v43 = vld [vmem:[%s4121_s1 + $0x350] sm:$0xff] }
  0xd0   :  { %819 = vrot.lane.b32.xlu2 %v801_v58, %s2161_s24  ;;  %v633_v58 = vmul.f32 %v2745_v42, %v2747_v30  ;;  %v804_v18 = vmul.f32 %v2005_v62, %v798_v37  ;;  %v582_v48 = vmul.f32 %v2005_v62, %v2711_v0 }
  0xd1   :  { %v2733_v38 = vpop.permute.xlu1 %367  ;;  %v2735_v50 = vpop.permute.xlu0 %365  ;;  %v614_v20 = vadd.f32 %v606_v19, %v587_v33  ;;  %v2007_v19 = vld [vmem:[%s4121_s1 + $0x310] sm:$0xff]  ;;  %v605_v33 = vmul.f32 %v2010_v52, %v2715_v44 }
  0xd2   :  { %v2749_v57 = vpop.permute.xlu2 %455  ;;  %v590_v35 = vadd.f32 %v582_v48, %v2652_v13  ;;  %v585_v13 = vadd.f32 %v577_v21, %v2594_v49  ;;  %v849_v48 = vmul.f32 %v2009_v40, %v2799_v8  ;;  %v234_v49 = vadd.f32 %v2561_v63, %v2460_v3  ;;  %v2012_v3 = vld [vmem:[%s4121_s1 + $0x338] sm:$0xff] }
  0xd3   :  { %4141 = vst [vmem:[#allocation23_spill] sm:$0xff] %v2749_v57  ;;  %v2754_v41 = vadd.f32 %v633_v58, %v614_v20  ;;  %v2771_v20 = vld [vmem:[%s4121_s1 + $0x308] sm:$0xff]  ;;  %v604_v58 = vmul.f32 %v2009_v40, %v2715_v44  ;;  %v586_v57 = vadd.f32 %v578_v27, %v2627_v5  ;;  %v581_v21 = vmul.f32 %v2004_v11, %v2711_v0 }
  0xd4   :  { %v805_v1 = vmul.f32 %v2771_v20, %v798_v37  ;;  %v851_v11 = vmul.f32 %v2723_v32, %v2799_v8  ;;  %v2859_v32 = vld [vmem:[%s4121_s1 + $0x398] sm:$0xff] }
  0xd5   :  { %v613_v16 = vadd.f32 %v605_v33, %v586_v57  ;;  %v612_v27 = vadd.f32 %v604_v58, %v585_v13  ;;  %v284_v57 = vadd.f32 %v2648_v60, %v234_v49  ;;  %v607_v60 = vmul.f32 %v2012_v3, %v2715_v44 }
  0xd6   :  { %v589_v58 = vadd.f32 %v581_v21, %v2655_v24  ;;  %v635_v24 = vmul.f32 %v2859_v32, %v2747_v30  ;;  %v584_v21 = vmul.f32 %v2007_v19, %v2711_v0 }
  0xd7   :  { %823 = vrot.lane.b32.xlu1 %v803_v45, %s2161_s24  ;;  %821 = vrot.lane.b32.xlu0 %v802_v28, %s2161_s24  ;;  %v609_v45 = vmul.f32 %v2761_v43, %v2715_v44  ;;  %v334_v13 = vadd.f32 %v2631_v39, %v284_v57 }
  0xd8   :  { %825 = vrot.lane.b32.xlu2 %v804_v18, %s2161_s24  ;;  %v806_v18 = vmul.f32 %v2007_v19, %v798_v37  ;;  %v2812_v37 = vld [vmem:[%s4121_s1 + $0x370] sm:$0xff]  ;;  %v854_v19 = vmul.f32 %v2761_v43, %v2799_v8  ;;  %v2024_v43 = vld [vmem:[%s4121_s1 + $0x3a8] sm:$0xff] }
  0xd9   :  { %v2775_v28 = vpop.permute.xlu1 %407  ;;  %v2777_v62 = vpop.permute.xlu0 %405  ;;  %v617_v10 = vadd.f32 %v609_v45, %v590_v35  ;;  %v632_v35 = vmul.f32 %v2807_v47, %v2747_v30  ;;  %v631_v5 = vmul.f32 %v2812_v37, %v2747_v30  ;;  %v384_v39 = vadd.f32 %v2733_v38, %v334_v13  ;;  %v2016_v38 = vld [vmem:[%s4121_s1 + $0x360] sm:$0xff] }
  0xda   :  { %4142 = vst [vmem:[#allocation24_spill] sm:$0xff] %v2775_v28  ;;  %v2792_v28 = vld [vmem:[%s4121_s1 + $0x3a0] sm:$0xff]  ;;  %v2795_v15 = vpop.permute.xlu2 %461 }
  0xdb   :  { %4143 = vst [vmem:[#allocation25_spill] sm:$0xff] %v2795_v15  ;;  %v636_v25 = vmul.f32 %v2792_v28, %v2747_v30  ;;  %v2840_v63 = vadd.f32 %v631_v5, %v612_v27 }
  0xdd   :  { %v2814_v15 = vadd.f32 %v636_v25, %v617_v10  ;;  %v580_v25 = vmul.f32 %v2003_v53, %v2711_v0  ;;  %v2826_v10 = vadd.f32 %v632_v35, %v613_v16  ;;  %v850_v53 = vmul.f32 %v2010_v52, %v2799_v8  ;;  %v2854_v35 = vld [vmem:[%s4121_s1 + $0x388] sm:$0xff] }
  0xdf   :  { %829 = vrot.lane.b32.xlu1 %v806_v18, %s2161_s24  ;;  %827 = vrot.lane.b32.xlu0 %v805_v1, %s2161_s24  ;;  %v2013_v1 = vld [vmem:[%s4121_s1 + $0x348] sm:$0xff]  ;;  %v588_v18 = vadd.f32 %v580_v25, %v2616_v34  ;;  %v634_v34 = vmul.f32 %v2854_v35, %v2747_v30 }
  0xe0   :  { %865 = vrot.lane.b32.xlu2 %v849_v48, %s2161_s24  ;;  %v608_v16 = vmul.f32 %v2013_v1, %v2715_v44  ;;  %v852_v48 = vmul.f32 %v2012_v3, %v2799_v8  ;;  %v583_v3 = vmul.f32 %v2771_v20, %v2711_v0  ;;  %v233_v0 = vadd.f32 %v2563_v2, %v2463_v4 }
  0xe1   :  { %v2829_v45 = vpop.permute.xlu1 %413  ;;  %v2831_v40 = vpop.permute.xlu0 %411  ;;  %v615_v27 = vadd.f32 %v607_v60, %v588_v18  ;;  %v2015_v60 = vld [vmem:[%s4121_s1 + $0x358] sm:$0xff]  ;;  %v592_v4 = vadd.f32 %v584_v21, %v2671_v51  ;;  %v232_v2 = vadd.f32 %v2466_v6, %v2378_v12  ;;  %v898_v51 = vstv %s2868_s21  ;;  %s2141_s21 = sld [smem:[#allocation2 + $0x2d]] }
  0xe2   :  { %v468_v33 = vpop.permute.xlu2 %467  ;;  %v616_v52 = vadd.f32 %v608_v16, %v589_v58  ;;  %v611_v58 = vmul.f32 %v2016_v38, %v2715_v44  ;;  %v610_v13 = vmul.f32 %v2015_v60, %v2715_v44  ;;  %v591_v44 = vadd.f32 %v583_v3, %v2644_v23 }
  0xe3   :  { %v2872_v5 = vadd.f32 %v634_v34, %v615_v27  ;;  %v282_v27 = vadd.f32 %v2618_v56, %v232_v2  ;;  %v856_v56 = vmul.f32 %v2016_v38, %v2799_v8  ;;  %v949_v2 = vld [vmem:[%s4121_s1 + $0x9] sm:$0xff] }
  0xe4   :  { %v2870_v49 = vadd.f32 %v635_v24, %v616_v52  ;;  %v619_v52 = vadd.f32 %v611_v58, %v592_v4  ;;  %v283_v24 = vadd.f32 %v2531_v61, %v233_v0  ;;  %v618_v34 = vadd.f32 %v610_v13, %v591_v44 }
  0xe5   :  { %v899_v61 = vmul.f32 %v2812_v37, %v898_v51  ;;  %v904_v0 = vmul.f32 %v2792_v28, %v898_v51 }
  0xe6   :  { %v333_v23 = vadd.f32 %v2679_v14, %v283_v24  ;;  %v2992_v24 = vld [vmem:[%s4121_s1 + $0x51] sm:$0xff] }
  0xe7   :  { %869 = vrot.lane.b32.xlu1 %v851_v11, %s2161_s24  ;;  %867 = vrot.lane.b32.xlu0 %v850_v53, %s2161_s24  ;;  %v853_v11 = vmul.f32 %v2013_v1, %v2799_v8  ;;  %v2905_v1 = vld [vmem:[%s4121_s1 + $0x3b0] sm:$0xff] }
  0xe8   :  { %871 = vrot.lane.b32.xlu2 %v852_v48, %s2161_s24  ;;  %v855_v48 = vmul.f32 %v2015_v60, %v2799_v8  ;;  %v383_v3 = vadd.f32 %v2735_v50, %v333_v23  ;;  %v900_v60 = vmul.f32 %v2807_v47, %v898_v51  ;;  %v902_v47 = vmul.f32 %v2854_v35, %v898_v51  ;;  %v950_v35 = vld [vmem:[%s4121_s1 + $0x11] sm:$0xff] }
  0xe9   :  { %v2875_v25 = vpop.permute.xlu1 %453  ;;  %v418_v57 = vpop.permute.xlu0 %417  ;;  %v906_v44 = vmul.f32 %v2905_v1, %v898_v51 }
  0xea   :  { %v434_v16 = vadd.f32 %v418_v57, %v384_v39  ;;  %v670_v53 = vpop.permute.xlu2 %669  ;;  %v433_v14 = vadd.f32 %v2713_v59, %v383_v3  ;;  %v2952_v59 = vstv %s2032_s5  ;;  %s2060_s5 = sld [smem:[#allocation2 + $0x1c]] }
  0xeb   :  { %v2895_v18 = vadd.f32 %v670_v53, %v2754_v41  ;;  %v638_v41 = vmul.f32 %v2905_v1, %v2747_v30  ;;  %v958_v28 = vmul.f32 %v2952_v59, %v949_v2 }
  0xec   :  { %v2892_v20 = vadd.f32 %v468_v33, %v434_v16  ;;  %v637_v33 = vmul.f32 %v2024_v43, %v2747_v30  ;;  %v332_v30 = vadd.f32 %v2681_v17, %v282_v27 }
  0xed   :  { %v2924_v6 = vadd.f32 %v638_v41, %v619_v52  ;;  %v2987_v52 = vld [vmem:[%s4121_s1 + $0x59] sm:$0xff] }
  0xee   :  { %v2928_v21 = vadd.f32 %v637_v33, %v618_v34  ;;  %v3002_v34 = vstv %s2078_s7  ;;  %s2120_s7 = sld [smem:[#allocation2 + $0x28]] }
  0xef   :  { %875 = vrot.lane.b32.xlu1 %v854_v19, %s2161_s24  ;;  %873 = vrot.lane.b32.xlu0 %v853_v11, %s2161_s24  ;;  %v382_v19 = vadd.f32 %v2675_v9, %v332_v30  ;;  %v901_v9 = vmul.f32 %v2745_v42, %v898_v51  ;;  %v903_v11 = vmul.f32 %v2859_v32, %v898_v51 }
  0xf0   :  { %877 = vrot.lane.b32.xlu2 %v855_v48, %s2161_s24  ;;  %v905_v32 = vmul.f32 %v2024_v43, %v898_v51  ;;  %v959_v48 = vmul.f32 %v2952_v59, %v950_v35  ;;  %v2977_v43 = vstv %s2033_s6 }
  0xf1   :  { %v2919_v39 = vpop.permute.xlu1 %459  ;;  %v2921_v12 = vpop.permute.xlu0 %457  ;;  %v432_v17 = vadd.f32 %v2829_v45, %v382_v19  ;;  %v984_v1 = vmul.f32 %v2987_v52, %v2977_v43  ;;  %v983_v51 = vmul.f32 %v2992_v24, %v2977_v43  ;;  %v1106_v19 = vmul.f32 %v3002_v34, %v949_v2 }
  0xf2   :  { %v676_v57 = vpop.permute.xlu2 %675 }
  0xf3   :  { %v2934_v16 = vadd.f32 %v676_v57, %v2814_v15 }
  0xf7   :  { %915 = vrot.lane.b32.xlu1 %v899_v61, %s2161_s24  ;;  %879 = vrot.lane.b32.xlu0 %v856_v56, %s2161_s24  ;;  %v3005_v61 = vadd.f32 %v984_v1, %v958_v28 }
  0xf8   :  { %917 = vrot.lane.b32.xlu2 %v900_v60, %s2161_s24  ;;  %v953_v60 = vld [vmem:[%s4121_s1 + $0x31] sm:$0xff] }
  0xf9   :  { %v466_v8 = vpop.permute.xlu1 %465  ;;  %v464_v37 = vpop.permute.xlu0 %463 }
  0xfa   :  { %v2943_v50 = vadd.f32 %v466_v8, %v433_v14  ;;  %v2945_v15 = vadd.f32 %v464_v37, %v432_v17  ;;  %v716_v38 = vpop.permute.xlu2 %715  ;;  %v962_v8 = vmul.f32 %v2952_v59, %v953_v60 }
  0xff   :  { %921 = vrot.lane.b32.xlu1 %v902_v47, %s2161_s24  ;;  %919 = vrot.lane.b32.xlu0 %v901_v9, %s2161_s24  ;;  %v3028_v47 = vld [vmem:[%s4121_s1 + $0x81] sm:$0xff] }
 0x100   :  { %923 = vrot.lane.b32.xlu2 %v903_v11, %s2161_s24  ;;  %v1107_v11 = vmul.f32 %v3002_v34, %v950_v35 }
 0x101   :  { %v668_v45 = vpop.permute.xlu1 %667  ;;  %v666_v53 = vpop.permute.xlu0 %665 }
 0x102   :  { %v2956_v58 = vadd.f32 %v668_v45, %v2826_v10  ;;  %v689_v42 = vadd.f32 %v666_v53, %v2840_v63  ;;  %v722_v13 = vpop.permute.xlu2 %721  ;;  %v948_v10 = vld [vmem:[%s4121_s1 + $0x1] sm:$0xff]  ;;  %v988_v45 = vmul.f32 %v3028_v47, %v2977_v43  ;;  %v3038_v53 = vld [vmem:[%s4121_s1 + $0x79] sm:$0xff] }
 0x103   :  { %v2975_v63 = vld [vmem:[%s4121_s1 + $0x61] sm:$0xff]  ;;  %v957_v41 = vmul.f32 %v2952_v59, %v948_v10  ;;  %v1105_v14 = vmul.f32 %v3002_v34, %v948_v10  ;;  %v987_v35 = vmul.f32 %v3038_v53, %v2977_v43 }
 0x104   :  { %v2964_v4 = vadd.f32 %v716_v38, %v689_v42  ;;  %v985_v33 = vmul.f32 %v2975_v63, %v2977_v43  ;;  %v3043_v42 = vld [vmem:[%s4121_s1 + $0x69] sm:$0xff] }
 0x105   :  { %v991_v56 = vadd.f32 %v983_v51, %v957_v41 }
 0x106   :  { %v2996_v27 = vadd.f32 %v985_v33, %v959_v48 }
 0x107   :  { %927 = vrot.lane.b32.xlu1 %v905_v32, %s2161_s24  ;;  %925 = vrot.lane.b32.xlu0 %v904_v0, %s2161_s24  ;;  %v3047_v32 = vadd.f32 %v988_v45, %v962_v8  ;;  %v986_v0 = vmul.f32 %v3043_v42, %v2977_v43  ;;  %v3085_v8 = vld [vmem:[%s4121_s1 + $0x91] sm:$0xff] }
 0x108   :  { %929 = vrot.lane.b32.xlu2 %v906_v44, %s2161_s24 }
 0x109   :  { %v674_v23 = vpop.permute.xlu1 %673  ;;  %v672_v30 = vpop.permute.xlu0 %671 }
 0x10a   :  { %v3008_v57 = vadd.f32 %v674_v23, %v2870_v49  ;;  %v692_v3 = vadd.f32 %v672_v30, %v2872_v5  ;;  %v728_v17 = vpop.permute.xlu2 %727  ;;  %v952_v49 = vld [vmem:[%s4121_s1 + $0x29] sm:$0xff]  ;;  %v951_v5 = vld [vmem:[%s4121_s1 + $0x19] sm:$0xff]  ;;  %v955_v23 = vld [vmem:[%s4121_s1 + $0x41] sm:$0xff] }
 0x10b   :  { %v961_v9 = vmul.f32 %v2952_v59, %v952_v49  ;;  %v960_v38 = vmul.f32 %v2952_v59, %v951_v5  ;;  %v1109_v44 = vmul.f32 %v3002_v34, %v952_v49  ;;  %v1108_v33 = vmul.f32 %v3002_v34, %v951_v5  ;;  %v954_v30 = vld [vmem:[%s4121_s1 + $0x39] sm:$0xff]  ;;  %v2040_v49 = vld [vmem:[%s4121_s1 + $0x89] sm:$0xff] }
 0x10c   :  { %v3017_v37 = vadd.f32 %v722_v13, %v692_v3  ;;  %v964_v3 = vmul.f32 %v2952_v59, %v955_v23 }
 0x10d   :  { %v3054_v2 = vadd.f32 %v987_v35, %v961_v9  ;;  %v994_v10 = vadd.f32 %v986_v0, %v960_v38 }
 0x10f   :  { %1123 = vrot.lane.b32.xlu1 %v1106_v19, %s2161_s24  ;;  %1121 = vrot.lane.b32.xlu0 %v1105_v14, %s2161_s24  ;;  %v963_v19 = vmul.f32 %v2952_v59, %v954_v30  ;;  %v1110_v14 = vmul.f32 %v3002_v34, %v953_v60  ;;  %v990_v59 = vmul.f32 %v3085_v8, %v2977_v43 }
 0x110   :  { %1125 = vrot.lane.b32.xlu2 %v1107_v11, %s2161_s24  ;;  %v989_v60 = vmul.f32 %v2040_v49, %v2977_v43  ;;  %v3107_v43 = vld [vmem:[%s4121_s1 + $0xb9] sm:$0xff] }
 0x111   :  { %v680_v13 = vpop.permute.xlu1 %679  ;;  %v678_v48 = vpop.permute.xlu0 %677  ;;  %v998_v11 = vadd.f32 %v990_v59, %v964_v3 }
 0x112   :  { %v3057_v28 = vadd.f32 %v680_v13, %v2924_v6  ;;  %v695_v41 = vadd.f32 %v678_v48, %v2928_v21  ;;  %v768_v1 = vpop.permute.xlu2 %767  ;;  %v3073_v6 = vld [vmem:[%s4121_s1 + $0xa1] sm:$0xff]  ;;  %v3075_v21 = vstv %s2042_s28  ;;  %v997_v45 = vadd.f32 %v989_v60, %v963_v19  ;;  %s2080_s28 = sld [smem:[#allocation2 + $0x20]] }
 0x113   :  { %v1112_v13 = vmul.f32 %v3002_v34, %v955_v23 }
 0x114   :  { %v3062_v51 = vadd.f32 %v728_v17, %v695_v41  ;;  %v1009_v17 = vmul.f32 %v3073_v6, %v3075_v21 }
 0x116   :  { %v3092_v5 = vadd.f32 %v1009_v17, %v991_v56  ;;  %v1111_v56 = vmul.f32 %v3002_v34, %v954_v30  ;;  %v2044_v34 = vld [vmem:[%s4121_s1 + $0xa9] sm:$0xff] }
 0x117   :  { %1129 = vrot.lane.b32.xlu1 %v1109_v44, %s2161_s24  ;;  %1127 = vrot.lane.b32.xlu0 %v1108_v33, %s2161_s24  ;;  %v1154_v44 = vstv %s2079_s9  ;;  %v1010_v23 = vmul.f32 %v2044_v34, %v3075_v21 }
 0x118   :  { %1131 = vrot.lane.b32.xlu2 %v1110_v14, %s2161_s24  ;;  %v1155_v33 = vmul.f32 %v2992_v24, %v1154_v44  ;;  %v1157_v59 = vmul.f32 %v2975_v63, %v1154_v44  ;;  %v1156_v60 = vmul.f32 %v2987_v52, %v1154_v44  ;;  %v2047_v63 = vld [vmem:[%s4121_s1 + $0xc9] sm:$0xff] }
 0x119   :  { %v720_v9 = vpop.permute.xlu1 %719  ;;  %v718_v38 = vpop.permute.xlu0 %717  ;;  %v3132_v14 = vadd.f32 %v1010_v23, %v3005_v61  ;;  %v1159_v23 = vmul.f32 %v3038_v53, %v1154_v44 }
 0x11a   :  { %v741_v35 = vadd.f32 %v720_v9, %v2895_v18  ;;  %v740_v0 = vadd.f32 %v718_v38, %v2956_v58  ;;  %v774_v48 = vpop.permute.xlu2 %773  ;;  %v1012_v18 = vmul.f32 %v3107_v43, %v3075_v21  ;;  %v3115_v58 = vld [vmem:[%s4121_s1 + $0xb1] sm:$0xff] }
 0x11b   :  { %v1011_v24 = vmul.f32 %v3115_v58, %v3075_v21 }
 0x11c   :  { %v3102_v41 = vadd.f32 %v768_v1, %v740_v0  ;;  %v3122_v1 = vadd.f32 %v1012_v18, %v994_v10  ;;  %v2049_v0 = vld [vmem:[%s4121_s1 + $0xd9] sm:$0xff] }
 0x11d   :  { %v3129_v19 = vadd.f32 %v1011_v24, %v2996_v27  ;;  %v1158_v27 = vmul.f32 %v3043_v42, %v1154_v44  ;;  %v1015_v61 = vmul.f32 %v2049_v0, %v3075_v21  ;;  %v1013_v42 = vmul.f32 %v2047_v63, %v3075_v21 }
 0x11e   :  { %v1160_v24 = vmul.f32 %v3028_v47, %v1154_v44 }
 0x11f   :  { %1135 = vrot.lane.b32.xlu1 %v1112_v13, %s2161_s24  ;;  %1133 = vrot.lane.b32.xlu0 %v1111_v56, %s2161_s24  ;;  %v3153_v52 = vadd.f32 %v1015_v61, %v997_v45 }
 0x120   :  { %1171 = vrot.lane.b32.xlu2 %v1155_v33, %s2161_s24  ;;  %v3162_v33 = vadd.f32 %v1013_v42, %v3054_v2  ;;  %v1204_v2 = vstv %s2080_s28 }
 0x121   :  { %v726_v30 = vpop.permute.xlu1 %725  ;;  %v724_v3 = vpop.permute.xlu0 %723 }
 0x122   :  { %v744_v17 = vadd.f32 %v726_v30, %v2934_v16  ;;  %v743_v10 = vadd.f32 %v724_v3, %v3008_v57  ;;  %v780_v9 = vpop.permute.xlu2 %779  ;;  %v2048_v16 = vld [vmem:[%s4121_s1 + $0xd1] sm:$0xff] }
 0x123   :  { %v1014_v57 = vmul.f32 %v2048_v16, %v3075_v21 }
 0x124   :  { %v3138_v38 = vadd.f32 %v774_v48, %v743_v10  ;;  %v1161_v10 = vmul.f32 %v2040_v49, %v1154_v44 }
 0x125   :  { %v3159_v48 = vadd.f32 %v1014_v57, %v3047_v32  ;;  %v2050_v32 = vld [vmem:[%s4121_s1 + $0xe1] sm:$0xff]  ;;  %v1206_v57 = vmul.f32 %v2044_v34, %v1204_v2 }
 0x127   :  { %1175 = vrot.lane.b32.xlu1 %v1157_v59, %s2161_s24  ;;  %1173 = vrot.lane.b32.xlu0 %v1156_v60, %s2161_s24  ;;  %v1205_v60 = vmul.f32 %v3073_v6, %v1204_v2  ;;  %v1207_v6 = vmul.f32 %v3115_v58, %v1204_v2 }
 0x128   :  { %1177 = vrot.lane.b32.xlu2 %v1158_v27, %s2161_s24 }
 0x129   :  { %v766_v13 = vpop.permute.xlu1 %765  ;;  %v730_v56 = vpop.permute.xlu0 %729 }
 0x12a   :  { %v789_v18 = vadd.f32 %v766_v13, %v2964_v4  ;;  %v746_v45 = vadd.f32 %v730_v56, %v3057_v28  ;;  %v820_v30 = vpop.permute.xlu2 %819  ;;  %v1016_v4 = vmul.f32 %v2050_v32, %v3075_v21  ;;  %v1209_v13 = vmul.f32 %v2047_v63, %v1204_v2 }
 0x12b   :  { %v1212_v63 = vmul.f32 %v2050_v32, %v1204_v2  ;;  %v2054_v32 = vld [vmem:[%s4121_s1 + $0x101] sm:$0xff] }
 0x12c   :  { %v3168_v3 = vadd.f32 %v780_v9, %v746_v45  ;;  %v3177_v47 = vadd.f32 %v1016_v4, %v998_v11  ;;  %v1162_v9 = vmul.f32 %v3085_v8, %v1154_v44  ;;  %v1210_v45 = vmul.f32 %v2048_v16, %v1204_v2 }
 0x12d   :  { %v228_v4 = vadd.f32 %v2523_v36, %v2429_v46  ;;  %v3234_v46 = vld [vmem:[%s4121_s1 + $0x119] sm:$0xff]  ;;  %v3239_v36 = vld [vmem:[%s4121_s1 + $0x109] sm:$0xff] }
 0x12f   :  { %1181 = vrot.lane.b32.xlu1 %v1160_v24, %s2161_s24  ;;  %1179 = vrot.lane.b32.xlu0 %v1159_v23, %s2161_s24  ;;  %v2053_v23 = vld [vmem:[%s4121_s1 + $0xf9] sm:$0xff] }
 0x130   :  { %1183 = vrot.lane.b32.xlu2 %v1161_v10, %s2161_s24 }
 0x131   :  { %v772_v28 = vpop.permute.xlu1 %771  ;;  %v770_v59 = vpop.permute.xlu0 %769 }
 0x132   :  { %v792_v53 = vadd.f32 %v772_v28, %v3017_v37  ;;  %v791_v49 = vadd.f32 %v770_v59, %v741_v35  ;;  %v826_v27 = vpop.permute.xlu2 %825  ;;  %v1208_v35 = vmul.f32 %v3107_v43, %v1204_v2  ;;  %v1211_v43 = vmul.f32 %v2049_v0, %v1204_v2 }
 0x134   :  { %v3182_v61 = vadd.f32 %v820_v30, %v791_v49  ;;  %v3205_v30 = vstv %s2081_s3 }
 0x135   :  { %v1256_v2 = vmul.f32 %v2053_v23, %v3205_v30 }
 0x137   :  { %1221 = vrot.lane.b32.xlu1 %v1205_v60, %s2161_s24  ;;  %1185 = vrot.lane.b32.xlu0 %v1162_v9, %s2161_s24  ;;  %v278_v60 = vadd.f32 %v2599_v31, %v228_v4  ;;  %v3229_v9 = vstv %s2060_s5  ;;  %s2140_s5 = sld [smem:[#allocation2 + $0x2c]] }
 0x138   :  { %1223 = vrot.lane.b32.xlu2 %v1206_v57, %s2161_s24 }
 0x139   :  { %v778_v21 = vpop.permute.xlu1 %777  ;;  %v776_v42 = vpop.permute.xlu0 %775 }
 0x13a   :  { %v795_v11 = vadd.f32 %v778_v21, %v3062_v51  ;;  %v794_v37 = vadd.f32 %v776_v42, %v744_v17  ;;  %v866_v8 = vpop.permute.xlu2 %865  ;;  %v3247_v42 = vld [vmem:[%s4121_s1 + $0x151] sm:$0xff] }
 0x13c   :  { %v3190_v44 = vadd.f32 %v826_v27, %v794_v37  ;;  %v328_v27 = vadd.f32 %v2568_v7, %v278_v60  ;;  %v1063_v7 = vmul.f32 %v3247_v42, %v3229_v9 }
 0x13f   :  { %1227 = vrot.lane.b32.xlu1 %v1208_v35, %s2161_s24  ;;  %1225 = vrot.lane.b32.xlu0 %v1207_v6, %s2161_s24  ;;  %v2057_v6 = vld [vmem:[%s4121_s1 + $0x121] sm:$0xff] }
 0x140   :  { %1229 = vrot.lane.b32.xlu2 %v1209_v13, %s2161_s24  ;;  %v378_v13 = vadd.f32 %v2688_v22, %v328_v27 }
 0x141   :  { %v818_v34 = vpop.permute.xlu1 %817  ;;  %v816_v56 = vpop.permute.xlu0 %815 }
 0x142   :  { %v3196_v51 = vadd.f32 %v818_v34, %v3102_v41  ;;  %v839_v17 = vadd.f32 %v816_v56, %v789_v18  ;;  %v872_v58 = vpop.permute.xlu2 %871  ;;  %v2052_v41 = vld [vmem:[%s4121_s1 + $0xf1] sm:$0xff]  ;;  %v1259_v34 = vmul.f32 %v3234_v46, %v3205_v30  ;;  %v428_v22 = vadd.f32 %v2777_v62, %v378_v13  ;;  %v3293_v62 = vld [vmem:[%s4121_s1 + $0x129] sm:$0xff] }
 0x143   :  { %v1255_v28 = vmul.f32 %v2052_v41, %v3205_v30 }
 0x144   :  { %v3198_v24 = vadd.f32 %v866_v8, %v839_v17  ;;  %v231_v8 = vadd.f32 %v2444_v55, %v2340_v54  ;;  %v3274_v54 = vstv %s2069_s12 }
 0x146   :  { %v281_v55 = vadd.f32 %v2620_v29, %v231_v8  ;;  %v3288_v29 = vld [vmem:[%s4121_s1 + $0x131] sm:$0xff] }
 0x147   :  { %1233 = vrot.lane.b32.xlu1 %v1211_v43, %s2161_s24  ;;  %1231 = vrot.lane.b32.xlu0 %v1210_v45, %s2161_s24  ;;  %v3272_v43 = vld [vmem:[%s4121_s1 + $0x1a1] sm:$0xff]  ;;  %v1260_v45 = vmul.f32 %v2057_v6, %v3205_v30 }
 0x148   :  { %1235 = vrot.lane.b32.xlu2 %v1212_v63, %s2161_s24 }
 0x149   :  { %v824_v0 = vpop.permute.xlu1 %823  ;;  %v822_v16 = vpop.permute.xlu0 %821 }
 0x14a   :  { %v3212_v18 = vadd.f32 %v824_v0, %v3138_v38  ;;  %v842_v10 = vadd.f32 %v822_v16, %v792_v53  ;;  %v878_v59 = vpop.permute.xlu2 %877  ;;  %v3224_v38 = vstv %s2051_s4  ;;  %v1257_v53 = vmul.f32 %v2054_v32, %v3205_v30  ;;  %s2111_s4 = sld [smem:[#allocation2 + $0x27]] }
 0x14b   :  { %v1037_v31 = vmul.f32 %v2054_v32, %v3224_v38  ;;  %v1035_v0 = vmul.f32 %v2052_v41, %v3224_v38  ;;  %v1040_v16 = vmul.f32 %v2057_v6, %v3224_v38  ;;  %v4144_v32 = vld [vmem:[#allocation9_spill] sm:$0xff]  ;;  %v1262_v6 = vmul.f32 %v3288_v29, %v3205_v30 }
 0x14c   :  { %v3221_v49 = vadd.f32 %v872_v58, %v842_v10  ;;  %v1089_v58 = vmul.f32 %v3272_v43, %v3274_v54  ;;  %v227_v4 = vadd.f32 %v4144_v32, %v2403_v26 }
 0x14d   :  { %v1045_v17 = vadd.f32 %v1037_v31, %v3129_v19  ;;  %v1036_v19 = vmul.f32 %v2053_v23, %v3224_v38  ;;  %v4145_v23 = vld [vmem:[#allocation13_spill] sm:$0xff]  ;;  %v3309_v31 = vld [vmem:[%s4121_s1 + $0x171] sm:$0xff] }
 0x14e   :  { %v331_v41 = vadd.f32 %v4145_v23, %v281_v55  ;;  %v1043_v55 = vadd.f32 %v1035_v0, %v3092_v5  ;;  %v3352_v5 = vld [vmem:[%s4121_s1 + $0x191] sm:$0xff] }
 0x14f   :  { %1273 = vrot.lane.b32.xlu1 %v1256_v2, %s2161_s24  ;;  %1271 = vrot.lane.b32.xlu0 %v1255_v28, %s2161_s24  ;;  %v1071_v63 = vadd.f32 %v1063_v7, %v1045_v17  ;;  %v4146_v2 = vld [vmem:[#allocation23_spill] sm:$0xff]  ;;  %v1261_v7 = vmul.f32 %v3293_v62, %v3205_v30  ;;  %v1044_v17 = vadd.f32 %v1036_v19, %v3132_v14 }
 0x150   :  { %1275 = vrot.lane.b32.xlu2 %v1257_v53, %s2161_s24  ;;  %v478_v28 = vadd.f32 %v4146_v2, %v428_v22  ;;  %v2062_v53 = vld [vmem:[%s4121_s1 + $0x149] sm:$0xff]  ;;  %v1087_v23 = vmul.f32 %v3352_v5, %v3274_v54  ;;  %v1038_v2 = vmul.f32 %v3239_v36, %v3224_v38 }
 0x151   :  { %v830_v57 = vpop.permute.xlu1 %829  ;;  %v828_v21 = vpop.permute.xlu0 %827  ;;  %v3296_v10 = vadd.f32 %v1089_v58, %v1071_v63  ;;  %v4147_v22 = vld [vmem:[#allocation7_spill] sm:$0xff] }
 0x152   :  { %v3250_v37 = vadd.f32 %v830_v57, %v3168_v3  ;;  %v845_v35 = vadd.f32 %v828_v21, %v795_v11  ;;  %v1258_v3 = vmul.f32 %v3239_v36, %v3205_v30  ;;  %v918_v56 = vpop.permute.xlu2 %917  ;;  %v1062_v57 = vmul.f32 %v2062_v53, %v3229_v9  ;;  %v2061_v21 = vld [vmem:[%s4121_s1 + $0x141] sm:$0xff]  ;;  %v2064_v36 = vld [vmem:[%s4121_s1 + $0x159] sm:$0xff] }
 0x153   :  { %v4148_v30 = vld [vmem:[#allocation21_spill] sm:$0xff] }
 0x154   :  { %v3266_v11 = vadd.f32 %v878_v59, %v845_v35  ;;  %v1066_v35 = vmul.f32 %v3309_v31, %v3229_v9  ;;  %v381_v58 = vadd.f32 %v4148_v30, %v331_v41  ;;  %v1070_v19 = vadd.f32 %v1062_v57, %v1044_v17  ;;  %v4151_v57 = vld [vmem:[#allocation6_spill] sm:$0xff]  ;;  %v4154_v30 = vld [vmem:[#allocation12_spill] sm:$0xff] }
 0x155   :  { %v1039_v41 = vmul.f32 %v3234_v46, %v3224_v38  ;;  %v2065_v46 = vld [vmem:[%s4121_s1 + $0x169] sm:$0xff] }
 0x156   :  { %v431_v32 = vadd.f32 %v2831_v40, %v381_v58  ;;  %v4150_v40 = vld [vmem:[#allocation8_spill] sm:$0xff] }
 0x157   :  { %1279 = vrot.lane.b32.xlu1 %v1259_v34, %s2161_s24  ;;  %1277 = vrot.lane.b32.xlu0 %v1258_v3, %s2161_s24  ;;  %v1048_v34 = vadd.f32 %v1040_v16, %v3159_v48  ;;  %v3333_v3 = vld [vmem:[%s4121_s1 + $0x1c1] sm:$0xff]  ;;  %v3345_v48 = vld [vmem:[%s4121_s1 + $0x199] sm:$0xff] }
 0x158   :  { %1281 = vrot.lane.b32.xlu2 %v1260_v45, %s2161_s24  ;;  %v277_v45 = vadd.f32 %v4147_v22, %v227_v4  ;;  %v1088_v0 = vmul.f32 %v3345_v48, %v3274_v54  ;;  %v1065_v22 = vmul.f32 %v2065_v46, %v3229_v9 }
 0x159   :  { %v870_v59 = vpop.permute.xlu1 %869  ;;  %v868_v60 = vpop.permute.xlu0 %867  ;;  %v1074_v14 = vadd.f32 %v1066_v35, %v1048_v34 }
 0x15a   :  { %v3312_v26 = vadd.f32 %v870_v59, %v3182_v61  ;;  %v890_v27 = vadd.f32 %v868_v60, %v3196_v51  ;;  %v924_v8 = vpop.permute.xlu2 %923  ;;  %v3326_v61 = vstv %s3264_s0  ;;  %v1061_v51 = vmul.f32 %v2061_v21, %v3229_v9  ;;  %v4149_v60 = vld [vmem:[#allocation5_spill] sm:$0xff] }
 0x15b   :  { %v1305_v63 = vmul.f32 %v2061_v21, %v3326_v61  ;;  %v3367_v59 = vadd.f32 %v1088_v0, %v1070_v19  ;;  %v4152_v21 = vld [vmem:[#allocation11_spill] sm:$0xff]  ;;  %v1306_v19 = vmul.f32 %v2062_v53, %v3326_v61 }
 0x15c   :  { %v940_v13 = vadd.f32 %v918_v56, %v890_v27  ;;  %v1092_v56 = vmul.f32 %v3333_v3, %v3274_v54  ;;  %v1069_v4 = vadd.f32 %v1061_v51, %v1043_v55  ;;  %v229_v27 = vadd.f32 %v4150_v40, %v4149_v60  ;;  %v4157_v40 = vld [vmem:[#allocation10_spill] sm:$0xff] }
 0x15d   :  { %v230_v35 = vadd.f32 %v4152_v21, %v4151_v57  ;;  %v1047_v60 = vadd.f32 %v1039_v41, %v3162_v33 }
 0x15e   :  { %v3347_v16 = vadd.f32 %v940_v13, %v478_v28  ;;  %v3365_v28 = vadd.f32 %v1092_v56, %v1074_v14  ;;  %v3381_v34 = vadd.f32 %v1087_v23, %v1069_v4  ;;  %v279_v58 = vadd.f32 %v4154_v30, %v229_v27  ;;  %v4156_v4 = vld [vmem:[#allocation25_spill] sm:$0xff] }
 0x15f   :  { %1285 = vrot.lane.b32.xlu1 %v1262_v6, %s2161_s24  ;;  %1283 = vrot.lane.b32.xlu0 %v1261_v7, %s2161_s24  ;;  %v4153_v6 = vld [vmem:[#allocation14_spill] sm:$0xff]  ;;  %v1307_v14 = vmul.f32 %v3247_v42, %v3326_v61  ;;  %v481_v23 = vadd.f32 %v4156_v4, %v431_v32  ;;  %v280_v57 = vadd.f32 %v4157_v40, %v230_v35  ;;  %v4158_v27 = vld [vmem:[#allocation17_spill] sm:$0xff] }
 0x160   :  { %v327_v7 = vadd.f32 %v4153_v6, %v277_v45  ;;  %1321 = vrot.lane.b32.xlu2 %v1305_v63, %s2161_s24  ;;  %v1064_v45 = vmul.f32 %v2064_v36, %v3229_v9  ;;  %v4155_v63 = vld [vmem:[#allocation19_spill] sm:$0xff]  ;;  %v329_v21 = vadd.f32 %v4158_v27, %v279_v58  ;;  %v1308_v6 = vmul.f32 %v2064_v36, %v3326_v61  ;;  %v3405_v42 = vld [vmem:[%s4121_s1 + $0x1b9] sm:$0xff] }
 0x161   :  { %v876_v51 = vpop.permute.xlu1 %875  ;;  %v874_v13 = vpop.permute.xlu0 %873  ;;  %v1073_v33 = vadd.f32 %v1065_v22, %v1047_v60  ;;  %v4161_v36 = vld [vmem:[#allocation15_spill] sm:$0xff]  ;;  %v1042_v22 = vmul.f32 %v3288_v29, %v3224_v38  ;;  %v2068_v29 = vld [vmem:[%s4121_s1 + $0x181] sm:$0xff]  ;;  %v1310_v60 = vmul.f32 %v3309_v31, %v3326_v61 }
 0x162   :  { %v3384_v17 = vadd.f32 %v876_v51, %v3190_v44  ;;  %v893_v55 = vadd.f32 %v874_v13, %v3212_v18  ;;  %v377_v56 = vadd.f32 %v4155_v63, %v327_v7  ;;  %v930_v0 = vpop.permute.xlu2 %929  ;;  %v1046_v18 = vadd.f32 %v1038_v2, %v3122_v1  ;;  %v3414_v1 = vld [vmem:[%s4121_s1 + $0x1a9] sm:$0xff]  ;;  %v4159_v2 = vld [vmem:[#allocation16_spill] sm:$0xff] }
 0x163   :  { %v1090_v41 = vmul.f32 %v3414_v1, %v3274_v54  ;;  %v330_v35 = vadd.f32 %v4159_v2, %v280_v57  ;;  %v4160_v7 = vld [vmem:[#allocation18_spill] sm:$0xff] }
 0x164   :  { %v943_v44 = vadd.f32 %v924_v8, %v893_v55  ;;  %v1091_v8 = vmul.f32 %v3405_v42, %v3274_v54  ;;  %v1072_v32 = vadd.f32 %v1064_v45, %v1046_v18  ;;  %v427_v51 = vadd.f32 %v4160_v7, %v377_v56  ;;  %v4162_v63 = vld [vmem:[#allocation22_spill] sm:$0xff] }
 0x165   :  { %v379_v55 = vadd.f32 %v4161_v36, %v329_v21  ;;  %v3458_v27 = vld [vmem:[%s4121_s1 + $0x1e9] sm:$0xff]  ;;  %v1050_v21 = vadd.f32 %v1042_v22, %v3177_v47  ;;  %v1354_v47 = vstv %s3420_s22  ;;  %s2139_s22 = sld [smem:[#allocation2 + $0x2b]] }
 0x166   :  { %v3409_v53 = vadd.f32 %v943_v44, %v481_v23  ;;  %v3426_v13 = vadd.f32 %v1091_v8, %v1073_v33  ;;  %v3432_v58 = vadd.f32 %v1090_v41, %v1072_v32  ;;  %v2067_v23 = vld [vmem:[%s4121_s1 + $0x179] sm:$0xff]  ;;  %v1041_v44 = vmul.f32 %v3293_v62, %v3224_v38 }
 0x167   :  { %1325 = vrot.lane.b32.xlu1 %v1307_v14, %s2161_s24  ;;  %1323 = vrot.lane.b32.xlu0 %v1306_v19, %s2161_s24  ;;  %v380_v14 = vadd.f32 %v4162_v63, %v330_v35  ;;  %v477_v19 = vadd.f32 %v2875_v25, %v427_v51  ;;  %v1309_v25 = vmul.f32 %v2065_v46, %v3326_v61  ;;  %v3461_v38 = vstv %s3397_s16  ;;  %v3469_v46 = vld [vmem:[%s4121_s1 + $0x239] sm:$0xff]  ;;  %s3967_s16 = sld [smem:[#allocation2 + $0x2f]] }
 0x168   :  { %1327 = vrot.lane.b32.xlu2 %v1308_v6, %s2161_s24  ;;  %v1311_v62 = vmul.f32 %v2067_v23, %v3326_v61  ;;  %v1414_v31 = vmul.f32 %v3458_v27, %v3461_v38  ;;  %v4163_v6 = vld [vmem:[#allocation20_spill] sm:$0xff]  ;;  %v3490_v35 = vld [vmem:[%s4121_s1 + $0x1e1] sm:$0xff]  ;;  %v1067_v7 = vmul.f32 %v2067_v23, %v3229_v9 }
 0x169   :  { %v916_v45 = vpop.permute.xlu1 %915  ;;  %v880_v30 = vpop.permute.xlu0 %879  ;;  %v430_v33 = vadd.f32 %v4163_v6, %v380_v14  ;;  %v4164_v8 = vld [vmem:[#allocation24_spill] sm:$0xff]  ;;  %v1413_v51 = vmul.f32 %v3490_v35, %v3461_v38 }
 0x16a   :  { %v939_v56 = vadd.f32 %v916_v45, %v3198_v24  ;;  %v896_v4 = vadd.f32 %v880_v30, %v3250_v37  ;;  %v1126_v24 = vpop.permute.xlu2 %1125  ;;  %v1068_v37 = vmul.f32 %v2068_v29, %v3229_v9  ;;  %v429_v32 = vadd.f32 %v4164_v8, %v379_v55  ;;  %v2076_v55 = vld [vmem:[%s4121_s1 + $0x1c9] sm:$0xff] }
 0x16b   :  { %v3453_v57 = vadd.f32 %v1126_v24, %v3296_v10  ;;  %v3472_v10 = vstv %s3407_s19  ;;  %v1049_v30 = vadd.f32 %v1041_v44, %v3153_v52  ;;  %v480_v63 = vadd.f32 %v2919_v39, %v430_v33 }
 0x16c   :  { %v3450_v18 = vadd.f32 %v939_v56, %v477_v19  ;;  %v946_v40 = vadd.f32 %v930_v0, %v896_v4  ;;  %v3477_v0 = vld [vmem:[%s4121_s1 + $0x1d1] sm:$0xff]  ;;  %v1440_v2 = vmul.f32 %v3469_v46, %v3472_v10  ;;  %v1076_v36 = vadd.f32 %v1068_v37, %v1050_v21 }
 0x16d   :  { %v1094_v9 = vmul.f32 %v3477_v0, %v3274_v54  ;;  %v479_v14 = vadd.f32 %v2921_v12, %v429_v32  ;;  %v1093_v4 = vmul.f32 %v2076_v55, %v3274_v54  ;;  %v1355_v37 = vmul.f32 %v3352_v5, %v1354_v47  ;;  %v3540_v5 = vld [vmem:[%s4121_s1 + $0x241] sm:$0xff] }
 0x16e   :  { %v3483_v41 = vadd.f32 %v946_v40, %v2892_v20  ;;  %v3501_v20 = vld [vmem:[%s4121_s1 + $0x231] sm:$0xff]  ;;  %v3506_v22 = vadd.f32 %v1440_v2, %v1414_v31  ;;  %v1312_v52 = vmul.f32 %v2068_v29, %v3326_v61  ;;  %v1075_v44 = vadd.f32 %v1067_v7, %v1049_v30 }
 0x16f   :  { %1331 = vrot.lane.b32.xlu1 %v1310_v60, %s2161_s24  ;;  %1329 = vrot.lane.b32.xlu0 %v1309_v25, %s2161_s24  ;;  %v1439_v45 = vmul.f32 %v3501_v20, %v3472_v10  ;;  %v1102_v24 = vadd.f32 %v1094_v9, %v1076_v36  ;;  %v1358_v33 = vmul.f32 %v3414_v1, %v1354_v47  ;;  %v1560_v9 = vstv %s2138_s15 }
 0x170   :  { %4165 = vst [vmem:[#allocation9_spill] sm:$0xff] %v3483_v41  ;;  %1333 = vrot.lane.b32.xlu2 %v1311_v62, %s2161_s24  ;;  %v1101_v54 = vadd.f32 %v1093_v4, %v1075_v44  ;;  %v1357_v8 = vmul.f32 %v3272_v43, %v1354_v47  ;;  %v1360_v36 = vmul.f32 %v3333_v3, %v1354_v47  ;;  %v3592_v4 = vld [vmem:[%s4121_s1 + $0x211] sm:$0xff]  ;;  %v3609_v44 = vld [vmem:[%s4121_s1 + $0x219] sm:$0xff] }
 0x171   :  { %v922_v19 = vpop.permute.xlu1 %921  ;;  %v920_v56 = vpop.permute.xlu0 %919  ;;  %v3519_v25 = vadd.f32 %v1439_v45, %v1413_v51  ;;  %v1359_v51 = vmul.f32 %v3405_v42, %v1354_v47  ;;  %v1362_v42 = vmul.f32 %v3477_v0, %v1354_v47  ;;  %v1562_v3 = vmul.f32 %v3458_v27, %v1560_v9 }
 0x172   :  { %v942_v23 = vadd.f32 %v922_v19, %v3221_v49  ;;  %v941_v60 = vadd.f32 %v920_v56, %v3312_v26  ;;  %v1132_v39 = vpop.permute.xlu2 %1131  ;;  %v1356_v49 = vmul.f32 %v3345_v48, %v1354_v47  ;;  %v2087_v26 = vld [vmem:[%s4121_s1 + $0x1f1] sm:$0xff] }
 0x173   :  { %v3528_v62 = vadd.f32 %v1132_v39, %v3365_v28  ;;  %v1415_v61 = vmul.f32 %v2087_v26, %v3461_v38  ;;  %v1441_v28 = vmul.f32 %v3540_v5, %v3472_v10  ;;  %v1563_v0 = vmul.f32 %v2087_v26, %v1560_v9 }
 0x174   :  { %v3523_v12 = vadd.f32 %v942_v23, %v480_v63  ;;  %v3525_v40 = vadd.f32 %v941_v60, %v479_v14  ;;  %v1566_v39 = vmul.f32 %v3592_v4, %v1560_v9 }
 0x175   :  { %v3547_v6 = vadd.f32 %v1441_v28, %v1415_v61 }
 0x176   :  { %4166 = vst [vmem:[#allocation13_spill] sm:$0xff] %v3523_v12 }
 0x177   :  { %4167 = vst [vmem:[#allocation23_spill] sm:$0xff] %v3525_v40  ;;  %1371 = vrot.lane.b32.xlu1 %v1355_v37, %s2161_s24  ;;  %1335 = vrot.lane.b32.xlu0 %v1312_v52, %s2161_s24 }
 0x178   :  { %1373 = vrot.lane.b32.xlu2 %v1356_v49, %s2161_s24 }
 0x179   :  { %v928_v48 = vpop.permute.xlu1 %927  ;;  %v926_v29 = vpop.permute.xlu0 %925 }
 0x17a   :  { %v945_v31 = vadd.f32 %v928_v48, %v3266_v11  ;;  %v944_v21 = vadd.f32 %v926_v29, %v3384_v17  ;;  %v1172_v32 = vpop.permute.xlu2 %1171  ;;  %v1567_v48 = vmul.f32 %v3609_v44, %v1560_v9 }
 0x17c   :  { %v3552_v2 = vadd.f32 %v945_v31, %v2943_v50  ;;  %v3555_v7 = vadd.f32 %v944_v21, %v2945_v15  ;;  %v1361_v50 = vmul.f32 %v2076_v55, %v1354_v47  ;;  %v1561_v55 = vmul.f32 %v3490_v35, %v1560_v9  ;;  %v3581_v47 = vld [vmem:[%s4121_s1 + $0x209] sm:$0xff] }
 0x17d   :  { %v1565_v23 = vmul.f32 %v3581_v47, %v1560_v9  ;;  %v1610_v21 = vstv %s2139_s22 }
 0x17e   :  { %4168 = vst [vmem:[#allocation7_spill] sm:$0xff] %v3552_v2 }
 0x17f   :  { %4169 = vst [vmem:[#allocation21_spill] sm:$0xff] %v3555_v7  ;;  %1377 = vrot.lane.b32.xlu1 %v1358_v33, %s2161_s24  ;;  %1375 = vrot.lane.b32.xlu0 %v1357_v8, %s2161_s24  ;;  %v1611_v33 = vmul.f32 %v3501_v20, %v1610_v21  ;;  %v1612_v20 = vmul.f32 %v3469_v46, %v1610_v21  ;;  %v3894_v7 = vld [vmem:[%s4121_s1 + $0x379] sm:$0xff] }
 0x180   :  { %1379 = vrot.lane.b32.xlu2 %v1359_v51, %s2161_s24 }
 0x181   :  { %v1124_v11 = vpop.permute.xlu1 %1123  ;;  %v1122_v17 = vpop.permute.xlu0 %1121 }
 0x182   :  { %v1146_v43 = vadd.f32 %v1124_v11, %v3367_v59  ;;  %v1145_v1 = vadd.f32 %v1122_v17, %v3381_v34  ;;  %v1178_v15 = vpop.permute.xlu2 %1177  ;;  %v3625_v11 = vld [vmem:[%s4121_s1 + $0x249] sm:$0xff]  ;;  %v1613_v17 = vmul.f32 %v3540_v5, %v1610_v21  ;;  %v3642_v5 = vld [vmem:[%s4121_s1 + $0x259] sm:$0xff] }
 0x184   :  { %v3564_v45 = vadd.f32 %v1172_v32, %v1145_v1 }
 0x187   :  { %1383 = vrot.lane.b32.xlu1 %v1361_v50, %s2161_s24  ;;  %1381 = vrot.lane.b32.xlu0 %v1360_v36, %s2161_s24  ;;  %v1614_v50 = vmul.f32 %v3625_v11, %v1610_v21 }
 0x188   :  { %1385 = vrot.lane.b32.xlu2 %v1362_v42, %s2161_s24 }
 0x189   :  { %v1130_v30 = vpop.permute.xlu1 %1129  ;;  %v1128_v63 = vpop.permute.xlu0 %1127 }
 0x18a   :  { %v1149_v59 = vadd.f32 %v1130_v30, %v3426_v13  ;;  %v1148_v34 = vadd.f32 %v1128_v63, %v3432_v58  ;;  %v1184_v14 = vpop.permute.xlu2 %1183  ;;  %v3586_v13 = vld [vmem:[%s4121_s1 + $0x1f9] sm:$0xff]  ;;  %v1615_v63 = vmul.f32 %v3642_v5, %v1610_v21 }
 0x18b   :  { %v1564_v60 = vmul.f32 %v3586_v13, %v1560_v9 }
 0x18c   :  { %v3574_v19 = vadd.f32 %v1178_v15, %v1148_v34 }
 0x18f   :  { %1579 = vrot.lane.b32.xlu1 %v1562_v3, %s2161_s24  ;;  %1577 = vrot.lane.b32.xlu0 %v1561_v55, %s2161_s24  ;;  %v1660_v55 = vstv %s2140_s5 }
 0x190   :  { %1581 = vrot.lane.b32.xlu2 %v1563_v0, %s2161_s24 }
 0x191   :  { %v1136_v58 = vpop.permute.xlu1 %1135  ;;  %v1134_v27 = vpop.permute.xlu0 %1133 }
 0x192   :  { %v1152_v35 = vadd.f32 %v1136_v58, %v1102_v24  ;;  %v1151_v56 = vadd.f32 %v1134_v27, %v1101_v54  ;;  %v1224_v37 = vpop.permute.xlu2 %1223  ;;  %v3604_v24 = vld [vmem:[%s4121_s1 + $0x221] sm:$0xff] }
 0x193   :  { %v1568_v28 = vmul.f32 %v3604_v24, %v1560_v9  ;;  %v3649_v9 = vld [vmem:[%s4121_s1 + $0x269] sm:$0xff] }
 0x194   :  { %v3596_v52 = vadd.f32 %v1184_v14, %v1151_v56  ;;  %v1617_v3 = vmul.f32 %v3649_v9, %v1610_v21  ;;  %v3666_v14 = vld [vmem:[%s4121_s1 + $0x271] sm:$0xff]  ;;  %v3673_v56 = vld [vmem:[%s4121_s1 + $0x289] sm:$0xff] }
 0x197   :  { %1585 = vrot.lane.b32.xlu1 %v1565_v23, %s2161_s24  ;;  %1583 = vrot.lane.b32.xlu0 %v1564_v60, %s2161_s24  ;;  %v1618_v60 = vmul.f32 %v3666_v14, %v1610_v21 }
 0x198   :  { %1587 = vrot.lane.b32.xlu2 %v1566_v39, %s2161_s24 }
 0x199   :  { %v1176_v49 = vpop.permute.xlu1 %1175  ;;  %v1174_v54 = vpop.permute.xlu0 %1173 }
 0x19a   :  { %v1197_v26 = vadd.f32 %v1176_v49, %v3453_v57  ;;  %v1196_v61 = vadd.f32 %v1174_v54, %v1146_v43  ;;  %v1230_v29 = vpop.permute.xlu2 %1229  ;;  %v1662_v49 = vmul.f32 %v3673_v56, %v1660_v55  ;;  %v2105_v54 = vld [vmem:[%s4121_s1 + $0x291] sm:$0xff] }
 0x19c   :  { %v3615_v31 = vadd.f32 %v1224_v37, %v1196_v61 }
 0x19f   :  { %1591 = vrot.lane.b32.xlu1 %v1568_v28, %s2161_s24  ;;  %1589 = vrot.lane.b32.xlu0 %v1567_v48, %s2161_s24 }
 0x1a0   :  { %1627 = vrot.lane.b32.xlu2 %v1611_v33, %s2161_s24  ;;  %v1663_v33 = vmul.f32 %v2105_v54, %v1660_v55 }
 0x1a1   :  { %v1182_v8 = vpop.permute.xlu1 %1181  ;;  %v1180_v32 = vpop.permute.xlu0 %1179 }
 0x1a2   :  { %v1200_v57 = vadd.f32 %v1182_v8, %v3528_v62  ;;  %v1199_v51 = vadd.f32 %v1180_v32, %v1149_v59  ;;  %v1236_v43 = vpop.permute.xlu2 %1235  ;;  %v3637_v62 = vld [vmem:[%s4121_s1 + $0x261] sm:$0xff] }
 0x1a3   :  { %v1616_v30 = vmul.f32 %v3637_v62, %v1610_v21 }
 0x1a4   :  { %v3629_v1 = vadd.f32 %v1230_v29, %v1199_v51  ;;  %v3695_v29 = vld [vmem:[%s4121_s1 + $0x2a9] sm:$0xff] }
 0x1a5   :  { %v1665_v51 = vmul.f32 %v3695_v29, %v1660_v55 }
 0x1a7   :  { %1631 = vrot.lane.b32.xlu1 %v1613_v17, %s2161_s24  ;;  %1629 = vrot.lane.b32.xlu0 %v1612_v20, %s2161_s24 }
 0x1a8   :  { %1633 = vrot.lane.b32.xlu2 %v1614_v50, %s2161_s24 }
 0x1a9   :  { %v1222_v46 = vpop.permute.xlu1 %1221  ;;  %v1186_v36 = vpop.permute.xlu0 %1185 }
 0x1aa   :  { %v1245_v15 = vadd.f32 %v1222_v46, %v3564_v45  ;;  %v1202_v42 = vadd.f32 %v1186_v36, %v1152_v35  ;;  %v1276_v59 = vpop.permute.xlu2 %1275  ;;  %v3661_v45 = vld [vmem:[%s4121_s1 + $0x281] sm:$0xff] }
 0x1ab   :  { %v1661_v23 = vmul.f32 %v3661_v45, %v1660_v55  ;;  %v3720_v46 = vld [vmem:[%s4121_s1 + $0x2c1] sm:$0xff] }
 0x1ac   :  { %v3653_v34 = vadd.f32 %v1236_v43, %v1202_v42 }
 0x1af   :  { %1637 = vrot.lane.b32.xlu1 %v1616_v30, %s2161_s24  ;;  %1635 = vrot.lane.b32.xlu0 %v1615_v63, %s2161_s24 }
 0x1b0   :  { %1639 = vrot.lane.b32.xlu2 %v1617_v3, %s2161_s24  ;;  %v3739_v3 = vld [vmem:[%s4121_s1 + $0x2d1] sm:$0xff] }
 0x1b1   :  { %v1228_v0 = vpop.permute.xlu1 %1227  ;;  %v1226_v58 = vpop.permute.xlu0 %1225 }
 0x1b2   :  { %v1248_v27 = vadd.f32 %v1228_v0, %v3574_v19  ;;  %v1247_v35 = vadd.f32 %v1226_v58, %v1197_v26  ;;  %v1282_v37 = vpop.permute.xlu2 %1281  ;;  %v3685_v19 = vld [vmem:[%s4121_s1 + $0x299] sm:$0xff] }
 0x1b3   :  { %v1664_v21 = vmul.f32 %v3685_v19, %v1660_v55 }
 0x1b4   :  { %v3677_v39 = vadd.f32 %v1276_v59, %v1247_v35  ;;  %v1668_v59 = vmul.f32 %v3720_v46, %v1660_v55 }
 0x1b7   :  { %1677 = vrot.lane.b32.xlu1 %v1661_v23, %s2161_s24  ;;  %1641 = vrot.lane.b32.xlu0 %v1618_v60, %s2161_s24  ;;  %v2114_v23 = vld [vmem:[%s4121_s1 + $0x2e1] sm:$0xff]  ;;  %v3748_v60 = vstv %s2102_s27 }
 0x1b8   :  { %1679 = vrot.lane.b32.xlu2 %v1662_v49, %s2161_s24 }
 0x1b9   :  { %v1234_v26 = vpop.permute.xlu1 %1233  ;;  %v1232_v61 = vpop.permute.xlu0 %1231 }
 0x1ba   :  { %v1251_v28 = vadd.f32 %v1234_v26, %v3596_v52  ;;  %v1250_v48 = vadd.f32 %v1232_v61, %v1200_v57  ;;  %v1322_v8 = vpop.permute.xlu2 %1321  ;;  %v3706_v52 = vld [vmem:[%s4121_s1 + $0x2b9] sm:$0xff]  ;;  %v3711_v57 = vld [vmem:[%s4121_s1 + $0x2b1] sm:$0xff] }
 0x1bb   :  { %v1667_v36 = vmul.f32 %v3706_v52, %v1660_v55  ;;  %v1666_v42 = vmul.f32 %v3711_v57, %v1660_v55 }
 0x1bc   :  { %v3698_v32 = vadd.f32 %v1282_v37, %v1250_v48  ;;  %v3761_v48 = vld [vmem:[%s4121_s1 + $0x2f9] sm:$0xff] }
 0x1bf   :  { %1683 = vrot.lane.b32.xlu1 %v1664_v21, %s2161_s24  ;;  %1681 = vrot.lane.b32.xlu0 %v1663_v33, %s2161_s24  ;;  %v3768_v21 = vld [vmem:[%s4121_s1 + $0x2e9] sm:$0xff] }
 0x1c0   :  { %1685 = vrot.lane.b32.xlu2 %v1665_v51, %s2161_s24 }
 0x1c1   :  { %v1274_v17 = vpop.permute.xlu1 %1273  ;;  %v1272_v20 = vpop.permute.xlu0 %1271 }
 0x1c2   :  { %v3715_v43 = vadd.f32 %v1274_v17, %v3615_v31  ;;  %v1295_v50 = vadd.f32 %v1272_v20, %v1245_v15  ;;  %v1328_v30 = vpop.permute.xlu2 %1327  ;;  %v3732_v31 = vld [vmem:[%s4121_s1 + $0x2d9] sm:$0xff]  ;;  %v3734_v15 = vstv %s2141_s21  ;;  %v2117_v20 = vld [vmem:[%s4121_s1 + $0x301] sm:$0xff] }
 0x1c3   :  { %v1712_v37 = vmul.f32 %v3732_v31, %v3734_v15  ;;  %v1711_v49 = vmul.f32 %v3739_v3, %v3734_v15  ;;  %v1715_v51 = vmul.f32 %v3761_v48, %v3734_v15 }
 0x1c4   :  { %v3724_v63 = vadd.f32 %v1322_v8, %v1295_v50 }
 0x1c7   :  { %1689 = vrot.lane.b32.xlu1 %v1667_v36, %s2161_s24  ;;  %1687 = vrot.lane.b32.xlu0 %v1666_v42, %s2161_s24  ;;  %v3782_v36 = vstv %s2111_s4  ;;  %v3787_v42 = vld [vmem:[%s4121_s1 + $0x381] sm:$0xff] }
 0x1c8   :  { %1691 = vrot.lane.b32.xlu2 %v1668_v59, %s2161_s24 }
 0x1c9   :  { %v1280_v0 = vpop.permute.xlu1 %1279  ;;  %v1278_v58 = vpop.permute.xlu0 %1277 }
 0x1ca   :  { %v3743_v55 = vadd.f32 %v1280_v0, %v3629_v1  ;;  %v1298_v35 = vadd.f32 %v1278_v58, %v1248_v27  ;;  %v1334_v26 = vpop.permute.xlu2 %1333  ;;  %v1713_v1 = vmul.f32 %v2114_v23, %v3734_v15  ;;  %v1467_v27 = vmul.f32 %v2105_v54, %v3748_v60 }
 0x1cb   :  { %v3797_v0 = vstv %s2120_s7 }
 0x1cc   :  { %v3754_v61 = vadd.f32 %v1328_v30, %v1298_v35  ;;  %v1475_v50 = vadd.f32 %v1467_v27, %v3547_v6  ;;  %v1714_v30 = vmul.f32 %v3768_v21, %v3734_v15  ;;  %v3799_v6 = vstv %s2129_s8 }
 0x1cd   :  { %v1545_v27 = vmul.f32 %v3787_v42, %v3799_v6 }
 0x1cf   :  { %1729 = vrot.lane.b32.xlu1 %v1712_v37, %s2161_s24  ;;  %1727 = vrot.lane.b32.xlu0 %v1711_v49, %s2161_s24  ;;  %v1417_v37 = vmul.f32 %v3581_v47, %v3461_v38  ;;  %v1716_v49 = vmul.f32 %v2117_v20, %v3734_v15  ;;  %v3822_v47 = vmul.f32 %v3609_v44, %v3461_v38  ;;  %v3839_v44 = vld [vmem:[%s4121_s1 + $0x311] sm:$0xff] }
 0x1d0   :  { %1731 = vrot.lane.b32.xlu2 %v1713_v1, %s2161_s24 }
 0x1d1   :  { %v1286_v33 = vpop.permute.xlu1 %1285  ;;  %v1284_v8 = vpop.permute.xlu0 %1283 }
 0x1d2   :  { %v3776_v54 = vadd.f32 %v1286_v33, %v3653_v34  ;;  %v1301_v17 = vadd.f32 %v1284_v8, %v1251_v28  ;;  %v1374_v59 = vpop.permute.xlu2 %1373  ;;  %v3794_v34 = vld [vmem:[%s4121_s1 + $0x331] sm:$0xff]  ;;  %v1493_v28 = vmul.f32 %v2114_v23, %v3782_v36  ;;  %v1416_v23 = vmul.f32 %v3586_v13, %v3461_v38 }
 0x1d3   :  { %v1519_v35 = vmul.f32 %v3794_v34, %v3797_v0  ;;  %v3814_v33 = vmul.f32 %v3604_v24, %v3461_v38  ;;  %v1444_v8 = vmul.f32 %v3637_v62, %v3472_v10  ;;  %v1442_v24 = vmul.f32 %v3625_v11, %v3472_v10  ;;  %v2121_v11 = vld [vmem:[%s4121_s1 + $0x321] sm:$0xff] }
 0x1d4   :  { %v3801_v58 = vadd.f32 %v1334_v26, %v1301_v17  ;;  %v1501_v1 = vadd.f32 %v1493_v28, %v1475_v50  ;;  %v1418_v26 = vmul.f32 %v3592_v4, %v3461_v38  ;;  %v1443_v17 = vmul.f32 %v3642_v5, %v3472_v10  ;;  %v3844_v5 = vld [vmem:[%s4121_s1 + $0x309] sm:$0xff] }
 0x1d5   :  { %v1465_v4 = vmul.f32 %v3661_v45, %v3748_v60  ;;  %v1466_v62 = vmul.f32 %v3673_v56, %v3748_v60  ;;  %v1470_v38 = vmul.f32 %v3711_v57, %v3748_v60  ;;  %v3851_v45 = vmul.f32 %v3666_v14, %v3472_v10  ;;  %v3868_v14 = vld [vmem:[%s4121_s1 + $0x351] sm:$0xff] }
 0x1d6   :  { %v1527_v13 = vadd.f32 %v1519_v35, %v1501_v1  ;;  %v1468_v56 = vmul.f32 %v3685_v19, %v3748_v60  ;;  %v3857_v50 = vstv %s3773_s13  ;;  %v1452_v1 = vadd.f32 %v1444_v8, %v1418_v26 }
 0x1d7   :  { %1735 = vrot.lane.b32.xlu1 %v1715_v51, %s2161_s24  ;;  %1733 = vrot.lane.b32.xlu0 %v1714_v30, %s2161_s24  ;;  %v1496_v19 = vmul.f32 %v2117_v20, %v3782_v36  ;;  %v2122_v20 = vld [vmem:[%s4121_s1 + $0x329] sm:$0xff]  ;;  %v1517_v40 = vmul.f32 %v2121_v11, %v3797_v0  ;;  %v1450_v12 = vadd.f32 %v1442_v24, %v1416_v23 }
 0x1d8   :  { %1737 = vrot.lane.b32.xlu2 %v1716_v49, %s2161_s24  ;;  %v3859_v30 = vadd.f32 %v1545_v27, %v1527_v13  ;;  %v1718_v49 = vmul.f32 %v3839_v44, %v3734_v15  ;;  %v1717_v27 = vmul.f32 %v3844_v5, %v3734_v15  ;;  %v1478_v8 = vadd.f32 %v1470_v38, %v1452_v1 }
 0x1d9   :  { %v1326_v57 = vpop.permute.xlu1 %1325  ;;  %v1324_v51 = vpop.permute.xlu0 %1323  ;;  %v1474_v15 = vadd.f32 %v1466_v62, %v3506_v22  ;;  %v1518_v2 = vmul.f32 %v2122_v20, %v3797_v0  ;;  %v3904_v22 = vld [vmem:[%s4121_s1 + $0x371] sm:$0xff]  ;;  %v1544_v1 = vmul.f32 %v3894_v7, %v3799_v6 }
 0x1da   :  { %v3862_v28 = vadd.f32 %v1326_v57, %v3677_v39  ;;  %v1346_v35 = vadd.f32 %v1324_v51, %v3715_v43  ;;  %v1380_v13 = vpop.permute.xlu2 %1379  ;;  %v1761_v39 = vmul.f32 %v2121_v11, %v3857_v50  ;;  %v1522_v43 = vmul.f32 %v3868_v14, %v3797_v0  ;;  %v3881_v57 = vld [vmem:[%s4121_s1 + $0x3a1] sm:$0xff] }
 0x1db   :  { %v1492_v51 = vmul.f32 %v3732_v31, %v3782_v36  ;;  %v1504_v31 = vadd.f32 %v1496_v19, %v1478_v8  ;;  %v1548_v62 = vmul.f32 %v3881_v57, %v3799_v6  ;;  %v1451_v8 = vadd.f32 %v1443_v17, %v1417_v37  ;;  %v2124_v37 = vld [vmem:[%s4121_s1 + $0x339] sm:$0xff] }
 0x1dc   :  { %v3883_v26 = vadd.f32 %v1374_v59, %v1346_v35  ;;  %v1473_v59 = vadd.f32 %v1465_v4, %v3519_v25  ;;  %v1491_v35 = vmul.f32 %v3739_v3, %v3782_v36  ;;  %v1469_v25 = vmul.f32 %v3695_v29, %v3748_v60 }
 0x1dd   :  { %v1500_v38 = vadd.f32 %v1492_v51, %v1474_v15  ;;  %v1543_v4 = vmul.f32 %v3904_v22, %v3799_v6  ;;  %v1530_v11 = vadd.f32 %v1522_v43, %v1504_v31  ;;  %v1445_v15 = vmul.f32 %v3649_v9, %v3472_v10 }
 0x1de   :  { %v1499_v3 = vadd.f32 %v1491_v35, %v1473_v59  ;;  %v1763_v29 = vmul.f32 %v3794_v34, %v3857_v50  ;;  %v2125_v34 = vld [vmem:[%s4121_s1 + $0x349] sm:$0xff]  ;;  %v1520_v43 = vmul.f32 %v2124_v37, %v3797_v0 }
 0x1df   :  { %1741 = vrot.lane.b32.xlu1 %v1718_v49, %s2161_s24  ;;  %1739 = vrot.lane.b32.xlu0 %v1717_v27, %s2161_s24  ;;  %v1526_v19 = vadd.f32 %v1518_v2, %v1500_v38  ;;  %v1762_v49 = vmul.f32 %v2122_v20, %v3857_v50  ;;  %v3929_v10 = vadd.f32 %v1548_v62, %v1530_v11  ;;  %v3950_v35 = vld [vmem:[%s4121_s1 + $0x389] sm:$0xff] }
 0x1e0   :  { %1777 = vrot.lane.b32.xlu2 %v1761_v39, %s2161_s24  ;;  %v1525_v27 = vadd.f32 %v1517_v40, %v1499_v3  ;;  %v1477_v40 = vadd.f32 %v1469_v25, %v1451_v8  ;;  %v1521_v24 = vmul.f32 %v2125_v34, %v3797_v0  ;;  %v1494_v39 = vmul.f32 %v3768_v21, %v3782_v36 }
 0x1e1   :  { %v1332_v51 = vpop.permute.xlu1 %1331  ;;  %v1330_v41 = vpop.permute.xlu0 %1329  ;;  %v3931_v9 = vadd.f32 %v1544_v1, %v1526_v19  ;;  %v1764_v20 = vmul.f32 %v2124_v37, %v3857_v50  ;;  %v1546_v31 = vmul.f32 %v3950_v35, %v3799_v6  ;;  %v1471_v62 = vmul.f32 %v3706_v52, %v3748_v60 }
 0x1e2   :  { %v3923_v59 = vadd.f32 %v1332_v51, %v3698_v32  ;;  %v1349_v2 = vadd.f32 %v1330_v41, %v3743_v55  ;;  %v1386_v23 = vpop.permute.xlu2 %1385  ;;  %v3936_v17 = vadd.f32 %v1543_v4, %v1525_v27  ;;  %v1495_v32 = vmul.f32 %v3761_v48, %v3782_v36  ;;  %v2137_v27 = vld [vmem:[%s4121_s1 + $0x3b1] sm:$0xff] }
 0x1e3   :  { %v1476_v41 = vadd.f32 %v1468_v56, %v1450_v12  ;;  %v3955_v12 = vld [vmem:[%s4121_s1 + $0x399] sm:$0xff]  ;;  %v1472_v56 = vmul.f32 %v3720_v46, %v3748_v60  ;;  %v1454_v46 = vadd.f32 %v3851_v45, %v3814_v33  ;;  %v1453_v25 = vadd.f32 %v1445_v15, %v3822_v47 }
 0x1e4   :  { %v3940_v55 = vadd.f32 %v1380_v13, %v1349_v2  ;;  %v1503_v48 = vadd.f32 %v1495_v32, %v1477_v40  ;;  %v1547_v21 = vmul.f32 %v3955_v12, %v3799_v6  ;;  %v1766_v11 = vmul.f32 %v3868_v14, %v3857_v50  ;;  %v2127_v33 = vld [vmem:[%s4121_s1 + $0x359] sm:$0xff]  ;;  %v2128_v14 = vld [vmem:[%s4121_s1 + $0x361] sm:$0xff] }
 0x1e5   :  { %v1502_v13 = vadd.f32 %v1494_v39, %v1476_v41  ;;  %v1480_v47 = vadd.f32 %v1472_v56, %v1454_v46  ;;  %v1765_v8 = vmul.f32 %v2125_v34, %v3857_v50  ;;  %v1479_v51 = vadd.f32 %v1471_v62, %v1453_v25 }
 0x1e6   :  { %v1529_v38 = vadd.f32 %v1521_v24, %v1503_v48  ;;  %v1524_v2 = vmul.f32 %v2128_v14, %v3797_v0  ;;  %v1523_v37 = vmul.f32 %v2127_v33, %v3797_v0  ;;  %v1810_v41 = vstv %s3967_s16 }
 0x1e7   :  { %1781 = vrot.lane.b32.xlu1 %v1763_v29, %s2161_s24  ;;  %1779 = vrot.lane.b32.xlu0 %v1762_v49, %s2161_s24  ;;  %v1528_v1 = vadd.f32 %v1520_v43, %v1502_v13  ;;  %v1768_v56 = vmul.f32 %v2128_v14, %v3857_v50  ;;  %v1816_v25 = vmul.f32 %v3881_v57, %v1810_v41 }
 0x1e8   :  { %1783 = vrot.lane.b32.xlu2 %v1764_v20, %s2161_s24  ;;  %v3975_v52 = vadd.f32 %v1547_v21, %v1529_v38 }
 0x1e9   :  { %v1372_v3 = vpop.permute.xlu1 %1371  ;;  %v1336_v4 = vpop.permute.xlu0 %1335  ;;  %v3984_v45 = vadd.f32 %v1546_v31, %v1528_v1  ;;  %v1812_v31 = vmul.f32 %v3894_v7, %v1810_v41  ;;  %v1815_v7 = vmul.f32 %v3955_v12, %v1810_v41 }
 0x1ea   :  { %v3978_v60 = vadd.f32 %v1372_v3, %v3724_v63  ;;  %v1352_v19 = vadd.f32 %v1336_v4, %v3776_v54  ;;  %v1582_v15 = vpop.permute.xlu2 %1581  ;;  %v1498_v63 = vmul.f32 %v3839_v44, %v3782_v36  ;;  %v1497_v54 = vmul.f32 %v3844_v5, %v3782_v36  ;;  %v2136_v36 = vld [vmem:[%s4121_s1 + $0x3a9] sm:$0xff] }
 0x1eb   :  { %v3997_v49 = vadd.f32 %v1582_v15, %v3859_v30  ;;  %v1767_v44 = vmul.f32 %v2127_v33, %v3857_v50  ;;  %v1549_v30 = vmul.f32 %v2136_v36, %v3799_v6  ;;  %v1813_v50 = vmul.f32 %v3787_v42, %v1810_v41 }
 0x1ec   :  { %v3994_v29 = vadd.f32 %v1386_v23, %v1352_v19  ;;  %v1506_v5 = vadd.f32 %v1498_v63, %v1480_v47  ;;  %v1550_v23 = vmul.f32 %v2137_v27, %v3799_v6  ;;  %v1505_v34 = vadd.f32 %v1497_v54, %v1479_v51 }
 0x1ed   :  { %v1811_v6 = vmul.f32 %v3904_v22, %v1810_v41  ;;  %v1814_v22 = vmul.f32 %v3950_v35, %v1810_v41  ;;  %v1817_v42 = vmul.f32 %v2136_v36, %v1810_v41  ;;  %v1818_v4 = vmul.f32 %v2137_v27, %v1810_v41 }
 0x1ee   :  { %v1532_v40 = vadd.f32 %v1524_v2, %v1506_v5  ;;  %v1531_v32 = vadd.f32 %v1523_v37, %v1505_v34 }
 0x1ef   :  { %1787 = vrot.lane.b32.xlu1 %v1766_v11, %s2161_s24  ;;  %1785 = vrot.lane.b32.xlu0 %v1765_v8, %s2161_s24 }
 0x1f0   :  { %1789 = vrot.lane.b32.xlu2 %v1767_v44, %s2161_s24  ;;  %v1558_v39 = vadd.f32 %v1550_v23, %v1532_v40  ;;  %v1557_v43 = vadd.f32 %v1549_v30, %v1531_v32 }
 0x1f1   :  { %v1378_v0 = vpop.permute.xlu1 %1377  ;;  %v1376_v24 = vpop.permute.xlu0 %1375 }
 0x1f2   :  { %v4015_v20 = vadd.f32 %v1378_v0, %v3754_v61  ;;  %v4018_v48 = vadd.f32 %v1376_v24, %v3862_v28  ;;  %v1588_v21 = vpop.permute.xlu2 %1587 }
 0x1f3   :  { %v1606_v13 = vadd.f32 %v1588_v21, %v3929_v10 }
 0x1f7   :  { %1827 = vrot.lane.b32.xlu1 %v1811_v6, %s2161_s24  ;;  %1791 = vrot.lane.b32.xlu0 %v1768_v56, %s2161_s24 }
 0x1f8   :  { %1829 = vrot.lane.b32.xlu2 %v1812_v31, %s2161_s24 }
 0x1f9   :  { %v1384_v62 = vpop.permute.xlu1 %1383  ;;  %v1382_v38 = vpop.permute.xlu0 %1381 }
 0x1fa   :  { %v4028_v61 = vadd.f32 %v1384_v62, %v3801_v58  ;;  %v4031_v28 = vadd.f32 %v1382_v38, %v3923_v59  ;;  %v1628_v10 = vpop.permute.xlu2 %1627 }
 0x1ff   :  { %1833 = vrot.lane.b32.xlu1 %v1814_v22, %s2161_s24  ;;  %1831 = vrot.lane.b32.xlu0 %v1813_v50, %s2161_s24 }
 0x200   :  { %1835 = vrot.lane.b32.xlu2 %v1815_v7, %s2161_s24 }
 0x201   :  { %v1580_v1 = vpop.permute.xlu1 %1579  ;;  %v1578_v46 = vpop.permute.xlu0 %1577 }
 0x202   :  { %v1602_v58 = vadd.f32 %v1580_v1, %v3931_v9  ;;  %v1601_v59 = vadd.f32 %v1578_v46, %v3936_v17  ;;  %v1634_v3 = vpop.permute.xlu2 %1633 }
 0x204   :  { %v1651_v35 = vadd.f32 %v1628_v10, %v1601_v59 }
 0x207   :  { %1839 = vrot.lane.b32.xlu1 %v1817_v42, %s2161_s24  ;;  %1837 = vrot.lane.b32.xlu0 %v1816_v25, %s2161_s24 }
 0x208   :  { %1841 = vrot.lane.b32.xlu2 %v1818_v4, %s2161_s24 }
 0x209   :  { %v1586_v12 = vpop.permute.xlu1 %1585  ;;  %v1584_v11 = vpop.permute.xlu0 %1583 }
 0x20a   :  { %v1605_v19 = vadd.f32 %v1586_v12, %v3975_v52  ;;  %v1604_v9 = vadd.f32 %v1584_v11, %v3984_v45  ;;  %v1640_v33 = vpop.permute.xlu2 %1639 }
 0x20c   :  { %v4047_v17 = vadd.f32 %v1634_v3, %v1604_v9 }
 0x211   :  { %v1592_v57 = vpop.permute.xlu1 %1591  ;;  %v1590_v47 = vpop.permute.xlu0 %1589 }
 0x212   :  { %v1608_v8 = vadd.f32 %v1592_v57, %v1558_v39  ;;  %v1607_v15 = vadd.f32 %v1590_v47, %v1557_v43  ;;  %v1680_v14 = vpop.permute.xlu2 %1679 }
 0x214   :  { %v4049_v63 = vadd.f32 %v1640_v33, %v1607_v15 }
 0x219   :  { %v1632_v51 = vpop.permute.xlu1 %1631  ;;  %v1630_v54 = vpop.permute.xlu0 %1629 }
 0x21a   :  { %v1653_v27 = vadd.f32 %v1632_v51, %v3997_v49  ;;  %v1686_v2 = vpop.permute.xlu2 %1685  ;;  %v1652_v31 = vadd.f32 %v1630_v54, %v1602_v58 }
 0x21c   :  { %v1702_v38 = vadd.f32 %v1680_v14, %v1652_v31 }
 0x221   :  { %v1638_v37 = vpop.permute.xlu1 %1637  ;;  %v1636_v44 = vpop.permute.xlu0 %1635 }
 0x222   :  { %v4052_v52 = vadd.f32 %v1638_v37, %v1606_v13  ;;  %v1692_v45 = vpop.permute.xlu2 %1691  ;;  %v1655_v7 = vadd.f32 %v1636_v44, %v1605_v19 }
 0x224   :  { %v1705_v59 = vadd.f32 %v1686_v2, %v1655_v7  ;;  %v4172_v7 = vld [vmem:[#allocation23_spill] sm:$0xff] }
 0x229   :  { %v1678_v36 = vpop.permute.xlu1 %1677  ;;  %v1642_v5 = vpop.permute.xlu0 %1641 }
 0x22a   :  { %v1732_v23 = vpop.permute.xlu2 %1731  ;;  %v1701_v12 = vadd.f32 %v1678_v36, %v1651_v35  ;;  %v1658_v11 = vadd.f32 %v1642_v5, %v1608_v8 }
 0x231   :  { %v1684_v34 = vpop.permute.xlu1 %1683  ;;  %v1682_v30 = vpop.permute.xlu0 %1681 }
 0x232   :  { %v4054_v40 = vpop.permute.xlu2 %1737  ;;  %v1704_v54 = vadd.f32 %v1684_v34, %v4047_v17 }
 0x239   :  { %v4056_v32 = vpop.permute.xlu1 %1689  ;;  %v4058_v41 = vpop.permute.xlu0 %1687 }
 0x23a   :  { %v1778_v0 = vpop.permute.xlu2 %1777 }
 0x241   :  { %v1730_v24 = vpop.permute.xlu1 %1729  ;;  %v1728_v49 = vpop.permute.xlu0 %1727 }
 0x242   :  { %v1784_v39 = vpop.permute.xlu2 %1783  ;;  %v1752_v50 = vadd.f32 %v1730_v24, %v1702_v38  ;;  %v1751_v47 = vadd.f32 %v1728_v49, %v1701_v12  ;;  %v1703_v24 = vadd.f32 %v1682_v30, %v1653_v27  ;;  %v1707_v30 = vadd.f32 %v4056_v32, %v4049_v63 }
 0x244   :  { %v1753_v17 = vadd.f32 %v1732_v23, %v1703_v24 }
 0x249   :  { %v1736_v43 = vpop.permute.xlu1 %1735  ;;  %v1734_v6 = vpop.permute.xlu0 %1733 }
 0x24a   :  { %v4060_v56 = vpop.permute.xlu2 %1789  ;;  %v1755_v3 = vadd.f32 %v1736_v43, %v1705_v59  ;;  %v1754_v49 = vadd.f32 %v1734_v6, %v1704_v54 }
 0x24c   :  { %v1804_v34 = vadd.f32 %v1784_v39, %v1754_v49 }
 0x251   :  { %v1742_v21 = vpop.permute.xlu1 %1741  ;;  %v4062_v13 = vpop.permute.xlu0 %1739 }
 0x252   :  { %v1830_v62 = vpop.permute.xlu2 %1829  ;;  %v1757_v23 = vadd.f32 %v4062_v13, %v1707_v30 }
 0x259   :  { %v1782_v22 = vpop.permute.xlu1 %1781  ;;  %v1780_v10 = vpop.permute.xlu0 %1779 }
 0x25a   :  { %v1802_v1 = vadd.f32 %v1780_v10, %v1752_v50  ;;  %v1836_v42 = vpop.permute.xlu2 %1835  ;;  %v1803_v6 = vadd.f32 %v1782_v22, %v1753_v17 }
 0x25c   :  { %v1852_v46 = vadd.f32 %v1830_v62, %v1802_v1 }
 0x25e   :  { %v1868_v25 = vadd.f32 %v1852_v46, %v3883_v26  ;;  %v1708_v26 = vadd.f32 %v1692_v45, %v1658_v11  ;;  %v1807_v46 = vadd.f32 %v4060_v56, %v1757_v23  ;;  %v4173_v11 = vld [vmem:[#allocation7_spill] sm:$0xff] }
 0x260   :  { %v1876_v4 = vadd.f32 %v1868_v25, %v3347_v16  ;;  %v1801_v16 = vadd.f32 %v1778_v0, %v1751_v47  ;;  %v1758_v35 = vadd.f32 %v1742_v21, %v1708_v26  ;;  %v4170_v21 = vld [vmem:[#allocation9_spill] sm:$0xff] }
 0x261   :  { %v1788_v9 = vpop.permute.xlu1 %1787  ;;  %v1786_v33 = vpop.permute.xlu0 %1785 }
 0x262   :  { %vm1884_vm1 = vcmp.ge.f32.partialorder %v1876_v4, 0.0  ;;  %v1892_v58 = vmul.f32 0.2, %v1876_v4  ;;  %v1805_v57 = vadd.f32 %v1786_v33, %v1755_v3  ;;  %v1842_v51 = vpop.permute.xlu2 %1841  ;;  %v4174_v33 = vld [vmem:[#allocation21_spill] sm:$0xff] }
 0x264   :  { %v1900_v15 = vsel %vm1884_vm1, %v1876_v4, %v1892_v58  ;;  %v1855_v19 = vadd.f32 %v1836_v42, %v1805_v57 }
 0x265   :  { %1909 = vst.msk [vmem:[%s4122_s2 + $0x8] sm:$0xff] %vm1907_vm0, %v1900_v15 }
 0x266   :  { %v1871_v14 = vadd.f32 %v1855_v19, %v3940_v55 }
 0x268   :  { %v1879_v8 = vadd.f32 %v1871_v14, %v3409_v53 }
 0x269   :  { %v1828_v2 = vpop.permute.xlu1 %1827  ;;  %v1792_v37 = vpop.permute.xlu0 %1791 }
 0x26a   :  { %vm1887_vm2 = vcmp.ge.f32.partialorder %v1879_v8, 0.0  ;;  %v1895_v44 = vmul.f32 0.2, %v1879_v8  ;;  %v1851_v36 = vadd.f32 %v1828_v2, %v1801_v16  ;;  %v1808_v5 = vadd.f32 %v1792_v37, %v1758_v35 }
 0x26c   :  { %v1903_v43 = vsel %vm1887_vm2, %v1879_v8, %v1895_v44  ;;  %v1867_v45 = vadd.f32 %v1851_v36, %v3978_v60  ;;  %v1858_v31 = vadd.f32 %v1842_v51, %v1808_v5  ;;  %v1706_v60 = vadd.f32 %v4058_v41, %v4052_v52  ;;  %v4171_v41 = vld [vmem:[#allocation13_spill] sm:$0xff] }
 0x26d   :  { %1912 = vst.msk [vmem:[%s4122_s2 + $0x20] sm:$0xff] %vm1907_vm0, %v1903_v43 }
 0x26e   :  { %v1875_v53 = vadd.f32 %v1867_v45, %v3450_v18  ;;  %v1874_v55 = vadd.f32 %v1858_v31, %v3994_v29  ;;  %v1756_v32 = vadd.f32 %v4054_v40, %v1706_v60 }
 0x270   :  { %vm1883_vm3 = vcmp.ge.f32.partialorder %v1875_v53, 0.0  ;;  %v1891_v0 = vmul.f32 0.2, %v1875_v53  ;;  %v1882_v27 = vadd.f32 %v1874_v55, %v4170_v21  ;;  %v1806_v59 = vadd.f32 %v1788_v9, %v1756_v32 }
 0x271   :  { %v1834_v62 = vpop.permute.xlu1 %1833  ;;  %v1832_v38 = vpop.permute.xlu0 %1831 }
 0x272   :  { %v1899_v50 = vsel %vm1883_vm3, %v1875_v53, %v1891_v0  ;;  %vm1890_vm4 = vcmp.ge.f32.partialorder %v1882_v27, 0.0  ;;  %v1898_v18 = vmul.f32 0.2, %v1882_v27  ;;  %v1854_v10 = vadd.f32 %v1834_v62, %v1804_v34 }
 0x273   :  { %1908 = vst.msk [vmem:[%s4122_s2] sm:$0xff] %vm1907_vm0, %v1899_v50  ;;  %v1853_v29 = vadd.f32 %v1832_v38, %v1803_v6 }
 0x274   :  { %v1906_v39 = vsel %vm1890_vm4, %v1882_v27, %v1898_v18  ;;  %v1870_v63 = vadd.f32 %v1854_v10, %v4015_v20 }
 0x275   :  { %1915 = vst.msk [vmem:[%s4122_s2 + $0x38] sm:$0xff] %vm1907_vm0, %v1906_v39  ;;  %v1869_v52 = vadd.f32 %v1853_v29, %v4018_v48 }
 0x276   :  { %v1878_v22 = vadd.f32 %v1870_v63, %v4171_v41 }
 0x277   :  { %v1877_v1 = vadd.f32 %v1869_v52, %v4172_v7 }
 0x278   :  { %vm1886_vm5 = vcmp.ge.f32.partialorder %v1878_v22, 0.0  ;;  %v1894_v13 = vmul.f32 0.2, %v1878_v22 }
 0x279   :  { %vm1885_vm6 = vcmp.ge.f32.partialorder %v1877_v1, 0.0  ;;  %v1893_v20 = vmul.f32 0.2, %v1877_v1  ;;  %v1840_v25 = vpop.permute.xlu1 %1839  ;;  %v1838_v42 = vpop.permute.xlu0 %1837 }
 0x27a   :  { %v1902_v3 = vsel %vm1886_vm5, %v1878_v22, %v1894_v13  ;;  %v1857_v4 = vadd.f32 %v1840_v25, %v1807_v46  ;;  %v1856_v12 = vadd.f32 %v1838_v42, %v1806_v59 }
 0x27b   :  { %1911 = vst.msk [vmem:[%s4122_s2 + $0x18] sm:$0xff] %vm1907_vm0, %v1902_v3  ;;  %v1901_v48 = vsel %vm1885_vm6, %v1877_v1, %v1893_v20 }
 0x27c   :  { %1910 = vst.msk [vmem:[%s4122_s2 + $0x10] sm:$0xff] %vm1907_vm0, %v1901_v48  ;;  %v1873_v40 = vadd.f32 %v1857_v4, %v4028_v61  ;;  %v1872_v56 = vadd.f32 %v1856_v12, %v4031_v28 }
 0x27e   :  { %v1881_v9 = vadd.f32 %v1873_v40, %v4173_v11  ;;  %v1880_v58 = vadd.f32 %v1872_v56, %v4174_v33 }
 0x280   :  { %vm1889_vm7 = vcmp.ge.f32.partialorder %v1881_v9, 0.0  ;;  %v1897_v57 = vmul.f32 0.2, %v1881_v9  ;;  %vm1888_vm8 = vcmp.ge.f32.partialorder %v1880_v58, 0.0  ;;  %v1896_v47 = vmul.f32 0.2, %v1880_v58 }
 0x282   :  { %v1905_v15 = vsel %vm1889_vm7, %v1881_v9, %v1897_v57  ;;  %v1904_v19 = vsel %vm1888_vm8, %v1880_v58, %v1896_v47 }
 0x283   :  { %1914 = vst.msk [vmem:[%s4122_s2 + $0x30] sm:$0xff] %vm1907_vm0, %v1905_v15 }
 0x284   :  { %1913 = vst.msk [vmem:[%s4122_s2 + $0x28] sm:$0xff] %vm1907_vm0, %v1904_v19 }
 0x285   :  { %1920 = vsyncpa [#allocation3], 1 }

// kernel: encoder_forward.3
= control target key start
LH: loop header
LB: loop body
LE: loop exit
PB: predicated region body
PF: predicated region fallthrough
CT: control target
= control target key end

     0   :  { %vm1296_vm0 = vcmask 1041408   ;;  %vm1412_vm1 = vcmask 15360   ;;  %vm2245_vm9 = vcmask 1043456   ;;  %vm2241_vm10 = vcmask 31744   ;;  %s6120_s1 = inlined_call_operand.vmem [shape: f32[1024,512], index: 1, kind: input, shape index: {}]   ;;  %s6121_s0 = inlined_call_operand.vmem [shape: f32[2,1024], index: 0, kind: input, shape index: {}]   ;;  %s6122_s6 = inlined_call_operand.vmem [shape: f32[2,512], index: 6, kind: input, shape index: {}]   ;;  %s6123_s5 = inlined_call_operand.vmem [shape: f32[512,2], index: 5, kind: input, shape index: {}]   ;;  %s6124_s8 = inlined_call_operand.vmem [shape: f32[4,256], index: 8, kind: input, shape index: {}]   ;;  %s6125_s11 = inlined_call_operand.vmem [shape: f32[1,2], index: 11, kind: input, shape index: {}]   ;;  %s6126_s2 = inlined_call_operand.vmem [shape: f32[512,256], index: 2, kind: input, shape index: {}]   ;;  %s6127_s12 = inlined_call_operand.vmem [shape: f32[1,2], index: 12, kind: input, shape index: {}]   ;;  %s6128_s7 = inlined_call_operand.vmem [shape: f32[256,4], index: 7, kind: input, shape index: {}]   ;;  %s6129_s3 = inlined_call_operand.vmem [shape: f32[256,128], index: 3, kind: input, shape index: {}]   ;;  %s6130_s13 = inlined_call_operand.vmem [shape: f32[1,4], index: 13, kind: input, shape index: {}]   ;;  %s6131_s14 = inlined_call_operand.vmem [shape: f32[1,4], index: 14, kind: input, shape index: {}]   ;;  %s6132_s9 = inlined_call_operand.vmem [shape: f32[128,8], index: 9, kind: input, shape index: {}]   ;;  %s6133_s10 = inlined_call_operand.vmem [shape: f32[8,128], index: 10, kind: input, shape index: {}]   ;;  %s6134_s4 = inlined_call_operand.vmem [shape: f32[128,512], index: 4, kind: input, shape index: {}]   ;;  %s6135_s15 = inlined_call_operand.vmem [shape: f32[1,8], index: 15, kind: input, shape index: {}]   ;;  %s6136_s16 = inlined_call_operand.vmem [shape: f32[1,8], index: 16, kind: input, shape index: {}]   ;;  %s6137_s17 = inlined_call_operand.vmem [shape: f32[2,512], index: 17, kind: output, shape index: {}]  }
   0x1   :  { %6166 = sst [smem:[#allocation25_spill]] %s6120_s1 }
   0x2   :  { %6167 = sst [smem:[#allocation26_spill]] %s6121_s0 }
   0x3   :  { %s6168_s26 = sld [smem:[#allocation25_spill]] }
   0x4   :  { %s6169_s30 = sld [smem:[#allocation26_spill]] }
   0x9   :  { %v118_v0 = vld [vmem:[%s6168_s26 + $0x1e0] sm:$0xff] }
   0xa   :  { %v182_v1 = vld [vmem:[%s6168_s26 + $0x3e0] sm:$0xff]  ;;  %591 = vmatpush.msra.mxu0 %v118_v0 }
   0xb   :  { %v246_v2 = vld [vmem:[%s6168_s26 + $0x5e0] sm:$0xff]  ;;  %611 = vmatpush.msra.mxu1 %v182_v1 }
   0xc   :  { %v114_v3 = vld [vmem:[%s6168_s26 + $0x1c0] sm:$0xff]  ;;  %631 = vmatpush.msra.mxu2 %v246_v2 }
   0xd   :  { %v178_v4 = vld [vmem:[%s6168_s26 + $0x3c0] sm:$0xff]  ;;  %592 = vmatpush.msra.mxu0 %v114_v3 }
   0xe   :  { %v242_v5 = vld [vmem:[%s6168_s26 + $0x5c0] sm:$0xff]  ;;  %612 = vmatpush.msra.mxu1 %v178_v4 }
   0xf   :  { %v310_v6 = vld [vmem:[%s6168_s26 + $0x7e0] sm:$0xff]  ;;  %632 = vmatpush.msra.mxu2 %v242_v5 }
  0x10   :  { %v110_v7 = vld [vmem:[%s6168_s26 + $0x1a0] sm:$0xff]  ;;  %651 = vmatpush.msra.mxu3 %v310_v6 }
  0x11   :  { %v174_v8 = vld [vmem:[%s6168_s26 + $0x3a0] sm:$0xff]  ;;  %593 = vmatpush.msra.mxu0 %v110_v7 }
  0x12   :  { %v238_v9 = vld [vmem:[%s6168_s26 + $0x5a0] sm:$0xff]  ;;  %613 = vmatpush.msra.mxu1 %v174_v8 }
  0x13   :  { %v306_v10 = vld [vmem:[%s6168_s26 + $0x7c0] sm:$0xff]  ;;  %633 = vmatpush.msra.mxu2 %v238_v9 }
  0x14   :  { %v106_v11 = vld [vmem:[%s6168_s26 + $0x180] sm:$0xff]  ;;  %652 = vmatpush.msra.mxu3 %v306_v10 }
  0x15   :  { %v170_v12 = vld [vmem:[%s6168_s26 + $0x380] sm:$0xff]  ;;  %594 = vmatpush.msra.mxu0 %v106_v11 }
  0x16   :  { %v234_v13 = vld [vmem:[%s6168_s26 + $0x580] sm:$0xff]  ;;  %614 = vmatpush.msra.mxu1 %v170_v12 }
  0x17   :  { %v302_v14 = vld [vmem:[%s6168_s26 + $0x7a0] sm:$0xff]  ;;  %634 = vmatpush.msra.mxu2 %v234_v13 }
  0x18   :  { %v102_v15 = vld [vmem:[%s6168_s26 + $0x160] sm:$0xff]  ;;  %653 = vmatpush.msra.mxu3 %v302_v14 }
  0x19   :  { %v166_v16 = vld [vmem:[%s6168_s26 + $0x360] sm:$0xff]  ;;  %595 = vmatpush.msra.mxu0 %v102_v15 }
  0x1a   :  { %v230_v17 = vld [vmem:[%s6168_s26 + $0x560] sm:$0xff]  ;;  %615 = vmatpush.msra.mxu1 %v166_v16 }
  0x1b   :  { %v298_v18 = vld [vmem:[%s6168_s26 + $0x780] sm:$0xff]  ;;  %635 = vmatpush.msra.mxu2 %v230_v17 }
  0x1c   :  { %v98_v19 = vld [vmem:[%s6168_s26 + $0x140] sm:$0xff]  ;;  %654 = vmatpush.msra.mxu3 %v298_v18 }
  0x1d   :  { %v162_v20 = vld [vmem:[%s6168_s26 + $0x340] sm:$0xff]  ;;  %596 = vmatpush.msra.mxu0 %v98_v19 }
  0x1e   :  { %v226_v21 = vld [vmem:[%s6168_s26 + $0x540] sm:$0xff]  ;;  %616 = vmatpush.msra.mxu1 %v162_v20 }
  0x1f   :  { %v294_v22 = vld [vmem:[%s6168_s26 + $0x760] sm:$0xff]  ;;  %636 = vmatpush.msra.mxu2 %v226_v21 }
  0x20   :  { %v94_v23 = vld [vmem:[%s6168_s26 + $0x120] sm:$0xff]  ;;  %655 = vmatpush.msra.mxu3 %v294_v22 }
  0x21   :  { %v158_v24 = vld [vmem:[%s6168_s26 + $0x320] sm:$0xff]  ;;  %597 = vmatpush.msra.mxu0 %v94_v23 }
  0x22   :  { %v222_v25 = vld [vmem:[%s6168_s26 + $0x520] sm:$0xff]  ;;  %617 = vmatpush.msra.mxu1 %v158_v24 }
  0x23   :  { %v290_v26 = vld [vmem:[%s6168_s26 + $0x740] sm:$0xff]  ;;  %637 = vmatpush.msra.mxu2 %v222_v25 }
  0x24   :  { %v90_v27 = vld [vmem:[%s6168_s26 + $0x100] sm:$0xff]  ;;  %656 = vmatpush.msra.mxu3 %v290_v26 }
  0x25   :  { %v154_v28 = vld [vmem:[%s6168_s26 + $0x300] sm:$0xff]  ;;  %598 = vmatpush.msra.mxu0 %v90_v27 }
  0x26   :  { %v218_v29 = vld [vmem:[%s6168_s26 + $0x500] sm:$0xff]  ;;  %618 = vmatpush.msra.mxu1 %v154_v28 }
  0x27   :  { %v286_v30 = vld [vmem:[%s6168_s26 + $0x720] sm:$0xff]  ;;  %638 = vmatpush.msra.mxu2 %v218_v29 }
  0x28   :  { %v86_v31 = vld [vmem:[%s6168_s26 + $0xe0] sm:$0xff]  ;;  %657 = vmatpush.msra.mxu3 %v286_v30 }
  0x29   :  { %v150_v32 = vld [vmem:[%s6168_s26 + $0x2e0] sm:$0xff]  ;;  %599 = vmatpush.msra.mxu0 %v86_v31 }
  0x2a   :  { %v214_v33 = vld [vmem:[%s6168_s26 + $0x4e0] sm:$0xff]  ;;  %619 = vmatpush.msra.mxu1 %v150_v32  ;;  %v57_v32 = vld [vmem:[%s6169_s30 + $0x8] sm:$0xff] }
  0x2b   :  { %v282_v34 = vld [vmem:[%s6168_s26 + $0x700] sm:$0xff]  ;;  %639 = vmatpush.msra.mxu2 %v214_v33  ;;  %574 = vst [vmem:[#allocation1 + $0x20] ss:$4 sm:$0xff] %v57_v32  ;;  %v227_v32 = vld [vmem:[%s6168_s26 + $0x548] sm:$0xff] }
  0x2c   :  { %v82_v35 = vld [vmem:[%s6168_s26 + $0xc0] sm:$0xff]  ;;  %658 = vmatpush.msra.mxu3 %v282_v34 }
  0x2d   :  { %v146_v36 = vld [vmem:[%s6168_s26 + $0x2c0] sm:$0xff]  ;;  %600 = vmatpush.msra.mxu0 %v82_v35 }
  0x2e   :  { %v210_v37 = vld [vmem:[%s6168_s26 + $0x4c0] sm:$0xff]  ;;  %620 = vmatpush.msra.mxu1 %v146_v36 }
  0x2f   :  { %v278_v38 = vld [vmem:[%s6168_s26 + $0x6e0] sm:$0xff]  ;;  %640 = vmatpush.msra.mxu2 %v210_v37 }
  0x30   :  { %v78_v39 = vld [vmem:[%s6168_s26 + $0xa0] sm:$0xff]  ;;  %659 = vmatpush.msra.mxu3 %v278_v38 }
  0x31   :  { %v142_v40 = vld [vmem:[%s6168_s26 + $0x2a0] sm:$0xff]  ;;  %601 = vmatpush.msra.mxu0 %v78_v39 }
  0x32   :  { %v206_v41 = vld [vmem:[%s6168_s26 + $0x4a0] sm:$0xff]  ;;  %621 = vmatpush.msra.mxu1 %v142_v40 }
  0x33   :  { %v274_v42 = vld [vmem:[%s6168_s26 + $0x6c0] sm:$0xff]  ;;  %641 = vmatpush.msra.mxu2 %v206_v41 }
  0x34   :  { %v74_v43 = vld [vmem:[%s6168_s26 + $0x80] sm:$0xff]  ;;  %660 = vmatpush.msra.mxu3 %v274_v42 }
  0x35   :  { %v138_v44 = vld [vmem:[%s6168_s26 + $0x280] sm:$0xff]  ;;  %602 = vmatpush.msra.mxu0 %v74_v43 }
  0x36   :  { %v202_v45 = vld [vmem:[%s6168_s26 + $0x480] sm:$0xff]  ;;  %622 = vmatpush.msra.mxu1 %v138_v44 }
  0x37   :  { %v270_v46 = vld [vmem:[%s6168_s26 + $0x6a0] sm:$0xff]  ;;  %642 = vmatpush.msra.mxu2 %v202_v45 }
  0x38   :  { %v70_v47 = vld [vmem:[%s6168_s26 + $0x60] sm:$0xff]  ;;  %661 = vmatpush.msra.mxu3 %v270_v46 }
  0x39   :  { %v134_v48 = vld [vmem:[%s6168_s26 + $0x260] sm:$0xff]  ;;  %603 = vmatpush.msra.mxu0 %v70_v47 }
  0x3a   :  { %v198_v49 = vld [vmem:[%s6168_s26 + $0x460] sm:$0xff]  ;;  %623 = vmatpush.msra.mxu1 %v134_v48 }
  0x3b   :  { %v266_v50 = vld [vmem:[%s6168_s26 + $0x680] sm:$0xff]  ;;  %643 = vmatpush.msra.mxu2 %v198_v49 }
  0x3c   :  { %v66_v51 = vld [vmem:[%s6168_s26 + $0x40] sm:$0xff]  ;;  %662 = vmatpush.msra.mxu3 %v266_v50 }
  0x3d   :  { %v130_v52 = vld [vmem:[%s6168_s26 + $0x240] sm:$0xff]  ;;  %604 = vmatpush.msra.mxu0 %v66_v51 }
  0x3e   :  { %v194_v53 = vld [vmem:[%s6168_s26 + $0x440] sm:$0xff]  ;;  %624 = vmatpush.msra.mxu1 %v130_v52 }
  0x3f   :  { %v262_v54 = vld [vmem:[%s6168_s26 + $0x660] sm:$0xff]  ;;  %644 = vmatpush.msra.mxu2 %v194_v53 }
  0x40   :  { %v62_v55 = vld [vmem:[%s6168_s26 + $0x20] sm:$0xff]  ;;  %663 = vmatpush.msra.mxu3 %v262_v54 }
  0x41   :  { %v126_v56 = vld [vmem:[%s6168_s26 + $0x220] sm:$0xff]  ;;  %605 = vmatpush.msra.mxu0 %v62_v55 }
  0x42   :  { %v190_v57 = vld [vmem:[%s6168_s26 + $0x420] sm:$0xff]  ;;  %625 = vmatpush.msra.mxu1 %v126_v56 }
  0x43   :  { %v258_v58 = vld [vmem:[%s6168_s26 + $0x640] sm:$0xff]  ;;  %645 = vmatpush.msra.mxu2 %v190_v57 }
  0x44   :  { %v58_v59 = vld [vmem:[%s6168_s26] sm:$0xff]  ;;  %664 = vmatpush.msra.mxu3 %v258_v58 }
  0x45   :  { %v122_v60 = vld [vmem:[%s6168_s26 + $0x200] sm:$0xff]  ;;  %606 = vmatpush.msra.mxu0 %v58_v59 }
  0x46   :  { %v186_v61 = vld [vmem:[%s6168_s26 + $0x400] sm:$0xff]  ;;  %626 = vmatpush.msra.mxu1 %v122_v60 }
  0x47   :  { %v254_v62 = vld [vmem:[%s6168_s26 + $0x620] sm:$0xff]  ;;  %646 = vmatpush.msra.mxu2 %v186_v61 }
  0x48   :  { %v374_v63 = vld [vmem:[%s6168_s26 + $0x9e0] sm:$0xff]  ;;  %665 = vmatpush.msra.mxu3 %v254_v62 }
  0x49   :  { %v438_v0 = vld [vmem:[%s6168_s26 + $0xbe0] sm:$0xff]  ;;  %671 = vmatpush.msrb.mxu0 %v374_v63 }
  0x4a   :  { %v502_v1 = vld [vmem:[%s6168_s26 + $0xde0] sm:$0xff]  ;;  %691 = vmatpush.msrb.mxu1 %v438_v0 }
  0x4b   :  { %v250_v2 = vld [vmem:[%s6168_s26 + $0x600] sm:$0xff]  ;;  %711 = vmatpush.msrb.mxu2 %v502_v1 }
  0x4c   :  { %v370_v3 = vld [vmem:[%s6168_s26 + $0x9c0] sm:$0xff]  ;;  %666 = vmatpush.msra.mxu3 %v250_v2 }
  0x4d   :  { %v434_v4 = vld [vmem:[%s6168_s26 + $0xbc0] sm:$0xff]  ;;  %672 = vmatpush.msrb.mxu0 %v370_v3 }
  0x4e   :  { %v498_v5 = vld [vmem:[%s6168_s26 + $0xdc0] sm:$0xff]  ;;  %692 = vmatpush.msrb.mxu1 %v434_v4 }
  0x4f   :  { %v566_v6 = vld [vmem:[%s6168_s26 + $0xfe0] sm:$0xff]  ;;  %712 = vmatpush.msrb.mxu2 %v498_v5 }
  0x50   :  { %v366_v7 = vld [vmem:[%s6168_s26 + $0x9a0] sm:$0xff]  ;;  %731 = vmatpush.msrb.mxu3 %v566_v6  ;;  %v3427_v6 = vld.sshfl [vmem:[#allocation1 + $0x30] sm:$0xff pattern:$0x73625140] }
  0x51   :  { %v430_v8 = vld [vmem:[%s6168_s26 + $0xba0] sm:$0xff]  ;;  %673 = vmatpush.msrb.mxu0 %v366_v7  ;;  %v119_v7 = vld [vmem:[%s6168_s26 + $0x1e8] sm:$0xff] }
  0x52   :  { %v494_v9 = vld [vmem:[%s6168_s26 + $0xda0] sm:$0xff]  ;;  %693 = vmatpush.msrb.mxu1 %v430_v8  ;;  %v183_v8 = vld [vmem:[%s6168_s26 + $0x3e8] sm:$0xff] }
  0x53   :  { %v562_v10 = vld [vmem:[%s6168_s26 + $0xfc0] sm:$0xff]  ;;  %713 = vmatpush.msrb.mxu2 %v494_v9  ;;  %v247_v9 = vld [vmem:[%s6168_s26 + $0x5e8] sm:$0xff] }
  0x54   :  { %v362_v11 = vld [vmem:[%s6168_s26 + $0x980] sm:$0xff]  ;;  %732 = vmatpush.msrb.mxu3 %v562_v10 }
  0x55   :  { %v426_v12 = vld [vmem:[%s6168_s26 + $0xb80] sm:$0xff]  ;;  %674 = vmatpush.msrb.mxu0 %v362_v11 }
  0x56   :  { %v490_v13 = vld [vmem:[%s6168_s26 + $0xd80] sm:$0xff]  ;;  %694 = vmatpush.msrb.mxu1 %v426_v12  ;;  %v3444_v12 = vld.sshfl [vmem:[#allocation1 + $0x38] sm:$0xff pattern:$0x73625140] }
  0x57   :  { %v558_v14 = vld [vmem:[%s6168_s26 + $0xfa0] sm:$0xff]  ;;  %714 = vmatpush.msrb.mxu2 %v490_v13  ;;  %v115_v13 = vld [vmem:[%s6168_s26 + $0x1c8] sm:$0xff] }
  0x58   :  { %v56_v15 = vld [vmem:[%s6169_s30] sm:$0xff]  ;;  %733 = vmatpush.msrb.mxu3 %v558_v14  ;;  %v179_v14 = vld [vmem:[%s6168_s26 + $0x3c8] sm:$0xff] }
  0x59   :  { %v358_v16 = vld [vmem:[%s6168_s26 + $0x960] sm:$0xff]  ;;  %572 = vst [vmem:[#allocation1] ss:$4 sm:$0xff] %v56_v15  ;;  %v243_v15 = vld [vmem:[%s6168_s26 + $0x5c8] sm:$0xff] }
  0x5a   :  { %v422_v17 = vld [vmem:[%s6168_s26 + $0xb60] sm:$0xff]  ;;  %675 = vmatpush.msrb.mxu0 %v358_v16  ;;  %v311_v16 = vld [vmem:[%s6168_s26 + $0x7e8] sm:$0xff] }
  0x5b   :  { %v486_v18 = vld [vmem:[%s6168_s26 + $0xd60] sm:$0xff]  ;;  %695 = vmatpush.msrb.mxu1 %v422_v17  ;;  %v3459_v17 = vld.sshfl [vmem:[#allocation1 + $0x28] sm:$0xff pattern:$0x73625140] }
  0x5c   :  { %v554_v19 = vld [vmem:[%s6168_s26 + $0xf80] sm:$0xff]  ;;  %715 = vmatpush.msrb.mxu2 %v486_v18  ;;  %v111_v18 = vld [vmem:[%s6168_s26 + $0x1a8] sm:$0xff] }
  0x5d   :  { %v354_v20 = vld [vmem:[%s6168_s26 + $0x940] sm:$0xff]  ;;  %734 = vmatpush.msrb.mxu3 %v554_v19  ;;  %v175_v19 = vld [vmem:[%s6168_s26 + $0x3a8] sm:$0xff] }
  0x5e   :  { %v418_v21 = vld [vmem:[%s6168_s26 + $0xb40] sm:$0xff]  ;;  %676 = vmatpush.msrb.mxu0 %v354_v20  ;;  %v239_v20 = vld [vmem:[%s6168_s26 + $0x5a8] sm:$0xff] }
  0x5f   :  { %v482_v22 = vld [vmem:[%s6168_s26 + $0xd40] sm:$0xff]  ;;  %696 = vmatpush.msrb.mxu1 %v418_v21  ;;  %v307_v21 = vld [vmem:[%s6168_s26 + $0x7c8] sm:$0xff] }
  0x60   :  { %v550_v23 = vld [vmem:[%s6168_s26 + $0xf60] sm:$0xff]  ;;  %716 = vmatpush.msrb.mxu2 %v482_v22  ;;  %v3324_v36 = vld.sshfl [vmem:[#allocation1 + $0x10] sm:$0xff pattern:$0x73625140]  ;;  %v107_v22 = vld [vmem:[%s6168_s26 + $0x188] sm:$0xff] }
  0x61   :  { %v350_v24 = vld [vmem:[%s6168_s26 + $0x920] sm:$0xff]  ;;  %735 = vmatpush.msrb.mxu3 %v550_v23  ;;  %v3328_v38 = vld.sshfl [vmem:[#allocation1 + $0x8] sm:$0xff pattern:$0x73625140]  ;;  %647 = vmatmul.f32.vlgmr.msra.gmra.mxu2 %v3324_v36 }
  0x62   :  { %v414_v25 = vld [vmem:[%s6168_s26 + $0xb20] sm:$0xff]  ;;  %677 = vmatpush.msrb.mxu0 %v350_v24  ;;  %v3330_v39 = vld.sshfl [vmem:[#allocation1 + $0x18] sm:$0xff pattern:$0x73625140]  ;;  %627 = vmatmul.f32.vlgmr.msra.gmra.mxu1 %v3328_v38  ;;  %v171_v23 = vld [vmem:[%s6168_s26 + $0x388] sm:$0xff] }
  0x63   :  { %v478_v26 = vld [vmem:[%s6168_s26 + $0xd20] sm:$0xff]  ;;  %697 = vmatpush.msrb.mxu1 %v414_v25  ;;  %667 = vmatmul.f32.vlgmr.msra.gmra.mxu3 %v3330_v39  ;;  %v235_v24 = vld [vmem:[%s6168_s26 + $0x588] sm:$0xff] }
  0x64   :  { %v546_v27 = vld [vmem:[%s6168_s26 + $0xf40] sm:$0xff]  ;;  %717 = vmatpush.msrb.mxu2 %v478_v26  ;;  %v303_v25 = vld [vmem:[%s6168_s26 + $0x7a8] sm:$0xff] }
  0x65   :  { %v346_v28 = vld [vmem:[%s6168_s26 + $0x900] sm:$0xff]  ;;  %736 = vmatpush.msrb.mxu3 %v546_v27  ;;  %v103_v26 = vld [vmem:[%s6168_s26 + $0x168] sm:$0xff] }
  0x66   :  { %v410_v29 = vld [vmem:[%s6168_s26 + $0xb00] sm:$0xff]  ;;  %678 = vmatpush.msrb.mxu0 %v346_v28  ;;  %v167_v27 = vld [vmem:[%s6168_s26 + $0x368] sm:$0xff] }
  0x67   :  { %v474_v30 = vld [vmem:[%s6168_s26 + $0xd00] sm:$0xff]  ;;  %698 = vmatpush.msrb.mxu1 %v410_v29  ;;  %v231_v28 = vld [vmem:[%s6168_s26 + $0x568] sm:$0xff] }
  0x68   :  { %v542_v31 = vld [vmem:[%s6168_s26 + $0xf20] sm:$0xff]  ;;  %718 = vmatpush.msrb.mxu2 %v474_v30  ;;  %v299_v29 = vld [vmem:[%s6168_s26 + $0x788] sm:$0xff] }
  0x69   :  { %v342_v33 = vld [vmem:[%s6168_s26 + $0x8e0] sm:$0xff]  ;;  %737 = vmatpush.msrb.mxu3 %v542_v31  ;;  %v99_v30 = vld [vmem:[%s6168_s26 + $0x148] sm:$0xff] }
  0x6a   :  { %v406_v34 = vld [vmem:[%s6168_s26 + $0xae0] sm:$0xff]  ;;  %679 = vmatpush.msrb.mxu0 %v342_v33  ;;  %v163_v31 = vld [vmem:[%s6168_s26 + $0x348] sm:$0xff] }
  0x6b   :  { %v3322_v35 = vld [vmem:[%s6122_s6] sm:$0xff]  ;;  %699 = vmatpush.msrb.mxu1 %v406_v34  ;;  %v295_v33 = vld [vmem:[%s6168_s26 + $0x768] sm:$0xff] }
  0x6c   :  { %v3326_v37 = vld.sshfl [vmem:[#allocation1] sm:$0xff pattern:$0x73625140]  ;;  %v95_v34 = vld [vmem:[%s6168_s26 + $0x128] sm:$0xff] }
  0x6d   :  { %v470_v40 = vld [vmem:[%s6168_s26 + $0xce0] sm:$0xff]  ;;  %1407 = vst [vmem:[#allocation1] ss:$4 sm:$0xff] %v3322_v35  ;;  %607 = vmatmul.f32.vlgmr.msra.gmra.mxu0 %v3326_v37 }
  0x6e   :  { %v538_v41 = vld [vmem:[%s6168_s26 + $0xf00] sm:$0xff]  ;;  %719 = vmatpush.msrb.mxu2 %v470_v40  ;;  %v159_v40 = vld [vmem:[%s6168_s26 + $0x328] sm:$0xff] }
  0x6f   :  { %v338_v42 = vld [vmem:[%s6168_s26 + $0x8c0] sm:$0xff]  ;;  %738 = vmatpush.msrb.mxu3 %v538_v41  ;;  %v223_v41 = vld [vmem:[%s6168_s26 + $0x528] sm:$0xff] }
  0x70   :  { %v402_v43 = vld [vmem:[%s6168_s26 + $0xac0] sm:$0xff]  ;;  %680 = vmatpush.msrb.mxu0 %v338_v42  ;;  %v291_v42 = vld [vmem:[%s6168_s26 + $0x748] sm:$0xff] }
  0x71   :  { %v466_v44 = vld [vmem:[%s6168_s26 + $0xcc0] sm:$0xff]  ;;  %700 = vmatpush.msrb.mxu1 %v402_v43  ;;  %v91_v43 = vld [vmem:[%s6168_s26 + $0x108] sm:$0xff] }
  0x72   :  { %v534_v45 = vld [vmem:[%s6168_s26 + $0xee0] sm:$0xff]  ;;  %720 = vmatpush.msrb.mxu2 %v466_v44  ;;  %v155_v44 = vld [vmem:[%s6168_s26 + $0x308] sm:$0xff] }
  0x73   :  { %v334_v46 = vld [vmem:[%s6168_s26 + $0x8a0] sm:$0xff]  ;;  %739 = vmatpush.msrb.mxu3 %v534_v45  ;;  %v219_v45 = vld [vmem:[%s6168_s26 + $0x508] sm:$0xff] }
  0x74   :  { %v398_v47 = vld [vmem:[%s6168_s26 + $0xaa0] sm:$0xff]  ;;  %681 = vmatpush.msrb.mxu0 %v334_v46  ;;  %v287_v46 = vld [vmem:[%s6168_s26 + $0x728] sm:$0xff] }
  0x75   :  { %v462_v48 = vld [vmem:[%s6168_s26 + $0xca0] sm:$0xff]  ;;  %701 = vmatpush.msrb.mxu1 %v398_v47  ;;  %v87_v47 = vld [vmem:[%s6168_s26 + $0xe8] sm:$0xff] }
  0x76   :  { %v530_v49 = vld [vmem:[%s6168_s26 + $0xec0] sm:$0xff]  ;;  %721 = vmatpush.msrb.mxu2 %v462_v48  ;;  %v151_v48 = vld [vmem:[%s6168_s26 + $0x2e8] sm:$0xff] }
  0x77   :  { %v330_v50 = vld [vmem:[%s6168_s26 + $0x880] sm:$0xff]  ;;  %740 = vmatpush.msrb.mxu3 %v530_v49  ;;  %v215_v49 = vld [vmem:[%s6168_s26 + $0x4e8] sm:$0xff] }
  0x78   :  { %v394_v51 = vld [vmem:[%s6168_s26 + $0xa80] sm:$0xff]  ;;  %682 = vmatpush.msrb.mxu0 %v330_v50  ;;  %v283_v50 = vld [vmem:[%s6168_s26 + $0x708] sm:$0xff] }
  0x79   :  { %v458_v52 = vld [vmem:[%s6168_s26 + $0xc80] sm:$0xff]  ;;  %702 = vmatpush.msrb.mxu1 %v394_v51  ;;  %v83_v51 = vld [vmem:[%s6168_s26 + $0xc8] sm:$0xff] }
  0x7a   :  { %v526_v53 = vld [vmem:[%s6168_s26 + $0xea0] sm:$0xff]  ;;  %722 = vmatpush.msrb.mxu2 %v458_v52  ;;  %v147_v52 = vld [vmem:[%s6168_s26 + $0x2c8] sm:$0xff] }
  0x7b   :  { %v326_v54 = vld [vmem:[%s6168_s26 + $0x860] sm:$0xff]  ;;  %741 = vmatpush.msrb.mxu3 %v526_v53  ;;  %v211_v53 = vld [vmem:[%s6168_s26 + $0x4c8] sm:$0xff] }
  0x7c   :  { %v390_v55 = vld [vmem:[%s6168_s26 + $0xa60] sm:$0xff]  ;;  %683 = vmatpush.msrb.mxu0 %v326_v54  ;;  %v279_v54 = vld [vmem:[%s6168_s26 + $0x6e8] sm:$0xff] }
  0x7d   :  { %v454_v56 = vld [vmem:[%s6168_s26 + $0xc60] sm:$0xff]  ;;  %703 = vmatpush.msrb.mxu1 %v390_v55  ;;  %v79_v55 = vld [vmem:[%s6168_s26 + $0xa8] sm:$0xff] }
  0x7e   :  { %v522_v57 = vld [vmem:[%s6168_s26 + $0xe80] sm:$0xff]  ;;  %723 = vmatpush.msrb.mxu2 %v454_v56  ;;  %v143_v56 = vld [vmem:[%s6168_s26 + $0x2a8] sm:$0xff] }
  0x7f   :  { %v322_v58 = vld [vmem:[%s6168_s26 + $0x840] sm:$0xff]  ;;  %742 = vmatpush.msrb.mxu3 %v522_v57  ;;  %v207_v57 = vld [vmem:[%s6168_s26 + $0x4a8] sm:$0xff] }
  0x80   :  { %v386_v59 = vld [vmem:[%s6168_s26 + $0xa40] sm:$0xff]  ;;  %684 = vmatpush.msrb.mxu0 %v322_v58  ;;  %v275_v58 = vld [vmem:[%s6168_s26 + $0x6c8] sm:$0xff] }
  0x81   :  { %v450_v60 = vld [vmem:[%s6168_s26 + $0xc40] sm:$0xff]  ;;  %704 = vmatpush.msrb.mxu1 %v386_v59  ;;  %v75_v59 = vld [vmem:[%s6168_s26 + $0x88] sm:$0xff] }
  0x82   :  { %v518_v61 = vld [vmem:[%s6168_s26 + $0xe60] sm:$0xff]  ;;  %724 = vmatpush.msrb.mxu2 %v450_v60  ;;  %v139_v60 = vld [vmem:[%s6168_s26 + $0x288] sm:$0xff] }
  0x83   :  { %v318_v62 = vld [vmem:[%s6168_s26 + $0x820] sm:$0xff]  ;;  %743 = vmatpush.msrb.mxu3 %v518_v61  ;;  %v203_v61 = vld [vmem:[%s6168_s26 + $0x488] sm:$0xff] }
  0x84   :  { %v382_v63 = vld [vmem:[%s6168_s26 + $0xa20] sm:$0xff]  ;;  %685 = vmatpush.msrb.mxu0 %v318_v62  ;;  %v271_v62 = vld [vmem:[%s6168_s26 + $0x6a8] sm:$0xff] }
  0x85   :  { %v446_v0 = vld [vmem:[%s6168_s26 + $0xc20] sm:$0xff]  ;;  %705 = vmatpush.msrb.mxu1 %v382_v63  ;;  %v71_v63 = vld [vmem:[%s6168_s26 + $0x68] sm:$0xff] }
  0x86   :  { %v514_v1 = vld [vmem:[%s6168_s26 + $0xe40] sm:$0xff]  ;;  %725 = vmatpush.msrb.mxu2 %v446_v0  ;;  %v135_v0 = vld [vmem:[%s6168_s26 + $0x268] sm:$0xff] }
  0x87   :  { %v314_v2 = vld [vmem:[%s6168_s26 + $0x800] sm:$0xff]  ;;  %744 = vmatpush.msrb.mxu3 %v514_v1  ;;  %v199_v1 = vld [vmem:[%s6168_s26 + $0x468] sm:$0xff] }
  0x88   :  { %v378_v3 = vld [vmem:[%s6168_s26 + $0xa00] sm:$0xff]  ;;  %686 = vmatpush.msrb.mxu0 %v314_v2  ;;  %v267_v2 = vld [vmem:[%s6168_s26 + $0x688] sm:$0xff] }
  0x89   :  { %v442_v4 = vld [vmem:[%s6168_s26 + $0xc00] sm:$0xff]  ;;  %706 = vmatpush.msrb.mxu1 %v378_v3  ;;  %v67_v3 = vld [vmem:[%s6168_s26 + $0x48] sm:$0xff] }
  0x8a   :  { %v510_v5 = vld [vmem:[%s6168_s26 + $0xe20] sm:$0xff]  ;;  %726 = vmatpush.msrb.mxu2 %v442_v4  ;;  %751 = vmatpush.msra.mxu0 %v119_v7  ;;  %v131_v4 = vld [vmem:[%s6168_s26 + $0x248] sm:$0xff] }
  0x8b   :  { %745 = vmatpush.msrb.mxu3 %v510_v5  ;;  %v506_v10 = vld [vmem:[%s6168_s26 + $0xe00] sm:$0xff]  ;;  %727 = vmatmul.f32.vlgmr.msrb.gmra.mxu2 %v3427_v6  ;;  %v195_v5 = vld [vmem:[%s6168_s26 + $0x448] sm:$0xff] }
  0x8c   :  { %v3441_v11 = vld.sshfl [vmem:[#allocation1 + $0x20] sm:$0xff pattern:$0x73625140]  ;;  %771 = vmatpush.msra.mxu1 %v183_v8  ;;  %791 = vmatpush.msra.mxu2 %v247_v9  ;;  %v263_v7 = vld [vmem:[%s6168_s26 + $0x668] sm:$0xff] }
  0x8d   :  { %746 = vmatpush.msrb.mxu3 %v506_v10  ;;  %687 = vmatmul.f32.vlgmr.msrb.gmra.mxu0 %v3441_v11  ;;  %v63_v8 = vld [vmem:[%s6168_s26 + $0x28] sm:$0xff] }
  0x8e   :  { %747 = vmatmul.f32.vlgmr.msrb.gmra.mxu3 %v3444_v12  ;;  %752 = vmatpush.msra.mxu0 %v115_v13  ;;  %v127_v9 = vld [vmem:[%s6168_s26 + $0x228] sm:$0xff] }
  0x8f   :  { %772 = vmatpush.msra.mxu1 %v179_v14  ;;  %792 = vmatpush.msra.mxu2 %v243_v15  ;;  %v191_v10 = vld [vmem:[%s6168_s26 + $0x428] sm:$0xff] }
  0x90   :  { %811 = vmatpush.msra.mxu3 %v311_v16  ;;  %707 = vmatmul.f32.vlgmr.msrb.gmra.mxu1 %v3459_v17  ;;  %v259_v13 = vld [vmem:[%s6168_s26 + $0x648] sm:$0xff] }
  0x91   :  { %753 = vmatpush.msra.mxu0 %v111_v18  ;;  %773 = vmatpush.msra.mxu1 %v175_v19  ;;  %v59_v14 = vld [vmem:[%s6168_s26 + $0x8] sm:$0xff] }
  0x92   :  { %793 = vmatpush.msra.mxu2 %v239_v20  ;;  %812 = vmatpush.msra.mxu3 %v307_v21  ;;  %v123_v15 = vld [vmem:[%s6168_s26 + $0x208] sm:$0xff] }
  0x93   :  { %754 = vmatpush.msra.mxu0 %v107_v22  ;;  %774 = vmatpush.msra.mxu1 %v171_v23  ;;  %v187_v16 = vld [vmem:[%s6168_s26 + $0x408] sm:$0xff] }
  0x94   :  { %794 = vmatpush.msra.mxu2 %v235_v24  ;;  %813 = vmatpush.msra.mxu3 %v303_v25  ;;  %v255_v18 = vld [vmem:[%s6168_s26 + $0x628] sm:$0xff] }
  0x95   :  { %755 = vmatpush.msra.mxu0 %v103_v26  ;;  %775 = vmatpush.msra.mxu1 %v167_v27  ;;  %v375_v19 = vld [vmem:[%s6168_s26 + $0x9e8] sm:$0xff] }
  0x96   :  { %795 = vmatpush.msra.mxu2 %v231_v28  ;;  %814 = vmatpush.msra.mxu3 %v299_v29  ;;  %v439_v20 = vld [vmem:[%s6168_s26 + $0xbe8] sm:$0xff] }
  0x97   :  { %756 = vmatpush.msra.mxu0 %v99_v30  ;;  %776 = vmatpush.msra.mxu1 %v163_v31  ;;  %v503_v21 = vld [vmem:[%s6168_s26 + $0xde8] sm:$0xff] }
  0x98   :  { %796 = vmatpush.msra.mxu2 %v227_v32  ;;  %815 = vmatpush.msra.mxu3 %v295_v33  ;;  %v251_v22 = vld [vmem:[%s6168_s26 + $0x608] sm:$0xff] }
  0x99   :  { %757 = vmatpush.msra.mxu0 %v95_v34  ;;  %777 = vmatpush.msra.mxu1 %v159_v40  ;;  %v371_v23 = vld [vmem:[%s6168_s26 + $0x9c8] sm:$0xff] }
  0x9a   :  { %797 = vmatpush.msra.mxu2 %v223_v41  ;;  %816 = vmatpush.msra.mxu3 %v291_v42  ;;  %v435_v24 = vld [vmem:[%s6168_s26 + $0xbc8] sm:$0xff] }
  0x9b   :  { %758 = vmatpush.msra.mxu0 %v91_v43  ;;  %778 = vmatpush.msra.mxu1 %v155_v44  ;;  %v499_v25 = vld [vmem:[%s6168_s26 + $0xdc8] sm:$0xff] }
  0x9c   :  { %798 = vmatpush.msra.mxu2 %v219_v45  ;;  %817 = vmatpush.msra.mxu3 %v287_v46  ;;  %v567_v26 = vld [vmem:[%s6168_s26 + $0xfe8] sm:$0xff] }
  0x9d   :  { %759 = vmatpush.msra.mxu0 %v87_v47  ;;  %779 = vmatpush.msra.mxu1 %v151_v48  ;;  %v367_v27 = vld [vmem:[%s6168_s26 + $0x9a8] sm:$0xff] }
  0x9e   :  { %799 = vmatpush.msra.mxu2 %v215_v49  ;;  %818 = vmatpush.msra.mxu3 %v283_v50  ;;  %v431_v28 = vld [vmem:[%s6168_s26 + $0xba8] sm:$0xff] }
  0x9f   :  { %760 = vmatpush.msra.mxu0 %v83_v51  ;;  %780 = vmatpush.msra.mxu1 %v147_v52  ;;  %v495_v29 = vld [vmem:[%s6168_s26 + $0xda8] sm:$0xff] }
  0xa0   :  { %800 = vmatpush.msra.mxu2 %v211_v53  ;;  %819 = vmatpush.msra.mxu3 %v279_v54  ;;  %v563_v30 = vld [vmem:[%s6168_s26 + $0xfc8] sm:$0xff] }
  0xa1   :  { %761 = vmatpush.msra.mxu0 %v79_v55  ;;  %781 = vmatpush.msra.mxu1 %v143_v56  ;;  %v363_v31 = vld [vmem:[%s6168_s26 + $0x988] sm:$0xff] }
  0xa2   :  { %801 = vmatpush.msra.mxu2 %v207_v57  ;;  %820 = vmatpush.msra.mxu3 %v275_v58  ;;  %v427_v32 = vld [vmem:[%s6168_s26 + $0xb88] sm:$0xff] }
  0xa3   :  { %762 = vmatpush.msra.mxu0 %v75_v59  ;;  %782 = vmatpush.msra.mxu1 %v139_v60  ;;  %v491_v33 = vld [vmem:[%s6168_s26 + $0xd88] sm:$0xff] }
  0xa4   :  { %802 = vmatpush.msra.mxu2 %v203_v61  ;;  %821 = vmatpush.msra.mxu3 %v271_v62  ;;  %v559_v34 = vld [vmem:[%s6168_s26 + $0xfa8] sm:$0xff] }
  0xa5   :  { %763 = vmatpush.msra.mxu0 %v71_v63  ;;  %783 = vmatpush.msra.mxu1 %v135_v0  ;;  %v359_v40 = vld [vmem:[%s6168_s26 + $0x968] sm:$0xff] }
  0xa6   :  { %803 = vmatpush.msra.mxu2 %v199_v1  ;;  %822 = vmatpush.msra.mxu3 %v267_v2  ;;  %v423_v41 = vld [vmem:[%s6168_s26 + $0xb68] sm:$0xff] }
  0xa7   :  { %764 = vmatpush.msra.mxu0 %v67_v3  ;;  %784 = vmatpush.msra.mxu1 %v131_v4  ;;  %v487_v42 = vld [vmem:[%s6168_s26 + $0xd68] sm:$0xff] }
  0xa8   :  { %804 = vmatpush.msra.mxu2 %v195_v5  ;;  %823 = vmatpush.msra.mxu3 %v263_v7  ;;  %v555_v43 = vld [vmem:[%s6168_s26 + $0xf88] sm:$0xff] }
  0xa9   :  { %765 = vmatpush.msra.mxu0 %v63_v8  ;;  %785 = vmatpush.msra.mxu1 %v127_v9  ;;  %v355_v44 = vld [vmem:[%s6168_s26 + $0x948] sm:$0xff] }
  0xaa   :  { %805 = vmatpush.msra.mxu2 %v191_v10  ;;  %824 = vmatpush.msra.mxu3 %v259_v13  ;;  %v419_v45 = vld [vmem:[%s6168_s26 + $0xb48] sm:$0xff] }
  0xab   :  { %766 = vmatpush.msra.mxu0 %v59_v14  ;;  %786 = vmatpush.msra.mxu1 %v123_v15  ;;  %v483_v46 = vld [vmem:[%s6168_s26 + $0xd48] sm:$0xff] }
  0xac   :  { %806 = vmatpush.msra.mxu2 %v187_v16  ;;  %825 = vmatpush.msra.mxu3 %v255_v18  ;;  %v551_v47 = vld [vmem:[%s6168_s26 + $0xf68] sm:$0xff] }
  0xad   :  { %831 = vmatpush.msrb.mxu0 %v375_v19  ;;  %851 = vmatpush.msrb.mxu1 %v439_v20  ;;  %v351_v48 = vld [vmem:[%s6168_s26 + $0x928] sm:$0xff] }
  0xae   :  { %871 = vmatpush.msrb.mxu2 %v503_v21  ;;  %826 = vmatpush.msra.mxu3 %v251_v22  ;;  %v415_v49 = vld [vmem:[%s6168_s26 + $0xb28] sm:$0xff] }
  0xaf   :  { %832 = vmatpush.msrb.mxu0 %v371_v23  ;;  %852 = vmatpush.msrb.mxu1 %v435_v24  ;;  %v479_v50 = vld [vmem:[%s6168_s26 + $0xd28] sm:$0xff] }
  0xb0   :  { %872 = vmatpush.msrb.mxu2 %v499_v25  ;;  %891 = vmatpush.msrb.mxu3 %v567_v26  ;;  %v547_v51 = vld [vmem:[%s6168_s26 + $0xf48] sm:$0xff] }
  0xb1   :  { %833 = vmatpush.msrb.mxu0 %v367_v27  ;;  %853 = vmatpush.msrb.mxu1 %v431_v28  ;;  %v347_v52 = vld [vmem:[%s6168_s26 + $0x908] sm:$0xff]  ;;  %v120_v28 = vld [vmem:[%s6168_s26 + $0x1f0] sm:$0xff] }
  0xb2   :  { %873 = vmatpush.msrb.mxu2 %v495_v29  ;;  %892 = vmatpush.msrb.mxu3 %v563_v30  ;;  %v411_v53 = vld [vmem:[%s6168_s26 + $0xb08] sm:$0xff]  ;;  %v184_v29 = vld [vmem:[%s6168_s26 + $0x3f0] sm:$0xff] }
  0xb3   :  { %834 = vmatpush.msrb.mxu0 %v363_v31  ;;  %854 = vmatpush.msrb.mxu1 %v427_v32  ;;  %v475_v54 = vld [vmem:[%s6168_s26 + $0xd08] sm:$0xff]  ;;  %v248_v30 = vld [vmem:[%s6168_s26 + $0x5f0] sm:$0xff] }
  0xb4   :  { %874 = vmatpush.msrb.mxu2 %v491_v33  ;;  %893 = vmatpush.msrb.mxu3 %v559_v34  ;;  %v543_v55 = vld [vmem:[%s6168_s26 + $0xf28] sm:$0xff]  ;;  %v116_v32 = vld [vmem:[%s6168_s26 + $0x1d0] sm:$0xff] }
  0xb5   :  { %835 = vmatpush.msrb.mxu0 %v359_v40  ;;  %855 = vmatpush.msrb.mxu1 %v423_v41  ;;  %v343_v56 = vld [vmem:[%s6168_s26 + $0x8e8] sm:$0xff]  ;;  %v180_v33 = vld [vmem:[%s6168_s26 + $0x3d0] sm:$0xff] }
  0xb6   :  { %875 = vmatpush.msrb.mxu2 %v487_v42  ;;  %894 = vmatpush.msrb.mxu3 %v555_v43  ;;  %v407_v57 = vld [vmem:[%s6168_s26 + $0xae8] sm:$0xff]  ;;  %v244_v34 = vld [vmem:[%s6168_s26 + $0x5d0] sm:$0xff] }
  0xb7   :  { %836 = vmatpush.msrb.mxu0 %v355_v44  ;;  %856 = vmatpush.msrb.mxu1 %v419_v45  ;;  %v471_v58 = vld [vmem:[%s6168_s26 + $0xce8] sm:$0xff]  ;;  %v112_v40 = vld [vmem:[%s6168_s26 + $0x1b0] sm:$0xff] }
  0xb8   :  { %876 = vmatpush.msrb.mxu2 %v483_v46  ;;  %895 = vmatpush.msrb.mxu3 %v551_v47  ;;  %v539_v59 = vld [vmem:[%s6168_s26 + $0xf08] sm:$0xff]  ;;  %v176_v41 = vld [vmem:[%s6168_s26 + $0x3b0] sm:$0xff] }
  0xb9   :  { %837 = vmatpush.msrb.mxu0 %v351_v48  ;;  %857 = vmatpush.msrb.mxu1 %v415_v49  ;;  %v339_v60 = vld [vmem:[%s6168_s26 + $0x8c8] sm:$0xff]  ;;  %v308_v42 = vld [vmem:[%s6168_s26 + $0x7d0] sm:$0xff] }
  0xba   :  { %877 = vmatpush.msrb.mxu2 %v479_v50  ;;  %896 = vmatpush.msrb.mxu3 %v547_v51  ;;  %v403_v61 = vld [vmem:[%s6168_s26 + $0xac8] sm:$0xff]  ;;  %v172_v43 = vld [vmem:[%s6168_s26 + $0x390] sm:$0xff] }
  0xbb   :  { %838 = vmatpush.msrb.mxu0 %v347_v52  ;;  %858 = vmatpush.msrb.mxu1 %v411_v53  ;;  %v467_v62 = vld [vmem:[%s6168_s26 + $0xcc8] sm:$0xff]  ;;  %v236_v44 = vld [vmem:[%s6168_s26 + $0x590] sm:$0xff] }
  0xbc   :  { %878 = vmatpush.msrb.mxu2 %v475_v54  ;;  %897 = vmatpush.msrb.mxu3 %v543_v55  ;;  %v535_v63 = vld [vmem:[%s6168_s26 + $0xee8] sm:$0xff]  ;;  %v304_v45 = vld [vmem:[%s6168_s26 + $0x7b0] sm:$0xff] }
  0xbd   :  { %839 = vmatpush.msrb.mxu0 %v343_v56  ;;  %859 = vmatpush.msrb.mxu1 %v407_v57  ;;  %v335_v0 = vld [vmem:[%s6168_s26 + $0x8a8] sm:$0xff]  ;;  %v168_v46 = vld [vmem:[%s6168_s26 + $0x370] sm:$0xff] }
  0xbe   :  { %879 = vmatpush.msrb.mxu2 %v471_v58  ;;  %898 = vmatpush.msrb.mxu3 %v539_v59  ;;  %v399_v1 = vld [vmem:[%s6168_s26 + $0xaa8] sm:$0xff]  ;;  %v232_v47 = vld [vmem:[%s6168_s26 + $0x570] sm:$0xff] }
  0xbf   :  { %840 = vmatpush.msrb.mxu0 %v339_v60  ;;  %860 = vmatpush.msrb.mxu1 %v403_v61  ;;  %v463_v2 = vld [vmem:[%s6168_s26 + $0xca8] sm:$0xff]  ;;  %v300_v48 = vld [vmem:[%s6168_s26 + $0x790] sm:$0xff] }
  0xc0   :  { %v531_v3 = vld [vmem:[%s6168_s26 + $0xec8] sm:$0xff]  ;;  %880 = vmatpush.msrb.mxu2 %v467_v62  ;;  %899 = vmatpush.msrb.mxu3 %v535_v63  ;;  %v100_v49 = vld [vmem:[%s6168_s26 + $0x150] sm:$0xff] }
  0xc1   :  { %v331_v4 = vld [vmem:[%s6168_s26 + $0x888] sm:$0xff]  ;;  %841 = vmatpush.msrb.mxu0 %v335_v0  ;;  %861 = vmatpush.msrb.mxu1 %v399_v1  ;;  %v164_v50 = vld [vmem:[%s6168_s26 + $0x350] sm:$0xff] }
  0xc2   :  { %v395_v5 = vld [vmem:[%s6168_s26 + $0xa88] sm:$0xff]  ;;  %881 = vmatpush.msrb.mxu2 %v463_v2  ;;  %900 = vmatpush.msrb.mxu3 %v531_v3  ;;  %v228_v51 = vld [vmem:[%s6168_s26 + $0x550] sm:$0xff] }
  0xc3   :  { %v459_v7 = vld [vmem:[%s6168_s26 + $0xc88] sm:$0xff]  ;;  %842 = vmatpush.msrb.mxu0 %v331_v4  ;;  %862 = vmatpush.msrb.mxu1 %v395_v5  ;;  %v296_v52 = vld [vmem:[%s6168_s26 + $0x770] sm:$0xff] }
  0xc4   :  { %v527_v8 = vld [vmem:[%s6168_s26 + $0xea8] sm:$0xff]  ;;  %882 = vmatpush.msrb.mxu2 %v459_v7  ;;  %767 = vmatmul.f32.vlgmr.msra.gmra.mxu0 %v3326_v37  ;;  %v96_v53 = vld [vmem:[%s6168_s26 + $0x130] sm:$0xff] }
  0xc5   :  { %v327_v9 = vld [vmem:[%s6168_s26 + $0x868] sm:$0xff]  ;;  %901 = vmatpush.msrb.mxu3 %v527_v8  ;;  %807 = vmatmul.f32.vlgmr.msra.gmra.mxu2 %v3324_v36  ;;  %v160_v54 = vld [vmem:[%s6168_s26 + $0x330] sm:$0xff] }
  0xc6   :  { %v391_v10 = vld [vmem:[%s6168_s26 + $0xa68] sm:$0xff]  ;;  %843 = vmatpush.msrb.mxu0 %v327_v9  ;;  %827 = vmatmul.f32.vlgmr.msra.gmra.mxu3 %v3330_v39  ;;  %v224_v55 = vld [vmem:[%s6168_s26 + $0x530] sm:$0xff] }
  0xc7   :  { %v455_v13 = vld [vmem:[%s6168_s26 + $0xc68] sm:$0xff]  ;;  %863 = vmatpush.msrb.mxu1 %v391_v10  ;;  %v292_v56 = vld [vmem:[%s6168_s26 + $0x750] sm:$0xff] }
  0xc8   :  { %v523_v14 = vld [vmem:[%s6168_s26 + $0xe88] sm:$0xff]  ;;  %883 = vmatpush.msrb.mxu2 %v455_v13  ;;  %787 = vmatmul.f32.vlgmr.msra.gmra.mxu1 %v3328_v38  ;;  %v92_v57 = vld [vmem:[%s6168_s26 + $0x110] sm:$0xff] }
  0xc9   :  { %v323_v15 = vld [vmem:[%s6168_s26 + $0x848] sm:$0xff]  ;;  %902 = vmatpush.msrb.mxu3 %v523_v14  ;;  %v156_v58 = vld [vmem:[%s6168_s26 + $0x310] sm:$0xff] }
  0xca   :  { %v387_v16 = vld [vmem:[%s6168_s26 + $0xa48] sm:$0xff]  ;;  %844 = vmatpush.msrb.mxu0 %v323_v15  ;;  %v220_v59 = vld [vmem:[%s6168_s26 + $0x510] sm:$0xff] }
  0xcb   :  { %v451_v18 = vld [vmem:[%s6168_s26 + $0xc48] sm:$0xff]  ;;  %864 = vmatpush.msrb.mxu1 %v387_v16  ;;  %v288_v60 = vld [vmem:[%s6168_s26 + $0x730] sm:$0xff] }
  0xcc   :  { %v519_v19 = vld [vmem:[%s6168_s26 + $0xe68] sm:$0xff]  ;;  %884 = vmatpush.msrb.mxu2 %v451_v18  ;;  %v88_v61 = vld [vmem:[%s6168_s26 + $0xf0] sm:$0xff] }
  0xcd   :  { %v319_v20 = vld [vmem:[%s6168_s26 + $0x828] sm:$0xff]  ;;  %903 = vmatpush.msrb.mxu3 %v519_v19  ;;  %v152_v62 = vld [vmem:[%s6168_s26 + $0x2f0] sm:$0xff] }
  0xce   :  { %v383_v21 = vld [vmem:[%s6168_s26 + $0xa28] sm:$0xff]  ;;  %845 = vmatpush.msrb.mxu0 %v319_v20  ;;  %v216_v63 = vld [vmem:[%s6168_s26 + $0x4f0] sm:$0xff] }
  0xcf   :  { %v447_v22 = vld [vmem:[%s6168_s26 + $0xc28] sm:$0xff]  ;;  %865 = vmatpush.msrb.mxu1 %v383_v21  ;;  %v284_v0 = vld [vmem:[%s6168_s26 + $0x710] sm:$0xff] }
  0xd0   :  { %v515_v23 = vld [vmem:[%s6168_s26 + $0xe48] sm:$0xff]  ;;  %885 = vmatpush.msrb.mxu2 %v447_v22  ;;  %v84_v1 = vld [vmem:[%s6168_s26 + $0xd0] sm:$0xff] }
  0xd1   :  { %v315_v24 = vld [vmem:[%s6168_s26 + $0x808] sm:$0xff]  ;;  %904 = vmatpush.msrb.mxu3 %v515_v23  ;;  %v148_v2 = vld [vmem:[%s6168_s26 + $0x2d0] sm:$0xff] }
  0xd2   :  { %v379_v25 = vld [vmem:[%s6168_s26 + $0xa08] sm:$0xff]  ;;  %846 = vmatpush.msrb.mxu0 %v315_v24  ;;  %v212_v3 = vld [vmem:[%s6168_s26 + $0x4d0] sm:$0xff] }
  0xd3   :  { %v443_v26 = vld [vmem:[%s6168_s26 + $0xc08] sm:$0xff]  ;;  %866 = vmatpush.msrb.mxu1 %v379_v25  ;;  %847 = vmatmul.f32.vlgmr.msrb.gmra.mxu0 %v3441_v11  ;;  %v240_v11 = vld [vmem:[%s6168_s26 + $0x5b0] sm:$0xff] }
  0xd4   :  { %v511_v27 = vld [vmem:[%s6168_s26 + $0xe28] sm:$0xff]  ;;  %886 = vmatpush.msrb.mxu2 %v443_v26  ;;  %911 = vmatpush.msra.mxu0 %v120_v28  ;;  %v280_v4 = vld [vmem:[%s6168_s26 + $0x6f0] sm:$0xff] }
  0xd5   :  { %905 = vmatpush.msrb.mxu3 %v511_v27  ;;  %v507_v31 = vld [vmem:[%s6168_s26 + $0xe08] sm:$0xff]  ;;  %887 = vmatmul.f32.vlgmr.msrb.gmra.mxu2 %v3427_v6  ;;  %v312_v6 = vld [vmem:[%s6168_s26 + $0x7f0] sm:$0xff] }
  0xd6   :  { %931 = vmatpush.msra.mxu1 %v184_v29  ;;  %951 = vmatpush.msra.mxu2 %v248_v30  ;;  %v80_v5 = vld [vmem:[%s6168_s26 + $0xb0] sm:$0xff] }
  0xd7   :  { %906 = vmatpush.msrb.mxu3 %v507_v31  ;;  %912 = vmatpush.msra.mxu0 %v116_v32  ;;  %v144_v7 = vld [vmem:[%s6168_s26 + $0x2b0] sm:$0xff] }
  0xd8   :  { %907 = vmatmul.f32.vlgmr.msrb.gmra.mxu3 %v3444_v12  ;;  %932 = vmatpush.msra.mxu1 %v180_v33  ;;  %v108_v12 = vld [vmem:[%s6168_s26 + $0x190] sm:$0xff] }
  0xd9   :  { %952 = vmatpush.msra.mxu2 %v244_v34  ;;  %971 = vmatpush.msra.mxu3 %v312_v6  ;;  %v208_v8 = vld [vmem:[%s6168_s26 + $0x4b0] sm:$0xff] }
  0xda   :  { %867 = vmatmul.f32.vlgmr.msrb.gmra.mxu1 %v3459_v17  ;;  %913 = vmatpush.msra.mxu0 %v112_v40  ;;  %v104_v17 = vld [vmem:[%s6168_s26 + $0x170] sm:$0xff] }
  0xdb   :  { %933 = vmatpush.msra.mxu1 %v176_v41  ;;  %953 = vmatpush.msra.mxu2 %v240_v11  ;;  %v276_v9 = vld [vmem:[%s6168_s26 + $0x6d0] sm:$0xff] }
  0xdc   :  { %972 = vmatpush.msra.mxu3 %v308_v42  ;;  %914 = vmatpush.msra.mxu0 %v108_v12  ;;  %v76_v10 = vld [vmem:[%s6168_s26 + $0x90] sm:$0xff] }
  0xdd   :  { %934 = vmatpush.msra.mxu1 %v172_v43  ;;  %954 = vmatpush.msra.mxu2 %v236_v44  ;;  %v140_v13 = vld [vmem:[%s6168_s26 + $0x290] sm:$0xff] }
  0xde   :  { %973 = vmatpush.msra.mxu3 %v304_v45  ;;  %915 = vmatpush.msra.mxu0 %v104_v17  ;;  %v204_v14 = vld [vmem:[%s6168_s26 + $0x490] sm:$0xff] }
  0xdf   :  { %935 = vmatpush.msra.mxu1 %v168_v46  ;;  %955 = vmatpush.msra.mxu2 %v232_v47  ;;  %v272_v15 = vld [vmem:[%s6168_s26 + $0x6b0] sm:$0xff] }
  0xe0   :  { %974 = vmatpush.msra.mxu3 %v300_v48  ;;  %916 = vmatpush.msra.mxu0 %v100_v49  ;;  %v72_v16 = vld [vmem:[%s6168_s26 + $0x70] sm:$0xff] }
  0xe1   :  { %936 = vmatpush.msra.mxu1 %v164_v50  ;;  %956 = vmatpush.msra.mxu2 %v228_v51  ;;  %v136_v18 = vld [vmem:[%s6168_s26 + $0x270] sm:$0xff] }
  0xe2   :  { %975 = vmatpush.msra.mxu3 %v296_v52  ;;  %917 = vmatpush.msra.mxu0 %v96_v53  ;;  %v200_v19 = vld [vmem:[%s6168_s26 + $0x470] sm:$0xff] }
  0xe3   :  { %937 = vmatpush.msra.mxu1 %v160_v54  ;;  %957 = vmatpush.msra.mxu2 %v224_v55  ;;  %v268_v20 = vld [vmem:[%s6168_s26 + $0x690] sm:$0xff] }
  0xe4   :  { %976 = vmatpush.msra.mxu3 %v292_v56  ;;  %918 = vmatpush.msra.mxu0 %v92_v57  ;;  %v68_v21 = vld [vmem:[%s6168_s26 + $0x50] sm:$0xff] }
  0xe5   :  { %938 = vmatpush.msra.mxu1 %v156_v58  ;;  %958 = vmatpush.msra.mxu2 %v220_v59  ;;  %v132_v22 = vld [vmem:[%s6168_s26 + $0x250] sm:$0xff] }
  0xe6   :  { %977 = vmatpush.msra.mxu3 %v288_v60  ;;  %919 = vmatpush.msra.mxu0 %v88_v61  ;;  %v196_v23 = vld [vmem:[%s6168_s26 + $0x450] sm:$0xff] }
  0xe7   :  { %939 = vmatpush.msra.mxu1 %v152_v62  ;;  %959 = vmatpush.msra.mxu2 %v216_v63  ;;  %v264_v24 = vld [vmem:[%s6168_s26 + $0x670] sm:$0xff] }
  0xe8   :  { %978 = vmatpush.msra.mxu3 %v284_v0  ;;  %920 = vmatpush.msra.mxu0 %v84_v1  ;;  %v64_v25 = vld [vmem:[%s6168_s26 + $0x30] sm:$0xff] }
  0xe9   :  { %940 = vmatpush.msra.mxu1 %v148_v2  ;;  %960 = vmatpush.msra.mxu2 %v212_v3  ;;  %v128_v26 = vld [vmem:[%s6168_s26 + $0x230] sm:$0xff] }
  0xea   :  { %979 = vmatpush.msra.mxu3 %v280_v4  ;;  %921 = vmatpush.msra.mxu0 %v80_v5  ;;  %v192_v27 = vld [vmem:[%s6168_s26 + $0x430] sm:$0xff] }
  0xeb   :  { %941 = vmatpush.msra.mxu1 %v144_v7  ;;  %961 = vmatpush.msra.mxu2 %v208_v8  ;;  %v260_v28 = vld [vmem:[%s6168_s26 + $0x650] sm:$0xff] }
  0xec   :  { %980 = vmatpush.msra.mxu3 %v276_v9  ;;  %922 = vmatpush.msra.mxu0 %v76_v10  ;;  %v60_v29 = vld [vmem:[%s6168_s26 + $0x10] sm:$0xff] }
  0xed   :  { %942 = vmatpush.msra.mxu1 %v140_v13  ;;  %962 = vmatpush.msra.mxu2 %v204_v14  ;;  %v124_v30 = vld [vmem:[%s6168_s26 + $0x210] sm:$0xff] }
  0xee   :  { %981 = vmatpush.msra.mxu3 %v272_v15  ;;  %923 = vmatpush.msra.mxu0 %v72_v16  ;;  %v188_v31 = vld [vmem:[%s6168_s26 + $0x410] sm:$0xff] }
  0xef   :  { %943 = vmatpush.msra.mxu1 %v136_v18  ;;  %963 = vmatpush.msra.mxu2 %v200_v19  ;;  %v256_v32 = vld [vmem:[%s6168_s26 + $0x630] sm:$0xff] }
  0xf0   :  { %982 = vmatpush.msra.mxu3 %v268_v20  ;;  %924 = vmatpush.msra.mxu0 %v68_v21  ;;  %v376_v33 = vld [vmem:[%s6168_s26 + $0x9f0] sm:$0xff] }
  0xf1   :  { %944 = vmatpush.msra.mxu1 %v132_v22  ;;  %964 = vmatpush.msra.mxu2 %v196_v23  ;;  %v440_v34 = vld [vmem:[%s6168_s26 + $0xbf0] sm:$0xff] }
  0xf2   :  { %983 = vmatpush.msra.mxu3 %v264_v24  ;;  %925 = vmatpush.msra.mxu0 %v64_v25  ;;  %v504_v6 = vld [vmem:[%s6168_s26 + $0xdf0] sm:$0xff] }
  0xf3   :  { %945 = vmatpush.msra.mxu1 %v128_v26  ;;  %965 = vmatpush.msra.mxu2 %v192_v27  ;;  %v252_v40 = vld [vmem:[%s6168_s26 + $0x610] sm:$0xff] }
  0xf4   :  { %984 = vmatpush.msra.mxu3 %v260_v28  ;;  %926 = vmatpush.msra.mxu0 %v60_v29  ;;  %v372_v41 = vld [vmem:[%s6168_s26 + $0x9d0] sm:$0xff] }
  0xf5   :  { %946 = vmatpush.msra.mxu1 %v124_v30  ;;  %966 = vmatpush.msra.mxu2 %v188_v31  ;;  %v436_v11 = vld [vmem:[%s6168_s26 + $0xbd0] sm:$0xff] }
  0xf6   :  { %985 = vmatpush.msra.mxu3 %v256_v32  ;;  %991 = vmatpush.msrb.mxu0 %v376_v33  ;;  %v500_v42 = vld [vmem:[%s6168_s26 + $0xdd0] sm:$0xff] }
  0xf7   :  { %1011 = vmatpush.msrb.mxu1 %v440_v34  ;;  %v568_v12 = vld [vmem:[%s6168_s26 + $0xff0] sm:$0xff]  ;;  %1031 = vmatpush.msrb.mxu2 %v504_v6 }
  0xf8   :  { %986 = vmatpush.msra.mxu3 %v252_v40  ;;  %v368_v43 = vld [vmem:[%s6168_s26 + $0x9b0] sm:$0xff]  ;;  %992 = vmatpush.msrb.mxu0 %v372_v41 }
  0xf9   :  { %v432_v44 = vld [vmem:[%s6168_s26 + $0xbb0] sm:$0xff]  ;;  %1012 = vmatpush.msrb.mxu1 %v436_v11  ;;  %1032 = vmatpush.msrb.mxu2 %v500_v42  ;;  %v121_v11 = vld [vmem:[%s6168_s26 + $0x1f8] sm:$0xff] }
  0xfa   :  { %v496_v45 = vld [vmem:[%s6168_s26 + $0xdb0] sm:$0xff]  ;;  %1051 = vmatpush.msrb.mxu3 %v568_v12  ;;  %993 = vmatpush.msrb.mxu0 %v368_v43  ;;  %v185_v42 = vld [vmem:[%s6168_s26 + $0x3f8] sm:$0xff] }
  0xfb   :  { %v564_v17 = vld [vmem:[%s6168_s26 + $0xfd0] sm:$0xff]  ;;  %1013 = vmatpush.msrb.mxu1 %v432_v44  ;;  %1033 = vmatpush.msrb.mxu2 %v496_v45  ;;  %v249_v12 = vld [vmem:[%s6168_s26 + $0x5f8] sm:$0xff] }
  0xfc   :  { %v364_v46 = vld [vmem:[%s6168_s26 + $0x990] sm:$0xff]  ;;  %1052 = vmatpush.msrb.mxu3 %v564_v17  ;;  %967 = vmatmul.f32.vlgmr.msra.gmra.mxu2 %v3324_v36  ;;  %v117_v45 = vld [vmem:[%s6168_s26 + $0x1d8] sm:$0xff] }
  0xfd   :  { %v428_v47 = vld [vmem:[%s6168_s26 + $0xb90] sm:$0xff]  ;;  %994 = vmatpush.msrb.mxu0 %v364_v46  ;;  %987 = vmatmul.f32.vlgmr.msra.gmra.mxu3 %v3330_v39  ;;  %v181_v17 = vld [vmem:[%s6168_s26 + $0x3d8] sm:$0xff] }
  0xfe   :  { %v492_v48 = vld [vmem:[%s6168_s26 + $0xd90] sm:$0xff]  ;;  %1014 = vmatpush.msrb.mxu1 %v428_v47  ;;  %927 = vmatmul.f32.vlgmr.msra.gmra.mxu0 %v3326_v37  ;;  %v245_v46 = vld [vmem:[%s6168_s26 + $0x5d8] sm:$0xff]  ;;  %v4243_v47 = vld.sshfl [vmem:[#allocation1 + $0x20] sm:$0xff pattern:$0x73625140] }
  0xff   :  { %v560_v49 = vld [vmem:[%s6168_s26 + $0xfb0] sm:$0xff]  ;;  %1034 = vmatpush.msrb.mxu2 %v492_v48  ;;  %947 = vmatmul.f32.vlgmr.msra.gmra.mxu1 %v3328_v38  ;;  %v313_v48 = vld [vmem:[%s6168_s26 + $0x7f8] sm:$0xff] }
 0x100   :  { %v360_v50 = vld [vmem:[%s6168_s26 + $0x970] sm:$0xff]  ;;  %1053 = vmatpush.msrb.mxu3 %v560_v49  ;;  %v4249_v49 = vld.sshfl [vmem:[#allocation1 + $0x38] sm:$0xff pattern:$0x73625140] }
 0x101   :  { %v424_v51 = vld [vmem:[%s6168_s26 + $0xb70] sm:$0xff]  ;;  %995 = vmatpush.msrb.mxu0 %v360_v50  ;;  %v113_v50 = vld [vmem:[%s6168_s26 + $0x1b8] sm:$0xff] }
 0x102   :  { %v488_v52 = vld [vmem:[%s6168_s26 + $0xd70] sm:$0xff]  ;;  %1015 = vmatpush.msrb.mxu1 %v424_v51  ;;  %v177_v51 = vld [vmem:[%s6168_s26 + $0x3b8] sm:$0xff] }
 0x103   :  { %v556_v53 = vld [vmem:[%s6168_s26 + $0xf90] sm:$0xff]  ;;  %1035 = vmatpush.msrb.mxu2 %v488_v52  ;;  %v241_v52 = vld [vmem:[%s6168_s26 + $0x5b8] sm:$0xff] }
 0x104   :  { %v356_v54 = vld [vmem:[%s6168_s26 + $0x950] sm:$0xff]  ;;  %1054 = vmatpush.msrb.mxu3 %v556_v53  ;;  %v309_v53 = vld [vmem:[%s6168_s26 + $0x7d8] sm:$0xff] }
 0x105   :  { %v420_v55 = vld [vmem:[%s6168_s26 + $0xb50] sm:$0xff]  ;;  %996 = vmatpush.msrb.mxu0 %v356_v54  ;;  %v4264_v54 = vld.sshfl [vmem:[#allocation1 + $0x28] sm:$0xff pattern:$0x73625140] }
 0x106   :  { %v484_v56 = vld [vmem:[%s6168_s26 + $0xd50] sm:$0xff]  ;;  %1016 = vmatpush.msrb.mxu1 %v420_v55  ;;  %v109_v55 = vld [vmem:[%s6168_s26 + $0x198] sm:$0xff] }
 0x107   :  { %v552_v57 = vld [vmem:[%s6168_s26 + $0xf70] sm:$0xff]  ;;  %1036 = vmatpush.msrb.mxu2 %v484_v56  ;;  %v173_v56 = vld [vmem:[%s6168_s26 + $0x398] sm:$0xff] }
 0x108   :  { %v352_v58 = vld [vmem:[%s6168_s26 + $0x930] sm:$0xff]  ;;  %1055 = vmatpush.msrb.mxu3 %v552_v57  ;;  %v237_v57 = vld [vmem:[%s6168_s26 + $0x598] sm:$0xff] }
 0x109   :  { %v416_v59 = vld [vmem:[%s6168_s26 + $0xb30] sm:$0xff]  ;;  %997 = vmatpush.msrb.mxu0 %v352_v58  ;;  %v305_v58 = vld [vmem:[%s6168_s26 + $0x7b8] sm:$0xff] }
 0x10a   :  { %v480_v60 = vld [vmem:[%s6168_s26 + $0xd30] sm:$0xff]  ;;  %1017 = vmatpush.msrb.mxu1 %v416_v59  ;;  %v105_v59 = vld [vmem:[%s6168_s26 + $0x178] sm:$0xff] }
 0x10b   :  { %v548_v61 = vld [vmem:[%s6168_s26 + $0xf50] sm:$0xff]  ;;  %1037 = vmatpush.msrb.mxu2 %v480_v60  ;;  %v169_v60 = vld [vmem:[%s6168_s26 + $0x378] sm:$0xff] }
 0x10c   :  { %v348_v62 = vld [vmem:[%s6168_s26 + $0x910] sm:$0xff]  ;;  %1056 = vmatpush.msrb.mxu3 %v548_v61  ;;  %v233_v61 = vld [vmem:[%s6168_s26 + $0x578] sm:$0xff] }
 0x10d   :  { %v412_v63 = vld [vmem:[%s6168_s26 + $0xb10] sm:$0xff]  ;;  %998 = vmatpush.msrb.mxu0 %v348_v62  ;;  %v301_v62 = vld [vmem:[%s6168_s26 + $0x798] sm:$0xff] }
 0x10e   :  { %v476_v0 = vld [vmem:[%s6168_s26 + $0xd10] sm:$0xff]  ;;  %1018 = vmatpush.msrb.mxu1 %v412_v63  ;;  %v101_v63 = vld [vmem:[%s6168_s26 + $0x158] sm:$0xff] }
 0x10f   :  { %v544_v1 = vld [vmem:[%s6168_s26 + $0xf30] sm:$0xff]  ;;  %1038 = vmatpush.msrb.mxu2 %v476_v0  ;;  %v165_v0 = vld [vmem:[%s6168_s26 + $0x358] sm:$0xff] }
 0x110   :  { %v344_v2 = vld [vmem:[%s6168_s26 + $0x8f0] sm:$0xff]  ;;  %1057 = vmatpush.msrb.mxu3 %v544_v1  ;;  %v229_v1 = vld [vmem:[%s6168_s26 + $0x558] sm:$0xff] }
 0x111   :  { %v408_v3 = vld [vmem:[%s6168_s26 + $0xaf0] sm:$0xff]  ;;  %999 = vmatpush.msrb.mxu0 %v344_v2  ;;  %v297_v2 = vld [vmem:[%s6168_s26 + $0x778] sm:$0xff] }
 0x112   :  { %v472_v4 = vld [vmem:[%s6168_s26 + $0xcf0] sm:$0xff]  ;;  %1019 = vmatpush.msrb.mxu1 %v408_v3  ;;  %v97_v3 = vld [vmem:[%s6168_s26 + $0x138] sm:$0xff] }
 0x113   :  { %v540_v5 = vld [vmem:[%s6168_s26 + $0xf10] sm:$0xff]  ;;  %1039 = vmatpush.msrb.mxu2 %v472_v4  ;;  %v161_v4 = vld [vmem:[%s6168_s26 + $0x338] sm:$0xff] }
 0x114   :  { %v340_v7 = vld [vmem:[%s6168_s26 + $0x8d0] sm:$0xff]  ;;  %1058 = vmatpush.msrb.mxu3 %v540_v5  ;;  %v225_v5 = vld [vmem:[%s6168_s26 + $0x538] sm:$0xff] }
 0x115   :  { %v404_v8 = vld [vmem:[%s6168_s26 + $0xad0] sm:$0xff]  ;;  %1000 = vmatpush.msrb.mxu0 %v340_v7  ;;  %v293_v7 = vld [vmem:[%s6168_s26 + $0x758] sm:$0xff] }
 0x116   :  { %v468_v9 = vld [vmem:[%s6168_s26 + $0xcd0] sm:$0xff]  ;;  %1020 = vmatpush.msrb.mxu1 %v404_v8  ;;  %v93_v8 = vld [vmem:[%s6168_s26 + $0x118] sm:$0xff] }
 0x117   :  { %v536_v10 = vld [vmem:[%s6168_s26 + $0xef0] sm:$0xff]  ;;  %1040 = vmatpush.msrb.mxu2 %v468_v9  ;;  %v157_v9 = vld [vmem:[%s6168_s26 + $0x318] sm:$0xff] }
 0x118   :  { %v336_v13 = vld [vmem:[%s6168_s26 + $0x8b0] sm:$0xff]  ;;  %1059 = vmatpush.msrb.mxu3 %v536_v10  ;;  %v221_v10 = vld [vmem:[%s6168_s26 + $0x518] sm:$0xff] }
 0x119   :  { %v400_v14 = vld [vmem:[%s6168_s26 + $0xab0] sm:$0xff]  ;;  %1001 = vmatpush.msrb.mxu0 %v336_v13  ;;  %v289_v13 = vld [vmem:[%s6168_s26 + $0x738] sm:$0xff] }
 0x11a   :  { %v464_v15 = vld [vmem:[%s6168_s26 + $0xcb0] sm:$0xff]  ;;  %1021 = vmatpush.msrb.mxu1 %v400_v14  ;;  %v89_v14 = vld [vmem:[%s6168_s26 + $0xf8] sm:$0xff] }
 0x11b   :  { %v532_v16 = vld [vmem:[%s6168_s26 + $0xed0] sm:$0xff]  ;;  %1041 = vmatpush.msrb.mxu2 %v464_v15  ;;  %v153_v15 = vld [vmem:[%s6168_s26 + $0x2f8] sm:$0xff] }
 0x11c   :  { %v332_v18 = vld [vmem:[%s6168_s26 + $0x890] sm:$0xff]  ;;  %1060 = vmatpush.msrb.mxu3 %v532_v16  ;;  %v217_v16 = vld [vmem:[%s6168_s26 + $0x4f8] sm:$0xff] }
 0x11d   :  { %v396_v19 = vld [vmem:[%s6168_s26 + $0xa90] sm:$0xff]  ;;  %1002 = vmatpush.msrb.mxu0 %v332_v18  ;;  %v285_v18 = vld [vmem:[%s6168_s26 + $0x718] sm:$0xff] }
 0x11e   :  { %v460_v20 = vld [vmem:[%s6168_s26 + $0xc90] sm:$0xff]  ;;  %1022 = vmatpush.msrb.mxu1 %v396_v19  ;;  %v85_v19 = vld [vmem:[%s6168_s26 + $0xd8] sm:$0xff] }
 0x11f   :  { %v528_v21 = vld [vmem:[%s6168_s26 + $0xeb0] sm:$0xff]  ;;  %1042 = vmatpush.msrb.mxu2 %v460_v20  ;;  %v149_v20 = vld [vmem:[%s6168_s26 + $0x2d8] sm:$0xff] }
 0x120   :  { %v328_v22 = vld [vmem:[%s6168_s26 + $0x870] sm:$0xff]  ;;  %1061 = vmatpush.msrb.mxu3 %v528_v21  ;;  %v213_v21 = vld [vmem:[%s6168_s26 + $0x4d8] sm:$0xff] }
 0x121   :  { %v392_v23 = vld [vmem:[%s6168_s26 + $0xa70] sm:$0xff]  ;;  %1003 = vmatpush.msrb.mxu0 %v328_v22  ;;  %v281_v22 = vld [vmem:[%s6168_s26 + $0x6f8] sm:$0xff] }
 0x122   :  { %v456_v24 = vld [vmem:[%s6168_s26 + $0xc70] sm:$0xff]  ;;  %1023 = vmatpush.msrb.mxu1 %v392_v23  ;;  %v81_v23 = vld [vmem:[%s6168_s26 + $0xb8] sm:$0xff] }
 0x123   :  { %v524_v25 = vld [vmem:[%s6168_s26 + $0xe90] sm:$0xff]  ;;  %1043 = vmatpush.msrb.mxu2 %v456_v24  ;;  %v145_v24 = vld [vmem:[%s6168_s26 + $0x2b8] sm:$0xff] }
 0x124   :  { %v324_v26 = vld [vmem:[%s6168_s26 + $0x850] sm:$0xff]  ;;  %1062 = vmatpush.msrb.mxu3 %v524_v25  ;;  %v209_v25 = vld [vmem:[%s6168_s26 + $0x4b8] sm:$0xff] }
 0x125   :  { %v388_v27 = vld [vmem:[%s6168_s26 + $0xa50] sm:$0xff]  ;;  %1004 = vmatpush.msrb.mxu0 %v324_v26  ;;  %v277_v26 = vld [vmem:[%s6168_s26 + $0x6d8] sm:$0xff] }
 0x126   :  { %v452_v28 = vld [vmem:[%s6168_s26 + $0xc50] sm:$0xff]  ;;  %1024 = vmatpush.msrb.mxu1 %v388_v27  ;;  %v77_v27 = vld [vmem:[%s6168_s26 + $0x98] sm:$0xff] }
 0x127   :  { %v520_v29 = vld [vmem:[%s6168_s26 + $0xe70] sm:$0xff]  ;;  %1044 = vmatpush.msrb.mxu2 %v452_v28  ;;  %v141_v28 = vld [vmem:[%s6168_s26 + $0x298] sm:$0xff] }
 0x128   :  { %v320_v30 = vld [vmem:[%s6168_s26 + $0x830] sm:$0xff]  ;;  %1063 = vmatpush.msrb.mxu3 %v520_v29  ;;  %v205_v29 = vld [vmem:[%s6168_s26 + $0x498] sm:$0xff] }
 0x129   :  { %v384_v31 = vld [vmem:[%s6168_s26 + $0xa30] sm:$0xff]  ;;  %1005 = vmatpush.msrb.mxu0 %v320_v30  ;;  %v273_v30 = vld [vmem:[%s6168_s26 + $0x6b8] sm:$0xff] }
 0x12a   :  { %v448_v32 = vld [vmem:[%s6168_s26 + $0xc30] sm:$0xff]  ;;  %1025 = vmatpush.msrb.mxu1 %v384_v31  ;;  %v73_v31 = vld [vmem:[%s6168_s26 + $0x78] sm:$0xff] }
 0x12b   :  { %v516_v33 = vld [vmem:[%s6168_s26 + $0xe50] sm:$0xff]  ;;  %1045 = vmatpush.msrb.mxu2 %v448_v32  ;;  %v137_v32 = vld [vmem:[%s6168_s26 + $0x278] sm:$0xff] }
 0x12c   :  { %v316_v34 = vld [vmem:[%s6168_s26 + $0x810] sm:$0xff]  ;;  %1064 = vmatpush.msrb.mxu3 %v516_v33  ;;  %v201_v33 = vld [vmem:[%s6168_s26 + $0x478] sm:$0xff] }
 0x12d   :  { %v380_v6 = vld [vmem:[%s6168_s26 + $0xa10] sm:$0xff]  ;;  %1006 = vmatpush.msrb.mxu0 %v316_v34  ;;  %v269_v34 = vld [vmem:[%s6168_s26 + $0x698] sm:$0xff] }
 0x12e   :  { %v444_v40 = vld [vmem:[%s6168_s26 + $0xc10] sm:$0xff]  ;;  %1026 = vmatpush.msrb.mxu1 %v380_v6  ;;  %1007 = vmatmul.f32.vlgmr.msrb.gmra.mxu0 %v4243_v47  ;;  %v69_v6 = vld [vmem:[%s6168_s26 + $0x58] sm:$0xff] }
 0x12f   :  { %v512_v41 = vld [vmem:[%s6168_s26 + $0xe30] sm:$0xff]  ;;  %1046 = vmatpush.msrb.mxu2 %v444_v40  ;;  %1071 = vmatpush.msra.mxu0 %v121_v11  ;;  %v133_v40 = vld [vmem:[%s6168_s26 + $0x258] sm:$0xff] }
 0x130   :  { %1065 = vmatpush.msrb.mxu3 %v512_v41  ;;  %v508_v43 = vld [vmem:[%s6168_s26 + $0xe10] sm:$0xff]  ;;  %1091 = vmatpush.msra.mxu1 %v185_v42  ;;  %v197_v41 = vld [vmem:[%s6168_s26 + $0x458] sm:$0xff] }
 0x131   :  { %v4231_v44 = vld.sshfl [vmem:[#allocation1 + $0x30] sm:$0xff pattern:$0x73625140]  ;;  %1111 = vmatpush.msra.mxu2 %v249_v12  ;;  %1072 = vmatpush.msra.mxu0 %v117_v45  ;;  %v265_v11 = vld [vmem:[%s6168_s26 + $0x678] sm:$0xff] }
 0x132   :  { %1047 = vmatmul.f32.vlgmr.msrb.gmra.mxu2 %v4231_v44  ;;  %1066 = vmatpush.msrb.mxu3 %v508_v43  ;;  %v65_v42 = vld [vmem:[%s6168_s26 + $0x38] sm:$0xff] }
 0x133   :  { %1067 = vmatmul.f32.vlgmr.msrb.gmra.mxu3 %v4249_v49  ;;  %1092 = vmatpush.msra.mxu1 %v181_v17  ;;  %v129_v12 = vld [vmem:[%s6168_s26 + $0x238] sm:$0xff] }
 0x134   :  { %1112 = vmatpush.msra.mxu2 %v245_v46  ;;  %1131 = vmatpush.msra.mxu3 %v313_v48  ;;  %v193_v43 = vld [vmem:[%s6168_s26 + $0x438] sm:$0xff] }
 0x135   :  { %1027 = vmatmul.f32.vlgmr.msrb.gmra.mxu1 %v4264_v54  ;;  %1073 = vmatpush.msra.mxu0 %v113_v50  ;;  %v261_v45 = vld [vmem:[%s6168_s26 + $0x658] sm:$0xff] }
 0x136   :  { %1093 = vmatpush.msra.mxu1 %v177_v51  ;;  %1113 = vmatpush.msra.mxu2 %v241_v52  ;;  %v61_v17 = vld [vmem:[%s6168_s26 + $0x18] sm:$0xff]  ;;  %v4423_v51 = vpop.f32.mrf.mxu0 }
 0x137   :  { %1132 = vmatpush.msra.mxu3 %v309_v53  ;;  %1074 = vmatpush.msra.mxu0 %v109_v55  ;;  %v125_v46 = vld [vmem:[%s6168_s26 + $0x218] sm:$0xff] }
 0x138   :  { %1094 = vmatpush.msra.mxu1 %v173_v56  ;;  %1114 = vmatpush.msra.mxu2 %v237_v57  ;;  %v189_v48 = vld [vmem:[%s6168_s26 + $0x418] sm:$0xff] }
 0x139   :  { %1133 = vmatpush.msra.mxu3 %v305_v58  ;;  %1075 = vmatpush.msra.mxu0 %v105_v59  ;;  %v257_v50 = vld [vmem:[%s6168_s26 + $0x638] sm:$0xff]  ;;  %v628_v59 = vpop.f32.mrf.mxu1 }
 0x13a   :  { %1095 = vmatpush.msra.mxu1 %v169_v60  ;;  %1115 = vmatpush.msra.mxu2 %v233_v61  ;;  %v377_v52 = vld [vmem:[%s6168_s26 + $0x9f8] sm:$0xff] }
 0x13b   :  { %1134 = vmatpush.msra.mxu3 %v301_v62  ;;  %1076 = vmatpush.msra.mxu0 %v101_v63  ;;  %v441_v53 = vld [vmem:[%s6168_s26 + $0xbf8] sm:$0xff]  ;;  %v4449_v62 = vpop.f32.mrf.mxu2 }
 0x13c   :  { %1096 = vmatpush.msra.mxu1 %v165_v0  ;;  %1116 = vmatpush.msra.mxu2 %v229_v1  ;;  %v505_v55 = vld [vmem:[%s6168_s26 + $0xdf8] sm:$0xff] }
 0x13d   :  { %1135 = vmatpush.msra.mxu3 %v297_v2  ;;  %1077 = vmatpush.msra.mxu0 %v97_v3  ;;  %v253_v56 = vld [vmem:[%s6168_s26 + $0x618] sm:$0xff] }
 0x13e   :  { %1097 = vmatpush.msra.mxu1 %v161_v4  ;;  %1117 = vmatpush.msra.mxu2 %v225_v5  ;;  %v373_v57 = vld [vmem:[%s6168_s26 + $0x9d8] sm:$0xff]  ;;  %v4469_v5 = vpop.f32.mrf.mxu3 }
 0x13f   :  { %1136 = vmatpush.msra.mxu3 %v293_v7  ;;  %1078 = vmatpush.msra.mxu0 %v93_v8  ;;  %v437_v58 = vld [vmem:[%s6168_s26 + $0xbd8] sm:$0xff] }
 0x140   :  { %1098 = vmatpush.msra.mxu1 %v157_v9  ;;  %1118 = vmatpush.msra.mxu2 %v221_v10  ;;  %v501_v60 = vld [vmem:[%s6168_s26 + $0xdd8] sm:$0xff] }
 0x141   :  { %1137 = vmatpush.msra.mxu3 %v289_v13  ;;  %1079 = vmatpush.msra.mxu0 %v89_v14  ;;  %v569_v61 = vld [vmem:[%s6168_s26 + $0xff8] sm:$0xff] }
 0x142   :  { %1099 = vmatpush.msra.mxu1 %v153_v15  ;;  %1119 = vmatpush.msra.mxu2 %v217_v16  ;;  %v369_v63 = vld [vmem:[%s6168_s26 + $0x9b8] sm:$0xff]  ;;  %v4489_v15 = vpop.f32.mrf.mxu0 }
 0x143   :  { %1138 = vmatpush.msra.mxu3 %v285_v18  ;;  %1080 = vmatpush.msra.mxu0 %v85_v19  ;;  %v433_v0 = vld [vmem:[%s6168_s26 + $0xbb8] sm:$0xff] }
 0x144   :  { %1100 = vmatpush.msra.mxu1 %v149_v20  ;;  %1120 = vmatpush.msra.mxu2 %v213_v21  ;;  %v497_v1 = vld [vmem:[%s6168_s26 + $0xdb8] sm:$0xff] }
 0x145   :  { %1139 = vmatpush.msra.mxu3 %v281_v22  ;;  %1081 = vmatpush.msra.mxu0 %v81_v23  ;;  %v565_v2 = vld [vmem:[%s6168_s26 + $0xfd8] sm:$0xff]  ;;  %v4509_v23 = vpop.f32.mrf.mxu1 }
 0x146   :  { %1101 = vmatpush.msra.mxu1 %v145_v24  ;;  %1121 = vmatpush.msra.mxu2 %v209_v25  ;;  %v365_v3 = vld [vmem:[%s6168_s26 + $0x998] sm:$0xff] }
 0x147   :  { %1140 = vmatpush.msra.mxu3 %v277_v26  ;;  %1082 = vmatpush.msra.mxu0 %v77_v27  ;;  %v429_v4 = vld [vmem:[%s6168_s26 + $0xb98] sm:$0xff]  ;;  %v4517_v26 = vpop.f32.mrf.mxu2 }
 0x148   :  { %1102 = vmatpush.msra.mxu1 %v141_v28  ;;  %1122 = vmatpush.msra.mxu2 %v205_v29  ;;  %v493_v7 = vld [vmem:[%s6168_s26 + $0xd98] sm:$0xff] }
 0x149   :  { %1141 = vmatpush.msra.mxu3 %v273_v30  ;;  %1083 = vmatpush.msra.mxu0 %v73_v31  ;;  %v561_v8 = vld [vmem:[%s6168_s26 + $0xfb8] sm:$0xff]  ;;  %v629_v31 = vadd.f32 %v628_v59, %v4423_v51 }
 0x14a   :  { %1103 = vmatpush.msra.mxu1 %v137_v32  ;;  %1123 = vmatpush.msra.mxu2 %v201_v33  ;;  %v361_v9 = vld [vmem:[%s6168_s26 + $0x978] sm:$0xff] }
 0x14b   :  { %1142 = vmatpush.msra.mxu3 %v269_v34  ;;  %1084 = vmatpush.msra.mxu0 %v69_v6  ;;  %v425_v10 = vld [vmem:[%s6168_s26 + $0xb78] sm:$0xff]  ;;  %v4538_v34 = vpop.f32.mrf.mxu3 }
 0x14c   :  { %1104 = vmatpush.msra.mxu1 %v133_v40  ;;  %1124 = vmatpush.msra.mxu2 %v197_v41  ;;  %v489_v13 = vld [vmem:[%s6168_s26 + $0xd78] sm:$0xff] }
 0x14d   :  { %1143 = vmatpush.msra.mxu3 %v265_v11  ;;  %1085 = vmatpush.msra.mxu0 %v65_v42  ;;  %v557_v14 = vld [vmem:[%s6168_s26 + $0xf98] sm:$0xff]  ;;  %v768_v42 = vpop.f32.mrf.mxu0  ;;  %v788_v51 = vpop.f32.mrf.mxu1 }
 0x14e   :  { %1105 = vmatpush.msra.mxu1 %v129_v12  ;;  %1125 = vmatpush.msra.mxu2 %v193_v43  ;;  %v357_v16 = vld [vmem:[%s6168_s26 + $0x958] sm:$0xff] }
 0x14f   :  { %1144 = vmatpush.msra.mxu3 %v261_v45  ;;  %1086 = vmatpush.msra.mxu0 %v61_v17  ;;  %v421_v18 = vld [vmem:[%s6168_s26 + $0xb58] sm:$0xff]  ;;  %v649_v45 = vadd.f32 %v4449_v62, %v629_v31  ;;  %v4685_v31 = vld [vmem:[%s6123_s5 + $0xe8] sm:$0xff] }
 0x150   :  { %1106 = vmatpush.msra.mxu1 %v125_v46  ;;  %1126 = vmatpush.msra.mxu2 %v189_v48  ;;  %v485_v19 = vld [vmem:[%s6168_s26 + $0xd58] sm:$0xff] }
 0x151   :  { %1145 = vmatpush.msra.mxu3 %v257_v50  ;;  %1151 = vmatpush.msrb.mxu0 %v377_v52  ;;  %v553_v20 = vld [vmem:[%s6168_s26 + $0xf78] sm:$0xff] }
 0x152   :  { %1171 = vmatpush.msrb.mxu1 %v441_v53  ;;  %1191 = vmatpush.msrb.mxu2 %v505_v55  ;;  %v353_v21 = vld [vmem:[%s6168_s26 + $0x938] sm:$0xff]  ;;  %v789_v53 = vadd.f32 %v788_v51, %v768_v42  ;;  %v808_v55 = vpop.f32.mrf.mxu2 }
 0x153   :  { %1146 = vmatpush.msra.mxu3 %v253_v56  ;;  %1152 = vmatpush.msrb.mxu0 %v373_v57  ;;  %v417_v22 = vld [vmem:[%s6168_s26 + $0xb38] sm:$0xff]  ;;  %v828_v62 = vpop.f32.mrf.mxu3 }
 0x154   :  { %1172 = vmatpush.msrb.mxu1 %v437_v58  ;;  %1192 = vmatpush.msrb.mxu2 %v501_v60  ;;  %v481_v24 = vld [vmem:[%s6168_s26 + $0xd38] sm:$0xff]  ;;  %v669_v58 = vadd.f32 %v4469_v5, %v649_v45  ;;  %v809_v60 = vadd.f32 %v808_v55, %v789_v53  ;;  %v4740_v45 = vld [vmem:[%s6123_s5 + $0xc8] sm:$0xff]  ;;  %v4770_v53 = vld [vmem:[%s6123_s5 + $0x30] sm:$0xff] }
 0x155   :  { %1211 = vmatpush.msrb.mxu3 %v569_v61  ;;  %1153 = vmatpush.msrb.mxu0 %v369_v63  ;;  %v549_v25 = vld [vmem:[%s6168_s26 + $0xf58] sm:$0xff]  ;;  %v848_v5 = vpop.f32.mrf.mxu0  ;;  %6173 = vst [vmem:[#allocation5_spill] sm:$0xff] %v4740_v45  ;;  %v4776_v55 = vld [vmem:[%s6123_s5 + $0xb0] sm:$0xff] }
 0x156   :  { %1173 = vmatpush.msrb.mxu1 %v433_v0  ;;  %1193 = vmatpush.msrb.mxu2 %v497_v1  ;;  %v349_v27 = vld [vmem:[%s6168_s26 + $0x918] sm:$0xff]  ;;  %v829_v1 = vadd.f32 %v828_v62, %v809_v60  ;;  %6178 = vst [vmem:[#allocation10_spill] sm:$0xff] %v4770_v53  ;;  %v4794_v60 = vld [vmem:[%s6123_s5 + $0xa8] sm:$0xff]  ;;  %v4806_v62 = vld [vmem:[%s6123_s5 + $0xa0] sm:$0xff] }
 0x157   :  { %1212 = vmatpush.msrb.mxu3 %v565_v2  ;;  %1154 = vmatpush.msrb.mxu0 %v365_v3  ;;  %v413_v28 = vld [vmem:[%s6168_s26 + $0xb18] sm:$0xff]  ;;  %v689_v2 = vadd.f32 %v4489_v15, %v669_v58  ;;  %6179 = vst [vmem:[#allocation11_spill] sm:$0xff] %v4776_v55  ;;  %v4787_v58 = vld [vmem:[%s6123_s5 + $0x28] sm:$0xff] }
 0x158   :  { %1174 = vmatpush.msrb.mxu1 %v429_v4  ;;  %1194 = vmatpush.msrb.mxu2 %v493_v7  ;;  %v477_v29 = vld [vmem:[%s6168_s26 + $0xd18] sm:$0xff]  ;;  %v849_v7 = vadd.f32 %v848_v5, %v829_v1  ;;  %6180 = vst [vmem:[#allocation12_spill] sm:$0xff] %v4787_v58  ;;  %v4842_v5 = vld [vmem:[%s6123_s5 + $0x90] sm:$0xff] }
 0x159   :  { %1213 = vmatpush.msrb.mxu3 %v561_v8  ;;  %1155 = vmatpush.msrb.mxu0 %v361_v9  ;;  %v545_v30 = vld [vmem:[%s6168_s26 + $0xf38] sm:$0xff]  ;;  %6181 = vst [vmem:[#allocation13_spill] sm:$0xff] %v4794_v60 }
 0x15a   :  { %1175 = vmatpush.msrb.mxu1 %v425_v10  ;;  %1195 = vmatpush.msrb.mxu2 %v489_v13  ;;  %v345_v32 = vld [vmem:[%s6168_s26 + $0x8f8] sm:$0xff]  ;;  %6183 = vst [vmem:[#allocation15_spill] sm:$0xff] %v4806_v62 }
 0x15b   :  { %1214 = vmatpush.msrb.mxu3 %v557_v14  ;;  %1156 = vmatpush.msrb.mxu0 %v357_v16  ;;  %v409_v33 = vld [vmem:[%s6168_s26 + $0xaf8] sm:$0xff]  ;;  %v868_v14 = vpop.f32.mrf.mxu1  ;;  %6187 = vst [vmem:[#allocation19_spill] sm:$0xff] %v4842_v5 }
 0x15c   :  { %1176 = vmatpush.msrb.mxu1 %v421_v18  ;;  %1196 = vmatpush.msrb.mxu2 %v485_v19  ;;  %v473_v6 = vld [vmem:[%s6168_s26 + $0xcf8] sm:$0xff] }
 0x15d   :  { %1215 = vmatpush.msrb.mxu3 %v553_v20  ;;  %1157 = vmatpush.msrb.mxu0 %v353_v21  ;;  %v541_v40 = vld [vmem:[%s6168_s26 + $0xf18] sm:$0xff]  ;;  %v869_v20 = vadd.f32 %v868_v14, %v849_v7  ;;  %v888_v21 = vpop.f32.mrf.mxu2  ;;  %v4877_v14 = vld [vmem:[%s6123_s5 + $0x80] sm:$0xff] }
 0x15e   :  { %1177 = vmatpush.msrb.mxu1 %v417_v22  ;;  %1197 = vmatpush.msrb.mxu2 %v481_v24  ;;  %v341_v41 = vld [vmem:[%s6168_s26 + $0x8d8] sm:$0xff]  ;;  %6191 = vst [vmem:[#allocation23_spill] sm:$0xff] %v4877_v14 }
 0x15f   :  { %1216 = vmatpush.msrb.mxu3 %v549_v25  ;;  %1158 = vmatpush.msrb.mxu0 %v349_v27  ;;  %v405_v11 = vld [vmem:[%s6168_s26 + $0xad8] sm:$0xff]  ;;  %v4657_v27 = vld [vmem:[%s6123_s5 + $0x70] sm:$0xff] }
 0x160   :  { %1178 = vmatpush.msrb.mxu1 %v413_v28  ;;  %1198 = vmatpush.msrb.mxu2 %v477_v29  ;;  %v469_v12 = vld [vmem:[%s6168_s26 + $0xcd8] sm:$0xff]  ;;  %v889_v28 = vadd.f32 %v888_v21, %v869_v20  ;;  %v908_v29 = vpop.f32.mrf.mxu3  ;;  %v4904_v20 = vld [vmem:[%s6123_s5 + $0x130] sm:$0xff]  ;;  %v4910_v21 = vld [vmem:[%s6123_s5 + $0x128] sm:$0xff] }
 0x161   :  { %1217 = vmatpush.msrb.mxu3 %v545_v30  ;;  %1159 = vmatpush.msrb.mxu0 %v345_v32  ;;  %v537_v43 = vld [vmem:[%s6168_s26 + $0xef8] sm:$0xff] }
 0x162   :  { %1179 = vmatpush.msrb.mxu1 %v409_v33  ;;  %1199 = vmatpush.msrb.mxu2 %v473_v6  ;;  %v337_v17 = vld [vmem:[%s6168_s26 + $0x8b8] sm:$0xff]  ;;  %v4693_v32 = vadd.f32 %v908_v29, %v889_v28  ;;  %v4927_v29 = vld [vmem:[%s6123_s5 + $0x110] sm:$0xff] }
 0x163   :  { %1218 = vmatpush.msrb.mxu3 %v541_v40  ;;  %v401_v46 = vld [vmem:[%s6168_s26 + $0xab8] sm:$0xff]  ;;  %1160 = vmatpush.msrb.mxu0 %v341_v41  ;;  %v4722_v41 = vld [vmem:[%s6123_s5 + $0x50] sm:$0xff] }
 0x164   :  { %1180 = vmatpush.msrb.mxu1 %v405_v11  ;;  %v465_v48 = vld [vmem:[%s6168_s26 + $0xcb8] sm:$0xff]  ;;  %1200 = vmatpush.msrb.mxu2 %v469_v12  ;;  %6171 = vst [vmem:[#allocation3_spill] sm:$0xff] %v4693_v32  ;;  %v1304_v40 = vsel %vm1296_vm0, %v4693_v32, 0.0  ;;  %v4728_v11 = vld [vmem:[%s6123_s5 + $0xd0] sm:$0xff]  ;;  %v4734_v12 = vld [vmem:[%s6123_s5 + $0x48] sm:$0xff] }
 0x165   :  { %v533_v50 = vld [vmem:[%s6168_s26 + $0xed8] sm:$0xff]  ;;  %1219 = vmatpush.msrb.mxu3 %v537_v43  ;;  %1161 = vmatpush.msrb.mxu0 %v337_v17  ;;  %6172 = vst [vmem:[#allocation4_spill] sm:$0xff] %v4734_v12  ;;  %v1305_v43 = vrot.slane %v1304_v40, 4  ;;  %v4746_v17 = vld [vmem:[%s6123_s5 + $0x40] sm:$0xff] }
 0x166   :  { %v333_v52 = vld [vmem:[%s6168_s26 + $0x898] sm:$0xff]  ;;  %1181 = vmatpush.msrb.mxu1 %v401_v46  ;;  %1201 = vmatpush.msrb.mxu2 %v465_v48  ;;  %6174 = vst [vmem:[#allocation6_spill] sm:$0xff] %v4746_v17  ;;  %v4752_v46 = vld [vmem:[%s6123_s5 + $0xc0] sm:$0xff] }
 0x167   :  { %v397_v56 = vld [vmem:[%s6168_s26 + $0xa98] sm:$0xff]  ;;  %1220 = vmatpush.msrb.mxu3 %v533_v50  ;;  %1127 = vmatmul.f32.vlgmr.msra.gmra.mxu2 %v3324_v36  ;;  %6175 = vst [vmem:[#allocation7_spill] sm:$0xff] %v4752_v46  ;;  %v1306_v51 = vadd.f32 %v1305_v43, %v1304_v40 }
 0x168   :  { %v461_v57 = vld [vmem:[%s6168_s26 + $0xc98] sm:$0xff]  ;;  %1162 = vmatpush.msrb.mxu0 %v333_v52  ;;  %1182 = vmatpush.msrb.mxu1 %v397_v56  ;;  %v4781_v56 = vld [vmem:[%s6123_s5 + $0x170] sm:$0xff] }
 0x169   :  { %v529_v59 = vld [vmem:[%s6168_s26 + $0xeb8] sm:$0xff]  ;;  %1202 = vmatpush.msrb.mxu2 %v461_v57  ;;  %1087 = vmatmul.f32.vlgmr.msra.gmra.mxu0 %v3326_v37 }
 0x16a   :  { %v329_v61 = vld [vmem:[%s6168_s26 + $0x878] sm:$0xff]  ;;  %1221 = vmatpush.msrb.mxu3 %v529_v59  ;;  %1107 = vmatmul.f32.vlgmr.msra.gmra.mxu1 %v3328_v38  ;;  %v709_v38 = vadd.f32 %v4509_v23, %v689_v2  ;;  %v1307_v59 = vrot.slane %v1306_v51, 2 }
 0x16b   :  { %v393_v63 = vld [vmem:[%s6168_s26 + $0xa78] sm:$0xff]  ;;  %1147 = vmatmul.f32.vlgmr.msra.gmra.mxu3 %v3330_v39  ;;  %1163 = vmatpush.msrb.mxu0 %v329_v61  ;;  %v4800_v61 = vld [vmem:[%s6123_s5 + $0x20] sm:$0xff] }
 0x16c   :  { %v457_v0 = vld [vmem:[%s6168_s26 + $0xc78] sm:$0xff]  ;;  %1183 = vmatpush.msrb.mxu1 %v393_v63  ;;  %v729_v24 = vadd.f32 %v4517_v26, %v709_v38  ;;  %v4664_v26 = vld [vmem:[%s6123_s5 + $0xf0] sm:$0xff]  ;;  %6182 = vst [vmem:[#allocation14_spill] sm:$0xff] %v4800_v61  ;;  %v4811_v63 = vld [vmem:[%s6123_s5 + $0x168] sm:$0xff] }
 0x16d   :  { %v525_v36 = vld [vmem:[%s6168_s26 + $0xe98] sm:$0xff]  ;;  %1203 = vmatpush.msrb.mxu2 %v457_v0 }
 0x16e   :  { %v325_v3 = vld [vmem:[%s6168_s26 + $0x858] sm:$0xff]  ;;  %1222 = vmatpush.msrb.mxu3 %v525_v36  ;;  %v4678_v30 = vadd.f32 %v4538_v34, %v729_v24  ;;  %v1308_v36 = vadd.f32 %v1307_v59, %v1306_v51  ;;  %v4915_v24 = vld [vmem:[%s6123_s5 + $0x120] sm:$0xff] }
 0x16f   :  { %v389_v4 = vld [vmem:[%s6168_s26 + $0xa58] sm:$0xff]  ;;  %1164 = vmatpush.msrb.mxu0 %v325_v3  ;;  %v4829_v3 = vld [vmem:[%s6123_s5 + $0x160] sm:$0xff] }
 0x170   :  { %v453_v37 = vld [vmem:[%s6168_s26 + $0xc58] sm:$0xff]  ;;  %1184 = vmatpush.msrb.mxu1 %v389_v4  ;;  %6170 = vst [vmem:[#allocation2_spill] sm:$0xff] %v4678_v30  ;;  %v1297_v34 = vsel %vm1296_vm0, %v4678_v30, 0.0  ;;  %v4835_v4 = vld [vmem:[%s6123_s5 + $0x10] sm:$0xff] }
 0x171   :  { %v521_v39 = vld [vmem:[%s6168_s26 + $0xe78] sm:$0xff]  ;;  %1204 = vmatpush.msrb.mxu2 %v453_v37  ;;  %v1298_v42 = vrot.slane %v1297_v34, 4  ;;  %6186 = vst [vmem:[#allocation18_spill] sm:$0xff] %v4835_v4 }
 0x172   :  { %v321_v8 = vld [vmem:[%s6168_s26 + $0x838] sm:$0xff]  ;;  %1223 = vmatpush.msrb.mxu3 %v521_v39  ;;  %v4853_v39 = vld [vmem:[%s6123_s5 + $0x8] sm:$0xff] }
 0x173   :  { %v385_v9 = vld [vmem:[%s6168_s26 + $0xa38] sm:$0xff]  ;;  %1165 = vmatpush.msrb.mxu0 %v321_v8  ;;  %v1299_v48 = vadd.f32 %v1298_v42, %v1297_v34  ;;  %6188 = vst [vmem:[#allocation20_spill] sm:$0xff] %v4853_v39  ;;  %v4860_v8 = vld [vmem:[%s6123_s5 + $0x88] sm:$0xff] }
 0x174   :  { %v449_v10 = vld [vmem:[%s6168_s26 + $0xc38] sm:$0xff]  ;;  %1185 = vmatpush.msrb.mxu1 %v385_v9  ;;  %6189 = vst [vmem:[#allocation21_spill] sm:$0xff] %v4860_v8  ;;  %v1309_v9 = vrot.slane %v1308_v36, 1  ;;  %v4933_v34 = vld [vmem:[%s6123_s5 + $0x108] sm:$0xff] }
 0x175   :  { %v517_v13 = vld [vmem:[%s6168_s26 + $0xe58] sm:$0xff]  ;;  %1205 = vmatpush.msrb.mxu2 %v449_v10  ;;  %v1300_v57 = vrot.slane %v1299_v48, 2  ;;  %v4866_v10 = vld [vmem:[%s6123_s5] sm:$0xff] }
 0x176   :  { %v317_v15 = vld [vmem:[%s6168_s26 + $0x818] sm:$0xff]  ;;  %1224 = vmatpush.msrb.mxu3 %v517_v13  ;;  %6190 = vst [vmem:[#allocation22_spill] sm:$0xff] %v4866_v10  ;;  %v4871_v13 = vld [vmem:[%s6123_s5 + $0x150] sm:$0xff] }
 0x177   :  { %v381_v16 = vld [vmem:[%s6168_s26 + $0xa18] sm:$0xff]  ;;  %1166 = vmatpush.msrb.mxu0 %v317_v15  ;;  %v1301_v0 = vadd.f32 %v1300_v57, %v1299_v48  ;;  %v1310_v15 = vadd.f32 %v1309_v9, %v1308_v36  ;;  %v4939_v48 = vld [vmem:[%s6123_s5 + $0x100] sm:$0xff] }
 0x178   :  { %v445_v18 = vld [vmem:[%s6168_s26 + $0xc18] sm:$0xff]  ;;  %1186 = vmatpush.msrb.mxu1 %v381_v16  ;;  %1167 = vmatmul.f32.vlgmr.msrb.gmra.mxu0 %v4243_v47  ;;  %v4675_v47 = vld [vmem:[%s6123_s5 + $0x68] sm:$0xff] }
 0x179   :  { %v513_v19 = vld [vmem:[%s6168_s26 + $0xe38] sm:$0xff]  ;;  %1206 = vmatpush.msrb.mxu2 %v445_v18  ;;  %1187 = vmatmul.f32.vlgmr.msrb.gmra.mxu1 %v4264_v54  ;;  %v4691_v54 = vld [vmem:[%s6123_s5 + $0x60] sm:$0xff]  ;;  %v1302_v7 = vrot.slane %v1301_v0, 1  ;;  %v4885_v16 = vld [vmem:[%s6123_s5 + $0x148] sm:$0xff] }
 0x17a   :  { %v4641_v22 = vld [vmem:[%s6123_s5 + $0x78] sm:$0xff]  ;;  %1225 = vmatpush.msrb.mxu3 %v513_v19  ;;  %1207 = vmatmul.f32.vlgmr.msrb.gmra.mxu2 %v4231_v44  ;;  %v4892_v18 = vld [vmem:[%s6123_s5 + $0x140] sm:$0xff] }
 0x17b   :  { %v4646_v23 = vld [vmem:[%s6123_s5 + $0xf8] sm:$0xff]  ;;  %1325 = vmatpush.msra.mxu0 %v4641_v22  ;;  %v1303_v38 = vadd.f32 %v1302_v7, %v1301_v0  ;;  %v928_v28 = vpop.f32.mrf.mxu0 }
 0x17c   :  { %v509_v25 = vld [vmem:[%s6168_s26 + $0xe18] sm:$0xff]  ;;  %1345 = vmatpush.msra.mxu1 %v4646_v23  ;;  %v948_v40 = vpop.f32.mrf.mxu1 }
 0x17d   :  { %v4669_v44 = vld [vmem:[%s6123_s5 + $0x178] sm:$0xff]  ;;  %1226 = vmatpush.msrb.mxu3 %v509_v25  ;;  %1326 = vmatpush.msra.mxu0 %v4657_v27  ;;  %v949_v42 = vadd.f32 %v948_v40, %v928_v28 }
 0x17e   :  { %1227 = vmatmul.f32.vlgmr.msrb.gmra.mxu3 %v4249_v49  ;;  %1346 = vmatpush.msra.mxu1 %v4664_v26  ;;  %v4700_v49 = vld [vmem:[%s6123_s5 + $0xe0] sm:$0xff]  ;;  %v4706_v33 = vld [vmem:[%s6123_s5 + $0x58] sm:$0xff] }
 0x17f   :  { %1365 = vmatpush.msra.mxu2 %v4669_v44  ;;  %1327 = vmatpush.msra.mxu0 %v4675_v47  ;;  %v4714_v6 = vld [vmem:[%s6123_s5 + $0xd8] sm:$0xff]  ;;  %v968_v43 = vpop.f32.mrf.mxu2 }
 0x180   :  { %1347 = vmatpush.msra.mxu1 %v4685_v31  ;;  %v4758_v50 = vld [vmem:[%s6123_s5 + $0x38] sm:$0xff]  ;;  %v969_v51 = vadd.f32 %v968_v43, %v949_v42  ;;  %v988_v57 = vpop.f32.mrf.mxu3 }
 0x181   :  { %1328 = vmatpush.msra.mxu0 %v4691_v54  ;;  %6176 = vst [vmem:[#allocation8_spill] sm:$0xff] %v4758_v50  ;;  %v4764_v52 = vld [vmem:[%s6123_s5 + $0xb8] sm:$0xff]  ;;  %1366 = vmatpush.msra.mxu2 %v4781_v56 }
 0x182   :  { %1348 = vmatpush.msra.mxu1 %v4700_v49  ;;  %6177 = vst [vmem:[#allocation9_spill] sm:$0xff] %v4764_v52  ;;  %v4817_v1 = vld [vmem:[%s6123_s5 + $0x18] sm:$0xff]  ;;  %v989_v59 = vadd.f32 %v988_v57, %v969_v51  ;;  %v1293_v57 = vld [vmem:[%s6123_s5 + $0x1f0] sm:$0xff] }
 0x183   :  { %1329 = vmatpush.msra.mxu0 %v4706_v33  ;;  %6184 = vst [vmem:[#allocation16_spill] sm:$0xff] %v4817_v1  ;;  %1367 = vmatpush.msra.mxu2 %v4811_v63  ;;  %v4824_v2 = vld [vmem:[%s6123_s5 + $0x98] sm:$0xff] }
 0x184   :  { %1349 = vmatpush.msra.mxu1 %v4714_v6  ;;  %6185 = vst [vmem:[#allocation17_spill] sm:$0xff] %v4824_v2  ;;  %v4847_v37 = vld [vmem:[%s6123_s5 + $0x158] sm:$0xff] }
 0x185   :  { %1330 = vmatpush.msra.mxu0 %v4722_v41  ;;  %1368 = vmatpush.msra.mxu2 %v4829_v3  ;;  %v4898_v19 = vld [vmem:[%s6123_s5 + $0x138] sm:$0xff] }
 0x186   :  { %1350 = vmatpush.msra.mxu1 %v4728_v11  ;;  %v4921_v25 = vld [vmem:[%s6123_s5 + $0x118] sm:$0xff] }
 0x187   :  { %1331 = vmatpush.msra.mxu0 %v4734_v12  ;;  %1369 = vmatpush.msra.mxu2 %v4847_v37  ;;  %v1294_v51 = vld [vmem:[%s6123_s5 + $0x1f8] sm:$0xff] }
 0x188   :  { %1351 = vmatpush.msra.mxu1 %v4740_v45  ;;  %1385 = vmatpush.msra.mxu3 %v1294_v51 }
 0x189   :  { %1332 = vmatpush.msra.mxu0 %v4746_v17  ;;  %1370 = vmatpush.msra.mxu2 %v4871_v13 }
 0x18a   :  { %1352 = vmatpush.msra.mxu1 %v4752_v46  ;;  %1386 = vmatpush.msra.mxu3 %v1293_v57 }
 0x18b   :  { %1333 = vmatpush.msra.mxu0 %v4758_v50  ;;  %1371 = vmatpush.msra.mxu2 %v4885_v16 }
 0x18c   :  { %1353 = vmatpush.msra.mxu1 %v4764_v52 }
 0x18d   :  { %1334 = vmatpush.msra.mxu0 %v4770_v53  ;;  %1372 = vmatpush.msra.mxu2 %v4892_v18 }
 0x18e   :  { %1354 = vmatpush.msra.mxu1 %v4776_v55 }
 0x18f   :  { %1335 = vmatpush.msra.mxu0 %v4787_v58  ;;  %1373 = vmatpush.msra.mxu2 %v4898_v19 }
 0x190   :  { %1355 = vmatpush.msra.mxu1 %v4794_v60 }
 0x191   :  { %1336 = vmatpush.msra.mxu0 %v4800_v61  ;;  %1374 = vmatpush.msra.mxu2 %v4904_v20 }
 0x192   :  { %1356 = vmatpush.msra.mxu1 %v4806_v62 }
 0x193   :  { %1337 = vmatpush.msra.mxu0 %v4817_v1  ;;  %1375 = vmatpush.msra.mxu2 %v4910_v21 }
 0x194   :  { %1357 = vmatpush.msra.mxu1 %v4824_v2 }
 0x195   :  { %1338 = vmatpush.msra.mxu0 %v4835_v4  ;;  %1376 = vmatpush.msra.mxu2 %v4915_v24 }
 0x196   :  { %1358 = vmatpush.msra.mxu1 %v4842_v5 }
 0x197   :  { %1339 = vmatpush.msra.mxu0 %v4853_v39  ;;  %1377 = vmatpush.msra.mxu2 %v4921_v25 }
 0x198   :  { %1359 = vmatpush.msra.mxu1 %v4860_v8 }
 0x199   :  { %1340 = vmatpush.msra.mxu0 %v4866_v10  ;;  %1378 = vmatpush.msra.mxu2 %v4927_v29 }
 0x19a   :  { %1360 = vmatpush.msra.mxu1 %v4877_v14  ;;  %1341 = vmatmul.f32.vlgmr.msra.gmra.mxu0 %v1303_v38 }
 0x19b   :  { %1361 = vmatmul.f32.vlgmr.msra.gmra.mxu1 %v1310_v15  ;;  %1379 = vmatpush.msra.mxu2 %v4933_v34 }
 0x19d   :  { %1380 = vmatpush.msra.mxu2 %v4939_v48 }
 0x1ab   :  { %v1008_v0 = vpop.f32.mrf.mxu0 }
 0x1ac   :  { %v1009_v36 = vadd.f32 %v1008_v0, %v989_v59  ;;  %v1292_v59 = vld [vmem:[%s6123_s5 + $0x1e8] sm:$0xff]  ;;  %v1286_v0 = vld [vmem:[%s6123_s5 + $0x1b8] sm:$0xff] }
 0x1ad   :  { %1387 = vmatpush.msra.mxu3 %v1292_v59 }
 0x1b2   :  { %v1028_v7 = vpop.f32.mrf.mxu1 }
 0x1b3   :  { %v1029_v9 = vadd.f32 %v1028_v7, %v1009_v36  ;;  %v1285_v36 = vld [vmem:[%s6123_s5 + $0x1b0] sm:$0xff]  ;;  %v1284_v7 = vld [vmem:[%s6123_s5 + $0x1a8] sm:$0xff] }
 0x1b5   :  { %v1048_v38 = vpop.f32.mrf.mxu2 }
 0x1b6   :  { %v1049_v15 = vadd.f32 %v1048_v38, %v1029_v9  ;;  %v1068_v28 = vpop.f32.mrf.mxu3  ;;  %v1283_v9 = vld [vmem:[%s6123_s5 + $0x1a0] sm:$0xff]  ;;  %v1282_v38 = vld [vmem:[%s6123_s5 + $0x198] sm:$0xff] }
 0x1b8   :  { %v4943_v40 = vadd.f32 %v1068_v28, %v1049_v15  ;;  %v1281_v15 = vld [vmem:[%s6123_s5 + $0x190] sm:$0xff]  ;;  %v1280_v28 = vld [vmem:[%s6123_s5 + $0x188] sm:$0xff] }
 0x1ba   :  { %6192 = vst [vmem:[#allocation24_spill] sm:$0xff] %v4943_v40  ;;  %v1311_v32 = vsel %vm1296_vm0, %v4943_v40, 0.0 }
 0x1bb   :  { %v1312_v30 = vrot.slane %v1311_v32, 4 }
 0x1bd   :  { %v1313_v14 = vadd.f32 %v1312_v30, %v1311_v32  ;;  %v1291_v30 = vld [vmem:[%s6123_s5 + $0x1e0] sm:$0xff]  ;;  %v1290_v32 = vld [vmem:[%s6123_s5 + $0x1d8] sm:$0xff] }
 0x1be   :  { %1388 = vmatpush.msra.mxu3 %v1291_v30 }
 0x1bf   :  { %v1314_v10 = vrot.slane %v1313_v14, 2 }
 0x1c0   :  { %1389 = vmatpush.msra.mxu3 %v1290_v32 }
 0x1c1   :  { %v1315_v42 = vadd.f32 %v1314_v10, %v1313_v14  ;;  %v1288_v10 = vld [vmem:[%s6123_s5 + $0x1c8] sm:$0xff]  ;;  %v1287_v14 = vld [vmem:[%s6123_s5 + $0x1c0] sm:$0xff] }
 0x1c3   :  { %v1316_v43 = vrot.slane %v1315_v42, 1 }
 0x1c5   :  { %v1317_v8 = vadd.f32 %v1316_v43, %v1315_v42  ;;  %v1279_v43 = vld [vmem:[%s6123_s5 + $0x180] sm:$0xff] }
 0x1c7   :  { %1381 = vmatmul.f32.vlgmr.msra.gmra.mxu2 %v1317_v8  ;;  %v1289_v8 = vld [vmem:[%s6123_s5 + $0x1d0] sm:$0xff] }
 0x1c8   :  { %1390 = vmatpush.msra.mxu3 %v1289_v8 }
 0x1ca   :  { %1391 = vmatpush.msra.mxu3 %v1288_v10 }
 0x1cc   :  { %1392 = vmatpush.msra.mxu3 %v1287_v14 }
 0x1ce   :  { %1393 = vmatpush.msra.mxu3 %v1286_v0 }
 0x1d0   :  { %1394 = vmatpush.msra.mxu3 %v1285_v36 }
 0x1d2   :  { %1395 = vmatpush.msra.mxu3 %v1284_v7 }
 0x1d4   :  { %1396 = vmatpush.msra.mxu3 %v1283_v9 }
 0x1d6   :  { %1397 = vmatpush.msra.mxu3 %v1282_v38 }
 0x1d8   :  { %1398 = vmatpush.msra.mxu3 %v1281_v15 }
 0x1da   :  { %1399 = vmatpush.msra.mxu3 %v1280_v28 }
 0x1dc   :  { %1400 = vmatpush.msra.mxu3 %v1279_v43 }
 0x1e6   :  { %v1088_v42 = vpop.f32.mrf.mxu0 }
 0x1e7   :  { %v1108_v40 = vpop.f32.mrf.mxu1 }
 0x1e8   :  { %v1109_v39 = vadd.f32 %v1108_v40, %v1088_v42 }
 0x1ea   :  { %v1128_v5 = vpop.f32.mrf.mxu2 }
 0x1eb   :  { %v1129_v4 = vadd.f32 %v1128_v5, %v1109_v39  ;;  %v6212_v39 = vld [vmem:[#allocation23_spill] sm:$0xff] }
 0x1ee   :  { %v1148_v2 = vpop.f32.mrf.mxu3 }
 0x1ef   :  { %v1149_v1 = vadd.f32 %v1148_v2, %v1129_v4  ;;  %v1410_v2 = vld.sshfl [vmem:[#allocation1 + $0x10] sm:$0xff pattern:$0x73625140]  ;;  %v1411_v4 = vld.sshfl [vmem:[#allocation1 + $0x18] sm:$0xff pattern:$0x73625140] }
 0x1f0   :  { %2887 = vmatpush.msk.msrb.mxu2 %vm1296_vm0, %v1410_v2  ;;  %2889 = vmatpush.msk.msrb.mxu3 %vm1296_vm0, %v1411_v4 }
 0x1f2   :  { %1584 = vmatpush.msra.mxu2 %v4669_v44  ;;  %v1408_v44 = vld.sshfl [vmem:[#allocation1] sm:$0xff pattern:$0x73625140] }
 0x1f3   :  { %2883 = vmatpush.msk.msrb.mxu0 %vm1296_vm0, %v1408_v44 }
 0x1f4   :  { %1585 = vmatpush.msra.mxu2 %v4781_v56 }
 0x1f5   :  { %v1168_v62 = vpop.f32.mrf.mxu0  ;;  %1544 = vmatpush.msra.mxu0 %v4641_v22  ;;  %v6193_v22 = vld [vmem:[#allocation4_spill] sm:$0xff] }
 0x1f6   :  { %v1169_v61 = vadd.f32 %v1168_v62, %v1149_v1  ;;  %v1188_v60 = vpop.f32.mrf.mxu1  ;;  %1586 = vmatpush.msra.mxu2 %v4811_v63  ;;  %v6209_v63 = vld [vmem:[#allocation20_spill] sm:$0xff]  ;;  %v6210_v1 = vld [vmem:[#allocation21_spill] sm:$0xff] }
 0x1f7   :  { %1545 = vmatpush.msra.mxu0 %v4657_v27  ;;  %v6195_v27 = vld [vmem:[#allocation6_spill] sm:$0xff] }
 0x1f8   :  { %v1189_v58 = vadd.f32 %v1188_v60, %v1169_v61  ;;  %1587 = vmatpush.msra.mxu2 %v4829_v3  ;;  %v6208_v60 = vld [vmem:[#allocation19_spill] sm:$0xff] }
 0x1f9   :  { %1546 = vmatpush.msra.mxu0 %v4675_v47  ;;  %v6197_v47 = vld [vmem:[#allocation8_spill] sm:$0xff] }
 0x1fa   :  { %1588 = vmatpush.msra.mxu2 %v4847_v37  ;;  %v6211_v37 = vld [vmem:[#allocation22_spill] sm:$0xff] }
 0x1fb   :  { %1547 = vmatpush.msra.mxu0 %v4691_v54  ;;  %v6199_v54 = vld [vmem:[#allocation10_spill] sm:$0xff] }
 0x1fc   :  { %1589 = vmatpush.msra.mxu2 %v4871_v13 }
 0x1fd   :  { %v1208_v55 = vpop.f32.mrf.mxu2  ;;  %1548 = vmatpush.msra.mxu0 %v4706_v33  ;;  %v6201_v33 = vld [vmem:[#allocation12_spill] sm:$0xff] }
 0x1fe   :  { %v1209_v53 = vadd.f32 %v1208_v55, %v1189_v58  ;;  %1590 = vmatpush.msra.mxu2 %v4885_v16  ;;  %v6206_v55 = vld [vmem:[#allocation17_spill] sm:$0xff]  ;;  %v6207_v58 = vld [vmem:[#allocation18_spill] sm:$0xff] }
 0x1ff   :  { %1549 = vmatpush.msra.mxu0 %v4722_v41 }
 0x200   :  { %1591 = vmatpush.msra.mxu2 %v4892_v18 }
 0x201   :  { %v1228_v52 = vpop.f32.mrf.mxu3  ;;  %1550 = vmatpush.msra.mxu0 %v6193_v22 }
 0x202   :  { %v4995_v50 = vadd.f32 %v1228_v52, %v1209_v53  ;;  %1592 = vmatpush.msra.mxu2 %v4898_v19  ;;  %v6205_v53 = vld [vmem:[#allocation16_spill] sm:$0xff] }
 0x203   :  { %1551 = vmatpush.msra.mxu0 %v6195_v27 }
 0x204   :  { %v1318_v46 = vsel %vm1296_vm0, %v4995_v50, 0.0  ;;  %1593 = vmatpush.msra.mxu2 %v4904_v20  ;;  %v6213_v20 = vld [vmem:[#allocation2_spill] sm:$0xff] }
 0x205   :  { %v1319_v17 = vrot.slane %v1318_v46, 4  ;;  %1552 = vmatpush.msra.mxu0 %v6197_v47 }
 0x206   :  { %1594 = vmatpush.msra.mxu2 %v4910_v21 }
 0x207   :  { %v1320_v45 = vadd.f32 %v1319_v17, %v1318_v46  ;;  %1553 = vmatpush.msra.mxu0 %v6199_v54  ;;  %v6204_v17 = vld [vmem:[#allocation15_spill] sm:$0xff] }
 0x208   :  { %1595 = vmatpush.msra.mxu2 %v4915_v24  ;;  %v6214_v24 = vld [vmem:[#allocation3_spill] sm:$0xff] }
 0x209   :  { %v1321_v12 = vrot.slane %v1320_v45, 2  ;;  %1554 = vmatpush.msra.mxu0 %v6201_v33 }
 0x20a   :  { %1596 = vmatpush.msra.mxu2 %v4921_v25 }
 0x20b   :  { %v1322_v40 = vadd.f32 %v1321_v12, %v1320_v45  ;;  %v1409_v12 = vld.sshfl [vmem:[#allocation1 + $0x8] sm:$0xff pattern:$0x73625140] }
 0x20c   :  { %1597 = vmatpush.msra.mxu2 %v4927_v29  ;;  %2885 = vmatpush.msk.msrb.mxu1 %vm1296_vm0, %v1409_v12  ;;  %1641 = vst [vmem:[#allocation1] ss:$4 sm:$0xff] %v3322_v35  ;;  %v6203_v45 = vld [vmem:[#allocation14_spill] sm:$0xff] }
 0x20d   :  { %v1323_v42 = vrot.slane %v1322_v40, 1  ;;  %1555 = vmatpush.msra.mxu0 %v6203_v45 }
 0x20e   :  { %1598 = vmatpush.msra.mxu2 %v4933_v34  ;;  %1564 = vmatpush.msra.mxu1 %v4646_v23  ;;  %v6194_v23 = vld [vmem:[#allocation5_spill] sm:$0xff] }
 0x20f   :  { %v1324_v5 = vadd.f32 %v1323_v42, %v1322_v40  ;;  %1556 = vmatpush.msra.mxu0 %v6205_v53 }
 0x210   :  { %1599 = vmatpush.msra.mxu2 %v4939_v48  ;;  %1565 = vmatpush.msra.mxu1 %v4664_v26  ;;  %v6196_v26 = vld [vmem:[#allocation7_spill] sm:$0xff] }
 0x211   :  { %1401 = vmatmul.f32.vlgmr.msra.gmra.mxu3 %v1324_v5  ;;  %1557 = vmatpush.msra.mxu0 %v6207_v58 }
 0x212   :  { %1604 = vmatpush.msra.mxu3 %v1294_v51  ;;  %1566 = vmatpush.msra.mxu1 %v4685_v31  ;;  %v6198_v31 = vld [vmem:[#allocation9_spill] sm:$0xff] }
 0x213   :  { %1558 = vmatpush.msra.mxu0 %v6209_v63 }
 0x214   :  { %1605 = vmatpush.msra.mxu3 %v1293_v57  ;;  %1567 = vmatpush.msra.mxu1 %v4700_v49  ;;  %v6200_v49 = vld [vmem:[#allocation11_spill] sm:$0xff] }
 0x215   :  { %1559 = vmatpush.msra.mxu0 %v6211_v37 }
 0x216   :  { %1606 = vmatpush.msra.mxu3 %v1292_v59  ;;  %1568 = vmatpush.msra.mxu1 %v4714_v6  ;;  %v6202_v6 = vld [vmem:[#allocation13_spill] sm:$0xff] }
 0x217   :  { %v1342_v41 = vpop.f32.mrf.mxu0 }
 0x218   :  { %1607 = vmatpush.msra.mxu3 %v1291_v30  ;;  %1569 = vmatpush.msra.mxu1 %v4728_v11  ;;  %v1362_v11 = vpop.f32.mrf.mxu1 }
 0x219   :  { %v1363_v52 = vadd.f32 %v1362_v11, %v1342_v41 }
 0x21a   :  { %1608 = vmatpush.msra.mxu3 %v1290_v32  ;;  %1570 = vmatpush.msra.mxu1 %v6194_v23 }
 0x21c   :  { %1609 = vmatpush.msra.mxu3 %v1289_v8  ;;  %1571 = vmatpush.msra.mxu1 %v6196_v26 }
 0x21e   :  { %1610 = vmatpush.msra.mxu3 %v1288_v10  ;;  %1572 = vmatpush.msra.mxu1 %v6198_v31 }
 0x220   :  { %1611 = vmatpush.msra.mxu3 %v1287_v14  ;;  %1573 = vmatpush.msra.mxu1 %v6200_v49 }
 0x222   :  { %1612 = vmatpush.msra.mxu3 %v1286_v0  ;;  %1574 = vmatpush.msra.mxu1 %v6202_v6 }
 0x224   :  { %1613 = vmatpush.msra.mxu3 %v1285_v36  ;;  %1575 = vmatpush.msra.mxu1 %v6204_v17  ;;  %v6215_v36 = vld [vmem:[#allocation24_spill] sm:$0xff]  ;;  %v1644_v17 = vld.sshfl [vmem:[#allocation1 + $0x10] sm:$0xff pattern:$0x73625140] }
 0x226   :  { %1614 = vmatpush.msra.mxu3 %v1284_v7  ;;  %1576 = vmatpush.msra.mxu1 %v6206_v55  ;;  %v1642_v55 = vld.sshfl [vmem:[#allocation1] sm:$0xff pattern:$0x73625140] }
 0x228   :  { %1615 = vmatpush.msra.mxu3 %v1283_v9  ;;  %1577 = vmatpush.msra.mxu1 %v6208_v60 }
 0x22a   :  { %1616 = vmatpush.msra.mxu3 %v1282_v38  ;;  %1578 = vmatpush.msra.mxu1 %v6210_v1  ;;  %v5078_v1 = vld [vmem:[%s6124_s8] sm:$0xff] }
 0x22c   :  { %1617 = vmatpush.msra.mxu3 %v1281_v15  ;;  %1579 = vmatpush.msra.mxu1 %v6212_v39 }
 0x22e   :  { %1618 = vmatpush.msra.mxu3 %v1280_v28 }
 0x230   :  { %1619 = vmatpush.msra.mxu3 %v1279_v43 }
 0x24a   :  { %v1382_v46 = vpop.f32.mrf.mxu2 }
 0x24b   :  { %v1383_v56 = vadd.f32 %v1382_v46, %v1363_v52  ;;  %v1645_v46 = vld.sshfl [vmem:[#allocation1 + $0x18] sm:$0xff pattern:$0x73625140] }
 0x294   :  { %v1402_v61 = vpop.f32.mrf.mxu3 }
 0x295   :  { %v1403_v62 = vadd.f32 %v1402_v61, %v1383_v56  ;;  %v1643_v56 = vld.sshfl [vmem:[#allocation1 + $0x8] sm:$0xff pattern:$0x73625140] }
 0x296   :  { %1745 = vst [vmem:[#allocation1] ss:$4 sm:$0xff] %v3322_v35 }
 0x297   :  { %v5050_v3 = vmul.f32 0.001953125, %v1403_v62 }
 0x299   :  { %2884 = vmatmul.msk.f32.vlgmr.msrb.gmra.mxu0 %vm1412_vm1, %v5050_v3  ;;  %2886 = vmatmul.msk.f32.vlgmr.msrb.gmra.mxu1 %vm1412_vm1, %v5050_v3 }
 0x29a   :  { %2888 = vmatmul.msk.f32.vlgmr.msrb.gmra.mxu2 %vm1412_vm1, %v5050_v3  ;;  %2890 = vmatmul.msk.f32.vlgmr.msrb.gmra.mxu3 %vm1412_vm1, %v5050_v3 }
 0x29b   :  { %2895 = vmatpush.msk.msrb.mxu2 %vm1296_vm0, %v1644_v17  ;;  %2897 = vmatpush.msk.msrb.mxu3 %vm1296_vm0, %v1645_v46  ;;  %v1941_v17 = vld [vmem:[%s6126_s2 + $0x280] sm:$0xff] }
 0x29c   :  { %2891 = vmatpush.msk.msrb.mxu0 %vm1296_vm0, %v1642_v55  ;;  %2893 = vmatpush.msk.msrb.mxu1 %vm1296_vm0, %v1643_v56  ;;  %v1973_v46 = vld [vmem:[%s6126_s2 + $0x380] sm:$0xff]  ;;  %v1939_v55 = vld [vmem:[%s6126_s2 + $0x270] sm:$0xff] }
 0x29d   :  { %v1748_v37 = vld.sshfl [vmem:[#allocation1 + $0x10] sm:$0xff pattern:$0x73625140]  ;;  %v1749_v39 = vld.sshfl [vmem:[#allocation1 + $0x18] sm:$0xff pattern:$0x73625140] }
 0x29e   :  { %v1747_v35 = vld.sshfl [vmem:[#allocation1 + $0x8] sm:$0xff pattern:$0x73625140]  ;;  %v1971_v56 = vld [vmem:[%s6126_s2 + $0x370] sm:$0xff] }
 0x316   :  { %v1441_v13 = vpop.f32.mrf.mxu0  ;;  %v1461_v16 = vpop.f32.mrf.mxu1 }
 0x317   :  { %v1504_v18 = vperm.slane %v1441_v13, 0  ;;  %v1505_v19 = vperm.slane %v1461_v16, 0  ;;  %v1746_v16 = vld.sshfl [vmem:[#allocation1] sm:$0xff pattern:$0x73625140] }
 0x318   :  { %2238 = vst [vmem:[#allocation1] ss:$2 sm:$0xff] %v5078_v1 }
 0x319   :  { %v1508_v21 = vsub.f32 %v6213_v20, %v1504_v18  ;;  %v1509_v25 = vsub.f32 %v6214_v24, %v1505_v19 }
 0x31b   :  { %v1512_v29 = vmul.f32 %v1508_v21, %v1508_v21  ;;  %v1513_v34 = vmul.f32 %v1509_v25, %v1509_v25 }
 0x31d   :  { %v1516_v48 = vsel %vm1296_vm0, %v1512_v29, 0.0  ;;  %v1523_v51 = vsel %vm1296_vm0, %v1513_v34, 0.0  ;;  %v1481_v57 = vpop.f32.mrf.mxu2  ;;  %v1501_v59 = vpop.f32.mrf.mxu3 }
 0x31e   :  { %v1517_v30 = vrot.slane %v1516_v48, 4  ;;  %v1524_v32 = vrot.slane %v1523_v51, 4  ;;  %v1506_v8 = vperm.slane %v1481_v57, 0  ;;  %v1507_v10 = vperm.slane %v1501_v59, 0 }
 0x320   :  { %v1518_v14 = vadd.f32 %v1517_v30, %v1516_v48  ;;  %v1525_v0 = vadd.f32 %v1524_v32, %v1523_v51  ;;  %v1510_v7 = vsub.f32 %v6215_v36, %v1506_v8  ;;  %v1511_v9 = vsub.f32 %v4995_v50, %v1507_v10  ;;  %v1625_v48 = vld [vmem:[%s6125_s11] sm:$0x1]  ;;  %v1891_v30 = vld [vmem:[%s6126_s2 + $0xf0] sm:$0xff] }
 0x321   :  { %v1923_v32 = vld [vmem:[%s6126_s2 + $0x1f0] sm:$0xff] }
 0x322   :  { %v1519_v38 = vrot.slane %v1518_v14, 2  ;;  %v1526_v15 = vrot.slane %v1525_v0, 2  ;;  %v1514_v28 = vmul.f32 %v1510_v7, %v1510_v7  ;;  %v1515_v43 = vmul.f32 %v1511_v9, %v1511_v9  ;;  %v1955_v8 = vld [vmem:[%s6126_s2 + $0x2f0] sm:$0xff]  ;;  %v1953_v9 = vld [vmem:[%s6126_s2 + $0x2e0] sm:$0xff] }
 0x323   :  { %v1987_v10 = vld [vmem:[%s6126_s2 + $0x3f0] sm:$0xff] }
 0x324   :  { %v1520_v40 = vadd.f32 %v1519_v38, %v1518_v14  ;;  %v1527_v42 = vadd.f32 %v1526_v15, %v1525_v0  ;;  %v1530_v5 = vsel %vm1296_vm0, %v1514_v28, 0.0  ;;  %v1537_v2 = vsel %vm1296_vm0, %v1515_v43, 0.0  ;;  %v1889_v14 = vld [vmem:[%s6126_s2 + $0xe0] sm:$0xff]  ;;  %v1887_v28 = vld [vmem:[%s6126_s2 + $0xd0] sm:$0xff] }
 0x325   :  { %v1531_v4 = vrot.slane %v1530_v5, 4  ;;  %v1538_v44 = vrot.slane %v1537_v2, 4  ;;  %v1921_v0 = vld [vmem:[%s6126_s2 + $0x1e0] sm:$0xff]  ;;  %v1951_v43 = vld [vmem:[%s6126_s2 + $0x2d0] sm:$0xff] }
 0x326   :  { %v1521_v12 = vrot.slane %v1520_v40, 1  ;;  %v1528_v22 = vrot.slane %v1527_v42, 1  ;;  %v1985_v38 = vld [vmem:[%s6126_s2 + $0x3e0] sm:$0xff] }
 0x327   :  { %v1532_v23 = vadd.f32 %v1531_v4, %v1530_v5  ;;  %v1539_v27 = vadd.f32 %v1538_v44, %v1537_v2  ;;  %v1638_v15 = vld [vmem:[%s6127_s12] sm:$0x1] }
 0x328   :  { %v1522_v26 = vadd.f32 %v1521_v12, %v1520_v40  ;;  %v1529_v47 = vadd.f32 %v1528_v22, %v1527_v42  ;;  %v1983_v40 = vld [vmem:[%s6126_s2 + $0x3d0] sm:$0xff]  ;;  %v1885_v5 = vld [vmem:[%s6126_s2 + $0xc0] sm:$0xff] }
 0x329   :  { %v1533_v31 = vrot.slane %v1532_v23, 2  ;;  %v1540_v54 = vrot.slane %v1539_v27, 2  ;;  %v1917_v2 = vld [vmem:[%s6126_s2 + $0x1c0] sm:$0xff]  ;;  %v1883_v12 = vld [vmem:[%s6126_s2 + $0xb0] sm:$0xff] }
 0x32a   :  { %1560 = vmatmul.f32.vlgmr.msra.gmra.mxu0 %v1522_v26  ;;  %1580 = vmatmul.f32.vlgmr.msra.gmra.mxu1 %v1529_v47  ;;  %v1949_v4 = vld [vmem:[%s6126_s2 + $0x2c0] sm:$0xff]  ;;  %v1915_v22 = vld [vmem:[%s6126_s2 + $0x1b0] sm:$0xff] }
 0x32b   :  { %v1534_v49 = vadd.f32 %v1533_v31, %v1532_v23  ;;  %v1541_v33 = vadd.f32 %v1540_v54, %v1539_v27  ;;  %2899 = vmatpush.msk.msra.mxu0 %vm1296_vm0, %v1746_v16  ;;  %2901 = vmatpush.msk.msra.mxu1 %vm1296_vm0, %v1747_v35  ;;  %v1981_v44 = vld [vmem:[%s6126_s2 + $0x3c0] sm:$0xff]  ;;  %v1947_v23 = vld [vmem:[%s6126_s2 + $0x2b0] sm:$0xff] }
 0x32c   :  { %v1979_v27 = vld [vmem:[%s6126_s2 + $0x3b0] sm:$0xff]  ;;  %v1881_v26 = vld [vmem:[%s6126_s2 + $0xa0] sm:$0xff] }
 0x32d   :  { %v1535_v6 = vrot.slane %v1534_v49, 1  ;;  %v1542_v41 = vrot.slane %v1541_v33, 1  ;;  %v1913_v47 = vld [vmem:[%s6126_s2 + $0x1a0] sm:$0xff] }
 0x32e   :  { %v1945_v31 = vld [vmem:[%s6126_s2 + $0x2a0] sm:$0xff] }
 0x32f   :  { %v1536_v11 = vadd.f32 %v1535_v6, %v1534_v49  ;;  %v1543_v45 = vadd.f32 %v1542_v41, %v1541_v33  ;;  %v1977_v54 = vld [vmem:[%s6126_s2 + $0x3a0] sm:$0xff]  ;;  %v1879_v49 = vld [vmem:[%s6126_s2 + $0x90] sm:$0xff] }
 0x330   :  { %v1911_v33 = vld [vmem:[%s6126_s2 + $0x190] sm:$0xff]  ;;  %v1869_v16 = vld [vmem:[%s6126_s2 + $0x40] sm:$0xff] }
 0x331   :  { %1600 = vmatmul.f32.vlgmr.msra.gmra.mxu2 %v1536_v11  ;;  %1620 = vmatmul.f32.vlgmr.msra.gmra.mxu3 %v1543_v45  ;;  %v1943_v6 = vld [vmem:[%s6126_s2 + $0x290] sm:$0xff]  ;;  %v1877_v11 = vld [vmem:[%s6126_s2 + $0x80] sm:$0xff] }
 0x332   :  { %2903 = vmatpush.msk.msra.mxu2 %vm1296_vm0, %v1748_v37  ;;  %2905 = vmatpush.msk.msra.mxu3 %vm1296_vm0, %v1749_v39  ;;  %v1975_v41 = vld [vmem:[%s6126_s2 + $0x390] sm:$0xff]  ;;  %v1909_v45 = vld [vmem:[%s6126_s2 + $0x180] sm:$0xff] }
 0x333   :  { %v1903_v37 = vld [vmem:[%s6126_s2 + $0x150] sm:$0xff]  ;;  %v1901_v35 = vld [vmem:[%s6126_s2 + $0x140] sm:$0xff] }
 0x334   :  { %v1935_v39 = vld [vmem:[%s6126_s2 + $0x250] sm:$0xff] }
 0x3a7   :  { %v1561_v52 = vpop.f32.mrf.mxu0  ;;  %v1581_v53 = vpop.f32.mrf.mxu1 }
 0x3a8   :  { %v1582_v58 = vadd.f32 %v1581_v53, %v1561_v52  ;;  %v1875_v52 = vld [vmem:[%s6126_s2 + $0x70] sm:$0xff] }
 0x3a9   :  { %v1907_v53 = vld [vmem:[%s6126_s2 + $0x170] sm:$0xff] }
 0x3b4   :  { %v1601_v60 = vpop.f32.mrf.mxu2  ;;  %v1621_v62 = vpop.f32.mrf.mxu3 }
 0x3b5   :  { %v1602_v61 = vadd.f32 %v1601_v60, %v1582_v58  ;;  %v1873_v58 = vld [vmem:[%s6126_s2 + $0x60] sm:$0xff] }
 0x3b6   :  { %v1905_v60 = vld [vmem:[%s6126_s2 + $0x160] sm:$0xff] }
 0x3b7   :  { %v1622_v63 = vadd.f32 %v1621_v62, %v1602_v61  ;;  %v1937_v61 = vld [vmem:[%s6126_s2 + $0x260] sm:$0xff] }
 0x3b8   :  { %v1969_v62 = vld [vmem:[%s6126_s2 + $0x360] sm:$0xff] }
 0x3b9   :  { %v1624_v13 = vmul.f32 0.001953125, %v1622_v63  ;;  %v1871_v63 = vld [vmem:[%s6126_s2 + $0x50] sm:$0xff] }
 0x3bb   :  { %v1626_v18 = vadd.f32 1e-05, %v1624_v13  ;;  %v1967_v13 = vld [vmem:[%s6126_s2 + $0x350] sm:$0xff] }
 0x3bd   :  { %2922 = vrsqrt.f32 %v1626_v18  ;;  %vm1633_vm3 = vweird.f32 %v1626_v18 }
 0x3c3   :  { %v2923_v19 = vpop.eup %2922 }
 0x3c4   :  { %v1628_v21 = vmul.f32 %v2923_v19, %v1626_v18  ;;  %vm1634_vm2 = vweird.f32 %v2923_v19  ;;  %v1933_v18 = vld [vmem:[%s6126_s2 + $0x240] sm:$0xff] }
 0x3c5   :  { %vm1635_vm4 = vmor %vm1633_vm3, %vm1634_vm2 }
 0x3c6   :  { %v1629_v25 = vmul.f32 %v2923_v19, %v1628_v21  ;;  %v1867_v21 = vld [vmem:[%s6126_s2 + $0x30] sm:$0xff] }
 0x3c8   :  { %v1630_v29 = vmul.f32 0.5, %v1629_v25  ;;  %v1899_v25 = vld [vmem:[%s6126_s2 + $0x130] sm:$0xff] }
 0x3ca   :  { %v1631_v34 = vsub.f32 1.5, %v1630_v29  ;;  %v1931_v29 = vld [vmem:[%s6126_s2 + $0x230] sm:$0xff] }
 0x3cc   :  { %v1632_v51 = vmul.f32 %v2923_v19, %v1631_v34  ;;  %v1963_v34 = vld [vmem:[%s6126_s2 + $0x330] sm:$0xff] }
 0x3ce   :  { %v1636_v57 = vsel %vm1635_vm4, %v2923_v19, %v1632_v51  ;;  %v1965_v19 = vld [vmem:[%s6126_s2 + $0x340] sm:$0xff] }
 0x3cf   :  { %v1637_v59 = vmul.f32 %v1636_v57, %v1625_v48  ;;  %v1865_v48 = vld [vmem:[%s6126_s2 + $0x20] sm:$0xff] }
 0x3d0   :  { %v1897_v51 = vld [vmem:[%s6126_s2 + $0x120] sm:$0xff] }
 0x3d1   :  { %2892 = vmatmul.msk.f32.vlgmr.msrb.gmra.mxu0 %vm1412_vm1, %v1637_v59  ;;  %2894 = vmatmul.msk.f32.vlgmr.msrb.gmra.mxu1 %vm1412_vm1, %v1637_v59  ;;  %v1639_v7 = vmul.f32 %v1637_v59, %v5050_v3  ;;  %v1919_v3 = vld [vmem:[%s6126_s2 + $0x1d0] sm:$0xff]  ;;  %v1929_v57 = vld [vmem:[%s6126_s2 + $0x220] sm:$0xff] }
 0x3d2   :  { %2896 = vmatmul.msk.f32.vlgmr.msrb.gmra.mxu2 %vm1412_vm1, %v1637_v59  ;;  %2898 = vmatmul.msk.f32.vlgmr.msrb.gmra.mxu3 %vm1412_vm1, %v1637_v59  ;;  %v1961_v59 = vld [vmem:[%s6126_s2 + $0x320] sm:$0xff] }
 0x3d3   :  { %1989 = vmatpush.msrb.mxu0 %v1891_v30  ;;  %2009 = vmatpush.msrb.mxu1 %v1923_v32  ;;  %v1640_v42 = vsub.f32 %v1638_v15, %v1639_v7  ;;  %v1863_v30 = vld [vmem:[%s6126_s2 + $0x10] sm:$0xff]  ;;  %v1892_v7 = vld [vmem:[%s6126_s2 + $0xf8] sm:$0xff]  ;;  %v1957_v15 = vld [vmem:[%s6126_s2 + $0x300] sm:$0xff] }
 0x3d4   :  { %2029 = vmatpush.msrb.mxu2 %v1955_v8  ;;  %2049 = vmatpush.msrb.mxu3 %v1987_v10  ;;  %v1895_v32 = vld [vmem:[%s6126_s2 + $0x110] sm:$0xff] }
 0x3d5   :  { %1990 = vmatpush.msrb.mxu0 %v1889_v14  ;;  %2010 = vmatpush.msrb.mxu1 %v1921_v0  ;;  %v1927_v8 = vld [vmem:[%s6126_s2 + $0x210] sm:$0xff]  ;;  %v1861_v14 = vld [vmem:[%s6126_s2] sm:$0xff] }
 0x3d6   :  { %2030 = vmatpush.msrb.mxu2 %v1953_v9  ;;  %2050 = vmatpush.msrb.mxu3 %v1985_v38  ;;  %v1959_v10 = vld [vmem:[%s6126_s2 + $0x310] sm:$0xff]  ;;  %v1893_v0 = vld [vmem:[%s6126_s2 + $0x100] sm:$0xff]  ;;  %v1924_v9 = vld [vmem:[%s6126_s2 + $0x1f8] sm:$0xff] }
 0x3d7   :  { %1991 = vmatpush.msrb.mxu0 %v1887_v28  ;;  %2011 = vmatpush.msrb.mxu1 %v1919_v3  ;;  %v1925_v38 = vld [vmem:[%s6126_s2 + $0x200] sm:$0xff]  ;;  %v1890_v28 = vld [vmem:[%s6126_s2 + $0xe8] sm:$0xff] }
 0x3d8   :  { %2031 = vmatpush.msrb.mxu2 %v1951_v43  ;;  %2051 = vmatpush.msrb.mxu3 %v1983_v40  ;;  %v1922_v3 = vld [vmem:[%s6126_s2 + $0x1e8] sm:$0xff]  ;;  %v1956_v43 = vld [vmem:[%s6126_s2 + $0x2f8] sm:$0xff] }
 0x3d9   :  { %2900 = vmatmul.msk.f32.vlgmr.msra.gmra.mxu0 %vm1412_vm1, %v1640_v42  ;;  %2902 = vmatmul.msk.f32.vlgmr.msra.gmra.mxu1 %vm1412_vm1, %v1640_v42  ;;  %v1988_v40 = vld [vmem:[%s6126_s2 + $0x3f8] sm:$0xff] }
 0x3da   :  { %2904 = vmatmul.msk.f32.vlgmr.msra.gmra.mxu2 %vm1412_vm1, %v1640_v42  ;;  %2906 = vmatmul.msk.f32.vlgmr.msra.gmra.mxu3 %vm1412_vm1, %v1640_v42  ;;  %v1888_v42 = vld [vmem:[%s6126_s2 + $0xd8] sm:$0xff]  ;;  %vm2598_vm1 = vcmask 64512  }
 0x3db   :  { %1992 = vmatpush.msrb.mxu0 %v1885_v5  ;;  %2012 = vmatpush.msrb.mxu1 %v1917_v2  ;;  %v1920_v5 = vld [vmem:[%s6126_s2 + $0x1d8] sm:$0xff]  ;;  %v1886_v2 = vld [vmem:[%s6126_s2 + $0xc8] sm:$0xff] }
 0x3dc   :  { %2032 = vmatpush.msrb.mxu2 %v1949_v4  ;;  %2052 = vmatpush.msrb.mxu3 %v1981_v44  ;;  %v1918_v4 = vld [vmem:[%s6126_s2 + $0x1c8] sm:$0xff]  ;;  %v1884_v44 = vld [vmem:[%s6126_s2 + $0xb8] sm:$0xff] }
 0x3dd   :  { %1993 = vmatpush.msrb.mxu0 %v1883_v12  ;;  %2013 = vmatpush.msrb.mxu1 %v1915_v22  ;;  %v1916_v12 = vld [vmem:[%s6126_s2 + $0x1b8] sm:$0xff]  ;;  %v1954_v22 = vld [vmem:[%s6126_s2 + $0x2e8] sm:$0xff] }
 0x3de   :  { %2033 = vmatpush.msrb.mxu2 %v1947_v23  ;;  %2053 = vmatpush.msrb.mxu3 %v1979_v27  ;;  %v1986_v23 = vld [vmem:[%s6126_s2 + $0x3e8] sm:$0xff] }
 0x3df   :  { %1994 = vmatpush.msrb.mxu0 %v1881_v26  ;;  %2014 = vmatpush.msrb.mxu1 %v1913_v47  ;;  %v1882_v27 = vld [vmem:[%s6126_s2 + $0xa8] sm:$0xff]  ;;  %v1952_v47 = vld [vmem:[%s6126_s2 + $0x2d8] sm:$0xff] }
 0x3e0   :  { %2034 = vmatpush.msrb.mxu2 %v1945_v31  ;;  %2054 = vmatpush.msrb.mxu3 %v1977_v54  ;;  %v1914_v26 = vld [vmem:[%s6126_s2 + $0x1a8] sm:$0xff]  ;;  %v1984_v31 = vld [vmem:[%s6126_s2 + $0x3d8] sm:$0xff] }
 0x3e1   :  { %1995 = vmatpush.msrb.mxu0 %v1879_v49  ;;  %2015 = vmatpush.msrb.mxu1 %v1911_v33  ;;  %v1880_v54 = vld [vmem:[%s6126_s2 + $0x98] sm:$0xff]  ;;  %v1950_v33 = vld [vmem:[%s6126_s2 + $0x2c8] sm:$0xff] }
 0x3e2   :  { %2035 = vmatpush.msrb.mxu2 %v1943_v6  ;;  %2055 = vmatpush.msrb.mxu3 %v1975_v41  ;;  %v1912_v49 = vld [vmem:[%s6126_s2 + $0x198] sm:$0xff]  ;;  %v1982_v6 = vld [vmem:[%s6126_s2 + $0x3c8] sm:$0xff] }
 0x3e3   :  { %1996 = vmatpush.msrb.mxu0 %v1877_v11  ;;  %2016 = vmatpush.msrb.mxu1 %v1909_v45  ;;  %v1878_v41 = vld [vmem:[%s6126_s2 + $0x88] sm:$0xff]  ;;  %v1948_v45 = vld [vmem:[%s6126_s2 + $0x2b8] sm:$0xff] }
 0x3e4   :  { %2036 = vmatpush.msrb.mxu2 %v1941_v17  ;;  %2056 = vmatpush.msrb.mxu3 %v1973_v46  ;;  %v1910_v11 = vld [vmem:[%s6126_s2 + $0x188] sm:$0xff]  ;;  %v1980_v17 = vld [vmem:[%s6126_s2 + $0x3b8] sm:$0xff] }
 0x3e5   :  { %1997 = vmatpush.msrb.mxu0 %v1875_v52  ;;  %2017 = vmatpush.msrb.mxu1 %v1907_v53  ;;  %v1876_v46 = vld [vmem:[%s6126_s2 + $0x78] sm:$0xff]  ;;  %v1946_v53 = vld [vmem:[%s6126_s2 + $0x2a8] sm:$0xff] }
 0x3e6   :  { %2037 = vmatpush.msrb.mxu2 %v1939_v55  ;;  %2057 = vmatpush.msrb.mxu3 %v1971_v56  ;;  %v1908_v52 = vld [vmem:[%s6126_s2 + $0x178] sm:$0xff]  ;;  %v1978_v55 = vld [vmem:[%s6126_s2 + $0x3a8] sm:$0xff] }
 0x3e7   :  { %1998 = vmatpush.msrb.mxu0 %v1873_v58  ;;  %2018 = vmatpush.msrb.mxu1 %v1905_v60  ;;  %v1874_v56 = vld [vmem:[%s6126_s2 + $0x68] sm:$0xff]  ;;  %v1944_v60 = vld [vmem:[%s6126_s2 + $0x298] sm:$0xff] }
 0x3e8   :  { %2038 = vmatpush.msrb.mxu2 %v1937_v61  ;;  %2058 = vmatpush.msrb.mxu3 %v1969_v62  ;;  %v1906_v58 = vld [vmem:[%s6126_s2 + $0x168] sm:$0xff]  ;;  %v1976_v61 = vld [vmem:[%s6126_s2 + $0x398] sm:$0xff] }
 0x3e9   :  { %1999 = vmatpush.msrb.mxu0 %v1871_v63  ;;  %2019 = vmatpush.msrb.mxu1 %v1903_v37  ;;  %v1872_v62 = vld [vmem:[%s6126_s2 + $0x58] sm:$0xff]  ;;  %v1942_v37 = vld [vmem:[%s6126_s2 + $0x288] sm:$0xff] }
 0x3ea   :  { %2039 = vmatpush.msrb.mxu2 %v1935_v39  ;;  %2059 = vmatpush.msrb.mxu3 %v1967_v13  ;;  %v1904_v63 = vld [vmem:[%s6126_s2 + $0x158] sm:$0xff]  ;;  %v1974_v39 = vld [vmem:[%s6126_s2 + $0x388] sm:$0xff] }
 0x3eb   :  { %2000 = vmatpush.msrb.mxu0 %v1869_v16  ;;  %2020 = vmatpush.msrb.mxu1 %v1901_v35  ;;  %v1870_v13 = vld [vmem:[%s6126_s2 + $0x48] sm:$0xff]  ;;  %v1940_v35 = vld [vmem:[%s6126_s2 + $0x278] sm:$0xff] }
 0x3ec   :  { %2040 = vmatpush.msrb.mxu2 %v1933_v18  ;;  %2060 = vmatpush.msrb.mxu3 %v1965_v19  ;;  %v1902_v16 = vld [vmem:[%s6126_s2 + $0x148] sm:$0xff]  ;;  %v1972_v18 = vld [vmem:[%s6126_s2 + $0x378] sm:$0xff] }
 0x3ed   :  { %2001 = vmatpush.msrb.mxu0 %v1867_v21  ;;  %2021 = vmatpush.msrb.mxu1 %v1899_v25  ;;  %v1868_v19 = vld [vmem:[%s6126_s2 + $0x38] sm:$0xff]  ;;  %v1938_v25 = vld [vmem:[%s6126_s2 + $0x268] sm:$0xff] }
 0x3ee   :  { %2041 = vmatpush.msrb.mxu2 %v1931_v29  ;;  %2061 = vmatpush.msrb.mxu3 %v1963_v34  ;;  %v1900_v21 = vld [vmem:[%s6126_s2 + $0x138] sm:$0xff]  ;;  %v1970_v29 = vld [vmem:[%s6126_s2 + $0x368] sm:$0xff] }
 0x3ef   :  { %2002 = vmatpush.msrb.mxu0 %v1865_v48  ;;  %2022 = vmatpush.msrb.mxu1 %v1897_v51  ;;  %v1866_v34 = vld [vmem:[%s6126_s2 + $0x28] sm:$0xff]  ;;  %v1936_v51 = vld [vmem:[%s6126_s2 + $0x258] sm:$0xff] }
 0x3f0   :  { %2042 = vmatpush.msrb.mxu2 %v1929_v57  ;;  %2062 = vmatpush.msrb.mxu3 %v1961_v59  ;;  %v1898_v48 = vld [vmem:[%s6126_s2 + $0x128] sm:$0xff]  ;;  %v1968_v57 = vld [vmem:[%s6126_s2 + $0x358] sm:$0xff] }
 0x3f1   :  { %2003 = vmatpush.msrb.mxu0 %v1863_v30  ;;  %2023 = vmatpush.msrb.mxu1 %v1895_v32  ;;  %v1864_v59 = vld [vmem:[%s6126_s2 + $0x18] sm:$0xff]  ;;  %v1934_v32 = vld [vmem:[%s6126_s2 + $0x248] sm:$0xff] }
 0x3f2   :  { %2043 = vmatpush.msrb.mxu2 %v1927_v8  ;;  %2063 = vmatpush.msrb.mxu3 %v1959_v10  ;;  %v1896_v30 = vld [vmem:[%s6126_s2 + $0x118] sm:$0xff]  ;;  %v1966_v8 = vld [vmem:[%s6126_s2 + $0x348] sm:$0xff] }
 0x3f3   :  { %2004 = vmatpush.msrb.mxu0 %v1861_v14  ;;  %2024 = vmatpush.msrb.mxu1 %v1893_v0  ;;  %v1862_v10 = vld [vmem:[%s6126_s2 + $0x8] sm:$0xff]  ;;  %v1932_v0 = vld [vmem:[%s6126_s2 + $0x238] sm:$0xff] }
 0x3f4   :  { %2044 = vmatpush.msrb.mxu2 %v1925_v38  ;;  %2064 = vmatpush.msrb.mxu3 %v1957_v15  ;;  %v1894_v14 = vld [vmem:[%s6126_s2 + $0x108] sm:$0xff]  ;;  %v1928_v15 = vld [vmem:[%s6126_s2 + $0x218] sm:$0xff] }
 0x3f5   :  { %2069 = vmatpush.msra.mxu0 %v1892_v7  ;;  %2089 = vmatpush.msra.mxu1 %v1924_v9  ;;  %v1964_v7 = vld [vmem:[%s6126_s2 + $0x338] sm:$0xff]  ;;  %v1930_v9 = vld [vmem:[%s6126_s2 + $0x228] sm:$0xff] }
 0x3f6   :  { %2109 = vmatpush.msra.mxu2 %v1956_v43  ;;  %2129 = vmatpush.msra.mxu3 %v1988_v40  ;;  %v1962_v38 = vld [vmem:[%s6126_s2 + $0x328] sm:$0xff] }
 0x3f7   :  { %2070 = vmatpush.msra.mxu0 %v1890_v28  ;;  %2090 = vmatpush.msra.mxu1 %v1922_v3  ;;  %v1960_v28 = vld [vmem:[%s6126_s2 + $0x318] sm:$0xff]  ;;  %v1926_v3 = vld [vmem:[%s6126_s2 + $0x208] sm:$0xff] }
 0x3f8   :  { %2110 = vmatpush.msra.mxu2 %v1954_v22  ;;  %2130 = vmatpush.msra.mxu3 %v1986_v23  ;;  %v1958_v43 = vld [vmem:[%s6126_s2 + $0x308] sm:$0xff] }
 0x3f9   :  { %2071 = vmatpush.msra.mxu0 %v1888_v42  ;;  %2091 = vmatpush.msra.mxu1 %v1920_v5 }
 0x3fa   :  { %2111 = vmatpush.msra.mxu2 %v1952_v47  ;;  %2131 = vmatpush.msra.mxu3 %v1984_v31 }
 0x3fb   :  { %2072 = vmatpush.msra.mxu0 %v1886_v2  ;;  %2092 = vmatpush.msra.mxu1 %v1918_v4 }
 0x3fc   :  { %2112 = vmatpush.msra.mxu2 %v1950_v33  ;;  %2132 = vmatpush.msra.mxu3 %v1982_v6 }
 0x3fd   :  { %2073 = vmatpush.msra.mxu0 %v1884_v44  ;;  %2093 = vmatpush.msra.mxu1 %v1916_v12 }
 0x3fe   :  { %2113 = vmatpush.msra.mxu2 %v1948_v45  ;;  %2133 = vmatpush.msra.mxu3 %v1980_v17 }
 0x3ff   :  { %2074 = vmatpush.msra.mxu0 %v1882_v27  ;;  %2094 = vmatpush.msra.mxu1 %v1914_v26 }
 0x400   :  { %2114 = vmatpush.msra.mxu2 %v1946_v53  ;;  %2134 = vmatpush.msra.mxu3 %v1978_v55 }
 0x401   :  { %2075 = vmatpush.msra.mxu0 %v1880_v54  ;;  %2095 = vmatpush.msra.mxu1 %v1912_v49 }
 0x402   :  { %2115 = vmatpush.msra.mxu2 %v1944_v60  ;;  %2135 = vmatpush.msra.mxu3 %v1976_v61 }
 0x403   :  { %2076 = vmatpush.msra.mxu0 %v1878_v41  ;;  %2096 = vmatpush.msra.mxu1 %v1910_v11  ;;  %v5489_v11 = vld [vmem:[%s6128_s7 + $0x78] sm:$0xff] }
 0x404   :  { %2116 = vmatpush.msra.mxu2 %v1942_v37  ;;  %2136 = vmatpush.msra.mxu3 %v1974_v39  ;;  %v5508_v37 = vld [vmem:[%s6128_s7 + $0xf8] sm:$0xff]  ;;  %v5513_v39 = vld [vmem:[%s6128_s7 + $0x60] sm:$0xff] }
 0x405   :  { %2077 = vmatpush.msra.mxu0 %v1876_v46  ;;  %2097 = vmatpush.msra.mxu1 %v1908_v52 }
 0x406   :  { %2117 = vmatpush.msra.mxu2 %v1940_v35  ;;  %2137 = vmatpush.msra.mxu3 %v1972_v18  ;;  %v5532_v35 = vld [vmem:[%s6128_s7 + $0xf0] sm:$0xff]  ;;  %v5537_v18 = vld [vmem:[%s6128_s7 + $0x48] sm:$0xff] }
 0x407   :  { %2078 = vmatpush.msra.mxu0 %v1874_v56  ;;  %2098 = vmatpush.msra.mxu1 %v1906_v58 }
 0x408   :  { %2118 = vmatpush.msra.mxu2 %v1938_v25  ;;  %2138 = vmatpush.msra.mxu3 %v1970_v29  ;;  %v5556_v25 = vld [vmem:[%s6128_s7 + $0xe0] sm:$0xff]  ;;  %v5563_v29 = vld [vmem:[%s6128_s7 + $0x38] sm:$0xff] }
 0x409   :  { %2079 = vmatpush.msra.mxu0 %v1872_v62  ;;  %2099 = vmatpush.msra.mxu1 %v1904_v63 }
 0x40a   :  { %2119 = vmatpush.msra.mxu2 %v1936_v51  ;;  %2139 = vmatpush.msra.mxu3 %v1968_v57  ;;  %v5580_v51 = vld [vmem:[%s6128_s7 + $0xd0] sm:$0xff]  ;;  %v5587_v57 = vld [vmem:[%s6128_s7 + $0x28] sm:$0xff] }
 0x40b   :  { %2080 = vmatpush.msra.mxu0 %v1870_v13  ;;  %2100 = vmatpush.msra.mxu1 %v1902_v16  ;;  %v5520_v13 = vld [vmem:[%s6128_s7 + $0x58] sm:$0xff]  ;;  %v5527_v16 = vld [vmem:[%s6128_s7 + $0x50] sm:$0xff] }
 0x40c   :  { %2120 = vmatpush.msra.mxu2 %v1934_v32  ;;  %2140 = vmatpush.msra.mxu3 %v1966_v8  ;;  %v5604_v32 = vld [vmem:[%s6128_s7 + $0xc0] sm:$0xff]  ;;  %v5611_v8 = vld [vmem:[%s6128_s7 + $0x18] sm:$0xff] }
 0x40d   :  { %2081 = vmatpush.msra.mxu0 %v1868_v19  ;;  %2101 = vmatpush.msra.mxu1 %v1900_v21  ;;  %v5544_v19 = vld [vmem:[%s6128_s7 + $0xe8] sm:$0xff]  ;;  %v5551_v21 = vld [vmem:[%s6128_s7 + $0x40] sm:$0xff] }
 0x40e   :  { %2121 = vmatpush.msra.mxu2 %v1932_v0  ;;  %2141 = vmatpush.msra.mxu3 %v1964_v7  ;;  %v5628_v0 = vld [vmem:[%s6128_s7 + $0xb0] sm:$0xff]  ;;  %v5635_v7 = vld [vmem:[%s6128_s7 + $0x8] sm:$0xff] }
 0x40f   :  { %2082 = vmatpush.msra.mxu0 %v1866_v34  ;;  %2102 = vmatpush.msra.mxu1 %v1898_v48  ;;  %v5568_v34 = vld [vmem:[%s6128_s7 + $0xd8] sm:$0xff]  ;;  %v5575_v48 = vld [vmem:[%s6128_s7 + $0x30] sm:$0xff] }
 0x410   :  { %2122 = vmatpush.msra.mxu2 %v1930_v9  ;;  %2142 = vmatpush.msra.mxu3 %v1962_v38  ;;  %v5640_v9 = vld [vmem:[%s6128_s7 + $0xa8] sm:$0xff]  ;;  %v5647_v38 = vld [vmem:[%s6128_s7] sm:$0xff] }
 0x411   :  { %2083 = vmatpush.msra.mxu0 %v1864_v59  ;;  %2103 = vmatpush.msra.mxu1 %v1896_v30  ;;  %v5592_v59 = vld [vmem:[%s6128_s7 + $0xc8] sm:$0xff]  ;;  %v5599_v30 = vld [vmem:[%s6128_s7 + $0x20] sm:$0xff] }
 0x412   :  { %2123 = vmatpush.msra.mxu2 %v1928_v15  ;;  %2143 = vmatpush.msra.mxu3 %v1960_v28  ;;  %v5652_v15 = vld [vmem:[%s6128_s7 + $0xa0] sm:$0xff]  ;;  %v5659_v28 = vld [vmem:[%s6128_s7 + $0x98] sm:$0xff] }
 0x413   :  { %2084 = vmatpush.msra.mxu0 %v1862_v10  ;;  %2104 = vmatpush.msra.mxu1 %v1894_v14  ;;  %v5616_v10 = vld [vmem:[%s6128_s7 + $0xb8] sm:$0xff]  ;;  %v5623_v14 = vld [vmem:[%s6128_s7 + $0x10] sm:$0xff] }
 0x414   :  { %2124 = vmatpush.msra.mxu2 %v1926_v3  ;;  %2144 = vmatpush.msra.mxu3 %v1958_v43  ;;  %v5665_v3 = vld [vmem:[%s6128_s7 + $0x90] sm:$0xff]  ;;  %v5670_v43 = vld [vmem:[%s6128_s7 + $0x88] sm:$0xff] }
 0x44e   :  { %v1674_v40 = vpop.f32.mrf.mxu0  ;;  %v1694_v42 = vpop.f32.mrf.mxu1 }
 0x44f   :  { %v1737_v5 = vperm.slane %v1674_v40, 0  ;;  %v1738_v2 = vperm.slane %v1694_v42, 0  ;;  %v5676_v40 = vld [vmem:[%s6128_s7 + $0x80] sm:$0xff] }
 0x451   :  { %v1741_v23 = vmul.f32 %v1737_v5, %v6213_v20  ;;  %v1742_v27 = vmul.f32 %v1738_v2, %v6214_v24 }
 0x455   :  { %v1714_v4 = vpop.f32.mrf.mxu2  ;;  %v1734_v44 = vpop.f32.mrf.mxu3 }
 0x456   :  { %v1778_v12 = vpop.f32.mrf.mxu0  ;;  %v1798_v22 = vpop.f32.mrf.mxu1  ;;  %v1739_v49 = vperm.slane %v1714_v4, 0  ;;  %v1740_v33 = vperm.slane %v1734_v44, 0 }
 0x457   :  { %v1841_v26 = vperm.slane %v1778_v12, 0  ;;  %v1842_v47 = vperm.slane %v1798_v22, 0 }
 0x458   :  { %v1743_v24 = vmul.f32 %v1739_v49, %v6215_v36  ;;  %v1744_v52 = vmul.f32 %v1740_v33, %v4995_v50  ;;  %v5497_v50 = vld [vmem:[%s6128_s7 + $0x70] sm:$0xff]  ;;  %v5502_v36 = vld [vmem:[%s6128_s7 + $0x68] sm:$0xff] }
 0x459   :  { %v1845_v31 = vadd.f32 %v1841_v26, %v1741_v23  ;;  %v1846_v54 = vadd.f32 %v1842_v47, %v1742_v27 }
 0x45b   :  { %v1853_v6 = vmul.f32 0.2, %v1845_v31  ;;  %v1854_v41 = vmul.f32 0.2, %v1846_v54  ;;  %vm1849_vm5 = vcmp.ge.f32.partialorder %v1845_v31, 0.0  ;;  %vm1850_vm6 = vcmp.ge.f32.partialorder %v1846_v54, 0.0 }
 0x45d   :  { %v1818_v45 = vpop.f32.mrf.mxu2  ;;  %v1838_v17 = vpop.f32.mrf.mxu3  ;;  %v1857_v20 = vsel %vm1849_vm5, %v1845_v31, %v1853_v6  ;;  %v1858_v46 = vsel %vm1850_vm6, %v1846_v54, %v1854_v41  ;;  %vm2874_vm6 = vcmask 1045508  }
 0x45e   :  { %v1843_v53 = vperm.slane %v1818_v45, 0  ;;  %v1844_v55 = vperm.slane %v1838_v17, 0  ;;  %2005 = vmatmul.f32.vlgmr.msrb.gmra.mxu0 %v1857_v20  ;;  %2025 = vmatmul.f32.vlgmr.msrb.gmra.mxu1 %v1858_v46 }
 0x45f   :  { %2196 = vmatpush.msrb.mxu0 %v5489_v11  ;;  %2216 = vmatpush.msrb.mxu1 %v5508_v37 }
 0x460   :  { %v1847_v56 = vadd.f32 %v1843_v53, %v1743_v24  ;;  %v1848_v58 = vadd.f32 %v1844_v55, %v1744_v52 }
 0x461   :  { %2197 = vmatpush.msrb.mxu0 %v5497_v50  ;;  %2217 = vmatpush.msrb.mxu1 %v5532_v35 }
 0x462   :  { %v1855_v60 = vmul.f32 0.2, %v1847_v56  ;;  %v1856_v61 = vmul.f32 0.2, %v1848_v58  ;;  %vm1851_vm7 = vcmp.ge.f32.partialorder %v1847_v56, 0.0  ;;  %vm1852_vm8 = vcmp.ge.f32.partialorder %v1848_v58, 0.0 }
 0x463   :  { %2198 = vmatpush.msrb.mxu0 %v5502_v36  ;;  %2218 = vmatpush.msrb.mxu1 %v5544_v19 }
 0x464   :  { %v1859_v62 = vsel %vm1851_vm7, %v1847_v56, %v1855_v60  ;;  %v1860_v63 = vsel %vm1852_vm8, %v1848_v58, %v1856_v61  ;;  %v2239_v61 = vld.sshfl [vmem:[#allocation1] sm:$0xff pattern:$0x75316420] }
 0x465   :  { %2045 = vmatmul.f32.vlgmr.msrb.gmra.mxu2 %v1859_v62  ;;  %2065 = vmatmul.f32.vlgmr.msrb.gmra.mxu3 %v1860_v63 }
 0x466   :  { %2085 = vmatmul.f32.vlgmr.msra.gmra.mxu0 %v1857_v20  ;;  %2105 = vmatmul.f32.vlgmr.msra.gmra.mxu1 %v1858_v46 }
 0x467   :  { %2199 = vmatpush.msrb.mxu0 %v5513_v39  ;;  %2219 = vmatpush.msrb.mxu1 %v5556_v25 }
 0x468   :  { %2907 = vmatpush.msk.msrb.mxu2 %vm2245_vm9, %v2239_v61 }
 0x469   :  { %2200 = vmatpush.msrb.mxu0 %v5520_v13  ;;  %2220 = vmatpush.msrb.mxu1 %v5568_v34 }
 0x46b   :  { %2201 = vmatpush.msrb.mxu0 %v5527_v16  ;;  %2221 = vmatpush.msrb.mxu1 %v5580_v51 }
 0x46d   :  { %2125 = vmatmul.f32.vlgmr.msra.gmra.mxu2 %v1859_v62  ;;  %2145 = vmatmul.f32.vlgmr.msra.gmra.mxu3 %v1860_v63  ;;  %v2240_v62 = vld.sshfl [vmem:[#allocation1 + $0x8] sm:$0xff pattern:$0x75316420] }
 0x46e   :  { %2202 = vmatpush.msrb.mxu0 %v5537_v18  ;;  %2222 = vmatpush.msrb.mxu1 %v5592_v59  ;;  %2367 = vst [vmem:[#allocation1] ss:$2 sm:$0xff] %v5078_v1 }
 0x46f   :  { %2909 = vmatpush.msk.msrb.mxu3 %vm2245_vm9, %v2240_v62  ;;  %2310 = vmatpush.msra.mxu2 %v5489_v11  ;;  %v2364_v62 = vld [vmem:[%s6131_s14] sm:$0x1] }
 0x470   :  { %2203 = vmatpush.msrb.mxu0 %v5551_v21  ;;  %2223 = vmatpush.msrb.mxu1 %v5604_v32 }
 0x471   :  { %2330 = vmatpush.msra.mxu3 %v5508_v37  ;;  %2311 = vmatpush.msra.mxu2 %v5497_v50 }
 0x472   :  { %2204 = vmatpush.msrb.mxu0 %v5563_v29  ;;  %2224 = vmatpush.msrb.mxu1 %v5616_v10 }
 0x473   :  { %2331 = vmatpush.msra.mxu3 %v5532_v35  ;;  %2312 = vmatpush.msra.mxu2 %v5502_v36 }
 0x474   :  { %2205 = vmatpush.msrb.mxu0 %v5575_v48  ;;  %2225 = vmatpush.msrb.mxu1 %v5628_v0 }
 0x475   :  { %2332 = vmatpush.msra.mxu3 %v5544_v19  ;;  %2313 = vmatpush.msra.mxu2 %v5513_v39 }
 0x476   :  { %2206 = vmatpush.msrb.mxu0 %v5587_v57  ;;  %2226 = vmatpush.msrb.mxu1 %v5640_v9 }
 0x477   :  { %2333 = vmatpush.msra.mxu3 %v5556_v25  ;;  %2314 = vmatpush.msra.mxu2 %v5520_v13 }
 0x478   :  { %2207 = vmatpush.msrb.mxu0 %v5599_v30  ;;  %2227 = vmatpush.msrb.mxu1 %v5652_v15 }
 0x479   :  { %2334 = vmatpush.msra.mxu3 %v5568_v34  ;;  %2315 = vmatpush.msra.mxu2 %v5527_v16 }
 0x47a   :  { %2208 = vmatpush.msrb.mxu0 %v5611_v8  ;;  %2228 = vmatpush.msrb.mxu1 %v5659_v28 }
 0x47b   :  { %2335 = vmatpush.msra.mxu3 %v5580_v51  ;;  %2316 = vmatpush.msra.mxu2 %v5537_v18 }
 0x47c   :  { %2209 = vmatpush.msrb.mxu0 %v5623_v14  ;;  %2229 = vmatpush.msrb.mxu1 %v5665_v3 }
 0x47d   :  { %2336 = vmatpush.msra.mxu3 %v5592_v59  ;;  %2317 = vmatpush.msra.mxu2 %v5551_v21 }
 0x47e   :  { %2210 = vmatpush.msrb.mxu0 %v5635_v7  ;;  %2230 = vmatpush.msrb.mxu1 %v5670_v43 }
 0x47f   :  { %2337 = vmatpush.msra.mxu3 %v5604_v32  ;;  %2318 = vmatpush.msra.mxu2 %v5563_v29 }
 0x480   :  { %2211 = vmatpush.msrb.mxu0 %v5647_v38  ;;  %2231 = vmatpush.msrb.mxu1 %v5676_v40 }
 0x481   :  { %2338 = vmatpush.msra.mxu3 %v5616_v10  ;;  %2319 = vmatpush.msra.mxu2 %v5575_v48 }
 0x483   :  { %2339 = vmatpush.msra.mxu3 %v5628_v0  ;;  %2320 = vmatpush.msra.mxu2 %v5587_v57 }
 0x485   :  { %2340 = vmatpush.msra.mxu3 %v5640_v9  ;;  %2321 = vmatpush.msra.mxu2 %v5599_v30  ;;  %v2368_v9 = vld.sshfl [vmem:[#allocation1] sm:$0xff pattern:$0x75316420] }
 0x486   :  { %2911 = vmatpush.msk.msra.mxu0 %vm2245_vm9, %v2368_v9 }
 0x487   :  { %2341 = vmatpush.msra.mxu3 %v5652_v15  ;;  %2322 = vmatpush.msra.mxu2 %v5611_v8 }
 0x489   :  { %2342 = vmatpush.msra.mxu3 %v5659_v28  ;;  %2323 = vmatpush.msra.mxu2 %v5623_v14 }
 0x48b   :  { %2343 = vmatpush.msra.mxu3 %v5665_v3  ;;  %2324 = vmatpush.msra.mxu2 %v5635_v7 }
 0x48d   :  { %2344 = vmatpush.msra.mxu3 %v5670_v43  ;;  %2325 = vmatpush.msra.mxu2 %v5647_v38  ;;  %v2369_v38 = vld.sshfl [vmem:[#allocation1 + $0x8] sm:$0xff pattern:$0x75316420] }
 0x48e   :  { %2913 = vmatpush.msk.msra.mxu1 %vm2245_vm9, %v2369_v38  ;;  %2421 = vst [vmem:[#allocation1] ss:$2 sm:$0xff] %v5078_v1  ;;  %v2495_v1 = vld [vmem:[%s6129_s3 + $0x70] sm:$0xff] }
 0x48f   :  { %2345 = vmatpush.msra.mxu3 %v5676_v40 }
 0x495   :  { %v2422_v43 = vld.sshfl [vmem:[#allocation1] sm:$0xff pattern:$0x75316420]  ;;  %v2423_v40 = vld.sshfl [vmem:[#allocation1 + $0x8] sm:$0xff pattern:$0x75316420] }
 0x4db   :  { %v2006_v42 = vpop.f32.mrf.mxu0  ;;  %v2026_v5 = vpop.f32.mrf.mxu1 }
 0x4dc   :  { %v2027_v2 = vadd.f32 %v2026_v5, %v2006_v42  ;;  %v2496_v5 = vld [vmem:[%s6129_s3 + $0x78] sm:$0xff] }
 0x4e3   :  { %v2086_v23 = vpop.f32.mrf.mxu0  ;;  %v2106_v27 = vpop.f32.mrf.mxu1 }
 0x4e4   :  { %v2107_v31 = vadd.f32 %v2106_v27, %v2086_v23  ;;  %v2510_v23 = vld [vmem:[%s6129_s3 + $0xe8] sm:$0xff]  ;;  %v2493_v27 = vld [vmem:[%s6129_s3 + $0x60] sm:$0xff] }
 0x4e8   :  { %v2046_v4 = vpop.f32.mrf.mxu2  ;;  %v2066_v44 = vpop.f32.mrf.mxu3 }
 0x4e9   :  { %v2047_v12 = vadd.f32 %v2046_v4, %v2027_v2  ;;  %v2512_v2 = vld [vmem:[%s6129_s3 + $0xf8] sm:$0xff]  ;;  %v2511_v4 = vld [vmem:[%s6129_s3 + $0xf0] sm:$0xff] }
 0x4eb   :  { %v5680_v22 = vadd.f32 %v2066_v44, %v2047_v12  ;;  %v2494_v12 = vld [vmem:[%s6129_s3 + $0x68] sm:$0xff] }
 0x4ed   :  { %v2182_v26 = vsel %vm1296_vm0, %v5680_v22, 0.0 }
 0x4ee   :  { %v2183_v47 = vrot.slane %v2182_v26, 4 }
 0x4f0   :  { %v2184_v54 = vadd.f32 %v2183_v47, %v2182_v26  ;;  %v2126_v49 = vpop.f32.mrf.mxu2  ;;  %v2146_v41 = vpop.f32.mrf.mxu3  ;;  %v2509_v26 = vld [vmem:[%s6129_s3 + $0xe0] sm:$0xff]  ;;  %v2492_v47 = vld [vmem:[%s6129_s3 + $0x58] sm:$0xff] }
 0x4f1   :  { %v2127_v33 = vadd.f32 %v2126_v49, %v2107_v31  ;;  %v2508_v31 = vld [vmem:[%s6129_s3 + $0xd8] sm:$0xff]  ;;  %v2507_v49 = vld [vmem:[%s6129_s3 + $0xd0] sm:$0xff] }
 0x4f2   :  { %v2185_v6 = vrot.slane %v2184_v54, 2 }
 0x4f3   :  { %v5684_v45 = vadd.f32 %v2146_v41, %v2127_v33  ;;  %v2506_v41 = vld [vmem:[%s6129_s3 + $0xc8] sm:$0xff] }
 0x4f4   :  { %v2186_v17 = vadd.f32 %v2185_v6, %v2184_v54  ;;  %v2491_v54 = vld [vmem:[%s6129_s3 + $0x50] sm:$0xff]  ;;  %v2490_v6 = vld [vmem:[%s6129_s3 + $0x48] sm:$0xff] }
 0x4f5   :  { %v2189_v20 = vsel %vm1296_vm0, %v5684_v45, 0.0 }
 0x4f6   :  { %v2190_v46 = vrot.slane %v2189_v20, 4  ;;  %v2187_v24 = vrot.slane %v2186_v17, 1 }
 0x4f8   :  { %v2191_v52 = vadd.f32 %v2190_v46, %v2189_v20  ;;  %v2188_v53 = vadd.f32 %v2187_v24, %v2186_v17  ;;  %v2489_v20 = vld [vmem:[%s6129_s3 + $0x40] sm:$0xff] }
 0x4f9   :  { %v2505_v46 = vld [vmem:[%s6129_s3 + $0xc0] sm:$0xff] }
 0x4fa   :  { %v2192_v55 = vrot.slane %v2191_v52, 2  ;;  %2212 = vmatmul.f32.vlgmr.msrb.gmra.mxu0 %v2188_v53 }
 0x4fb   :  { %2915 = vmatpush.msk.msrb.mxu0 %vm2245_vm9, %v2422_v43 }
 0x4fc   :  { %v2193_v56 = vadd.f32 %v2192_v55, %v2191_v52  ;;  %v2351_v55 = vld [vmem:[%s6130_s13] sm:$0x1] }
 0x4fe   :  { %v2194_v58 = vrot.slane %v2193_v56, 1 }
 0x500   :  { %v2195_v60 = vadd.f32 %v2194_v58, %v2193_v56 }
 0x502   :  { %2232 = vmatmul.f32.vlgmr.msrb.gmra.mxu1 %v2195_v60 }
 0x503   :  { %2917 = vmatpush.msk.msrb.mxu1 %vm2245_vm9, %v2423_v40 }
 0x577   :  { %v2213_v11 = vpop.f32.mrf.mxu0 }
 0x57f   :  { %v2233_v63 = vpop.f32.mrf.mxu1 }
 0x580   :  { %v2234_v50 = vadd.f32 %v2233_v63, %v2213_v11  ;;  %v2488_v63 = vld [vmem:[%s6129_s3 + $0x38] sm:$0xff] }
 0x582   :  { %v5723_v36 = vmul.f32 0.0078125, %v2234_v50  ;;  %v2504_v50 = vld [vmem:[%s6129_s3 + $0xb8] sm:$0xff] }
 0x584   :  { %2908 = vmatmul.msk.f32.vlgmr.msrb.gmra.mxu2 %vm2241_vm10, %v5723_v36  ;;  %2910 = vmatmul.msk.f32.vlgmr.msrb.gmra.mxu3 %vm2241_vm10, %v5723_v36 }
 0x585   :  { %2513 = vmatpush.msrb.mxu2 %v2496_v5  ;;  %2533 = vmatpush.msrb.mxu3 %v2512_v2 }
 0x587   :  { %2514 = vmatpush.msrb.mxu2 %v2495_v1  ;;  %2534 = vmatpush.msrb.mxu3 %v2511_v4 }
 0x589   :  { %2515 = vmatpush.msrb.mxu2 %v2494_v12  ;;  %2535 = vmatpush.msrb.mxu3 %v2510_v23 }
 0x58b   :  { %2516 = vmatpush.msrb.mxu2 %v2493_v27  ;;  %2536 = vmatpush.msrb.mxu3 %v2509_v26  ;;  %v2560_v27 = vld [vmem:[%s6132_s9 + $0x38] sm:$0xff]  ;;  %v2557_v26 = vld [vmem:[%s6132_s9 + $0x20] sm:$0xff] }
 0x58d   :  { %2517 = vmatpush.msrb.mxu2 %v2492_v47  ;;  %2537 = vmatpush.msrb.mxu3 %v2508_v31  ;;  %v2556_v47 = vld [vmem:[%s6132_s9 + $0x18] sm:$0xff]  ;;  %v2555_v31 = vld [vmem:[%s6132_s9 + $0x10] sm:$0xff] }
 0x58f   :  { %2518 = vmatpush.msrb.mxu2 %v2491_v54  ;;  %2538 = vmatpush.msrb.mxu3 %v2507_v49  ;;  %v2554_v54 = vld [vmem:[%s6132_s9 + $0x8] sm:$0xff]  ;;  %v2553_v49 = vld [vmem:[%s6132_s9] sm:$0xff] }
 0x591   :  { %2519 = vmatpush.msrb.mxu2 %v2490_v6  ;;  %2539 = vmatpush.msrb.mxu3 %v2506_v41 }
 0x593   :  { %2520 = vmatpush.msrb.mxu2 %v2489_v20  ;;  %2540 = vmatpush.msrb.mxu3 %v2505_v46 }
 0x595   :  { %2521 = vmatpush.msrb.mxu2 %v2488_v63  ;;  %2541 = vmatpush.msrb.mxu3 %v2504_v50 }
 0x607   :  { %v2267_v37 = vpop.f32.mrf.mxu2  ;;  %v2287_v39 = vpop.f32.mrf.mxu3 }
 0x608   :  { %v2290_v13 = vperm.slane %v2267_v37, 0  ;;  %v2291_v16 = vperm.slane %v2287_v39, 0  ;;  %v2503_v37 = vld [vmem:[%s6129_s3 + $0xb0] sm:$0xff]  ;;  %v2486_v39 = vld [vmem:[%s6129_s3 + $0x28] sm:$0xff] }
 0x609   :  { %2542 = vmatpush.msrb.mxu3 %v2503_v37 }
 0x60a   :  { %v2292_v35 = vsub.f32 %v5680_v22, %v2290_v13  ;;  %v2293_v18 = vsub.f32 %v5684_v45, %v2291_v16  ;;  %v2502_v13 = vld [vmem:[%s6129_s3 + $0xa8] sm:$0xff]  ;;  %v2485_v16 = vld [vmem:[%s6129_s3 + $0x20] sm:$0xff] }
 0x60b   :  { %2543 = vmatpush.msrb.mxu3 %v2502_v13 }
 0x60c   :  { %v2294_v19 = vmul.f32 %v2292_v35, %v2292_v35  ;;  %v2295_v21 = vmul.f32 %v2293_v18, %v2293_v18  ;;  %v2501_v35 = vld [vmem:[%s6129_s3 + $0xa0] sm:$0xff]  ;;  %v2484_v18 = vld [vmem:[%s6129_s3 + $0x18] sm:$0xff] }
 0x60d   :  { %2544 = vmatpush.msrb.mxu3 %v2501_v35 }
 0x60e   :  { %v2296_v25 = vsel %vm1296_vm0, %v2294_v19, 0.0  ;;  %v2303_v29 = vsel %vm1296_vm0, %v2295_v21, 0.0  ;;  %v2500_v19 = vld [vmem:[%s6129_s3 + $0x98] sm:$0xff]  ;;  %v2483_v21 = vld [vmem:[%s6129_s3 + $0x10] sm:$0xff] }
 0x60f   :  { %v2297_v34 = vrot.slane %v2296_v25, 4  ;;  %v2304_v48 = vrot.slane %v2303_v29, 4  ;;  %2545 = vmatpush.msrb.mxu3 %v2500_v19  ;;  %v2783_v19 = vld [vmem:[%s6134_s4 + $0x1e8] sm:$0xff] }
 0x611   :  { %v2298_v51 = vadd.f32 %v2297_v34, %v2296_v25  ;;  %v2305_v57 = vadd.f32 %v2304_v48, %v2303_v29  ;;  %v2499_v25 = vld [vmem:[%s6129_s3 + $0x90] sm:$0xff]  ;;  %v2482_v29 = vld [vmem:[%s6129_s3 + $0x8] sm:$0xff]  ;;  %v2481_v48 = vld [vmem:[%s6129_s3] sm:$0xff] }
 0x612   :  { %2546 = vmatpush.msrb.mxu3 %v2499_v25  ;;  %v2498_v34 = vld [vmem:[%s6129_s3 + $0x88] sm:$0xff]  ;;  %v2785_v25 = vld [vmem:[%s6134_s4 + $0x1f8] sm:$0xff] }
 0x613   :  { %v2299_v59 = vrot.slane %v2298_v51, 2  ;;  %v2306_v30 = vrot.slane %v2305_v57, 2 }
 0x614   :  { %2547 = vmatpush.msrb.mxu3 %v2498_v34  ;;  %v2779_v34 = vld [vmem:[%s6134_s4 + $0x1c8] sm:$0xff] }
 0x615   :  { %v2300_v32 = vadd.f32 %v2299_v59, %v2298_v51  ;;  %v2307_v8 = vadd.f32 %v2306_v30, %v2305_v57  ;;  %v2497_v51 = vld [vmem:[%s6129_s3 + $0x80] sm:$0xff]  ;;  %v2568_v57 = vld [vmem:[%s6132_s9 + $0x78] sm:$0xff]  ;;  %v2567_v59 = vld [vmem:[%s6132_s9 + $0x70] sm:$0xff] }
 0x616   :  { %2548 = vmatpush.msrb.mxu3 %v2497_v51  ;;  %v2566_v30 = vld [vmem:[%s6132_s9 + $0x68] sm:$0xff]  ;;  %v2781_v51 = vld [vmem:[%s6134_s4 + $0x1d8] sm:$0xff] }
 0x617   :  { %v2301_v10 = vrot.slane %v2300_v32, 1  ;;  %v2308_v14 = vrot.slane %v2307_v8, 1 }
 0x619   :  { %v2302_v0 = vadd.f32 %v2301_v10, %v2300_v32  ;;  %v2309_v7 = vadd.f32 %v2308_v14, %v2307_v8  ;;  %v2565_v32 = vld [vmem:[%s6132_s9 + $0x60] sm:$0xff]  ;;  %v2564_v8 = vld [vmem:[%s6132_s9 + $0x58] sm:$0xff]  ;;  %v2563_v10 = vld [vmem:[%s6132_s9 + $0x50] sm:$0xff] }
 0x61a   :  { %v2562_v14 = vld [vmem:[%s6132_s9 + $0x48] sm:$0xff] }
 0x61b   :  { %2326 = vmatmul.f32.vlgmr.msra.gmra.mxu2 %v2302_v0  ;;  %2346 = vmatmul.f32.vlgmr.msra.gmra.mxu3 %v2309_v7  ;;  %v2561_v0 = vld [vmem:[%s6132_s9 + $0x40] sm:$0xff] }
 0x69e   :  { %v2327_v15 = vpop.f32.mrf.mxu2  ;;  %v2347_v28 = vpop.f32.mrf.mxu3 }
 0x69f   :  { %v2348_v3 = vadd.f32 %v2347_v28, %v2327_v15 }
 0x6a1   :  { %v2350_v42 = vmul.f32 0.0078125, %v2348_v3 }
 0x6a3   :  { %v2352_v44 = vadd.f32 1e-05, %v2350_v42 }
 0x6a5   :  { %2924 = vrsqrt.f32 %v2352_v44  ;;  %vm2359_vm12 = vweird.f32 %v2352_v44 }
 0x6ab   :  { %v2925_v33 = vpop.eup %2924 }
 0x6ac   :  { %v2354_v17 = vmul.f32 %v2925_v33, %v2352_v44  ;;  %vm2360_vm11 = vweird.f32 %v2925_v33 }
 0x6ad   :  { %vm2361_vm13 = vmor %vm2359_vm12, %vm2360_vm11 }
 0x6ae   :  { %v2355_v24 = vmul.f32 %v2925_v33, %v2354_v17 }
 0x6b0   :  { %v2356_v52 = vmul.f32 0.5, %v2355_v24 }
 0x6b2   :  { %v2357_v53 = vsub.f32 1.5, %v2356_v52 }
 0x6b4   :  { %v2358_v56 = vmul.f32 %v2925_v33, %v2357_v53 }
 0x6b6   :  { %v2362_v58 = vsel %vm2361_vm13, %v2925_v33, %v2358_v56  ;;  %v2569_v33 = vld [vmem:[%s6133_s10] sm:$0xff] }
 0x6b7   :  { %v2363_v60 = vmul.f32 %v2362_v58, %v2351_v55  ;;  %2712 = vmatpush.msra.mxu3 %v2569_v33 }
 0x6b9   :  { %2912 = vmatmul.msk.f32.vlgmr.msra.gmra.mxu0 %vm2241_vm10, %v2363_v60  ;;  %2914 = vmatmul.msk.f32.vlgmr.msra.gmra.mxu1 %vm2241_vm10, %v2363_v60  ;;  %v2365_v61 = vmul.f32 %v2363_v60, %v5723_v36  ;;  %v2487_v36 = vld [vmem:[%s6129_s3 + $0x30] sm:$0xff] }
 0x6ba   :  { %2522 = vmatpush.msrb.mxu2 %v2487_v36  ;;  %2577 = vmatpush.msra.mxu0 %v2568_v57 }
 0x6bb   :  { %v2366_v11 = vsub.f32 %v2364_v62, %v2365_v61  ;;  %2617 = vmatpush.msra.mxu1 %v2569_v33 }
 0x6bc   :  { %2523 = vmatpush.msrb.mxu2 %v2486_v39  ;;  %2578 = vmatpush.msra.mxu0 %v2567_v59 }
 0x6be   :  { %2524 = vmatpush.msrb.mxu2 %v2485_v16  ;;  %2579 = vmatpush.msra.mxu0 %v2566_v30 }
 0x6c0   :  { %2525 = vmatpush.msrb.mxu2 %v2484_v18  ;;  %2580 = vmatpush.msra.mxu0 %v2565_v32  ;;  %v2782_v18 = vld [vmem:[%s6134_s4 + $0x1e0] sm:$0xff] }
 0x6c1   :  { %2916 = vmatmul.msk.f32.vlgmr.msrb.gmra.mxu0 %vm2241_vm10, %v2366_v11  ;;  %2918 = vmatmul.msk.f32.vlgmr.msrb.gmra.mxu1 %vm2241_vm10, %v2366_v11 }
 0x6c2   :  { %2526 = vmatpush.msrb.mxu2 %v2483_v21  ;;  %2581 = vmatpush.msra.mxu0 %v2564_v8  ;;  %v2784_v21 = vld [vmem:[%s6134_s4 + $0x1f0] sm:$0xff] }
 0x6c3   :  { %2632 = vmatpush.msrb.mxu1 %v2568_v57  ;;  %v2774_v57 = vld [vmem:[%s6134_s4 + $0x1a0] sm:$0xff] }
 0x6c4   :  { %2527 = vmatpush.msrb.mxu2 %v2482_v29  ;;  %2582 = vmatpush.msra.mxu0 %v2563_v10  ;;  %v2778_v29 = vld [vmem:[%s6134_s4 + $0x1c0] sm:$0xff] }
 0x6c5   :  { %2633 = vmatpush.msrb.mxu1 %v2567_v59 }
 0x6c6   :  { %2528 = vmatpush.msrb.mxu2 %v2481_v48  ;;  %2583 = vmatpush.msra.mxu0 %v2562_v14  ;;  %v2780_v48 = vld [vmem:[%s6134_s4 + $0x1d0] sm:$0xff] }
 0x6c7   :  { %2634 = vmatpush.msrb.mxu1 %v2566_v30  ;;  %v2775_v30 = vld [vmem:[%s6134_s4 + $0x1a8] sm:$0xff] }
 0x6c8   :  { %2584 = vmatpush.msra.mxu0 %v2561_v0  ;;  %2687 = vmatpush.msra.mxu2 %v2569_v33  ;;  %v2753_v33 = vld [vmem:[%s6134_s4 + $0xf8] sm:$0xff] }
 0x6c9   :  { %2635 = vmatpush.msrb.mxu1 %v2565_v32  ;;  %v2776_v32 = vld [vmem:[%s6134_s4 + $0x1b0] sm:$0xff] }
 0x6ca   :  { %2585 = vmatpush.msra.mxu0 %v2560_v27 }
 0x6cb   :  { %2636 = vmatpush.msrb.mxu1 %v2564_v8  ;;  %v2777_v8 = vld [vmem:[%s6134_s4 + $0x1b8] sm:$0xff] }
 0x6cd   :  { %2637 = vmatpush.msrb.mxu1 %v2563_v10 }
 0x6cf   :  { %2638 = vmatpush.msrb.mxu1 %v2562_v14  ;;  %v2770_v14 = vld [vmem:[%s6134_s4 + $0x180] sm:$0xff] }
 0x6d1   :  { %2639 = vmatpush.msrb.mxu1 %v2561_v0  ;;  %v2771_v0 = vld [vmem:[%s6134_s4 + $0x188] sm:$0xff] }
 0x6d3   :  { %2640 = vmatpush.msrb.mxu1 %v2560_v27  ;;  %v2755_v27 = vld [vmem:[%s6134_s4 + $0x108] sm:$0xff] }
 0x736   :  { %v2394_v7 = vpop.f32.mrf.mxu0  ;;  %v2414_v9 = vpop.f32.mrf.mxu1 }
 0x737   :  { %v2417_v38 = vperm.slane %v2394_v7, 0  ;;  %v2418_v15 = vperm.slane %v2414_v9, 0  ;;  %v2772_v7 = vld [vmem:[%s6134_s4 + $0x190] sm:$0xff]  ;;  %v2773_v9 = vld [vmem:[%s6134_s4 + $0x198] sm:$0xff] }
 0x739   :  { %v2419_v43 = vmul.f32 %v2417_v38, %v5680_v22  ;;  %v2420_v40 = vmul.f32 %v2418_v15, %v5684_v45  ;;  %v2559_v22 = vld [vmem:[%s6132_s9 + $0x30] sm:$0xff]  ;;  %v2558_v45 = vld [vmem:[%s6132_s9 + $0x28] sm:$0xff]  ;;  %v2766_v15 = vld [vmem:[%s6134_s4 + $0x160] sm:$0xff] }
 0x73a   :  { %2586 = vmatpush.msra.mxu0 %v2559_v22  ;;  %2641 = vmatpush.msrb.mxu1 %v2559_v22  ;;  %v2756_v22 = vld [vmem:[%s6134_s4 + $0x110] sm:$0xff] }
 0x73c   :  { %2587 = vmatpush.msra.mxu0 %v2558_v45  ;;  %2642 = vmatpush.msrb.mxu1 %v2558_v45  ;;  %v2757_v45 = vld [vmem:[%s6134_s4 + $0x118] sm:$0xff] }
 0x73e   :  { %v2448_v28 = vpop.f32.mrf.mxu0  ;;  %v2468_v3 = vpop.f32.mrf.mxu1  ;;  %2588 = vmatpush.msra.mxu0 %v2557_v26  ;;  %2643 = vmatpush.msrb.mxu1 %v2557_v26 }
 0x73f   :  { %v2471_v42 = vperm.slane %v2448_v28, 0  ;;  %v2472_v5 = vperm.slane %v2468_v3, 0  ;;  %v2767_v28 = vld [vmem:[%s6134_s4 + $0x168] sm:$0xff]  ;;  %v2768_v3 = vld [vmem:[%s6134_s4 + $0x170] sm:$0xff] }
 0x740   :  { %2589 = vmatpush.msra.mxu0 %v2556_v47  ;;  %2644 = vmatpush.msrb.mxu1 %v2556_v47  ;;  %v2750_v47 = vld [vmem:[%s6134_s4 + $0xe0] sm:$0xff] }
 0x741   :  { %v2473_v2 = vadd.f32 %v2471_v42, %v2419_v43  ;;  %v2474_v1 = vadd.f32 %v2472_v5, %v2420_v40  ;;  %v2769_v43 = vld [vmem:[%s6134_s4 + $0x178] sm:$0xff]  ;;  %v2762_v40 = vld [vmem:[%s6134_s4 + $0x140] sm:$0xff]  ;;  %v2763_v42 = vld [vmem:[%s6134_s4 + $0x148] sm:$0xff] }
 0x742   :  { %2590 = vmatpush.msra.mxu0 %v2555_v31  ;;  %2645 = vmatpush.msrb.mxu1 %v2555_v31  ;;  %v2764_v5 = vld [vmem:[%s6134_s4 + $0x150] sm:$0xff]  ;;  %v2751_v31 = vld [vmem:[%s6134_s4 + $0xe8] sm:$0xff] }
 0x743   :  { %v2477_v4 = vmul.f32 0.2, %v2473_v2  ;;  %v2478_v44 = vmul.f32 0.2, %v2474_v1  ;;  %vm2475_vm14 = vcmp.ge.f32.partialorder %v2473_v2, 0.0  ;;  %vm2476_vm15 = vcmp.ge.f32.partialorder %v2474_v1, 0.0 }
 0x744   :  { %2591 = vmatpush.msra.mxu0 %v2554_v54  ;;  %2646 = vmatpush.msrb.mxu1 %v2554_v54 }
 0x745   :  { %v2479_v12 = vsel %vm2475_vm14, %v2473_v2, %v2477_v4  ;;  %v2480_v23 = vsel %vm2476_vm15, %v2474_v1, %v2478_v44  ;;  %v2765_v2 = vld [vmem:[%s6134_s4 + $0x158] sm:$0xff]  ;;  %v2758_v1 = vld [vmem:[%s6134_s4 + $0x120] sm:$0xff]  ;;  %v2759_v4 = vld [vmem:[%s6134_s4 + $0x128] sm:$0xff] }
 0x746   :  { %2529 = vmatmul.f32.vlgmr.msrb.gmra.mxu2 %v2479_v12  ;;  %2549 = vmatmul.f32.vlgmr.msrb.gmra.mxu3 %v2480_v23  ;;  %v2760_v44 = vld [vmem:[%s6134_s4 + $0x130] sm:$0xff]  ;;  %v2761_v12 = vld [vmem:[%s6134_s4 + $0x138] sm:$0xff]  ;;  %v2754_v23 = vld [vmem:[%s6134_s4 + $0x100] sm:$0xff] }
 0x747   :  { %2592 = vmatpush.msra.mxu0 %v2553_v49  ;;  %2647 = vmatpush.msrb.mxu1 %v2553_v49  ;;  %v2752_v49 = vld [vmem:[%s6134_s4 + $0xf0] sm:$0xff] }
 0x748   :  { %2806 = vmatpush.msrb.mxu2 %v2783_v19  ;;  %2826 = vmatpush.msrb.mxu3 %v2784_v21  ;;  %v2735_v19 = vld [vmem:[%s6134_s4 + $0x68] sm:$0xff]  ;;  %v2736_v21 = vld [vmem:[%s6134_s4 + $0x70] sm:$0xff] }
 0x749   :  { %2786 = vmatpush.msrb.mxu0 %v2782_v18  ;;  %v2734_v18 = vld [vmem:[%s6134_s4 + $0x60] sm:$0xff] }
 0x74a   :  { %2807 = vmatpush.msrb.mxu2 %v2779_v34  ;;  %2827 = vmatpush.msrb.mxu3 %v2780_v48  ;;  %v2731_v34 = vld [vmem:[%s6134_s4 + $0x48] sm:$0xff]  ;;  %v2732_v48 = vld [vmem:[%s6134_s4 + $0x50] sm:$0xff] }
 0x74b   :  { %2787 = vmatpush.msrb.mxu0 %v2778_v29  ;;  %v2730_v29 = vld [vmem:[%s6134_s4 + $0x40] sm:$0xff] }
 0x74c   :  { %2808 = vmatpush.msrb.mxu2 %v2775_v30  ;;  %2828 = vmatpush.msrb.mxu3 %v2776_v32  ;;  %v2728_v30 = vld [vmem:[%s6134_s4 + $0x30] sm:$0xff]  ;;  %v2729_v32 = vld [vmem:[%s6134_s4 + $0x38] sm:$0xff] }
 0x74d   :  { %2788 = vmatpush.msrb.mxu0 %v2774_v57  ;;  %v2726_v57 = vld [vmem:[%s6134_s4 + $0x20] sm:$0xff] }
 0x74e   :  { %2809 = vmatpush.msrb.mxu2 %v2771_v0  ;;  %2829 = vmatpush.msrb.mxu3 %v2772_v7  ;;  %v2725_v0 = vld [vmem:[%s6134_s4 + $0x18] sm:$0xff] }
 0x74f   :  { %2789 = vmatpush.msrb.mxu0 %v2770_v14  ;;  %v2724_v14 = vld [vmem:[%s6134_s4 + $0x10] sm:$0xff] }
 0x750   :  { %2810 = vmatpush.msrb.mxu2 %v2767_v28  ;;  %2830 = vmatpush.msrb.mxu3 %v2768_v3 }
 0x751   :  { %2790 = vmatpush.msrb.mxu0 %v2766_v15 }
 0x752   :  { %2811 = vmatpush.msrb.mxu2 %v2763_v42  ;;  %2831 = vmatpush.msrb.mxu3 %v2764_v5 }
 0x753   :  { %2791 = vmatpush.msrb.mxu0 %v2762_v40 }
 0x754   :  { %2812 = vmatpush.msrb.mxu2 %v2759_v4  ;;  %2832 = vmatpush.msrb.mxu3 %v2760_v44 }
 0x755   :  { %2792 = vmatpush.msrb.mxu0 %v2758_v1 }
 0x756   :  { %2813 = vmatpush.msrb.mxu2 %v2755_v27  ;;  %2833 = vmatpush.msrb.mxu3 %v2756_v22 }
 0x757   :  { %2793 = vmatpush.msrb.mxu0 %v2754_v23 }
 0x758   :  { %2814 = vmatpush.msrb.mxu2 %v2751_v31  ;;  %2834 = vmatpush.msrb.mxu3 %v2752_v49 }
 0x759   :  { %2794 = vmatpush.msrb.mxu0 %v2750_v47 }
 0x7c9   :  { %v2530_v6 = vpop.f32.mrf.mxu2  ;;  %v2550_v41 = vpop.f32.mrf.mxu3 }
 0x7ca   :  { %v5898_v17 = vadd.f32 %v2550_v41, %v2530_v6  ;;  %v2746_v6 = vld [vmem:[%s6134_s4 + $0xc0] sm:$0xff]  ;;  %v2747_v41 = vld [vmem:[%s6134_s4 + $0xc8] sm:$0xff] }
 0x7cb   :  { %2795 = vmatpush.msrb.mxu0 %v2746_v6  ;;  %2815 = vmatpush.msrb.mxu2 %v2747_v41 }
 0x7cc   :  { %v2570_v20 = vsel %vm1296_vm0, %v5898_v17, 0.0 }
 0x7cd   :  { %v2571_v46 = vrot.slane %v2570_v20, 4 }
 0x7cf   :  { %v2572_v24 = vadd.f32 %v2571_v46, %v2570_v20  ;;  %v2748_v46 = vld [vmem:[%s6134_s4 + $0xd0] sm:$0xff] }
 0x7d0   :  { %2835 = vmatpush.msrb.mxu3 %v2748_v46 }
 0x7d1   :  { %v2573_v52 = vrot.slane %v2572_v24, 2 }
 0x7d3   :  { %v2574_v53 = vadd.f32 %v2573_v52, %v2572_v24  ;;  %v2749_v24 = vld [vmem:[%s6134_s4 + $0xd8] sm:$0xff] }
 0x7d5   :  { %v2575_v55 = vrot.slane %v2574_v53, 1 }
 0x7d7   :  { %v2576_v56 = vadd.f32 %v2575_v55, %v2574_v53  ;;  %v2653_v55 = vld [vmem:[%s6135_s15] sm:$0x1] }
 0x7d9   :  { %2593 = vmatmul.f32.vlgmr.msra.gmra.mxu0 %v2576_v56 }
 0x856   :  { %v2594_v58 = vpop.f32.mrf.mxu0 }
 0x857   :  { %v5902_v60 = vmul.f32 0.03125, %v2594_v58 }
 0x859   :  { %2919 = vmatmul.msk.f32.vlgmr.msra.gmra.mxu1 %vm2598_vm1, %v5902_v60 }
 0x85a   :  { %2846 = vmatpush.msra.mxu1 %v2785_v25  ;;  %v2737_v25 = vld [vmem:[%s6134_s4 + $0x78] sm:$0xff] }
 0x85c   :  { %2847 = vmatpush.msra.mxu1 %v2781_v51  ;;  %v2733_v51 = vld [vmem:[%s6134_s4 + $0x58] sm:$0xff] }
 0x85e   :  { %2848 = vmatpush.msra.mxu1 %v2777_v8  ;;  %v2722_v8 = vld [vmem:[%s6134_s4] sm:$0xff] }
 0x860   :  { %2849 = vmatpush.msra.mxu1 %v2773_v9 }
 0x862   :  { %2850 = vmatpush.msra.mxu1 %v2769_v43 }
 0x864   :  { %2851 = vmatpush.msra.mxu1 %v2765_v2 }
 0x866   :  { %2852 = vmatpush.msra.mxu1 %v2761_v12 }
 0x868   :  { %2853 = vmatpush.msra.mxu1 %v2757_v45 }
 0x86a   :  { %2854 = vmatpush.msra.mxu1 %v2753_v33 }
 0x86c   :  { %2855 = vmatpush.msra.mxu1 %v2749_v24 }
 0x8d6   :  { %v2619_v61 = vpop.f32.mrf.mxu1 }
 0x8d7   :  { %v2622_v62 = vperm.slane %v2619_v61, 0 }
 0x8d9   :  { %v2623_v11 = vsub.f32 %v5898_v17, %v2622_v62  ;;  %v2666_v62 = vld [vmem:[%s6136_s16] sm:$0x1] }
 0x8db   :  { %v2624_v63 = vmul.f32 %v2623_v11, %v2623_v11 }
 0x8dd   :  { %v2625_v50 = vsel %vm1296_vm0, %v2624_v63, 0.0 }
 0x8de   :  { %v2626_v36 = vrot.slane %v2625_v50, 4 }
 0x8e0   :  { %v2627_v37 = vadd.f32 %v2626_v36, %v2625_v50  ;;  %v2742_v50 = vld [vmem:[%s6134_s4 + $0xa0] sm:$0xff]  ;;  %v2743_v36 = vld [vmem:[%s6134_s4 + $0xa8] sm:$0xff] }
 0x8e1   :  { %2796 = vmatpush.msrb.mxu0 %v2742_v50  ;;  %2816 = vmatpush.msrb.mxu2 %v2743_v36 }
 0x8e2   :  { %v2628_v39 = vrot.slane %v2627_v37, 2 }
 0x8e4   :  { %v2629_v13 = vadd.f32 %v2628_v39, %v2627_v37  ;;  %v2744_v37 = vld [vmem:[%s6134_s4 + $0xb0] sm:$0xff]  ;;  %v2738_v39 = vld [vmem:[%s6134_s4 + $0x80] sm:$0xff] }
 0x8e5   :  { %2836 = vmatpush.msrb.mxu3 %v2744_v37  ;;  %2797 = vmatpush.msrb.mxu0 %v2738_v39 }
 0x8e6   :  { %v2630_v16 = vrot.slane %v2629_v13, 1 }
 0x8e7   :  { %2798 = vmatpush.msrb.mxu0 %v2734_v18 }
 0x8e8   :  { %v2631_v35 = vadd.f32 %v2630_v16, %v2629_v13  ;;  %v2739_v13 = vld [vmem:[%s6134_s4 + $0x88] sm:$0xff]  ;;  %v2740_v16 = vld [vmem:[%s6134_s4 + $0x90] sm:$0xff] }
 0x8e9   :  { %2817 = vmatpush.msrb.mxu2 %v2739_v13  ;;  %2837 = vmatpush.msrb.mxu3 %v2740_v16 }
 0x8ea   :  { %2648 = vmatmul.f32.vlgmr.msrb.gmra.mxu1 %v2631_v35  ;;  %v2741_v35 = vld [vmem:[%s6134_s4 + $0x98] sm:$0xff]  ;;  %2799 = vmatpush.msrb.mxu0 %v2730_v29 }
 0x8eb   :  { %2818 = vmatpush.msrb.mxu2 %v2735_v19  ;;  %2838 = vmatpush.msrb.mxu3 %v2736_v21 }
 0x8ec   :  { %2800 = vmatpush.msrb.mxu0 %v2726_v57 }
 0x8ed   :  { %2819 = vmatpush.msrb.mxu2 %v2731_v34  ;;  %2839 = vmatpush.msrb.mxu3 %v2732_v48 }
 0x8ee   :  { %2801 = vmatpush.msrb.mxu0 %v2722_v8 }
 0x8ef   :  { %2840 = vmatpush.msrb.mxu3 %v2728_v30 }
 0x8f1   :  { %2841 = vmatpush.msrb.mxu3 %v2724_v14 }
 0x967   :  { %v2649_v59 = vpop.f32.mrf.mxu1 }
 0x968   :  { %v2652_v10 = vmul.f32 0.03125, %v2649_v59  ;;  %v2727_v59 = vld [vmem:[%s6134_s4 + $0x28] sm:$0xff] }
 0x969   :  { %2820 = vmatpush.msrb.mxu2 %v2727_v59 }
 0x96a   :  { %v5956_v38 = vadd.f32 1e-05, %v2652_v10  ;;  %v2723_v10 = vld [vmem:[%s6134_s4 + $0x8] sm:$0xff] }
 0x96b   :  { %2821 = vmatpush.msrb.mxu2 %v2723_v10 }
 0x96c   :  { %2926 = vrsqrt.f32 %v5956_v38  ;;  %vm2661_vm3 = vweird.f32 %v5956_v38 }
 0x972   :  { %v2927_v26 = vpop.eup %2926 }
 0x973   :  { %v2656_v54 = vmul.f32 %v2927_v26, %v5956_v38  ;;  %vm2662_vm2 = vweird.f32 %v2927_v26 }
 0x974   :  { %vm2663_vm4 = vmor %vm2661_vm3, %vm2662_vm2 }
 0x975   :  { %v2657_v20 = vmul.f32 %v2927_v26, %v2656_v54 }
 0x977   :  { %v2658_v52 = vmul.f32 0.5, %v2657_v20 }
 0x979   :  { %v2659_v53 = vsub.f32 1.5, %v2658_v52 }
 0x97b   :  { %v2660_v56 = vmul.f32 %v2927_v26, %v2659_v53 }
 0x97d   :  { %v2664_v58 = vsel %vm2663_vm4, %v2927_v26, %v2660_v56 }
 0x97e   :  { %v2665_v61 = vmul.f32 %v2664_v58, %v2653_v55 }
 0x980   :  { %v2667_v11 = vmul.f32 %v2665_v61, %v5902_v60  ;;  %2920 = vmatmul.msk.f32.vlgmr.msra.gmra.mxu2 %vm2598_vm1, %v2665_v61  ;;  %v2745_v60 = vld [vmem:[%s6134_s4 + $0xb8] sm:$0xff] }
 0x981   :  { %2856 = vmatpush.msra.mxu1 %v2745_v60 }
 0x982   :  { %v2668_v63 = vsub.f32 %v2666_v62, %v2667_v11 }
 0x983   :  { %2857 = vmatpush.msra.mxu1 %v2741_v35 }
 0x984   :  { %2921 = vmatmul.msk.f32.vlgmr.msra.gmra.mxu3 %vm2598_vm1, %v2668_v63 }
 0x985   :  { %2858 = vmatpush.msra.mxu1 %v2737_v25 }
 0x987   :  { %2859 = vmatpush.msra.mxu1 %v2733_v51 }
 0x989   :  { %2860 = vmatpush.msra.mxu1 %v2729_v32 }
 0x98b   :  { %2861 = vmatpush.msra.mxu1 %v2725_v0 }
 0xa03   :  { %v2689_v7 = vpop.f32.mrf.mxu2 }
 0xa04   :  { %v2692_v9 = vperm.slane %v2689_v7, 0 }
 0xa06   :  { %v2693_v15 = vmul.f32 %v2692_v9, %v5898_v17 }
 0xa07   :  { %v2714_v38 = vpop.f32.mrf.mxu3 }
 0xa08   :  { %v2717_v28 = vperm.slane %v2714_v38, 0 }
 0xa0a   :  { %v2718_v3 = vadd.f32 %v2717_v28, %v2693_v15 }
 0xa0c   :  { %v2720_v43 = vmul.f32 0.2, %v2718_v3  ;;  %vm2719_vm5 = vcmp.ge.f32.partialorder %v2718_v3, 0.0 }
 0xa0e   :  { %v2721_v40 = vsel %vm2719_vm5, %v2718_v3, %v2720_v43 }
 0xa0f   :  { %2802 = vmatmul.f32.vlgmr.msrb.gmra.mxu0 %v2721_v40  ;;  %2822 = vmatmul.f32.vlgmr.msrb.gmra.mxu2 %v2721_v40 }
 0xa10   :  { %2842 = vmatmul.f32.vlgmr.msrb.gmra.mxu3 %v2721_v40  ;;  %2862 = vmatmul.f32.vlgmr.msra.gmra.mxu1 %v2721_v40 }
 0xa8c   :  { %v2803_v4 = vpop.f32.mrf.mxu0 }
 0xa8d   :  { %v2863_v42 = vpop.f32.mrf.mxu1 }
 0xa8e   :  { %v2872_v44 = vrot.slane %v2863_v42, 2 }
 0xa92   :  { %v2823_v5 = vpop.f32.mrf.mxu2 }
 0xa93   :  { %v2870_v2 = vrot.slane %v2823_v5, 6  ;;  %v2843_v1 = vpop.f32.mrf.mxu3 }
 0xa94   :  { %v2871_v12 = vrot.slane %v2843_v1, 4 }
 0xa95   :  { %v2873_v23 = vsel %vm1296_vm0, %v2803_v4, %v2870_v2 }
 0xa96   :  { %v2875_v17 = vsel %vm2874_vm6, %v2871_v12, %v2872_v44 }
 0xa97   :  { %v2876_v27 = vsel %vm2245_vm9, %v2873_v23, %v2875_v17 }
 0xa98   :  { %2878 = vst [vmem:[%s6137_s17] sm:$0xff] %v2876_v27 }

</bundles_post_ra>
